<compile_context>
chip_gen: v6e
topology: v6e:2x2x1
jax: 0.10.0
libtpu: 0.0.40
codegen_flags: <defaults>
</compile_context>

<pallas_src>
import numpy as np
import jax
import jax.numpy as jnp
from jax.experimental import pallas as pl
from jax.experimental.pallas import tpu as pltpu

# ---------------- small, deterministic hyper-parameters ----------------
BATCH = 2
EMBED_DIM = 128          # embed_dim (768 in the original)
VOCAB_DIM = 256          # hyper_parameters['vocab_dim']
FEATURES_DIM = 128       # features_dim (2054 in the original)
CLIP_DIM = 128           # hyper_parameters['clip_dim']
FEATURE_NUM = 4          # hyper_parameters['feature_num']
CLIP_NUM = 1
MAX_LEN = 11             # hyper_parameters['max_len'] (seq_len)
LAYER_NUM = 2            # hyper_parameters['layer_num']
N_HEAD = 4
HEAD_DIM = EMBED_DIM // N_HEAD
TOTAL_T = MAX_LEN + FEATURE_NUM + CLIP_NUM   # 16 (per-example sequence length)
PREFIX = CLIP_NUM + FEATURE_NUM              # 5
IMG_C, IMG_H, IMG_W = 3, 16, 16
IMG_FLAT = IMG_C * IMG_H * IMG_W             # 768
LN_EPS = 1e-5

# Row layout of the sublane-stacked activation slab (type-major ordering):
#   rows [0, B)                         clip embedding, one row per example
#   rows [B, B*(1+FEATURE_NUM))         image-feature embeddings
#   rows [B*(1+FEATURE_NUM), B*T)       word embeddings (MAX_LEN per example)
TOTAL_ROWS = BATCH * TOTAL_T                 # 32
WORD_START = BATCH * (CLIP_NUM + FEATURE_NUM)  # 10


def _row_layout():
    """Per-row (batch, position) ids and the additive attention bias."""
    batch_id = np.concatenate([
        np.arange(BATCH),
        np.repeat(np.arange(BATCH), FEATURE_NUM),
        np.repeat(np.arange(BATCH), MAX_LEN),
    ]).astype(np.int32)
    pos_id = np.concatenate([
        np.zeros(BATCH, dtype=np.int64),
        np.tile(np.arange(CLIP_NUM, CLIP_NUM + FEATURE_NUM), BATCH),
        np.tile(np.arange(PREFIX, TOTAL_T), BATCH),
    ]).astype(np.int32)
    same_batch = batch_id[:, None] == batch_id[None, :]
    causal = pos_id[None, :] <= pos_id[:, None]
    attn_bias = np.where(same_batch & causal, 0.0, -1e9).astype(np.float32)
    return pos_id, attn_bias


# ---------------------------- fused Pallas kernel ----------------------------
def _fused_forward_kernel(
    # data
    tgt_ref,      # (BT, 1) int32   (-1 on prefix rows)
    img_ref,      # (B, IMG_FLAT) f32
    feat_ref,     # (B*F, FEATURES_DIM) f32
    wemb_ref,     # (B*L, D) f32
    pos_ref,      # (BT, D) f32 (wpe gathered per row)
    bias_ref,     # (BT, BT) f32 additive block-diag causal mask
    # packed weights
    embw_ref,     # (IMG_FLAT + CLIP_DIM + FEATURES_DIM, D) bf16
    miscv_ref,    # (5, D) f32  [clip_enc_b, clip_emb_b, img2emb_b, lnf_g, lnf_b]
    qkvw_ref,     # (LAYER*3*H, D, Dh) bf16  (Q pre-scaled by 1/sqrt(Dh))
    qkvb_ref,     # (LAYER*3*H, Dh) f32      (Q bias pre-scaled)
    projw_ref,    # (LAYER*H, Dh, D) bf16
    fc1w_ref,     # (LAYER, D, 4D) bf16
    fc1b_ref,     # (LAYER, 1, 4D) f32
    fc2w_ref,     # (LAYER, 4D, D) bf16
    lvec_ref,     # (LAYER*6, D) f32 [ln1_g, ln1_b, ln2_g, ln2_b, proj_b, fc2_b]
    outw_ref,     # (D, V) bf16
    outb_ref,     # (1, V) f32
    # outputs
    logits_ref,   # (BT, V) f32
    loss_ref,     # (1, 128) f32 (cross-entropy sum over word rows)
    # scratch
    h0_ref,       # (BT, D) f32
):
    def mm(x, w):
        # bf16 MXU operands, f32 accumulation; elementwise math stays f32.
        return jnp.dot(x.astype(jnp.bfloat16), w.astype(jnp.bfloat16),
                       preferred_element_type=jnp.float32)

    def ln(x, g, beta):
        mu = jnp.mean(x, axis=-1, keepdims=True)
        var = jnp.mean(jnp.square(x - mu), axis=-1, keepdims=True)
        return (x - mu) * jax.lax.rsqrt(var + LN_EPS) * g + beta

    # ---- parameter views (static, zero-cost slices) -------------------------
    clip_enc_w = embw_ref[0:IMG_FLAT, :]
    clip_emb_w = embw_ref[IMG_FLAT:IMG_FLAT + CLIP_DIM, :]
    img2emb_w = embw_ref[IMG_FLAT + CLIP_DIM:, :]
    clip_enc_b = miscv_ref[0:1, :]
    clip_emb_b = miscv_ref[1:2, :]
    img2emb_b = miscv_ref[2:3, :]
    lnf_g = miscv_ref[3:4, :]
    lnf_b = miscv_ref[4:5, :]

    # ---- embeddings ----------------------------------------------------------
    clip_feat = mm(img_ref[...], clip_enc_w) + clip_enc_b      # (B, CLIP_DIM)
    clip_emb = mm(clip_feat, clip_emb_w) + clip_emb_b          # (B, D)
    img_emb = mm(feat_ref[...], img2emb_w) + img2emb_b         # (B*F, D)

    # assemble h0 with contiguous row-slice stores (no value-level concat)
    h0_ref[0:BATCH, :] = clip_emb
    h0_ref[BATCH:WORD_START, :] = img_emb
    h0_ref[WORD_START:, :] = wemb_ref[...]
    h0 = h0_ref[...] + pos_ref[...]                            # (BT, D)
    h = h0
    # embed dropout = identity (eval mode)

    rows = jax.lax.broadcasted_iota(jnp.int32, (TOTAL_ROWS, EMBED_DIM), 0)
    prefix_mask = rows < WORD_START
    attn_bias = bias_ref[...]                                  # (BT, BT)

    for l in range(LAYER_NUM):
        # ---------- attention sub-block ----------
        a = ln(h, lvec_ref[l * 6 + 0:l * 6 + 1, :], lvec_ref[l * 6 + 1:l * 6 + 2, :])
        attn_out = jnp.zeros((TOTAL_ROWS, EMBED_DIM), jnp.float32)
        for hd in range(N_HEAD):
            rq = (l * 3 + 0) * N_HEAD + hd
            rk = (l * 3 + 1) * N_HEAD + hd
            rv = (l * 3 + 2) * N_HEAD + hd
            qh = mm(a, qkvw_ref[rq]) + qkvb_ref[rq:rq + 1, :]  # (BT, Dh), scaled
            kh = mm(a, qkvw_ref[rk]) + qkvb_ref[rk:rk + 1, :]
            vh = mm(a, qkvw_ref[rv]) + qkvb_ref[rv:rv + 1, :]
            s = jax.lax.dot_general(
                qh.astype(jnp.bfloat16), kh.astype(jnp.bfloat16),
                (((1,), (1,)), ((), ())),
                preferred_element_type=jnp.float32)            # (BT, BT)
            s = s + attn_bias
            s = s - jnp.max(s, axis=-1, keepdims=True)
            p = jnp.exp(s)
            p = p / jnp.sum(p, axis=-1, keepdims=True)
            # head output accumulated straight through the matching c_proj slab
            attn_out = attn_out + mm(mm(p, vh), projw_ref[l * N_HEAD + hd])
        h = h + attn_out + lvec_ref[l * 6 + 4:l * 6 + 5, :]    # + c_proj bias

        # ---------- MLP sub-block (c_fc -> gelu_new -> c_proj) ----------
        m = ln(h, lvec_ref[l * 6 + 2:l * 6 + 3, :], lvec_ref[l * 6 + 3:l * 6 + 4, :])
        hh = mm(m, fc1w_ref[l]) + fc1b_ref[l]                  # (BT, 4D)
        hh = 0.5 * hh * (1.0 + jnp.tanh(
            0.7978845608028654 * (hh + 0.044715 * hh * hh * hh)))
        h = h + mm(hh, fc2w_ref[l]) + lvec_ref[l * 6 + 5:l * 6 + 6, :]

        # ---------- prefix overwrite (clip + image rows reset per layer) ------
        h = jnp.where(prefix_mask, h0, h)

    # ---- final LayerNorm + fc on the full aligned slab -----------------------
    x = ln(h, lnf_g, lnf_b)
    logits = mm(x, outw_ref[...]) + outb_ref[...]              # (BT, V)
    logits_ref[...] = logits

    # ---- cross-entropy sum over word rows (vectorized one-hot gather) --------
    tgt = tgt_ref[...]                                         # (BT, 1)
    colv = jax.lax.broadcasted_iota(jnp.int32, (TOTAL_ROWS, VOCAB_DIM), 1)
    tgt_logit = jnp.sum(jnp.where(colv == tgt, logits, 0.0),
                        axis=-1, keepdims=True)                # (BT, 1)
    mx = jnp.max(logits, axis=-1, keepdims=True)
    lse = mx + jnp.log(jnp.sum(jnp.exp(logits - mx), axis=-1, keepdims=True))
    per_row = jnp.where(tgt >= 0, lse - tgt_logit, 0.0)        # prefix rows -> 0
    loss_ref[...] = jnp.full((1, 128), jnp.sum(per_row), jnp.float32)


# ---------------------------- parameter init ----------------------------
def _xavier(key, shape):
    fan_in, fan_out = shape[-2], shape[-1]
    lim = jnp.sqrt(6.0 / (fan_in + fan_out))
    return jax.random.uniform(key, shape, jnp.float32, -lim, lim)


def _normal(key, shape, std=0.02):
    return std * jax.random.normal(key, shape, jnp.float32)


def init_params(key):
    ks = iter(jax.random.split(key, 12))
    return {
        # CLIP encode_image stand-in (flatten image -> clip_dim)
        "clip_enc_w": _normal(next(ks), (IMG_FLAT, CLIP_DIM)),
        "clip_enc_b": jnp.zeros((1, CLIP_DIM), jnp.float32),
        # __clip_embed__ / __img2embed__ (xavier per __init_weights__)
        "clip_embed_w": _xavier(next(ks), (CLIP_DIM, EMBED_DIM)),
        "clip_embed_b": jnp.zeros((1, EMBED_DIM), jnp.float32),
        "img2embed_w": _xavier(next(ks), (FEATURES_DIM, EMBED_DIM)),
        "img2embed_b": jnp.zeros((1, EMBED_DIM), jnp.float32),
        # embeddings
        "wte": _normal(next(ks), (VOCAB_DIM, EMBED_DIM)),
        "wpe": _normal(next(ks), (TOTAL_T, EMBED_DIM)),
        # GPT-2 blocks, stacked along a leading LAYER_NUM axis (Conv1D layout)
        "ln1_g": jnp.ones((LAYER_NUM, 1, EMBED_DIM), jnp.float32),
        "ln1_b": jnp.zeros((LAYER_NUM, 1, EMBED_DIM), jnp.float32),
        "attn_w": _normal(next(ks), (LAYER_NUM, EMBED_DIM, 3 * EMBED_DIM)),
        "attn_b": jnp.zeros((LAYER_NUM, 1, 3 * EMBED_DIM), jnp.float32),
        "proj_w": _normal(next(ks), (LAYER_NUM, EMBED_DIM, EMBED_DIM)),
        "proj_b": jnp.zeros((LAYER_NUM, 1, EMBED_DIM), jnp.float32),
        "ln2_g": jnp.ones((LAYER_NUM, 1, EMBED_DIM), jnp.float32),
        "ln2_b": jnp.zeros((LAYER_NUM, 1, EMBED_DIM), jnp.float32),
        "mlp_fc_w": _normal(next(ks), (LAYER_NUM, EMBED_DIM, 4 * EMBED_DIM)),
        "mlp_fc_b": jnp.zeros((LAYER_NUM, 1, 4 * EMBED_DIM), jnp.float32),
        "mlp_proj_w": _normal(next(ks), (LAYER_NUM, 4 * EMBED_DIM, EMBED_DIM)),
        "mlp_proj_b": jnp.zeros((LAYER_NUM, 1, EMBED_DIM), jnp.float32),
        # final layer norm + fc
        "lnf_g": jnp.ones((1, EMBED_DIM), jnp.float32),
        "lnf_b": jnp.zeros((1, EMBED_DIM), jnp.float32),
        "fc_w": _xavier(next(ks), (EMBED_DIM, VOCAB_DIM)),
        "fc_b": jnp.zeros((1, VOCAB_DIM), jnp.float32),
    }


# ---------------------------- weight packing ----------------------------
def _pack_params(p):
    bf = lambda w: w.astype(jnp.bfloat16)

    # per-head QKV weight slabs, 1/sqrt(Dh) folded into the Q section
    w = p["attn_w"].reshape(LAYER_NUM, EMBED_DIM, 3, N_HEAD, HEAD_DIM)
    w = jnp.transpose(w, (0, 2, 3, 1, 4))                      # (L, 3, H, D, Dh)
    b = p["attn_b"].reshape(LAYER_NUM, 3, N_HEAD, HEAD_DIM)    # (L, 3, H, Dh)
    sc = jnp.asarray([1.0 / float(HEAD_DIM) ** 0.5, 1.0, 1.0], jnp.float32)
    w = w * sc.reshape(1, 3, 1, 1, 1)
    b = b * sc.reshape(1, 3, 1, 1)
    qkv_w = bf(w.reshape(LAYER_NUM * 3 * N_HEAD, EMBED_DIM, HEAD_DIM))
    qkv_b = b.reshape(LAYER_NUM * 3 * N_HEAD, HEAD_DIM)

    # per-head c_proj slabs (sublane-aligned row slabs of proj_w)
    proj_w = bf(p["proj_w"].reshape(LAYER_NUM * N_HEAD, HEAD_DIM, EMBED_DIM))

    # packed per-layer f32 vectors: [ln1_g, ln1_b, ln2_g, ln2_b, proj_b, fc2_b]
    layer_v = jnp.concatenate(
        [p["ln1_g"], p["ln1_b"], p["ln2_g"], p["ln2_b"],
         p["proj_b"], p["mlp_proj_b"]], axis=1
    ).reshape(LAYER_NUM * 6, EMBED_DIM)

    # fused embedding-projection weights / biases
    emb_w = bf(jnp.concatenate(
        [p["clip_enc_w"], p["clip_embed_w"], p["img2embed_w"]], axis=0))
    misc_v = jnp.concatenate(
        [p["clip_enc_b"], p["clip_embed_b"], p["img2embed_b"],
         p["lnf_g"], p["lnf_b"]], axis=0)

    return dict(
        emb_w=emb_w, misc_v=misc_v, qkv_w=qkv_w, qkv_b=qkv_b, proj_w=proj_w,
        fc1_w=bf(p["mlp_fc_w"]), fc1_b=p["mlp_fc_b"], fc2_w=bf(p["mlp_proj_w"]),
        layer_v=layer_v, out_w=bf(p["fc_w"]), out_b=p["fc_b"])


# ---------------------------- model forward ----------------------------
def cap_bench_train_forward(params, images, features, input_ids, target):
    """CapBenchTrain.forward with self_crit_seq_train=None: (loss, preds_out)."""
    pos_id, attn_bias_np = _row_layout()
    attn_bias = jnp.asarray(attn_bias_np)                       # (BT, BT) const
    pos_embed = params["wpe"][pos_id]                           # (BT, D)

    words_embed = params["wte"][input_ids].reshape(BATCH * MAX_LEN, EMBED_DIM)
    images_flat = images.reshape(BATCH, IMG_FLAT).astype(jnp.float32)
    feats = features.reshape(BATCH * FEATURE_NUM, FEATURES_DIM).astype(jnp.float32)
    tgt_rows = jnp.concatenate(
        [jnp.full((WORD_START,), -1, jnp.int32),
         target.reshape(-1).astype(jnp.int32)]).reshape(TOTAL_ROWS, 1)

    pk = _pack_params(params)

    args = (tgt_rows, images_flat, feats, words_embed, pos_embed, attn_bias,
            pk["emb_w"], pk["misc_v"], pk["qkv_w"], pk["qkv_b"], pk["proj_w"],
            pk["fc1_w"], pk["fc1_b"], pk["fc2_w"], pk["layer_v"],
            pk["out_w"], pk["out_b"])

    vmem = pl.BlockSpec(memory_space=pltpu.MemorySpace.VMEM)
    logits, loss_part = pl.pallas_call(
        _fused_forward_kernel,
        out_shape=(
            jax.ShapeDtypeStruct((TOTAL_ROWS, VOCAB_DIM), jnp.float32),
            jax.ShapeDtypeStruct((1, 128), jnp.float32),
        ),
        in_specs=[vmem] * len(args),
        out_specs=(vmem, vmem),
        scratch_shapes=[pltpu.VMEM((TOTAL_ROWS, EMBED_DIM), jnp.float32)],
    )(*args)

    # word rows -> (B, L, V); CrossEntropyLoss(reduction='mean') over B*L rows
    preds = logits[WORD_START:, :].reshape(BATCH, MAX_LEN, VOCAB_DIM)
    loss = loss_part[0, 0] / jnp.float32(BATCH * MAX_LEN)
    return loss, preds


# ---------------------------- driver ----------------------------
if __name__ == "__main__":
    key = jax.random.PRNGKey(0)
    kp, ki, kf, kw, kt = jax.random.split(key, 5)
    params = init_params(kp)
    images = jax.random.normal(ki, (BATCH, IMG_C, IMG_H, IMG_W), jnp.float32)
    features = jax.random.normal(kf, (BATCH, FEATURE_NUM, FEATURES_DIM), jnp.float32)
    input_ids = jax.random.randint(kw, (BATCH, MAX_LEN), 0, VOCAB_DIM)
    target = jax.random.randint(kt, (BATCH, MAX_LEN), 0, VOCAB_DIM)

    loss, preds = jax.jit(cap_bench_train_forward)(
        params, images, features, input_ids, target
    )
    jax.block_until_ready((loss, preds))
    assert preds.shape == (BATCH, MAX_LEN, VOCAB_DIM)
    assert loss.shape == ()
    print("KERNEL_OK")
</pallas_src>

<mosaic_0001>
module attributes {stable_mosaic.version = 11 : i64} {
  func.func @_fused_forward_kernel(%arg0: memref<32x1xi32, #tpu.memory_space<vmem>>, %arg1: memref<2x768xf32, #tpu.memory_space<vmem>>, %arg2: memref<8x128xf32, #tpu.memory_space<vmem>>, %arg3: memref<22x128xf32, #tpu.memory_space<vmem>>, %arg4: memref<32x128xf32, #tpu.memory_space<vmem>>, %arg5: memref<32x32xf32, #tpu.memory_space<vmem>>, %arg6: memref<1024x128xbf16, #tpu.memory_space<vmem>>, %arg7: memref<5x128xf32, #tpu.memory_space<vmem>>, %arg8: memref<24x128x32xbf16, #tpu.memory_space<vmem>>, %arg9: memref<24x32xf32, #tpu.memory_space<vmem>>, %arg10: memref<8x32x128xbf16, #tpu.memory_space<vmem>>, %arg11: memref<2x128x512xbf16, #tpu.memory_space<vmem>>, %arg12: memref<2x1x512xf32, #tpu.memory_space<vmem>>, %arg13: memref<2x512x128xbf16, #tpu.memory_space<vmem>>, %arg14: memref<12x128xf32, #tpu.memory_space<vmem>>, %arg15: memref<128x256xbf16, #tpu.memory_space<vmem>>, %arg16: memref<1x256xf32, #tpu.memory_space<vmem>>, %arg17: memref<32x256xf32, #tpu.memory_space<vmem>>, %arg18: memref<1x128xf32, #tpu.memory_space<vmem>>, %arg19: memref<32x128xf32, #tpu.memory_space<vmem>>) attributes {dimension_semantics = [], scalar_prefetch = 0 : i64, scratch_operands = 1 : i64, tpu.core_type = #tpu.core_type<tc>} {
    %c0 = arith.constant 0 : index
    %c0_0 = arith.constant 0 : index
    %0 = vector.load %arg6[%c0, %c0_0] : memref<1024x128xbf16, #tpu.memory_space<vmem>>, vector<768x128xbf16>
    %c768 = arith.constant 768 : index
    %c0_1 = arith.constant 0 : index
    %1 = vector.load %arg6[%c768, %c0_1] : memref<1024x128xbf16, #tpu.memory_space<vmem>>, vector<128x128xbf16>
    %c896 = arith.constant 896 : index
    %c0_2 = arith.constant 0 : index
    %2 = vector.load %arg6[%c896, %c0_2] : memref<1024x128xbf16, #tpu.memory_space<vmem>>, vector<128x128xbf16>
    %c0_3 = arith.constant 0 : index
    %c0_4 = arith.constant 0 : index
    %3 = vector.load %arg7[%c0_3, %c0_4] : memref<5x128xf32, #tpu.memory_space<vmem>>, vector<1x128xf32>
    %c1 = arith.constant 1 : index
    %c0_5 = arith.constant 0 : index
    %4 = vector.load %arg7[%c1, %c0_5] : memref<5x128xf32, #tpu.memory_space<vmem>>, vector<1x128xf32>
    %c2 = arith.constant 2 : index
    %c0_6 = arith.constant 0 : index
    %5 = vector.load %arg7[%c2, %c0_6] : memref<5x128xf32, #tpu.memory_space<vmem>>, vector<1x128xf32>
    %c3 = arith.constant 3 : index
    %c0_7 = arith.constant 0 : index
    %6 = vector.load %arg7[%c3, %c0_7] : memref<5x128xf32, #tpu.memory_space<vmem>>, vector<1x128xf32>
    %c4 = arith.constant 4 : index
    %c0_8 = arith.constant 0 : index
    %7 = vector.load %arg7[%c4, %c0_8] : memref<5x128xf32, #tpu.memory_space<vmem>>, vector<1x128xf32>
    %c0_9 = arith.constant 0 : index
    %c0_10 = arith.constant 0 : index
    %8 = vector.load %arg1[%c0_9, %c0_10] : memref<2x768xf32, #tpu.memory_space<vmem>>, vector<2x768xf32>
    %9 = arith.truncf %8 : vector<2x768xf32> to vector<2x768xbf16>
    %cst = arith.constant dense<0.000000e+00> : vector<2x128xf32>
    %10 = tpu.matmul %9, %0, %cst {dimension_numbers = #tpu.dot_dimension_numbers<[1], [0], [0], [1], [0, 0, 1, 1], [], []>} : vector<2x768xbf16>, vector<768x128xbf16>, vector<2x128xf32> -> vector<2x128xf32>
    %11 = vector.broadcast %3 : vector<1x128xf32> to vector<2x128xf32>
    %12 = arith.addf %10, %11 : vector<2x128xf32>
    %13 = arith.truncf %12 : vector<2x128xf32> to vector<2x128xbf16>
    %cst_11 = arith.constant dense<0.000000e+00> : vector<2x128xf32>
    %14 = tpu.matmul %13, %1, %cst_11 {dimension_numbers = #tpu.dot_dimension_numbers<[1], [0], [0], [1], [0, 0, 1, 1], [], []>} : vector<2x128xbf16>, vector<128x128xbf16>, vector<2x128xf32> -> vector<2x128xf32>
    %15 = vector.broadcast %4 : vector<1x128xf32> to vector<2x128xf32>
    %16 = arith.addf %14, %15 : vector<2x128xf32>
    %c0_12 = arith.constant 0 : index
    %c0_13 = arith.constant 0 : index
    %17 = vector.load %arg2[%c0_12, %c0_13] : memref<8x128xf32, #tpu.memory_space<vmem>>, vector<8x128xf32>
    %18 = arith.truncf %17 : vector<8x128xf32> to vector<8x128xbf16>
    %cst_14 = arith.constant dense<0.000000e+00> : vector<8x128xf32>
    %19 = tpu.matmul %18, %2, %cst_14 {dimension_numbers = #tpu.dot_dimension_numbers<[1], [0], [0], [1], [0, 0, 1, 1], [], []>} : vector<8x128xbf16>, vector<128x128xbf16>, vector<8x128xf32> -> vector<8x128xf32>
    %20 = vector.broadcast %5 : vector<1x128xf32> to vector<8x128xf32>
    %21 = arith.addf %19, %20 : vector<8x128xf32>
    %c0_15 = arith.constant 0 : index
    %c0_16 = arith.constant 0 : index
    %22 = vector.load %arg19[%c0_15, %c0_16] : memref<32x128xf32, #tpu.memory_space<vmem>>, vector<2x128xf32>
    tpu.vector_store %arg19[%c0_15, %c0_16], %16 {strides = array<i32>} : memref<32x128xf32, #tpu.memory_space<vmem>>, vector<2x128xf32>,
    %c2_17 = arith.constant 2 : index
    %c0_18 = arith.constant 0 : index
    %23 = vector.load %arg19[%c2_17, %c0_18] : memref<32x128xf32, #tpu.memory_space<vmem>>, vector<8x128xf32>
    tpu.vector_store %arg19[%c2_17, %c0_18], %21 {strides = array<i32>} : memref<32x128xf32, #tpu.memory_space<vmem>>, vector<8x128xf32>,
    %c0_19 = arith.constant 0 : index
    %c0_20 = arith.constant 0 : index
    %24 = vector.load %arg3[%c0_19, %c0_20] : memref<22x128xf32, #tpu.memory_space<vmem>>, vector<22x128xf32>
    %c10 = arith.constant 10 : index
    %c0_21 = arith.constant 0 : index
    %25 = vector.load %arg19[%c10, %c0_21] : memref<32x128xf32, #tpu.memory_space<vmem>>, vector<22x128xf32>
    tpu.vector_store %arg19[%c10, %c0_21], %24 {strides = array<i32>} : memref<32x128xf32, #tpu.memory_space<vmem>>, vector<22x128xf32>,
    %c0_22 = arith.constant 0 : index
    %c0_23 = arith.constant 0 : index
    %26 = vector.load %arg19[%c0_22, %c0_23] : memref<32x128xf32, #tpu.memory_space<vmem>>, vector<32x128xf32>
    %c0_24 = arith.constant 0 : index
    %c0_25 = arith.constant 0 : index
    %27 = vector.load %arg4[%c0_24, %c0_25] : memref<32x128xf32, #tpu.memory_space<vmem>>, vector<32x128xf32>
    %28 = arith.addf %26, %27 : vector<32x128xf32>
    %29 = tpu.iota {dimensions = array<i32: 0>} : vector<32x128xi32>
    %c10_i32 = arith.constant 10 : i32
    %30 = vector.broadcast %c10_i32 : i32 to vector<32x128xi32>
    %31 = arith.cmpi slt, %29, %30 : vector<32x128xi32>
    %c0_26 = arith.constant 0 : index
    %c0_27 = arith.constant 0 : index
    %32 = vector.load %arg5[%c0_26, %c0_27] : memref<32x32xf32, #tpu.memory_space<vmem>>, vector<32x32xf32>
    %c0_28 = arith.constant 0 : index
    %c0_29 = arith.constant 0 : index
    %33 = vector.load %arg14[%c0_28, %c0_29] : memref<12x128xf32, #tpu.memory_space<vmem>>, vector<1x128xf32>
    %c1_30 = arith.constant 1 : index
    %c0_31 = arith.constant 0 : index
    %34 = vector.load %arg14[%c1_30, %c0_31] : memref<12x128xf32, #tpu.memory_space<vmem>>, vector<1x128xf32>
    %cst_32 = arith.constant dense<0.000000e+00> : vector<32xf32>
    %35 = vector.multi_reduction <add>, %28, %cst_32 [1] : vector<32x128xf32> to vector<32xf32>
    %36 = vector.shape_cast %35 : vector<32xf32> to vector<32x1xf32>
    %cst_33 = arith.constant 1.280000e+02 : f32
    %37 = vector.broadcast %cst_33 : f32 to vector<32x1xf32>
    %38 = arith.divf %36, %37 : vector<32x1xf32>
    %39 = vector.broadcast %38 : vector<32x1xf32> to vector<32x128xf32>
    %40 = arith.subf %28, %39 : vector<32x128xf32>
    %41 = arith.mulf %40, %40 : vector<32x128xf32>
    %cst_34 = arith.constant dense<0.000000e+00> : vector<32xf32>
    %42 = vector.multi_reduction <add>, %41, %cst_34 [1] : vector<32x128xf32> to vector<32xf32>
    %43 = vector.shape_cast %42 : vector<32xf32> to vector<32x1xf32>
    %cst_35 = arith.constant 1.280000e+02 : f32
    %44 = vector.broadcast %cst_35 : f32 to vector<32x1xf32>
    %45 = arith.divf %43, %44 : vector<32x1xf32>
    %46 = vector.broadcast %38 : vector<32x1xf32> to vector<32x128xf32>
    %47 = arith.subf %28, %46 : vector<32x128xf32>
    %cst_36 = arith.constant 9.99999974E-6 : f32
    %48 = vector.broadcast %cst_36 : f32 to vector<32x1xf32>
    %49 = arith.addf %45, %48 : vector<32x1xf32>
    %50 = math.rsqrt %49 : vector<32x1xf32>
    %51 = vector.broadcast %50 : vector<32x1xf32> to vector<32x128xf32>
    %52 = arith.mulf %47, %51 : vector<32x128xf32>
    %53 = vector.broadcast %33 : vector<1x128xf32> to vector<32x128xf32>
    %54 = arith.mulf %52, %53 : vector<32x128xf32>
    %55 = vector.broadcast %34 : vector<1x128xf32> to vector<32x128xf32>
    %56 = arith.addf %54, %55 : vector<32x128xf32>
    %cst_37 = arith.constant 0.000000e+00 : f32
    %57 = vector.broadcast %cst_37 : f32 to vector<32x128xf32>
    %c0_38 = arith.constant 0 : index
    %c0_39 = arith.constant 0 : index
    %c0_40 = arith.constant 0 : index
    %58 = vector.load %arg8[%c0_38, %c0_39, %c0_40] : memref<24x128x32xbf16, #tpu.memory_space<vmem>>, vector<1x128x32xbf16>
    %59 = vector.shape_cast %58 : vector<1x128x32xbf16> to vector<128x32xbf16>
    %60 = arith.truncf %56 : vector<32x128xf32> to vector<32x128xbf16>
    %cst_41 = arith.constant dense<0.000000e+00> : vector<32x32xf32>
    %61 = tpu.matmul %60, %59, %cst_41 {dimension_numbers = #tpu.dot_dimension_numbers<[1], [0], [0], [1], [0, 0, 1, 1], [], []>} : vector<32x128xbf16>, vector<128x32xbf16>, vector<32x32xf32> -> vector<32x32xf32>
    %c0_42 = arith.constant 0 : index
    %c0_43 = arith.constant 0 : index
    %62 = vector.load %arg9[%c0_42, %c0_43] : memref<24x32xf32, #tpu.memory_space<vmem>>, vector<1x32xf32>
    %63 = vector.broadcast %62 : vector<1x32xf32> to vector<32x32xf32>
    %64 = arith.addf %61, %63 : vector<32x32xf32>
    %c4_44 = arith.constant 4 : index
    %c0_45 = arith.constant 0 : index
    %c0_46 = arith.constant 0 : index
    %65 = vector.load %arg8[%c4_44, %c0_45, %c0_46] : memref<24x128x32xbf16, #tpu.memory_space<vmem>>, vector<1x128x32xbf16>
    %66 = vector.shape_cast %65 : vector<1x128x32xbf16> to vector<128x32xbf16>
    %67 = arith.truncf %56 : vector<32x128xf32> to vector<32x128xbf16>
    %cst_47 = arith.constant dense<0.000000e+00> : vector<32x32xf32>
    %68 = tpu.matmul %67, %66, %cst_47 {dimension_numbers = #tpu.dot_dimension_numbers<[1], [0], [0], [1], [0, 0, 1, 1], [], []>} : vector<32x128xbf16>, vector<128x32xbf16>, vector<32x32xf32> -> vector<32x32xf32>
    %c4_48 = arith.constant 4 : index
    %c0_49 = arith.constant 0 : index
    %69 = vector.load %arg9[%c4_48, %c0_49] : memref<24x32xf32, #tpu.memory_space<vmem>>, vector<1x32xf32>
    %70 = vector.broadcast %69 : vector<1x32xf32> to vector<32x32xf32>
    %71 = arith.addf %68, %70 : vector<32x32xf32>
    %c8 = arith.constant 8 : index
    %c0_50 = arith.constant 0 : index
    %c0_51 = arith.constant 0 : index
    %72 = vector.load %arg8[%c8, %c0_50, %c0_51] : memref<24x128x32xbf16, #tpu.memory_space<vmem>>, vector<1x128x32xbf16>
    %73 = vector.shape_cast %72 : vector<1x128x32xbf16> to vector<128x32xbf16>
    %74 = arith.truncf %56 : vector<32x128xf32> to vector<32x128xbf16>
    %cst_52 = arith.constant dense<0.000000e+00> : vector<32x32xf32>
    %75 = tpu.matmul %74, %73, %cst_52 {dimension_numbers = #tpu.dot_dimension_numbers<[1], [0], [0], [1], [0, 0, 1, 1], [], []>} : vector<32x128xbf16>, vector<128x32xbf16>, vector<32x32xf32> -> vector<32x32xf32>
    %c8_53 = arith.constant 8 : index
    %c0_54 = arith.constant 0 : index
    %76 = vector.load %arg9[%c8_53, %c0_54] : memref<24x32xf32, #tpu.memory_space<vmem>>, vector<1x32xf32>
    %77 = vector.broadcast %76 : vector<1x32xf32> to vector<32x32xf32>
    %78 = arith.addf %75, %77 : vector<32x32xf32>
    %79 = arith.truncf %64 : vector<32x32xf32> to vector<32x32xbf16>
    %80 = arith.truncf %71 : vector<32x32xf32> to vector<32x32xbf16>
    %cst_55 = arith.constant dense<0.000000e+00> : vector<32x32xf32>
    %81 = tpu.matmul %79, %80, %cst_55 {dimension_numbers = #tpu.dot_dimension_numbers<[1], [1], [0], [0], [0, 0, 1, 0], [], []>} : vector<32x32xbf16>, vector<32x32xbf16>, vector<32x32xf32> -> vector<32x32xf32>
    %82 = arith.addf %81, %32 : vector<32x32xf32>
    %cst_56 = arith.constant dense<0xFF800000> : vector<32xf32>
    %83 = vector.multi_reduction <maximumf>, %82, %cst_56 [1] : vector<32x32xf32> to vector<32xf32>
    %84 = vector.shape_cast %83 : vector<32xf32> to vector<32x1xf32>
    %85 = vector.broadcast %84 : vector<32x1xf32> to vector<32x32xf32>
    %86 = arith.subf %82, %85 : vector<32x32xf32>
    %87 = math.exp %86 : vector<32x32xf32>
    %cst_57 = arith.constant dense<0.000000e+00> : vector<32xf32>
    %88 = vector.multi_reduction <add>, %87, %cst_57 [1] : vector<32x32xf32> to vector<32xf32>
    %89 = vector.shape_cast %88 : vector<32xf32> to vector<32x1xf32>
    %90 = vector.broadcast %89 : vector<32x1xf32> to vector<32x32xf32>
    %91 = arith.divf %87, %90 : vector<32x32xf32>
    %92 = arith.truncf %91 : vector<32x32xf32> to vector<32x32xbf16>
    %93 = arith.truncf %78 : vector<32x32xf32> to vector<32x32xbf16>
    %cst_58 = arith.constant dense<0.000000e+00> : vector<32x32xf32>
    %94 = tpu.matmul %92, %93, %cst_58 {dimension_numbers = #tpu.dot_dimension_numbers<[1], [0], [0], [1], [0, 0, 1, 1], [], []>} : vector<32x32xbf16>, vector<32x32xbf16>, vector<32x32xf32> -> vector<32x32xf32>
    %c0_59 = arith.constant 0 : index
    %c0_60 = arith.constant 0 : index
    %c0_61 = arith.constant 0 : index
    %95 = vector.load %arg10[%c0_59, %c0_60, %c0_61] : memref<8x32x128xbf16, #tpu.memory_space<vmem>>, vector<1x32x128xbf16>
    %96 = vector.shape_cast %95 : vector<1x32x128xbf16> to vector<32x128xbf16>
    %97 = arith.truncf %94 : vector<32x32xf32> to vector<32x32xbf16>
    %cst_62 = arith.constant dense<0.000000e+00> : vector<32x128xf32>
    %98 = tpu.matmul %97, %96, %cst_62 {dimension_numbers = #tpu.dot_dimension_numbers<[1], [0], [0], [1], [0, 0, 1, 1], [], []>} : vector<32x32xbf16>, vector<32x128xbf16>, vector<32x128xf32> -> vector<32x128xf32>
    %99 = arith.addf %57, %98 : vector<32x128xf32>
    %c1_63 = arith.constant 1 : index
    %c0_64 = arith.constant 0 : index
    %c0_65 = arith.constant 0 : index
    %100 = vector.load %arg8[%c1_63, %c0_64, %c0_65] : memref<24x128x32xbf16, #tpu.memory_space<vmem>>, vector<1x128x32xbf16>
    %101 = vector.shape_cast %100 : vector<1x128x32xbf16> to vector<128x32xbf16>
    %102 = arith.truncf %56 : vector<32x128xf32> to vector<32x128xbf16>
    %cst_66 = arith.constant dense<0.000000e+00> : vector<32x32xf32>
    %103 = tpu.matmul %102, %101, %cst_66 {dimension_numbers = #tpu.dot_dimension_numbers<[1], [0], [0], [1], [0, 0, 1, 1], [], []>} : vector<32x128xbf16>, vector<128x32xbf16>, vector<32x32xf32> -> vector<32x32xf32>
    %c1_67 = arith.constant 1 : index
    %c0_68 = arith.constant 0 : index
    %104 = vector.load %arg9[%c1_67, %c0_68] : memref<24x32xf32, #tpu.memory_space<vmem>>, vector<1x32xf32>
    %105 = vector.broadcast %104 : vector<1x32xf32> to vector<32x32xf32>
    %106 = arith.addf %103, %105 : vector<32x32xf32>
    %c5 = arith.constant 5 : index
    %c0_69 = arith.constant 0 : index
    %c0_70 = arith.constant 0 : index
    %107 = vector.load %arg8[%c5, %c0_69, %c0_70] : memref<24x128x32xbf16, #tpu.memory_space<vmem>>, vector<1x128x32xbf16>
    %108 = vector.shape_cast %107 : vector<1x128x32xbf16> to vector<128x32xbf16>
    %109 = arith.truncf %56 : vector<32x128xf32> to vector<32x128xbf16>
    %cst_71 = arith.constant dense<0.000000e+00> : vector<32x32xf32>
    %110 = tpu.matmul %109, %108, %cst_71 {dimension_numbers = #tpu.dot_dimension_numbers<[1], [0], [0], [1], [0, 0, 1, 1], [], []>} : vector<32x128xbf16>, vector<128x32xbf16>, vector<32x32xf32> -> vector<32x32xf32>
    %c5_72 = arith.constant 5 : index
    %c0_73 = arith.constant 0 : index
    %111 = vector.load %arg9[%c5_72, %c0_73] : memref<24x32xf32, #tpu.memory_space<vmem>>, vector<1x32xf32>
    %112 = vector.broadcast %111 : vector<1x32xf32> to vector<32x32xf32>
    %113 = arith.addf %110, %112 : vector<32x32xf32>
    %c9 = arith.constant 9 : index
    %c0_74 = arith.constant 0 : index
    %c0_75 = arith.constant 0 : index
    %114 = vector.load %arg8[%c9, %c0_74, %c0_75] : memref<24x128x32xbf16, #tpu.memory_space<vmem>>, vector<1x128x32xbf16>
    %115 = vector.shape_cast %114 : vector<1x128x32xbf16> to vector<128x32xbf16>
    %116 = arith.truncf %56 : vector<32x128xf32> to vector<32x128xbf16>
    %cst_76 = arith.constant dense<0.000000e+00> : vector<32x32xf32>
    %117 = tpu.matmul %116, %115, %cst_76 {dimension_numbers = #tpu.dot_dimension_numbers<[1], [0], [0], [1], [0, 0, 1, 1], [], []>} : vector<32x128xbf16>, vector<128x32xbf16>, vector<32x32xf32> -> vector<32x32xf32>
    %c9_77 = arith.constant 9 : index
    %c0_78 = arith.constant 0 : index
    %118 = vector.load %arg9[%c9_77, %c0_78] : memref<24x32xf32, #tpu.memory_space<vmem>>, vector<1x32xf32>
    %119 = vector.broadcast %118 : vector<1x32xf32> to vector<32x32xf32>
    %120 = arith.addf %117, %119 : vector<32x32xf32>
    %121 = arith.truncf %106 : vector<32x32xf32> to vector<32x32xbf16>
    %122 = arith.truncf %113 : vector<32x32xf32> to vector<32x32xbf16>
    %cst_79 = arith.constant dense<0.000000e+00> : vector<32x32xf32>
    %123 = tpu.matmul %121, %122, %cst_79 {dimension_numbers = #tpu.dot_dimension_numbers<[1], [1], [0], [0], [0, 0, 1, 0], [], []>} : vector<32x32xbf16>, vector<32x32xbf16>, vector<32x32xf32> -> vector<32x32xf32>
    %124 = arith.addf %123, %32 : vector<32x32xf32>
    %cst_80 = arith.constant dense<0xFF800000> : vector<32xf32>
    %125 = vector.multi_reduction <maximumf>, %124, %cst_80 [1] : vector<32x32xf32> to vector<32xf32>
    %126 = vector.shape_cast %125 : vector<32xf32> to vector<32x1xf32>
    %127 = vector.broadcast %126 : vector<32x1xf32> to vector<32x32xf32>
    %128 = arith.subf %124, %127 : vector<32x32xf32>
    %129 = math.exp %128 : vector<32x32xf32>
    %cst_81 = arith.constant dense<0.000000e+00> : vector<32xf32>
    %130 = vector.multi_reduction <add>, %129, %cst_81 [1] : vector<32x32xf32> to vector<32xf32>
    %131 = vector.shape_cast %130 : vector<32xf32> to vector<32x1xf32>
    %132 = vector.broadcast %131 : vector<32x1xf32> to vector<32x32xf32>
    %133 = arith.divf %129, %132 : vector<32x32xf32>
    %134 = arith.truncf %133 : vector<32x32xf32> to vector<32x32xbf16>
    %135 = arith.truncf %120 : vector<32x32xf32> to vector<32x32xbf16>
    %cst_82 = arith.constant dense<0.000000e+00> : vector<32x32xf32>
    %136 = tpu.matmul %134, %135, %cst_82 {dimension_numbers = #tpu.dot_dimension_numbers<[1], [0], [0], [1], [0, 0, 1, 1], [], []>} : vector<32x32xbf16>, vector<32x32xbf16>, vector<32x32xf32> -> vector<32x32xf32>
    %c1_83 = arith.constant 1 : index
    %c0_84 = arith.constant 0 : index
    %c0_85 = arith.constant 0 : index
    %137 = vector.load %arg10[%c1_83, %c0_84, %c0_85] : memref<8x32x128xbf16, #tpu.memory_space<vmem>>, vector<1x32x128xbf16>
    %138 = vector.shape_cast %137 : vector<1x32x128xbf16> to vector<32x128xbf16>
    %139 = arith.truncf %136 : vector<32x32xf32> to vector<32x32xbf16>
    %cst_86 = arith.constant dense<0.000000e+00> : vector<32x128xf32>
    %140 = tpu.matmul %139, %138, %cst_86 {dimension_numbers = #tpu.dot_dimension_numbers<[1], [0], [0], [1], [0, 0, 1, 1], [], []>} : vector<32x32xbf16>, vector<32x128xbf16>, vector<32x128xf32> -> vector<32x128xf32>
    %141 = arith.addf %99, %140 : vector<32x128xf32>
    %c2_87 = arith.constant 2 : index
    %c0_88 = arith.constant 0 : index
    %c0_89 = arith.constant 0 : index
    %142 = vector.load %arg8[%c2_87, %c0_88, %c0_89] : memref<24x128x32xbf16, #tpu.memory_space<vmem>>, vector<1x128x32xbf16>
    %143 = vector.shape_cast %142 : vector<1x128x32xbf16> to vector<128x32xbf16>
    %144 = arith.truncf %56 : vector<32x128xf32> to vector<32x128xbf16>
    %cst_90 = arith.constant dense<0.000000e+00> : vector<32x32xf32>
    %145 = tpu.matmul %144, %143, %cst_90 {dimension_numbers = #tpu.dot_dimension_numbers<[1], [0], [0], [1], [0, 0, 1, 1], [], []>} : vector<32x128xbf16>, vector<128x32xbf16>, vector<32x32xf32> -> vector<32x32xf32>
    %c2_91 = arith.constant 2 : index
    %c0_92 = arith.constant 0 : index
    %146 = vector.load %arg9[%c2_91, %c0_92] : memref<24x32xf32, #tpu.memory_space<vmem>>, vector<1x32xf32>
    %147 = vector.broadcast %146 : vector<1x32xf32> to vector<32x32xf32>
    %148 = arith.addf %145, %147 : vector<32x32xf32>
    %c6 = arith.constant 6 : index
    %c0_93 = arith.constant 0 : index
    %c0_94 = arith.constant 0 : index
    %149 = vector.load %arg8[%c6, %c0_93, %c0_94] : memref<24x128x32xbf16, #tpu.memory_space<vmem>>, vector<1x128x32xbf16>
    %150 = vector.shape_cast %149 : vector<1x128x32xbf16> to vector<128x32xbf16>
    %151 = arith.truncf %56 : vector<32x128xf32> to vector<32x128xbf16>
    %cst_95 = arith.constant dense<0.000000e+00> : vector<32x32xf32>
    %152 = tpu.matmul %151, %150, %cst_95 {dimension_numbers = #tpu.dot_dimension_numbers<[1], [0], [0], [1], [0, 0, 1, 1], [], []>} : vector<32x128xbf16>, vector<128x32xbf16>, vector<32x32xf32> -> vector<32x32xf32>
    %c6_96 = arith.constant 6 : index
    %c0_97 = arith.constant 0 : index
    %153 = vector.load %arg9[%c6_96, %c0_97] : memref<24x32xf32, #tpu.memory_space<vmem>>, vector<1x32xf32>
    %154 = vector.broadcast %153 : vector<1x32xf32> to vector<32x32xf32>
    %155 = arith.addf %152, %154 : vector<32x32xf32>
    %c10_98 = arith.constant 10 : index
    %c0_99 = arith.constant 0 : index
    %c0_100 = arith.constant 0 : index
    %156 = vector.load %arg8[%c10_98, %c0_99, %c0_100] : memref<24x128x32xbf16, #tpu.memory_space<vmem>>, vector<1x128x32xbf16>
    %157 = vector.shape_cast %156 : vector<1x128x32xbf16> to vector<128x32xbf16>
    %158 = arith.truncf %56 : vector<32x128xf32> to vector<32x128xbf16>
    %cst_101 = arith.constant dense<0.000000e+00> : vector<32x32xf32>
    %159 = tpu.matmul %158, %157, %cst_101 {dimension_numbers = #tpu.dot_dimension_numbers<[1], [0], [0], [1], [0, 0, 1, 1], [], []>} : vector<32x128xbf16>, vector<128x32xbf16>, vector<32x32xf32> -> vector<32x32xf32>
    %c10_102 = arith.constant 10 : index
    %c0_103 = arith.constant 0 : index
    %160 = vector.load %arg9[%c10_102, %c0_103] : memref<24x32xf32, #tpu.memory_space<vmem>>, vector<1x32xf32>
    %161 = vector.broadcast %160 : vector<1x32xf32> to vector<32x32xf32>
    %162 = arith.addf %159, %161 : vector<32x32xf32>
    %163 = arith.truncf %148 : vector<32x32xf32> to vector<32x32xbf16>
    %164 = arith.truncf %155 : vector<32x32xf32> to vector<32x32xbf16>
    %cst_104 = arith.constant dense<0.000000e+00> : vector<32x32xf32>
    %165 = tpu.matmul %163, %164, %cst_104 {dimension_numbers = #tpu.dot_dimension_numbers<[1], [1], [0], [0], [0, 0, 1, 0], [], []>} : vector<32x32xbf16>, vector<32x32xbf16>, vector<32x32xf32> -> vector<32x32xf32>
    %166 = arith.addf %165, %32 : vector<32x32xf32>
    %cst_105 = arith.constant dense<0xFF800000> : vector<32xf32>
    %167 = vector.multi_reduction <maximumf>, %166, %cst_105 [1] : vector<32x32xf32> to vector<32xf32>
    %168 = vector.shape_cast %167 : vector<32xf32> to vector<32x1xf32>
    %169 = vector.broadcast %168 : vector<32x1xf32> to vector<32x32xf32>
    %170 = arith.subf %166, %169 : vector<32x32xf32>
    %171 = math.exp %170 : vector<32x32xf32>
    %cst_106 = arith.constant dense<0.000000e+00> : vector<32xf32>
    %172 = vector.multi_reduction <add>, %171, %cst_106 [1] : vector<32x32xf32> to vector<32xf32>
    %173 = vector.shape_cast %172 : vector<32xf32> to vector<32x1xf32>
    %174 = vector.broadcast %173 : vector<32x1xf32> to vector<32x32xf32>
    %175 = arith.divf %171, %174 : vector<32x32xf32>
    %176 = arith.truncf %175 : vector<32x32xf32> to vector<32x32xbf16>
    %177 = arith.truncf %162 : vector<32x32xf32> to vector<32x32xbf16>
    %cst_107 = arith.constant dense<0.000000e+00> : vector<32x32xf32>
    %178 = tpu.matmul %176, %177, %cst_107 {dimension_numbers = #tpu.dot_dimension_numbers<[1], [0], [0], [1], [0, 0, 1, 1], [], []>} : vector<32x32xbf16>, vector<32x32xbf16>, vector<32x32xf32> -> vector<32x32xf32>
    %c2_108 = arith.constant 2 : index
    %c0_109 = arith.constant 0 : index
    %c0_110 = arith.constant 0 : index
    %179 = vector.load %arg10[%c2_108, %c0_109, %c0_110] : memref<8x32x128xbf16, #tpu.memory_space<vmem>>, vector<1x32x128xbf16>
    %180 = vector.shape_cast %179 : vector<1x32x128xbf16> to vector<32x128xbf16>
    %181 = arith.truncf %178 : vector<32x32xf32> to vector<32x32xbf16>
    %cst_111 = arith.constant dense<0.000000e+00> : vector<32x128xf32>
    %182 = tpu.matmul %181, %180, %cst_111 {dimension_numbers = #tpu.dot_dimension_numbers<[1], [0], [0], [1], [0, 0, 1, 1], [], []>} : vector<32x32xbf16>, vector<32x128xbf16>, vector<32x128xf32> -> vector<32x128xf32>
    %183 = arith.addf %141, %182 : vector<32x128xf32>
    %c3_112 = arith.constant 3 : index
    %c0_113 = arith.constant 0 : index
    %c0_114 = arith.constant 0 : index
    %184 = vector.load %arg8[%c3_112, %c0_113, %c0_114] : memref<24x128x32xbf16, #tpu.memory_space<vmem>>, vector<1x128x32xbf16>
    %185 = vector.shape_cast %184 : vector<1x128x32xbf16> to vector<128x32xbf16>
    %186 = arith.truncf %56 : vector<32x128xf32> to vector<32x128xbf16>
    %cst_115 = arith.constant dense<0.000000e+00> : vector<32x32xf32>
    %187 = tpu.matmul %186, %185, %cst_115 {dimension_numbers = #tpu.dot_dimension_numbers<[1], [0], [0], [1], [0, 0, 1, 1], [], []>} : vector<32x128xbf16>, vector<128x32xbf16>, vector<32x32xf32> -> vector<32x32xf32>
    %c3_116 = arith.constant 3 : index
    %c0_117 = arith.constant 0 : index
    %188 = vector.load %arg9[%c3_116, %c0_117] : memref<24x32xf32, #tpu.memory_space<vmem>>, vector<1x32xf32>
    %189 = vector.broadcast %188 : vector<1x32xf32> to vector<32x32xf32>
    %190 = arith.addf %187, %189 : vector<32x32xf32>
    %c7 = arith.constant 7 : index
    %c0_118 = arith.constant 0 : index
    %c0_119 = arith.constant 0 : index
    %191 = vector.load %arg8[%c7, %c0_118, %c0_119] : memref<24x128x32xbf16, #tpu.memory_space<vmem>>, vector<1x128x32xbf16>
    %192 = vector.shape_cast %191 : vector<1x128x32xbf16> to vector<128x32xbf16>
    %193 = arith.truncf %56 : vector<32x128xf32> to vector<32x128xbf16>
    %cst_120 = arith.constant dense<0.000000e+00> : vector<32x32xf32>
    %194 = tpu.matmul %193, %192, %cst_120 {dimension_numbers = #tpu.dot_dimension_numbers<[1], [0], [0], [1], [0, 0, 1, 1], [], []>} : vector<32x128xbf16>, vector<128x32xbf16>, vector<32x32xf32> -> vector<32x32xf32>
    %c7_121 = arith.constant 7 : index
    %c0_122 = arith.constant 0 : index
    %195 = vector.load %arg9[%c7_121, %c0_122] : memref<24x32xf32, #tpu.memory_space<vmem>>, vector<1x32xf32>
    %196 = vector.broadcast %195 : vector<1x32xf32> to vector<32x32xf32>
    %197 = arith.addf %194, %196 : vector<32x32xf32>
    %c11 = arith.constant 11 : index
    %c0_123 = arith.constant 0 : index
    %c0_124 = arith.constant 0 : index
    %198 = vector.load %arg8[%c11, %c0_123, %c0_124] : memref<24x128x32xbf16, #tpu.memory_space<vmem>>, vector<1x128x32xbf16>
    %199 = vector.shape_cast %198 : vector<1x128x32xbf16> to vector<128x32xbf16>
    %200 = arith.truncf %56 : vector<32x128xf32> to vector<32x128xbf16>
    %cst_125 = arith.constant dense<0.000000e+00> : vector<32x32xf32>
    %201 = tpu.matmul %200, %199, %cst_125 {dimension_numbers = #tpu.dot_dimension_numbers<[1], [0], [0], [1], [0, 0, 1, 1], [], []>} : vector<32x128xbf16>, vector<128x32xbf16>, vector<32x32xf32> -> vector<32x32xf32>
    %c11_126 = arith.constant 11 : index
    %c0_127 = arith.constant 0 : index
    %202 = vector.load %arg9[%c11_126, %c0_127] : memref<24x32xf32, #tpu.memory_space<vmem>>, vector<1x32xf32>
    %203 = vector.broadcast %202 : vector<1x32xf32> to vector<32x32xf32>
    %204 = arith.addf %201, %203 : vector<32x32xf32>
    %205 = arith.truncf %190 : vector<32x32xf32> to vector<32x32xbf16>
    %206 = arith.truncf %197 : vector<32x32xf32> to vector<32x32xbf16>
    %cst_128 = arith.constant dense<0.000000e+00> : vector<32x32xf32>
    %207 = tpu.matmul %205, %206, %cst_128 {dimension_numbers = #tpu.dot_dimension_numbers<[1], [1], [0], [0], [0, 0, 1, 0], [], []>} : vector<32x32xbf16>, vector<32x32xbf16>, vector<32x32xf32> -> vector<32x32xf32>
    %208 = arith.addf %207, %32 : vector<32x32xf32>
    %cst_129 = arith.constant dense<0xFF800000> : vector<32xf32>
    %209 = vector.multi_reduction <maximumf>, %208, %cst_129 [1] : vector<32x32xf32> to vector<32xf32>
    %210 = vector.shape_cast %209 : vector<32xf32> to vector<32x1xf32>
    %211 = vector.broadcast %210 : vector<32x1xf32> to vector<32x32xf32>
    %212 = arith.subf %208, %211 : vector<32x32xf32>
    %213 = math.exp %212 : vector<32x32xf32>
    %cst_130 = arith.constant dense<0.000000e+00> : vector<32xf32>
    %214 = vector.multi_reduction <add>, %213, %cst_130 [1] : vector<32x32xf32> to vector<32xf32>
    %215 = vector.shape_cast %214 : vector<32xf32> to vector<32x1xf32>
    %216 = vector.broadcast %215 : vector<32x1xf32> to vector<32x32xf32>
    %217 = arith.divf %213, %216 : vector<32x32xf32>
    %218 = arith.truncf %217 : vector<32x32xf32> to vector<32x32xbf16>
    %219 = arith.truncf %204 : vector<32x32xf32> to vector<32x32xbf16>
    %cst_131 = arith.constant dense<0.000000e+00> : vector<32x32xf32>
    %220 = tpu.matmul %218, %219, %cst_131 {dimension_numbers = #tpu.dot_dimension_numbers<[1], [0], [0], [1], [0, 0, 1, 1], [], []>} : vector<32x32xbf16>, vector<32x32xbf16>, vector<32x32xf32> -> vector<32x32xf32>
    %c3_132 = arith.constant 3 : index
    %c0_133 = arith.constant 0 : index
    %c0_134 = arith.constant 0 : index
    %221 = vector.load %arg10[%c3_132, %c0_133, %c0_134] : memref<8x32x128xbf16, #tpu.memory_space<vmem>>, vector<1x32x128xbf16>
    %222 = vector.shape_cast %221 : vector<1x32x128xbf16> to vector<32x128xbf16>
    %223 = arith.truncf %220 : vector<32x32xf32> to vector<32x32xbf16>
    %cst_135 = arith.constant dense<0.000000e+00> : vector<32x128xf32>
    %224 = tpu.matmul %223, %222, %cst_135 {dimension_numbers = #tpu.dot_dimension_numbers<[1], [0], [0], [1], [0, 0, 1, 1], [], []>} : vector<32x32xbf16>, vector<32x128xbf16>, vector<32x128xf32> -> vector<32x128xf32>
    %225 = arith.addf %183, %224 : vector<32x128xf32>
    %226 = arith.addf %28, %225 : vector<32x128xf32>
    %c4_136 = arith.constant 4 : index
    %c0_137 = arith.constant 0 : index
    %227 = vector.load %arg14[%c4_136, %c0_137] : memref<12x128xf32, #tpu.memory_space<vmem>>, vector<1x128xf32>
    %228 = vector.broadcast %227 : vector<1x128xf32> to vector<32x128xf32>
    %229 = arith.addf %226, %228 : vector<32x128xf32>
    %c2_138 = arith.constant 2 : index
    %c0_139 = arith.constant 0 : index
    %230 = vector.load %arg14[%c2_138, %c0_139] : memref<12x128xf32, #tpu.memory_space<vmem>>, vector<1x128xf32>
    %c3_140 = arith.constant 3 : index
    %c0_141 = arith.constant 0 : index
    %231 = vector.load %arg14[%c3_140, %c0_141] : memref<12x128xf32, #tpu.memory_space<vmem>>, vector<1x128xf32>
    %cst_142 = arith.constant dense<0.000000e+00> : vector<32xf32>
    %232 = vector.multi_reduction <add>, %229, %cst_142 [1] : vector<32x128xf32> to vector<32xf32>
    %233 = vector.shape_cast %232 : vector<32xf32> to vector<32x1xf32>
    %cst_143 = arith.constant 1.280000e+02 : f32
    %234 = vector.broadcast %cst_143 : f32 to vector<32x1xf32>
    %235 = arith.divf %233, %234 : vector<32x1xf32>
    %236 = vector.broadcast %235 : vector<32x1xf32> to vector<32x128xf32>
    %237 = arith.subf %229, %236 : vector<32x128xf32>
    %238 = arith.mulf %237, %237 : vector<32x128xf32>
    %cst_144 = arith.constant dense<0.000000e+00> : vector<32xf32>
    %239 = vector.multi_reduction <add>, %238, %cst_144 [1] : vector<32x128xf32> to vector<32xf32>
    %240 = vector.shape_cast %239 : vector<32xf32> to vector<32x1xf32>
    %cst_145 = arith.constant 1.280000e+02 : f32
    %241 = vector.broadcast %cst_145 : f32 to vector<32x1xf32>
    %242 = arith.divf %240, %241 : vector<32x1xf32>
    %243 = vector.broadcast %235 : vector<32x1xf32> to vector<32x128xf32>
    %244 = arith.subf %229, %243 : vector<32x128xf32>
    %cst_146 = arith.constant 9.99999974E-6 : f32
    %245 = vector.broadcast %cst_146 : f32 to vector<32x1xf32>
    %246 = arith.addf %242, %245 : vector<32x1xf32>
    %247 = math.rsqrt %246 : vector<32x1xf32>
    %248 = vector.broadcast %247 : vector<32x1xf32> to vector<32x128xf32>
    %249 = arith.mulf %244, %248 : vector<32x128xf32>
    %250 = vector.broadcast %230 : vector<1x128xf32> to vector<32x128xf32>
    %251 = arith.mulf %249, %250 : vector<32x128xf32>
    %252 = vector.broadcast %231 : vector<1x128xf32> to vector<32x128xf32>
    %253 = arith.addf %251, %252 : vector<32x128xf32>
    %c0_147 = arith.constant 0 : index
    %c0_148 = arith.constant 0 : index
    %c0_149 = arith.constant 0 : index
    %254 = vector.load %arg11[%c0_147, %c0_148, %c0_149] : memref<2x128x512xbf16, #tpu.memory_space<vmem>>, vector<1x128x512xbf16>
    %255 = vector.shape_cast %254 : vector<1x128x512xbf16> to vector<128x512xbf16>
    %256 = arith.truncf %253 : vector<32x128xf32> to vector<32x128xbf16>
    %cst_150 = arith.constant dense<0.000000e+00> : vector<32x512xf32>
    %257 = tpu.matmul %256, %255, %cst_150 {dimension_numbers = #tpu.dot_dimension_numbers<[1], [0], [0], [1], [0, 0, 1, 1], [], []>} : vector<32x128xbf16>, vector<128x512xbf16>, vector<32x512xf32> -> vector<32x512xf32>
    %c0_151 = arith.constant 0 : index
    %c0_152 = arith.constant 0 : index
    %c0_153 = arith.constant 0 : index
    %258 = vector.load %arg12[%c0_151, %c0_152, %c0_153] : memref<2x1x512xf32, #tpu.memory_space<vmem>>, vector<1x1x512xf32>
    %259 = vector.shape_cast %258 : vector<1x1x512xf32> to vector<1x512xf32>
    %260 = vector.broadcast %259 : vector<1x512xf32> to vector<32x512xf32>
    %261 = arith.addf %257, %260 : vector<32x512xf32>
    %cst_154 = arith.constant 5.000000e-01 : f32
    %262 = vector.broadcast %cst_154 : f32 to vector<32x512xf32>
    %263 = arith.mulf %262, %261 : vector<32x512xf32>
    %cst_155 = arith.constant 4.471500e-02 : f32
    %264 = vector.broadcast %cst_155 : f32 to vector<32x512xf32>
    %265 = arith.mulf %264, %261 : vector<32x512xf32>
    %266 = arith.mulf %265, %261 : vector<32x512xf32>
    %267 = arith.mulf %266, %261 : vector<32x512xf32>
    %268 = arith.addf %261, %267 : vector<32x512xf32>
    %cst_156 = arith.constant 0.797884583 : f32
    %269 = vector.broadcast %cst_156 : f32 to vector<32x512xf32>
    %270 = arith.mulf %269, %268 : vector<32x512xf32>
    %271 = math.tanh %270 : vector<32x512xf32>
    %cst_157 = arith.constant 1.000000e+00 : f32
    %272 = vector.broadcast %cst_157 : f32 to vector<32x512xf32>
    %273 = arith.addf %272, %271 : vector<32x512xf32>
    %274 = arith.mulf %263, %273 : vector<32x512xf32>
    %c0_158 = arith.constant 0 : index
    %c0_159 = arith.constant 0 : index
    %c0_160 = arith.constant 0 : index
    %275 = vector.load %arg13[%c0_158, %c0_159, %c0_160] : memref<2x512x128xbf16, #tpu.memory_space<vmem>>, vector<1x512x128xbf16>
    %276 = vector.shape_cast %275 : vector<1x512x128xbf16> to vector<512x128xbf16>
    %277 = arith.truncf %274 : vector<32x512xf32> to vector<32x512xbf16>
    %cst_161 = arith.constant dense<0.000000e+00> : vector<32x128xf32>
    %278 = tpu.matmul %277, %276, %cst_161 {dimension_numbers = #tpu.dot_dimension_numbers<[1], [0], [0], [1], [0, 0, 1, 1], [], []>} : vector<32x512xbf16>, vector<512x128xbf16>, vector<32x128xf32> -> vector<32x128xf32>
    %279 = arith.addf %229, %278 : vector<32x128xf32>
    %c5_162 = arith.constant 5 : index
    %c0_163 = arith.constant 0 : index
    %280 = vector.load %arg14[%c5_162, %c0_163] : memref<12x128xf32, #tpu.memory_space<vmem>>, vector<1x128xf32>
    %281 = vector.broadcast %280 : vector<1x128xf32> to vector<32x128xf32>
    %282 = arith.addf %279, %281 : vector<32x128xf32>
    %283 = arith.select %31, %28, %282 : vector<32x128xi1>, vector<32x128xf32>
    %c6_164 = arith.constant 6 : index
    %c0_165 = arith.constant 0 : index
    %284 = vector.load %arg14[%c6_164, %c0_165] : memref<12x128xf32, #tpu.memory_space<vmem>>, vector<1x128xf32>
    %c7_166 = arith.constant 7 : index
    %c0_167 = arith.constant 0 : index
    %285 = vector.load %arg14[%c7_166, %c0_167] : memref<12x128xf32, #tpu.memory_space<vmem>>, vector<1x128xf32>
    %cst_168 = arith.constant dense<0.000000e+00> : vector<32xf32>
    %286 = vector.multi_reduction <add>, %283, %cst_168 [1] : vector<32x128xf32> to vector<32xf32>
    %287 = vector.shape_cast %286 : vector<32xf32> to vector<32x1xf32>
    %cst_169 = arith.constant 1.280000e+02 : f32
    %288 = vector.broadcast %cst_169 : f32 to vector<32x1xf32>
    %289 = arith.divf %287, %288 : vector<32x1xf32>
    %290 = vector.broadcast %289 : vector<32x1xf32> to vector<32x128xf32>
    %291 = arith.subf %283, %290 : vector<32x128xf32>
    %292 = arith.mulf %291, %291 : vector<32x128xf32>
    %cst_170 = arith.constant dense<0.000000e+00> : vector<32xf32>
    %293 = vector.multi_reduction <add>, %292, %cst_170 [1] : vector<32x128xf32> to vector<32xf32>
    %294 = vector.shape_cast %293 : vector<32xf32> to vector<32x1xf32>
    %cst_171 = arith.constant 1.280000e+02 : f32
    %295 = vector.broadcast %cst_171 : f32 to vector<32x1xf32>
    %296 = arith.divf %294, %295 : vector<32x1xf32>
    %297 = vector.broadcast %289 : vector<32x1xf32> to vector<32x128xf32>
    %298 = arith.subf %283, %297 : vector<32x128xf32>
    %cst_172 = arith.constant 9.99999974E-6 : f32
    %299 = vector.broadcast %cst_172 : f32 to vector<32x1xf32>
    %300 = arith.addf %296, %299 : vector<32x1xf32>
    %301 = math.rsqrt %300 : vector<32x1xf32>
    %302 = vector.broadcast %301 : vector<32x1xf32> to vector<32x128xf32>
    %303 = arith.mulf %298, %302 : vector<32x128xf32>
    %304 = vector.broadcast %284 : vector<1x128xf32> to vector<32x128xf32>
    %305 = arith.mulf %303, %304 : vector<32x128xf32>
    %306 = vector.broadcast %285 : vector<1x128xf32> to vector<32x128xf32>
    %307 = arith.addf %305, %306 : vector<32x128xf32>
    %cst_173 = arith.constant 0.000000e+00 : f32
    %308 = vector.broadcast %cst_173 : f32 to vector<32x128xf32>
    %c12 = arith.constant 12 : index
    %c0_174 = arith.constant 0 : index
    %c0_175 = arith.constant 0 : index
    %309 = vector.load %arg8[%c12, %c0_174, %c0_175] : memref<24x128x32xbf16, #tpu.memory_space<vmem>>, vector<1x128x32xbf16>
    %310 = vector.shape_cast %309 : vector<1x128x32xbf16> to vector<128x32xbf16>
    %311 = arith.truncf %307 : vector<32x128xf32> to vector<32x128xbf16>
    %cst_176 = arith.constant dense<0.000000e+00> : vector<32x32xf32>
    %312 = tpu.matmul %311, %310, %cst_176 {dimension_numbers = #tpu.dot_dimension_numbers<[1], [0], [0], [1], [0, 0, 1, 1], [], []>} : vector<32x128xbf16>, vector<128x32xbf16>, vector<32x32xf32> -> vector<32x32xf32>
    %c12_177 = arith.constant 12 : index
    %c0_178 = arith.constant 0 : index
    %313 = vector.load %arg9[%c12_177, %c0_178] : memref<24x32xf32, #tpu.memory_space<vmem>>, vector<1x32xf32>
    %314 = vector.broadcast %313 : vector<1x32xf32> to vector<32x32xf32>
    %315 = arith.addf %312, %314 : vector<32x32xf32>
    %c16 = arith.constant 16 : index
    %c0_179 = arith.constant 0 : index
    %c0_180 = arith.constant 0 : index
    %316 = vector.load %arg8[%c16, %c0_179, %c0_180] : memref<24x128x32xbf16, #tpu.memory_space<vmem>>, vector<1x128x32xbf16>
    %317 = vector.shape_cast %316 : vector<1x128x32xbf16> to vector<128x32xbf16>
    %318 = arith.truncf %307 : vector<32x128xf32> to vector<32x128xbf16>
    %cst_181 = arith.constant dense<0.000000e+00> : vector<32x32xf32>
    %319 = tpu.matmul %318, %317, %cst_181 {dimension_numbers = #tpu.dot_dimension_numbers<[1], [0], [0], [1], [0, 0, 1, 1], [], []>} : vector<32x128xbf16>, vector<128x32xbf16>, vector<32x32xf32> -> vector<32x32xf32>
    %c16_182 = arith.constant 16 : index
    %c0_183 = arith.constant 0 : index
    %320 = vector.load %arg9[%c16_182, %c0_183] : memref<24x32xf32, #tpu.memory_space<vmem>>, vector<1x32xf32>
    %321 = vector.broadcast %320 : vector<1x32xf32> to vector<32x32xf32>
    %322 = arith.addf %319, %321 : vector<32x32xf32>
    %c20 = arith.constant 20 : index
    %c0_184 = arith.constant 0 : index
    %c0_185 = arith.constant 0 : index
    %323 = vector.load %arg8[%c20, %c0_184, %c0_185] : memref<24x128x32xbf16, #tpu.memory_space<vmem>>, vector<1x128x32xbf16>
    %324 = vector.shape_cast %323 : vector<1x128x32xbf16> to vector<128x32xbf16>
    %325 = arith.truncf %307 : vector<32x128xf32> to vector<32x128xbf16>
    %cst_186 = arith.constant dense<0.000000e+00> : vector<32x32xf32>
    %326 = tpu.matmul %325, %324, %cst_186 {dimension_numbers = #tpu.dot_dimension_numbers<[1], [0], [0], [1], [0, 0, 1, 1], [], []>} : vector<32x128xbf16>, vector<128x32xbf16>, vector<32x32xf32> -> vector<32x32xf32>
    %c20_187 = arith.constant 20 : index
    %c0_188 = arith.constant 0 : index
    %327 = vector.load %arg9[%c20_187, %c0_188] : memref<24x32xf32, #tpu.memory_space<vmem>>, vector<1x32xf32>
    %328 = vector.broadcast %327 : vector<1x32xf32> to vector<32x32xf32>
    %329 = arith.addf %326, %328 : vector<32x32xf32>
    %330 = arith.truncf %315 : vector<32x32xf32> to vector<32x32xbf16>
    %331 = arith.truncf %322 : vector<32x32xf32> to vector<32x32xbf16>
    %cst_189 = arith.constant dense<0.000000e+00> : vector<32x32xf32>
    %332 = tpu.matmul %330, %331, %cst_189 {dimension_numbers = #tpu.dot_dimension_numbers<[1], [1], [0], [0], [0, 0, 1, 0], [], []>} : vector<32x32xbf16>, vector<32x32xbf16>, vector<32x32xf32> -> vector<32x32xf32>
    %333 = arith.addf %332, %32 : vector<32x32xf32>
    %cst_190 = arith.constant dense<0xFF800000> : vector<32xf32>
    %334 = vector.multi_reduction <maximumf>, %333, %cst_190 [1] : vector<32x32xf32> to vector<32xf32>
    %335 = vector.shape_cast %334 : vector<32xf32> to vector<32x1xf32>
    %336 = vector.broadcast %335 : vector<32x1xf32> to vector<32x32xf32>
    %337 = arith.subf %333, %336 : vector<32x32xf32>
    %338 = math.exp %337 : vector<32x32xf32>
    %cst_191 = arith.constant dense<0.000000e+00> : vector<32xf32>
    %339 = vector.multi_reduction <add>, %338, %cst_191 [1] : vector<32x32xf32> to vector<32xf32>
    %340 = vector.shape_cast %339 : vector<32xf32> to vector<32x1xf32>
    %341 = vector.broadcast %340 : vector<32x1xf32> to vector<32x32xf32>
    %342 = arith.divf %338, %341 : vector<32x32xf32>
    %343 = arith.truncf %342 : vector<32x32xf32> to vector<32x32xbf16>
    %344 = arith.truncf %329 : vector<32x32xf32> to vector<32x32xbf16>
    %cst_192 = arith.constant dense<0.000000e+00> : vector<32x32xf32>
    %345 = tpu.matmul %343, %344, %cst_192 {dimension_numbers = #tpu.dot_dimension_numbers<[1], [0], [0], [1], [0, 0, 1, 1], [], []>} : vector<32x32xbf16>, vector<32x32xbf16>, vector<32x32xf32> -> vector<32x32xf32>
    %c4_193 = arith.constant 4 : index
    %c0_194 = arith.constant 0 : index
    %c0_195 = arith.constant 0 : index
    %346 = vector.load %arg10[%c4_193, %c0_194, %c0_195] : memref<8x32x128xbf16, #tpu.memory_space<vmem>>, vector<1x32x128xbf16>
    %347 = vector.shape_cast %346 : vector<1x32x128xbf16> to vector<32x128xbf16>
    %348 = arith.truncf %345 : vector<32x32xf32> to vector<32x32xbf16>
    %cst_196 = arith.constant dense<0.000000e+00> : vector<32x128xf32>
    %349 = tpu.matmul %348, %347, %cst_196 {dimension_numbers = #tpu.dot_dimension_numbers<[1], [0], [0], [1], [0, 0, 1, 1], [], []>} : vector<32x32xbf16>, vector<32x128xbf16>, vector<32x128xf32> -> vector<32x128xf32>
    %350 = arith.addf %308, %349 : vector<32x128xf32>
    %c13 = arith.constant 13 : index
    %c0_197 = arith.constant 0 : index
    %c0_198 = arith.constant 0 : index
    %351 = vector.load %arg8[%c13, %c0_197, %c0_198] : memref<24x128x32xbf16, #tpu.memory_space<vmem>>, vector<1x128x32xbf16>
    %352 = vector.shape_cast %351 : vector<1x128x32xbf16> to vector<128x32xbf16>
    %353 = arith.truncf %307 : vector<32x128xf32> to vector<32x128xbf16>
    %cst_199 = arith.constant dense<0.000000e+00> : vector<32x32xf32>
    %354 = tpu.matmul %353, %352, %cst_199 {dimension_numbers = #tpu.dot_dimension_numbers<[1], [0], [0], [1], [0, 0, 1, 1], [], []>} : vector<32x128xbf16>, vector<128x32xbf16>, vector<32x32xf32> -> vector<32x32xf32>
    %c13_200 = arith.constant 13 : index
    %c0_201 = arith.constant 0 : index
    %355 = vector.load %arg9[%c13_200, %c0_201] : memref<24x32xf32, #tpu.memory_space<vmem>>, vector<1x32xf32>
    %356 = vector.broadcast %355 : vector<1x32xf32> to vector<32x32xf32>
    %357 = arith.addf %354, %356 : vector<32x32xf32>
    %c17 = arith.constant 17 : index
    %c0_202 = arith.constant 0 : index
    %c0_203 = arith.constant 0 : index
    %358 = vector.load %arg8[%c17, %c0_202, %c0_203] : memref<24x128x32xbf16, #tpu.memory_space<vmem>>, vector<1x128x32xbf16>
    %359 = vector.shape_cast %358 : vector<1x128x32xbf16> to vector<128x32xbf16>
    %360 = arith.truncf %307 : vector<32x128xf32> to vector<32x128xbf16>
    %cst_204 = arith.constant dense<0.000000e+00> : vector<32x32xf32>
    %361 = tpu.matmul %360, %359, %cst_204 {dimension_numbers = #tpu.dot_dimension_numbers<[1], [0], [0], [1], [0, 0, 1, 1], [], []>} : vector<32x128xbf16>, vector<128x32xbf16>, vector<32x32xf32> -> vector<32x32xf32>
    %c17_205 = arith.constant 17 : index
    %c0_206 = arith.constant 0 : index
    %362 = vector.load %arg9[%c17_205, %c0_206] : memref<24x32xf32, #tpu.memory_space<vmem>>, vector<1x32xf32>
    %363 = vector.broadcast %362 : vector<1x32xf32> to vector<32x32xf32>
    %364 = arith.addf %361, %363 : vector<32x32xf32>
    %c21 = arith.constant 21 : index
    %c0_207 = arith.constant 0 : index
    %c0_208 = arith.constant 0 : index
    %365 = vector.load %arg8[%c21, %c0_207, %c0_208] : memref<24x128x32xbf16, #tpu.memory_space<vmem>>, vector<1x128x32xbf16>
    %366 = vector.shape_cast %365 : vector<1x128x32xbf16> to vector<128x32xbf16>
    %367 = arith.truncf %307 : vector<32x128xf32> to vector<32x128xbf16>
    %cst_209 = arith.constant dense<0.000000e+00> : vector<32x32xf32>
    %368 = tpu.matmul %367, %366, %cst_209 {dimension_numbers = #tpu.dot_dimension_numbers<[1], [0], [0], [1], [0, 0, 1, 1], [], []>} : vector<32x128xbf16>, vector<128x32xbf16>, vector<32x32xf32> -> vector<32x32xf32>
    %c21_210 = arith.constant 21 : index
    %c0_211 = arith.constant 0 : index
    %369 = vector.load %arg9[%c21_210, %c0_211] : memref<24x32xf32, #tpu.memory_space<vmem>>, vector<1x32xf32>
    %370 = vector.broadcast %369 : vector<1x32xf32> to vector<32x32xf32>
    %371 = arith.addf %368, %370 : vector<32x32xf32>
    %372 = arith.truncf %357 : vector<32x32xf32> to vector<32x32xbf16>
    %373 = arith.truncf %364 : vector<32x32xf32> to vector<32x32xbf16>
    %cst_212 = arith.constant dense<0.000000e+00> : vector<32x32xf32>
    %374 = tpu.matmul %372, %373, %cst_212 {dimension_numbers = #tpu.dot_dimension_numbers<[1], [1], [0], [0], [0, 0, 1, 0], [], []>} : vector<32x32xbf16>, vector<32x32xbf16>, vector<32x32xf32> -> vector<32x32xf32>
    %375 = arith.addf %374, %32 : vector<32x32xf32>
    %cst_213 = arith.constant dense<0xFF800000> : vector<32xf32>
    %376 = vector.multi_reduction <maximumf>, %375, %cst_213 [1] : vector<32x32xf32> to vector<32xf32>
    %377 = vector.shape_cast %376 : vector<32xf32> to vector<32x1xf32>
    %378 = vector.broadcast %377 : vector<32x1xf32> to vector<32x32xf32>
    %379 = arith.subf %375, %378 : vector<32x32xf32>
    %380 = math.exp %379 : vector<32x32xf32>
    %cst_214 = arith.constant dense<0.000000e+00> : vector<32xf32>
    %381 = vector.multi_reduction <add>, %380, %cst_214 [1] : vector<32x32xf32> to vector<32xf32>
    %382 = vector.shape_cast %381 : vector<32xf32> to vector<32x1xf32>
    %383 = vector.broadcast %382 : vector<32x1xf32> to vector<32x32xf32>
    %384 = arith.divf %380, %383 : vector<32x32xf32>
    %385 = arith.truncf %384 : vector<32x32xf32> to vector<32x32xbf16>
    %386 = arith.truncf %371 : vector<32x32xf32> to vector<32x32xbf16>
    %cst_215 = arith.constant dense<0.000000e+00> : vector<32x32xf32>
    %387 = tpu.matmul %385, %386, %cst_215 {dimension_numbers = #tpu.dot_dimension_numbers<[1], [0], [0], [1], [0, 0, 1, 1], [], []>} : vector<32x32xbf16>, vector<32x32xbf16>, vector<32x32xf32> -> vector<32x32xf32>
    %c5_216 = arith.constant 5 : index
    %c0_217 = arith.constant 0 : index
    %c0_218 = arith.constant 0 : index
    %388 = vector.load %arg10[%c5_216, %c0_217, %c0_218] : memref<8x32x128xbf16, #tpu.memory_space<vmem>>, vector<1x32x128xbf16>
    %389 = vector.shape_cast %388 : vector<1x32x128xbf16> to vector<32x128xbf16>
    %390 = arith.truncf %387 : vector<32x32xf32> to vector<32x32xbf16>
    %cst_219 = arith.constant dense<0.000000e+00> : vector<32x128xf32>
    %391 = tpu.matmul %390, %389, %cst_219 {dimension_numbers = #tpu.dot_dimension_numbers<[1], [0], [0], [1], [0, 0, 1, 1], [], []>} : vector<32x32xbf16>, vector<32x128xbf16>, vector<32x128xf32> -> vector<32x128xf32>
    %392 = arith.addf %350, %391 : vector<32x128xf32>
    %c14 = arith.constant 14 : index
    %c0_220 = arith.constant 0 : index
    %c0_221 = arith.constant 0 : index
    %393 = vector.load %arg8[%c14, %c0_220, %c0_221] : memref<24x128x32xbf16, #tpu.memory_space<vmem>>, vector<1x128x32xbf16>
    %394 = vector.shape_cast %393 : vector<1x128x32xbf16> to vector<128x32xbf16>
    %395 = arith.truncf %307 : vector<32x128xf32> to vector<32x128xbf16>
    %cst_222 = arith.constant dense<0.000000e+00> : vector<32x32xf32>
    %396 = tpu.matmul %395, %394, %cst_222 {dimension_numbers = #tpu.dot_dimension_numbers<[1], [0], [0], [1], [0, 0, 1, 1], [], []>} : vector<32x128xbf16>, vector<128x32xbf16>, vector<32x32xf32> -> vector<32x32xf32>
    %c14_223 = arith.constant 14 : index
    %c0_224 = arith.constant 0 : index
    %397 = vector.load %arg9[%c14_223, %c0_224] : memref<24x32xf32, #tpu.memory_space<vmem>>, vector<1x32xf32>
    %398 = vector.broadcast %397 : vector<1x32xf32> to vector<32x32xf32>
    %399 = arith.addf %396, %398 : vector<32x32xf32>
    %c18 = arith.constant 18 : index
    %c0_225 = arith.constant 0 : index
    %c0_226 = arith.constant 0 : index
    %400 = vector.load %arg8[%c18, %c0_225, %c0_226] : memref<24x128x32xbf16, #tpu.memory_space<vmem>>, vector<1x128x32xbf16>
    %401 = vector.shape_cast %400 : vector<1x128x32xbf16> to vector<128x32xbf16>
    %402 = arith.truncf %307 : vector<32x128xf32> to vector<32x128xbf16>
    %cst_227 = arith.constant dense<0.000000e+00> : vector<32x32xf32>
    %403 = tpu.matmul %402, %401, %cst_227 {dimension_numbers = #tpu.dot_dimension_numbers<[1], [0], [0], [1], [0, 0, 1, 1], [], []>} : vector<32x128xbf16>, vector<128x32xbf16>, vector<32x32xf32> -> vector<32x32xf32>
    %c18_228 = arith.constant 18 : index
    %c0_229 = arith.constant 0 : index
    %404 = vector.load %arg9[%c18_228, %c0_229] : memref<24x32xf32, #tpu.memory_space<vmem>>, vector<1x32xf32>
    %405 = vector.broadcast %404 : vector<1x32xf32> to vector<32x32xf32>
    %406 = arith.addf %403, %405 : vector<32x32xf32>
    %c22 = arith.constant 22 : index
    %c0_230 = arith.constant 0 : index
    %c0_231 = arith.constant 0 : index
    %407 = vector.load %arg8[%c22, %c0_230, %c0_231] : memref<24x128x32xbf16, #tpu.memory_space<vmem>>, vector<1x128x32xbf16>
    %408 = vector.shape_cast %407 : vector<1x128x32xbf16> to vector<128x32xbf16>
    %409 = arith.truncf %307 : vector<32x128xf32> to vector<32x128xbf16>
    %cst_232 = arith.constant dense<0.000000e+00> : vector<32x32xf32>
    %410 = tpu.matmul %409, %408, %cst_232 {dimension_numbers = #tpu.dot_dimension_numbers<[1], [0], [0], [1], [0, 0, 1, 1], [], []>} : vector<32x128xbf16>, vector<128x32xbf16>, vector<32x32xf32> -> vector<32x32xf32>
    %c22_233 = arith.constant 22 : index
    %c0_234 = arith.constant 0 : index
    %411 = vector.load %arg9[%c22_233, %c0_234] : memref<24x32xf32, #tpu.memory_space<vmem>>, vector<1x32xf32>
    %412 = vector.broadcast %411 : vector<1x32xf32> to vector<32x32xf32>
    %413 = arith.addf %410, %412 : vector<32x32xf32>
    %414 = arith.truncf %399 : vector<32x32xf32> to vector<32x32xbf16>
    %415 = arith.truncf %406 : vector<32x32xf32> to vector<32x32xbf16>
    %cst_235 = arith.constant dense<0.000000e+00> : vector<32x32xf32>
    %416 = tpu.matmul %414, %415, %cst_235 {dimension_numbers = #tpu.dot_dimension_numbers<[1], [1], [0], [0], [0, 0, 1, 0], [], []>} : vector<32x32xbf16>, vector<32x32xbf16>, vector<32x32xf32> -> vector<32x32xf32>
    %417 = arith.addf %416, %32 : vector<32x32xf32>
    %cst_236 = arith.constant dense<0xFF800000> : vector<32xf32>
    %418 = vector.multi_reduction <maximumf>, %417, %cst_236 [1] : vector<32x32xf32> to vector<32xf32>
    %419 = vector.shape_cast %418 : vector<32xf32> to vector<32x1xf32>
    %420 = vector.broadcast %419 : vector<32x1xf32> to vector<32x32xf32>
    %421 = arith.subf %417, %420 : vector<32x32xf32>
    %422 = math.exp %421 : vector<32x32xf32>
    %cst_237 = arith.constant dense<0.000000e+00> : vector<32xf32>
    %423 = vector.multi_reduction <add>, %422, %cst_237 [1] : vector<32x32xf32> to vector<32xf32>
    %424 = vector.shape_cast %423 : vector<32xf32> to vector<32x1xf32>
    %425 = vector.broadcast %424 : vector<32x1xf32> to vector<32x32xf32>
    %426 = arith.divf %422, %425 : vector<32x32xf32>
    %427 = arith.truncf %426 : vector<32x32xf32> to vector<32x32xbf16>
    %428 = arith.truncf %413 : vector<32x32xf32> to vector<32x32xbf16>
    %cst_238 = arith.constant dense<0.000000e+00> : vector<32x32xf32>
    %429 = tpu.matmul %427, %428, %cst_238 {dimension_numbers = #tpu.dot_dimension_numbers<[1], [0], [0], [1], [0, 0, 1, 1], [], []>} : vector<32x32xbf16>, vector<32x32xbf16>, vector<32x32xf32> -> vector<32x32xf32>
    %c6_239 = arith.constant 6 : index
    %c0_240 = arith.constant 0 : index
    %c0_241 = arith.constant 0 : index
    %430 = vector.load %arg10[%c6_239, %c0_240, %c0_241] : memref<8x32x128xbf16, #tpu.memory_space<vmem>>, vector<1x32x128xbf16>
    %431 = vector.shape_cast %430 : vector<1x32x128xbf16> to vector<32x128xbf16>
    %432 = arith.truncf %429 : vector<32x32xf32> to vector<32x32xbf16>
    %cst_242 = arith.constant dense<0.000000e+00> : vector<32x128xf32>
    %433 = tpu.matmul %432, %431, %cst_242 {dimension_numbers = #tpu.dot_dimension_numbers<[1], [0], [0], [1], [0, 0, 1, 1], [], []>} : vector<32x32xbf16>, vector<32x128xbf16>, vector<32x128xf32> -> vector<32x128xf32>
    %434 = arith.addf %392, %433 : vector<32x128xf32>
    %c15 = arith.constant 15 : index
    %c0_243 = arith.constant 0 : index
    %c0_244 = arith.constant 0 : index
    %435 = vector.load %arg8[%c15, %c0_243, %c0_244] : memref<24x128x32xbf16, #tpu.memory_space<vmem>>, vector<1x128x32xbf16>
    %436 = vector.shape_cast %435 : vector<1x128x32xbf16> to vector<128x32xbf16>
    %437 = arith.truncf %307 : vector<32x128xf32> to vector<32x128xbf16>
    %cst_245 = arith.constant dense<0.000000e+00> : vector<32x32xf32>
    %438 = tpu.matmul %437, %436, %cst_245 {dimension_numbers = #tpu.dot_dimension_numbers<[1], [0], [0], [1], [0, 0, 1, 1], [], []>} : vector<32x128xbf16>, vector<128x32xbf16>, vector<32x32xf32> -> vector<32x32xf32>
    %c15_246 = arith.constant 15 : index
    %c0_247 = arith.constant 0 : index
    %439 = vector.load %arg9[%c15_246, %c0_247] : memref<24x32xf32, #tpu.memory_space<vmem>>, vector<1x32xf32>
    %440 = vector.broadcast %439 : vector<1x32xf32> to vector<32x32xf32>
    %441 = arith.addf %438, %440 : vector<32x32xf32>
    %c19 = arith.constant 19 : index
    %c0_248 = arith.constant 0 : index
    %c0_249 = arith.constant 0 : index
    %442 = vector.load %arg8[%c19, %c0_248, %c0_249] : memref<24x128x32xbf16, #tpu.memory_space<vmem>>, vector<1x128x32xbf16>
    %443 = vector.shape_cast %442 : vector<1x128x32xbf16> to vector<128x32xbf16>
    %444 = arith.truncf %307 : vector<32x128xf32> to vector<32x128xbf16>
    %cst_250 = arith.constant dense<0.000000e+00> : vector<32x32xf32>
    %445 = tpu.matmul %444, %443, %cst_250 {dimension_numbers = #tpu.dot_dimension_numbers<[1], [0], [0], [1], [0, 0, 1, 1], [], []>} : vector<32x128xbf16>, vector<128x32xbf16>, vector<32x32xf32> -> vector<32x32xf32>
    %c19_251 = arith.constant 19 : index
    %c0_252 = arith.constant 0 : index
    %446 = vector.load %arg9[%c19_251, %c0_252] : memref<24x32xf32, #tpu.memory_space<vmem>>, vector<1x32xf32>
    %447 = vector.broadcast %446 : vector<1x32xf32> to vector<32x32xf32>
    %448 = arith.addf %445, %447 : vector<32x32xf32>
    %c23 = arith.constant 23 : index
    %c0_253 = arith.constant 0 : index
    %c0_254 = arith.constant 0 : index
    %449 = vector.load %arg8[%c23, %c0_253, %c0_254] : memref<24x128x32xbf16, #tpu.memory_space<vmem>>, vector<1x128x32xbf16>
    %450 = vector.shape_cast %449 : vector<1x128x32xbf16> to vector<128x32xbf16>
    %451 = arith.truncf %307 : vector<32x128xf32> to vector<32x128xbf16>
    %cst_255 = arith.constant dense<0.000000e+00> : vector<32x32xf32>
    %452 = tpu.matmul %451, %450, %cst_255 {dimension_numbers = #tpu.dot_dimension_numbers<[1], [0], [0], [1], [0, 0, 1, 1], [], []>} : vector<32x128xbf16>, vector<128x32xbf16>, vector<32x32xf32> -> vector<32x32xf32>
    %c23_256 = arith.constant 23 : index
    %c0_257 = arith.constant 0 : index
    %453 = vector.load %arg9[%c23_256, %c0_257] : memref<24x32xf32, #tpu.memory_space<vmem>>, vector<1x32xf32>
    %454 = vector.broadcast %453 : vector<1x32xf32> to vector<32x32xf32>
    %455 = arith.addf %452, %454 : vector<32x32xf32>
    %456 = arith.truncf %441 : vector<32x32xf32> to vector<32x32xbf16>
    %457 = arith.truncf %448 : vector<32x32xf32> to vector<32x32xbf16>
    %cst_258 = arith.constant dense<0.000000e+00> : vector<32x32xf32>
    %458 = tpu.matmul %456, %457, %cst_258 {dimension_numbers = #tpu.dot_dimension_numbers<[1], [1], [0], [0], [0, 0, 1, 0], [], []>} : vector<32x32xbf16>, vector<32x32xbf16>, vector<32x32xf32> -> vector<32x32xf32>
    %459 = arith.addf %458, %32 : vector<32x32xf32>
    %cst_259 = arith.constant dense<0xFF800000> : vector<32xf32>
    %460 = vector.multi_reduction <maximumf>, %459, %cst_259 [1] : vector<32x32xf32> to vector<32xf32>
    %461 = vector.shape_cast %460 : vector<32xf32> to vector<32x1xf32>
    %462 = vector.broadcast %461 : vector<32x1xf32> to vector<32x32xf32>
    %463 = arith.subf %459, %462 : vector<32x32xf32>
    %464 = math.exp %463 : vector<32x32xf32>
    %cst_260 = arith.constant dense<0.000000e+00> : vector<32xf32>
    %465 = vector.multi_reduction <add>, %464, %cst_260 [1] : vector<32x32xf32> to vector<32xf32>
    %466 = vector.shape_cast %465 : vector<32xf32> to vector<32x1xf32>
    %467 = vector.broadcast %466 : vector<32x1xf32> to vector<32x32xf32>
    %468 = arith.divf %464, %467 : vector<32x32xf32>
    %469 = arith.truncf %468 : vector<32x32xf32> to vector<32x32xbf16>
    %470 = arith.truncf %455 : vector<32x32xf32> to vector<32x32xbf16>
    %cst_261 = arith.constant dense<0.000000e+00> : vector<32x32xf32>
    %471 = tpu.matmul %469, %470, %cst_261 {dimension_numbers = #tpu.dot_dimension_numbers<[1], [0], [0], [1], [0, 0, 1, 1], [], []>} : vector<32x32xbf16>, vector<32x32xbf16>, vector<32x32xf32> -> vector<32x32xf32>
    %c7_262 = arith.constant 7 : index
    %c0_263 = arith.constant 0 : index
    %c0_264 = arith.constant 0 : index
    %472 = vector.load %arg10[%c7_262, %c0_263, %c0_264] : memref<8x32x128xbf16, #tpu.memory_space<vmem>>, vector<1x32x128xbf16>
    %473 = vector.shape_cast %472 : vector<1x32x128xbf16> to vector<32x128xbf16>
    %474 = arith.truncf %471 : vector<32x32xf32> to vector<32x32xbf16>
    %cst_265 = arith.constant dense<0.000000e+00> : vector<32x128xf32>
    %475 = tpu.matmul %474, %473, %cst_265 {dimension_numbers = #tpu.dot_dimension_numbers<[1], [0], [0], [1], [0, 0, 1, 1], [], []>} : vector<32x32xbf16>, vector<32x128xbf16>, vector<32x128xf32> -> vector<32x128xf32>
    %476 = arith.addf %434, %475 : vector<32x128xf32>
    %477 = arith.addf %283, %476 : vector<32x128xf32>
    %c10_266 = arith.constant 10 : index
    %c0_267 = arith.constant 0 : index
    %478 = vector.load %arg14[%c10_266, %c0_267] : memref<12x128xf32, #tpu.memory_space<vmem>>, vector<1x128xf32>
    %479 = vector.broadcast %478 : vector<1x128xf32> to vector<32x128xf32>
    %480 = arith.addf %477, %479 : vector<32x128xf32>
    %c8_268 = arith.constant 8 : index
    %c0_269 = arith.constant 0 : index
    %481 = vector.load %arg14[%c8_268, %c0_269] : memref<12x128xf32, #tpu.memory_space<vmem>>, vector<1x128xf32>
    %c9_270 = arith.constant 9 : index
    %c0_271 = arith.constant 0 : index
    %482 = vector.load %arg14[%c9_270, %c0_271] : memref<12x128xf32, #tpu.memory_space<vmem>>, vector<1x128xf32>
    %cst_272 = arith.constant dense<0.000000e+00> : vector<32xf32>
    %483 = vector.multi_reduction <add>, %480, %cst_272 [1] : vector<32x128xf32> to vector<32xf32>
    %484 = vector.shape_cast %483 : vector<32xf32> to vector<32x1xf32>
    %cst_273 = arith.constant 1.280000e+02 : f32
    %485 = vector.broadcast %cst_273 : f32 to vector<32x1xf32>
    %486 = arith.divf %484, %485 : vector<32x1xf32>
    %487 = vector.broadcast %486 : vector<32x1xf32> to vector<32x128xf32>
    %488 = arith.subf %480, %487 : vector<32x128xf32>
    %489 = arith.mulf %488, %488 : vector<32x128xf32>
    %cst_274 = arith.constant dense<0.000000e+00> : vector<32xf32>
    %490 = vector.multi_reduction <add>, %489, %cst_274 [1] : vector<32x128xf32> to vector<32xf32>
    %491 = vector.shape_cast %490 : vector<32xf32> to vector<32x1xf32>
    %cst_275 = arith.constant 1.280000e+02 : f32
    %492 = vector.broadcast %cst_275 : f32 to vector<32x1xf32>
    %493 = arith.divf %491, %492 : vector<32x1xf32>
    %494 = vector.broadcast %486 : vector<32x1xf32> to vector<32x128xf32>
    %495 = arith.subf %480, %494 : vector<32x128xf32>
    %cst_276 = arith.constant 9.99999974E-6 : f32
    %496 = vector.broadcast %cst_276 : f32 to vector<32x1xf32>
    %497 = arith.addf %493, %496 : vector<32x1xf32>
    %498 = math.rsqrt %497 : vector<32x1xf32>
    %499 = vector.broadcast %498 : vector<32x1xf32> to vector<32x128xf32>
    %500 = arith.mulf %495, %499 : vector<32x128xf32>
    %501 = vector.broadcast %481 : vector<1x128xf32> to vector<32x128xf32>
    %502 = arith.mulf %500, %501 : vector<32x128xf32>
    %503 = vector.broadcast %482 : vector<1x128xf32> to vector<32x128xf32>
    %504 = arith.addf %502, %503 : vector<32x128xf32>
    %c1_277 = arith.constant 1 : index
    %c0_278 = arith.constant 0 : index
    %c0_279 = arith.constant 0 : index
    %505 = vector.load %arg11[%c1_277, %c0_278, %c0_279] : memref<2x128x512xbf16, #tpu.memory_space<vmem>>, vector<1x128x512xbf16>
    %506 = vector.shape_cast %505 : vector<1x128x512xbf16> to vector<128x512xbf16>
    %507 = arith.truncf %504 : vector<32x128xf32> to vector<32x128xbf16>
    %cst_280 = arith.constant dense<0.000000e+00> : vector<32x512xf32>
    %508 = tpu.matmul %507, %506, %cst_280 {dimension_numbers = #tpu.dot_dimension_numbers<[1], [0], [0], [1], [0, 0, 1, 1], [], []>} : vector<32x128xbf16>, vector<128x512xbf16>, vector<32x512xf32> -> vector<32x512xf32>
    %c1_281 = arith.constant 1 : index
    %c0_282 = arith.constant 0 : index
    %c0_283 = arith.constant 0 : index
    %509 = vector.load %arg12[%c1_281, %c0_282, %c0_283] : memref<2x1x512xf32, #tpu.memory_space<vmem>>, vector<1x1x512xf32>
    %510 = vector.shape_cast %509 : vector<1x1x512xf32> to vector<1x512xf32>
    %511 = vector.broadcast %510 : vector<1x512xf32> to vector<32x512xf32>
    %512 = arith.addf %508, %511 : vector<32x512xf32>
    %cst_284 = arith.constant 5.000000e-01 : f32
    %513 = vector.broadcast %cst_284 : f32 to vector<32x512xf32>
    %514 = arith.mulf %513, %512 : vector<32x512xf32>
    %cst_285 = arith.constant 4.471500e-02 : f32
    %515 = vector.broadcast %cst_285 : f32 to vector<32x512xf32>
    %516 = arith.mulf %515, %512 : vector<32x512xf32>
    %517 = arith.mulf %516, %512 : vector<32x512xf32>
    %518 = arith.mulf %517, %512 : vector<32x512xf32>
    %519 = arith.addf %512, %518 : vector<32x512xf32>
    %cst_286 = arith.constant 0.797884583 : f32
    %520 = vector.broadcast %cst_286 : f32 to vector<32x512xf32>
    %521 = arith.mulf %520, %519 : vector<32x512xf32>
    %522 = math.tanh %521 : vector<32x512xf32>
    %cst_287 = arith.constant 1.000000e+00 : f32
    %523 = vector.broadcast %cst_287 : f32 to vector<32x512xf32>
    %524 = arith.addf %523, %522 : vector<32x512xf32>
    %525 = arith.mulf %514, %524 : vector<32x512xf32>
    %c1_288 = arith.constant 1 : index
    %c0_289 = arith.constant 0 : index
    %c0_290 = arith.constant 0 : index
    %526 = vector.load %arg13[%c1_288, %c0_289, %c0_290] : memref<2x512x128xbf16, #tpu.memory_space<vmem>>, vector<1x512x128xbf16>
    %527 = vector.shape_cast %526 : vector<1x512x128xbf16> to vector<512x128xbf16>
    %528 = arith.truncf %525 : vector<32x512xf32> to vector<32x512xbf16>
    %cst_291 = arith.constant dense<0.000000e+00> : vector<32x128xf32>
    %529 = tpu.matmul %528, %527, %cst_291 {dimension_numbers = #tpu.dot_dimension_numbers<[1], [0], [0], [1], [0, 0, 1, 1], [], []>} : vector<32x512xbf16>, vector<512x128xbf16>, vector<32x128xf32> -> vector<32x128xf32>
    %530 = arith.addf %480, %529 : vector<32x128xf32>
    %c11_292 = arith.constant 11 : index
    %c0_293 = arith.constant 0 : index
    %531 = vector.load %arg14[%c11_292, %c0_293] : memref<12x128xf32, #tpu.memory_space<vmem>>, vector<1x128xf32>
    %532 = vector.broadcast %531 : vector<1x128xf32> to vector<32x128xf32>
    %533 = arith.addf %530, %532 : vector<32x128xf32>
    %534 = arith.select %31, %28, %533 : vector<32x128xi1>, vector<32x128xf32>
    %cst_294 = arith.constant dense<0.000000e+00> : vector<32xf32>
    %535 = vector.multi_reduction <add>, %534, %cst_294 [1] : vector<32x128xf32> to vector<32xf32>
    %536 = vector.shape_cast %535 : vector<32xf32> to vector<32x1xf32>
    %cst_295 = arith.constant 1.280000e+02 : f32
    %537 = vector.broadcast %cst_295 : f32 to vector<32x1xf32>
    %538 = arith.divf %536, %537 : vector<32x1xf32>
    %539 = vector.broadcast %538 : vector<32x1xf32> to vector<32x128xf32>
    %540 = arith.subf %534, %539 : vector<32x128xf32>
    %541 = arith.mulf %540, %540 : vector<32x128xf32>
    %cst_296 = arith.constant dense<0.000000e+00> : vector<32xf32>
    %542 = vector.multi_reduction <add>, %541, %cst_296 [1] : vector<32x128xf32> to vector<32xf32>
    %543 = vector.shape_cast %542 : vector<32xf32> to vector<32x1xf32>
    %cst_297 = arith.constant 1.280000e+02 : f32
    %544 = vector.broadcast %cst_297 : f32 to vector<32x1xf32>
    %545 = arith.divf %543, %544 : vector<32x1xf32>
    %546 = vector.broadcast %538 : vector<32x1xf32> to vector<32x128xf32>
    %547 = arith.subf %534, %546 : vector<32x128xf32>
    %cst_298 = arith.constant 9.99999974E-6 : f32
    %548 = vector.broadcast %cst_298 : f32 to vector<32x1xf32>
    %549 = arith.addf %545, %548 : vector<32x1xf32>
    %550 = math.rsqrt %549 : vector<32x1xf32>
    %551 = vector.broadcast %550 : vector<32x1xf32> to vector<32x128xf32>
    %552 = arith.mulf %547, %551 : vector<32x128xf32>
    %553 = vector.broadcast %6 : vector<1x128xf32> to vector<32x128xf32>
    %554 = arith.mulf %552, %553 : vector<32x128xf32>
    %555 = vector.broadcast %7 : vector<1x128xf32> to vector<32x128xf32>
    %556 = arith.addf %554, %555 : vector<32x128xf32>
    %c0_299 = arith.constant 0 : index
    %c0_300 = arith.constant 0 : index
    %557 = vector.load %arg15[%c0_299, %c0_300] : memref<128x256xbf16, #tpu.memory_space<vmem>>, vector<128x256xbf16>
    %558 = arith.truncf %556 : vector<32x128xf32> to vector<32x128xbf16>
    %cst_301 = arith.constant dense<0.000000e+00> : vector<32x256xf32>
    %559 = tpu.matmul %558, %557, %cst_301 {dimension_numbers = #tpu.dot_dimension_numbers<[1], [0], [0], [1], [0, 0, 1, 1], [], []>} : vector<32x128xbf16>, vector<128x256xbf16>, vector<32x256xf32> -> vector<32x256xf32>
    %c0_302 = arith.constant 0 : index
    %c0_303 = arith.constant 0 : index
    %560 = vector.load %arg16[%c0_302, %c0_303] : memref<1x256xf32, #tpu.memory_space<vmem>>, vector<1x256xf32>
    %561 = vector.broadcast %560 : vector<1x256xf32> to vector<32x256xf32>
    %562 = arith.addf %559, %561 : vector<32x256xf32>
    %c0_304 = arith.constant 0 : index
    %c0_305 = arith.constant 0 : index
    %563 = vector.load %arg17[%c0_304, %c0_305] : memref<32x256xf32, #tpu.memory_space<vmem>>, vector<32x256xf32>
    tpu.vector_store %arg17[%c0_304, %c0_305], %562 {strides = array<i32>} : memref<32x256xf32, #tpu.memory_space<vmem>>, vector<32x256xf32>,
    %c0_306 = arith.constant 0 : index
    %c0_307 = arith.constant 0 : index
    %564 = vector.load %arg0[%c0_306, %c0_307] : memref<32x1xi32, #tpu.memory_space<vmem>>, vector<32x1xi32>
    %565 = tpu.iota {dimensions = array<i32: 1>} : vector<32x256xi32>
    %566 = vector.broadcast %564 : vector<32x1xi32> to vector<32x256xi32>
    %567 = arith.cmpi eq, %565, %566 : vector<32x256xi32>
    %cst_308 = arith.constant 0.000000e+00 : f32
    %568 = vector.broadcast %cst_308 : f32 to vector<32x256xf32>
    %569 = arith.select %567, %562, %568 : vector<32x256xi1>, vector<32x256xf32>
    %cst_309 = arith.constant dense<0.000000e+00> : vector<32xf32>
    %570 = vector.multi_reduction <add>, %569, %cst_309 [1] : vector<32x256xf32> to vector<32xf32>
    %571 = vector.shape_cast %570 : vector<32xf32> to vector<32x1xf32>
    %cst_310 = arith.constant dense<0xFF800000> : vector<32xf32>
    %572 = vector.multi_reduction <maximumf>, %562, %cst_310 [1] : vector<32x256xf32> to vector<32xf32>
    %573 = vector.shape_cast %572 : vector<32xf32> to vector<32x1xf32>
    %574 = vector.broadcast %573 : vector<32x1xf32> to vector<32x256xf32>
    %575 = arith.subf %562, %574 : vector<32x256xf32>
    %576 = math.exp %575 : vector<32x256xf32>
    %cst_311 = arith.constant dense<0.000000e+00> : vector<32xf32>
    %577 = vector.multi_reduction <add>, %576, %cst_311 [1] : vector<32x256xf32> to vector<32xf32>
    %578 = vector.shape_cast %577 : vector<32xf32> to vector<32x1xf32>
    %579 = math.log %578 : vector<32x1xf32>
    %580 = arith.addf %573, %579 : vector<32x1xf32>
    %c0_i32 = arith.constant 0 : i32
    %581 = vector.broadcast %c0_i32 : i32 to vector<32x1xi32>
    %582 = arith.cmpi sge, %564, %581 : vector<32x1xi32>
    %583 = arith.subf %580, %571 : vector<32x1xf32>
    %cst_312 = arith.constant 0.000000e+00 : f32
    %584 = vector.broadcast %cst_312 : f32 to vector<32x1xf32>
    %585 = arith.select %582, %583, %584 : vector<32x1xi1>, vector<32x1xf32>
    %586 = vector.shape_cast %585 : vector<32x1xf32> to vector<1x32x1xf32>
    %cst_313 = arith.constant dense<0.000000e+00> : vector<1xf32>
    %587 = vector.multi_reduction <add>, %586, %cst_313 [1, 2] : vector<1x32x1xf32> to vector<1xf32>
    %588 = vector.shape_cast %587 : vector<1xf32> to vector<1x1x1xf32>
    %589 = vector.extract %588[0, 0, 0] : f32 from vector<1x1x1xf32>
    %590 = vector.broadcast %589 : f32 to vector<1x128xf32>
    %c0_314 = arith.constant 0 : index
    %c0_315 = arith.constant 0 : index
    %591 = vector.load %arg18[%c0_314, %c0_315] : memref<1x128xf32, #tpu.memory_space<vmem>>, vector<1x128xf32>
    tpu.vector_store %arg18[%c0_314, %c0_315], %590 {strides = array<i32>} : memref<1x128xf32, #tpu.memory_space<vmem>>, vector<1x128xf32>,
    return
  }
}

</mosaic_0001>

<bundles_post_ra>
// kernel: cap_bench_train_forward.1
= control target key start
LH: loop header
LB: loop body
LE: loop exit
PB: predicated region body
PF: predicated region fallthrough
CT: control target
= control target key end

     0   :  { %v11013_v21 = vmov 1983009808   ;;  %v200_v23 = vlaneseq  ;;  %vm11015_vm0 = vmmov 0   ;;  %vm1290_vm1 = vcmask 261120   ;;  %s13517_s6 = inlined_call_operand.vmem [shape: bf16[1024,128], index: 6, kind: input, shape index: {}]   ;;  %s13518_s1 = inlined_call_operand.vmem [shape: f32[2,768], index: 1, kind: input, shape index: {}]   ;;  %s13519_s2 = inlined_call_operand.vmem [shape: f32[8,128], index: 2, kind: input, shape index: {}]   ;;  %s13520_s7 = inlined_call_operand.vmem [shape: f32[5,128], index: 7, kind: input, shape index: {}]   ;;  %s13521_s3 = inlined_call_operand.vmem [shape: f32[22,128], index: 3, kind: input, shape index: {}]   ;;  %s13522_s4 = inlined_call_operand.vmem [shape: f32[32,128], index: 4, kind: input, shape index: {}]   ;;  %s13523_s8 = inlined_call_operand.vmem [shape: bf16[24,128,32], index: 8, kind: input, shape index: {}]   ;;  %s13524_s14 = inlined_call_operand.vmem [shape: f32[12,128], index: 14, kind: input, shape index: {}]   ;;  %s13525_s9 = inlined_call_operand.vmem [shape: f32[24,32], index: 9, kind: input, shape index: {}]   ;;  %s13526_s5 = inlined_call_operand.vmem [shape: f32[32,32], index: 5, kind: input, shape index: {}]   ;;  %s13527_s10 = inlined_call_operand.vmem [shape: bf16[8,32,128], index: 10, kind: input, shape index: {}]   ;;  %s13528_s11 = inlined_call_operand.vmem [shape: bf16[2,128,512], index: 11, kind: input, shape index: {}]   ;;  %s13529_s13 = inlined_call_operand.vmem [shape: bf16[2,512,128], index: 13, kind: input, shape index: {}]   ;;  %s13530_s12 = inlined_call_operand.vmem [shape: f32[2,1,512], index: 12, kind: input, shape index: {}]   ;;  %s13531_s15 = inlined_call_operand.vmem [shape: bf16[128,256], index: 15, kind: input, shape index: {}]   ;;  %s13532_s16 = inlined_call_operand.vmem [shape: f32[1,256], index: 16, kind: input, shape index: {}]   ;;  %s13533_s17 = inlined_call_operand.vmem [shape: f32[32,256], index: 17, kind: output, shape index: {0}]   ;;  %s13534_s0 = inlined_call_operand.vmem [shape: s32[32,1], index: 0, kind: input, shape index: {}]   ;;  %s13535_s18 = inlined_call_operand.vmem [shape: f32[1,128], index: 18, kind: output, shape index: {1}]  }
   0x1   :  { %13538 = sst [smem:[#allocation3_spill]] %s13517_s6  ;;  %v198_v22 = vunpack.c.l.s4 %v11013_v21  ;;  %vm7994_vm14 = vcmask 7168  }
   0x2   :  { %13539 = sst [smem:[#allocation4_spill]] %s13518_s1  ;;  %v11188_v29 = vshrl.u32 %v200_v23, 7 }
   0x3   :  { %13540 = sst [smem:[#allocation5_spill]] %s13519_s2  ;;  %v199_v28 = vunpack.c.0.s8 %v198_v22 }
   0x4   :  { %s13541_s29 = sld [smem:[#allocation3_spill]] }
   0x5   :  { %v202_v34 = vsub.s32 %v199_v28, %v11188_v29  ;;  %s13542_s22 = sld [smem:[#allocation4_spill]] }
   0x6   :  { %s13543_s2 = sld [smem:[#allocation5_spill]] }
   0xa   :  { %v10288_v0 = vld [vmem:[%s13541_s29 + $0x78] sm:$0xff]   ;;  %v10292_v4 = vld [vmem:[%s13541_s29 + $0x70] sm:$0xff]   ;;  %v10296_v8 = vld [vmem:[%s13541_s29 + $0x68] sm:$0xff]  }
   0xb   :  { %v10289_v1 = vld [vmem:[%s13541_s29 + $0x38] sm:$0xff]   ;;  %9020 = vmatprep.subr.bf16.mxu0 %v10288_v0  ;;  %v10293_v5 = vld [vmem:[%s13541_s29 + $0x30] sm:$0xff]   ;;  %v10297_v9 = vld [vmem:[%s13541_s29 + $0x28] sm:$0xff]  }
   0xc   :  { %v10290_v2 = vld [vmem:[%s13541_s29 + $0xf8] sm:$0xff]   ;;  %9021 = vmatpush3.bf16.msra.mxu0 %v10289_v1  ;;  %v10294_v6 = vld [vmem:[%s13541_s29 + $0xf0] sm:$0xff]   ;;  %v10298_v10 = vld [vmem:[%s13541_s29 + $0xe8] sm:$0xff]  }
   0xd   :  { %v10291_v3 = vld [vmem:[%s13541_s29 + $0xb8] sm:$0xff]   ;;  %9042 = vmatprep.subr.bf16.mxu1 %v10290_v2  ;;  %9022 = vmatprep.subr.bf16.mxu0 %v10292_v4  ;;  %v10295_v7 = vld [vmem:[%s13541_s29 + $0xb0] sm:$0xff]   ;;  %v10299_v11 = vld [vmem:[%s13541_s29 + $0xa8] sm:$0xff]  }
   0xe   :  { %9043 = vmatpush3.bf16.msra.mxu1 %v10291_v3  ;;  %v10300_v12 = vld [vmem:[%s13541_s29 + $0x60] sm:$0xff]   ;;  %v10304_v16 = vld [vmem:[%s13541_s29 + $0x58] sm:$0xff]   ;;  %v10308_v20 = vld [vmem:[%s13541_s29 + $0x50] sm:$0xff]  }
   0xf   :  { %9044 = vmatprep.subr.bf16.mxu1 %v10294_v6  ;;  %v10301_v13 = vld [vmem:[%s13541_s29 + $0x20] sm:$0xff]   ;;  %v10305_v17 = vld [vmem:[%s13541_s29 + $0x18] sm:$0xff]   ;;  %v10309_v24 = vld [vmem:[%s13541_s29 + $0x10] sm:$0xff]  }
  0x10   :  { %9023 = vmatpush3.bf16.msra.mxu0 %v10293_v5  ;;  %v10302_v14 = vld [vmem:[%s13541_s29 + $0xe0] sm:$0xff]   ;;  %v10306_v18 = vld [vmem:[%s13541_s29 + $0xd8] sm:$0xff]   ;;  %v10310_v25 = vld [vmem:[%s13541_s29 + $0xd0] sm:$0xff]   ;;  %v11014_v5 = vmov 0.0  }
  0x11   :  { %9024 = vmatprep.subr.bf16.mxu0 %v10296_v8  ;;  %v10303_v15 = vld [vmem:[%s13541_s29 + $0xa0] sm:$0xff]   ;;  %v10307_v19 = vld [vmem:[%s13541_s29 + $0x98] sm:$0xff]   ;;  %v10311_v26 = vld [vmem:[%s13541_s29 + $0x90] sm:$0xff]  }
  0x12   :  { %9045 = vmatpush3.bf16.msra.mxu1 %v10295_v7  ;;  %v10312_v27 = vld [vmem:[%s13541_s29 + $0x48] sm:$0xff]   ;;  %v10316_v33 = vld [vmem:[%s13541_s29 + $0x40] sm:$0xff]   ;;  %v10320_v41 = vld [vmem:[%s13541_s29 + $0x178] sm:$0xff]  }
  0x13   :  { %9046 = vmatprep.subr.bf16.mxu1 %v10298_v10  ;;  %v10313_v30 = vld [vmem:[%s13541_s29 + $0x8] sm:$0xff]   ;;  %v10317_v35 = vld [vmem:[%s13541_s29] sm:$0xff]   ;;  %v10322_v47 = vld [vmem:[%s13541_s29 + $0x138] sm:$0xff]  }
  0x14   :  { %9025 = vmatpush3.bf16.msra.mxu0 %v10297_v9  ;;  %v10314_v31 = vld [vmem:[%s13541_s29 + $0xc8] sm:$0xff]   ;;  %v10318_v36 = vld [vmem:[%s13541_s29 + $0xc0] sm:$0xff]   ;;  %v10323_v49 = vld [vmem:[%s13541_s29 + $0x170] sm:$0xff]  }
  0x15   :  { %9026 = vmatprep.subr.bf16.mxu0 %v10300_v12  ;;  %v10315_v32 = vld [vmem:[%s13541_s29 + $0x88] sm:$0xff]   ;;  %v192_v37 = vld [vmem:[%s13542_s22] sm:$0xff]  ;;  %v10324_v51 = vld [vmem:[%s13541_s29 + $0x130] sm:$0xff]  }
  0x16   :  { %9047 = vmatpush3.bf16.msra.mxu1 %v10299_v11  ;;  %v203_v38 = vrot.slane %v192_v37, %v202_v34  ;;  %v10319_v39 = vld [vmem:[%s13541_s29 + $0x80] sm:$0xff]   ;;  %v196_v40 = vcombine.high %v192_v37, %v192_v37  ;;  %v10325_v52 = vld [vmem:[%s13541_s29 + $0x168] sm:$0xff]   ;;  %v10329_v56 = vld [vmem:[%s13541_s29 + $0x158] sm:$0xff]  }
  0x17   :  { %9048 = vmatprep.subr.bf16.mxu1 %v10302_v14  ;;  %v10326_v53 = vld [vmem:[%s13541_s29 + $0x128] sm:$0xff]   ;;  %v10327_v54 = vld [vmem:[%s13541_s29 + $0x160] sm:$0xff]   ;;  %v10330_v59 = vld [vmem:[%s13541_s29 + $0x118] sm:$0xff]  }
  0x18   :  { %9027 = vmatpush3.bf16.msra.mxu0 %v10301_v13  ;;  %v211_v42 = vcombine.high %v203_v38, %v203_v38  ;;  %v210_v43 = vrot.slane %v196_v40, %v202_v34  ;;  %v227_v44 = vpack.c.bf16 %v203_v38, %v203_v38  ;;  %v10328_v55 = vld [vmem:[%s13541_s29 + $0x120] sm:$0xff]   ;;  %v8021_v57 = vld.sshfl [vmem:[%s13542_s22 + $0x8] sm:$0x33 pattern:$0x76325410]  ;;  %v10331_v60 = vld [vmem:[%s13541_s29 + $0x150] sm:$0xff]  }
  0x19   :  { %9028 = vmatprep.subr.bf16.mxu0 %v10304_v16  ;;  %v220_v58 = vcombine.high %v8021_v57, %v8021_v57  ;;  %v10332_v62 = vld [vmem:[%s13541_s29 + $0x110] sm:$0xff]   ;;  %v10333_v63 = vld [vmem:[%s13541_s29 + $0x148] sm:$0xff]   ;;  %v10335_v1 = vld [vmem:[%s13541_s29 + $0x140] sm:$0xff]   ;;  %v231_v3 = vpack.c.bf16 %v8021_v57, %v8021_v57 }
  0x1a   :  { %9049 = vmatpush3.bf16.msra.mxu1 %v10303_v15  ;;  %v228_v45 = vpack.c.bf16 %v211_v42, %v211_v42  ;;  %v212_v46 = vcombine.high %v210_v43, %v210_v43  ;;  %v229_v48 = vpack.c.bf16 %v210_v43, %v210_v43  ;;  %v10334_v0 = vld [vmem:[%s13541_s29 + $0x108] sm:$0xff]   ;;  %v10336_v2 = vld [vmem:[%s13541_s29 + $0x100] sm:$0xff]   ;;  %v10337_v4 = vld [vmem:[%s13541_s29 + $0x1f8] sm:$0xff]  }
  0x1b   :  { %9050 = vmatprep.subr.bf16.mxu1 %v10306_v18  ;;  %v232_v61 = vpack.c.bf16 %v220_v58, %v220_v58  ;;  %v10338_v6 = vld [vmem:[%s13541_s29 + $0x1f0] sm:$0xff]   ;;  %v10339_v7 = vld [vmem:[%s13541_s29 + $0x1b8] sm:$0xff]   ;;  %v10340_v8 = vld [vmem:[%s13541_s29 + $0x1e8] sm:$0xff]  }
  0x1c   :  { %9029 = vmatpush3.bf16.msra.mxu0 %v10305_v17  ;;  %557 = vmatprep.mubr.bf16.mxu0 %v228_v45  ;;  %v230_v50 = vpack.c.bf16 %v212_v46, %v212_v46  ;;  %v10341_v9 = vld [vmem:[%s13541_s29 + $0x1b0] sm:$0xff]   ;;  %v10342_v10 = vld [vmem:[%s13541_s29 + $0x1e0] sm:$0xff]   ;;  %v10343_v11 = vld [vmem:[%s13541_s29 + $0x1a8] sm:$0xff]  }
  0x1d   :  { %9030 = vmatprep.subr.bf16.mxu0 %v10308_v20  ;;  %v10344_v12 = vld [vmem:[%s13541_s29 + $0x1d8] sm:$0xff]   ;;  %v10345_v13 = vld [vmem:[%s13541_s29 + $0x1a0] sm:$0xff]   ;;  %v10346_v14 = vld [vmem:[%s13541_s29 + $0x1d0] sm:$0xff]  }
  0x1e   :  { %9051 = vmatpush3.bf16.msra.mxu1 %v10307_v19  ;;  %597 = vmatprep.mubr.bf16.mxu1 %v230_v50  ;;  %v10347_v15 = vld [vmem:[%s13541_s29 + $0x198] sm:$0xff]   ;;  %v10348_v16 = vld [vmem:[%s13541_s29 + $0x1c8] sm:$0xff]   ;;  %v10349_v17 = vld [vmem:[%s13541_s29 + $0x190] sm:$0xff]  }
  0x1f   :  { %9052 = vmatprep.subr.bf16.mxu1 %v10310_v25  ;;  %v10350_v18 = vld [vmem:[%s13541_s29 + $0x1c0] sm:$0xff]   ;;  %v10351_v19 = vld [vmem:[%s13541_s29 + $0x188] sm:$0xff]   ;;  %v847_v57 = vld [vmem:[%s13522_s4 + $0x18] sm:$0xff] }
  0x20   :  { %9031 = vmatpush3.bf16.msra.mxu0 %v10309_v24  ;;  %v738_v20 = vld [vmem:[%s13543_s2] sm:$0xff] }
  0x21   :  { %9032 = vmatprep.subr.bf16.mxu0 %v10312_v27  ;;  %v739_v21 = vpack.c.bf16 %v738_v20, %v738_v20  ;;  %v10352_v22 = vld [vmem:[%s13541_s29 + $0x180] sm:$0xff]  }
  0x22   :  { %9053 = vmatpush3.bf16.msra.mxu1 %v10311_v26  ;;  %v8022_v34 = vld [vmem:[%s13520_s7] ss:$0 sm:$0xff]  ;;  %v8080_v45 = vld [vmem:[%s13520_s7 + $0x2] ss:$0 sm:$0xff] }
  0x23   :  { %9054 = vmatprep.subr.bf16.mxu1 %v10314_v31 }
  0x24   :  { %9033 = vmatpush3.bf16.msra.mxu0 %v10313_v30 }
  0x25   :  { %9034 = vmatprep.subr.bf16.mxu0 %v10316_v33 }
  0x26   :  { %9055 = vmatpush3.bf16.msra.mxu1 %v10315_v32 }
  0x27   :  { %9056 = vmatprep.subr.bf16.mxu1 %v10318_v36 }
  0x28   :  { %9035 = vmatpush3.bf16.msra.mxu0 %v10317_v35 }
  0x29   :  { %9064 = vmatprep.subr.bf16.mxu0 %v10320_v41 }
  0x2a   :  { %9057 = vmatpush3.bf16.msra.mxu1 %v10319_v39 }
  0x2b   :  { %558 = vmatmul.mubr.bf16.vlgmr.msra.gmra.mxu0 %v227_v44  ;;  %9552 = vmatprep.subr.bf16.mxu1 %v11014_v5 }
  0x2c   :  { %9065 = vmatpush3.bf16.msra.mxu0 %v10322_v47  ;;  %637 = vmatprep.mubr.bf16.mxu0 %v232_v61 }
  0x2d   :  { %598 = vmatmul.mubr.bf16.vlgmr.msra.gmra.mxu1 %v229_v48  ;;  %9066 = vmatprep.subr.bf16.mxu0 %v10323_v49 }
  0x2e   :  { %9553 = vmatpush3.bf16.msra.mxu1 %v10339_v7  ;;  %9568 = vmatprep.mubr.msk.bf16.mxu1 %vm11015_vm0, %v11014_v5 }
  0x2f   :  { %9554 = vmatprep.subr.bf16.mxu1 %v11014_v5 }
  0x30   :  { %9067 = vmatpush3.bf16.msra.mxu0 %v10324_v51  ;;  %v834_v51 = vld [vmem:[%s13521_s3] sm:$0xff] }
  0x31   :  { %9068 = vmatprep.subr.bf16.mxu0 %v10325_v52  ;;  %837 = vst [vmem:[#allocation2 + $0xa] sm:$0xff] %v834_v51  ;;  %v835_v52 = vld [vmem:[%s13521_s3 + $0x8] sm:$0xff] }
  0x32   :  { %9555 = vmatpush3.bf16.msra.mxu1 %v10341_v9  ;;  %838 = vst [vmem:[#allocation2 + $0x12] sm:$0xff] %v835_v52 }
  0x33   :  { %9556 = vmatprep.subr.bf16.mxu1 %v11014_v5 }
  0x34   :  { %9069 = vmatpush3.bf16.msra.mxu0 %v10326_v53  ;;  %v836_v53 = vld [vmem:[%s13521_s3 + $0x10] sm:$0x3f] }
  0x35   :  { %9070 = vmatprep.subr.bf16.mxu0 %v10327_v54  ;;  %839 = vst [vmem:[#allocation2 + $0x1a] sm:$0x3f] %v836_v53  ;;  %v846_v54 = vld [vmem:[%s13522_s4 + $0x10] sm:$0xff] }
  0x36   :  { %9557 = vmatpush3.bf16.msra.mxu1 %v10343_v11 }
  0x37   :  { %9558 = vmatprep.subr.bf16.mxu1 %v11014_v5 }
  0x38   :  { %9071 = vmatpush3.bf16.msra.mxu0 %v10328_v55 }
  0x39   :  { %9072 = vmatprep.subr.bf16.mxu0 %v10329_v56  ;;  %v842_v55 = vld [vmem:[#allocation2 + $0x10] sm:$0xff] }
  0x3a   :  { %9559 = vmatpush3.bf16.msra.mxu1 %v10345_v13  ;;  %v11335_v56 = vadd.f32 %v846_v54, %v842_v55 }
  0x3b   :  { %9560 = vmatprep.subr.bf16.mxu1 %v11014_v5 }
  0x3c   :  { %9073 = vmatpush3.bf16.msra.mxu0 %v10330_v59  ;;  %871 = vadd.xlane.f32.xlu1 %v11335_v56  ;;  %v843_v58 = vld [vmem:[#allocation2 + $0x18] sm:$0xff] }
  0x3d   :  { %9074 = vmatprep.subr.bf16.mxu0 %v10331_v60  ;;  %v11341_v59 = vadd.f32 %v847_v57, %v843_v58  ;;  %v8071_v60 = vld [vmem:[%s13520_s7 + $0x1] ss:$0 sm:$0xff] }
  0x3e   :  { %9561 = vmatpush3.bf16.msra.mxu1 %v10347_v15 }
  0x3f   :  { %9562 = vmatprep.subr.bf16.mxu1 %v11014_v5 }
  0x40   :  { %9075 = vmatpush3.bf16.msra.mxu0 %v10332_v62  ;;  %873 = vadd.xlane.f32.xlu1 %v11341_v59 }
  0x41   :  { %9076 = vmatprep.subr.bf16.mxu0 %v10333_v63 }
  0x42   :  { %9563 = vmatpush3.bf16.msra.mxu1 %v10349_v17 }
  0x43   :  { %9564 = vmatprep.subr.bf16.mxu1 %v11014_v5 }
  0x44   :  { %9077 = vmatpush3.bf16.msra.mxu0 %v10334_v0 }
  0x45   :  { %9078 = vmatprep.subr.bf16.mxu0 %v10335_v1 }
  0x46   :  { %9565 = vmatpush3.bf16.msra.mxu1 %v10351_v19 }
  0x47   :  { %9566 = vmatprep.subr.bf16.mxu1 %v11014_v5 }
  0x48   :  { %9079 = vmatpush3.bf16.msra.mxu0 %v10336_v2  ;;  %v844_v2 = vld [vmem:[%s13522_s4] sm:$0xff] }
  0x49   :  { %9572 = vmatprep.subr.bf16.mxu0 %v11014_v5 }
  0x4a   :  { %9567 = vmatpush3.bf16.msra.mxu1 %v10352_v22 }
  0x4b   :  { %638 = vmatmul.mubr.bf16.vlgmr.msra.gmra.mxu0 %v231_v3 }
  0x4c   :  { %9573 = vmatpush3.bf16.msra.mxu0 %v10337_v4  ;;  %9588 = vmatprep.mubr.msk.bf16.mxu0 %vm11015_vm0, %v11014_v5 }
  0x4d   :  { %9574 = vmatprep.subr.bf16.mxu0 %v11014_v5 }
  0x50   :  { %9575 = vmatpush3.bf16.msra.mxu0 %v10338_v6  ;;  %v845_v6 = vld [vmem:[%s13522_s4 + $0x8] sm:$0xff] }
  0x51   :  { %9576 = vmatprep.subr.bf16.mxu0 %v11014_v5 }
  0x54   :  { %9577 = vmatpush3.bf16.msra.mxu0 %v10340_v8 }
  0x55   :  { %9578 = vmatprep.subr.bf16.mxu0 %v11014_v5 }
  0x58   :  { %9579 = vmatpush3.bf16.msra.mxu0 %v10342_v10 }
  0x59   :  { %9580 = vmatprep.subr.bf16.mxu0 %v11014_v5 }
  0x5c   :  { %9581 = vmatpush3.bf16.msra.mxu0 %v10344_v12 }
  0x5d   :  { %9582 = vmatprep.subr.bf16.mxu0 %v11014_v5 }
  0x60   :  { %9583 = vmatpush3.bf16.msra.mxu0 %v10346_v14 }
  0x61   :  { %9584 = vmatprep.subr.bf16.mxu0 %v11014_v5 }
  0x64   :  { %9585 = vmatpush3.bf16.msra.mxu0 %v10348_v16 }
  0x65   :  { %9586 = vmatprep.subr.bf16.mxu0 %v11014_v5 }
  0x68   :  { %9587 = vmatpush3.bf16.msra.mxu0 %v10350_v18 }
  0x6b   :  { %9589 = vmatmul.mubr.bf16.vlgmr.msra.gmra.mxu0 %v739_v21 }
  0xc5   :  { %v872_v8 = vpop.xlane.xlu1 %871 }
  0xc6   :  { %v878_v9 = vmul.f32 0.0078125, %v872_v8 }
  0xc8   :  { %v11363_v15 = vsub.f32 %v11335_v56, %v878_v9 }
  0xc9   :  { %v874_v11 = vpop.xlane.xlu1 %873 }
  0xca   :  { %v879_v14 = vmul.f32 0.0078125, %v874_v11  ;;  %v886_v19 = vmul.f32 %v11363_v15, %v11363_v15 }
  0xcc   :  { %v11373_v21 = vsub.f32 %v11341_v59, %v879_v14 }
  0xeb   :  { %v9036_v24 = vpop.f32.mrf.mxu0 }
  0xed   :  { %v9037_v25 = vpop.f32.mrf.mxu0  ;;  %v9058_v26 = vpop.f32.mrf.mxu1 }
  0xee   :  { %v9038_v33 = vadd.f32 %v9037_v25, %v9036_v24  ;;  %v887_v24 = vmul.f32 %v11373_v21, %v11373_v21  ;;  %v10353_v25 = vld [vmem:[%s13523_s8 + $0x38] sm:$0xff]  }
  0xef   :  { %v9039_v27 = vpop.f32.mrf.mxu0  ;;  %v9059_v28 = vpop.f32.mrf.mxu1  ;;  %9592 = vmatprep.subr.bf16.mxu1 %v10353_v25 }
  0xf0   :  { %v560_v35 = vadd.f32 %v9038_v33, %v8022_v34  ;;  %v9060_v36 = vadd.f32 %v9059_v28, %v9058_v26  ;;  %v10354_v26 = vld [vmem:[%s13523_s8 + $0x138] sm:$0xff]   ;;  %v10355_v27 = vld [vmem:[%s13523_s8 + $0x30] sm:$0xff]   ;;  %v10360_v33 = vld [vmem:[%s13523_s8 + $0x120] sm:$0xff]  }
  0xf1   :  { %v9040_v30 = vpop.f32.mrf.mxu0  ;;  %v9061_v31 = vpop.f32.mrf.mxu1  ;;  %9612 = vmatprep.subr.bf16.mxu0 %v10354_v26  ;;  %v10356_v28 = vld [vmem:[%s13523_s8 + $0x130] sm:$0xff]   ;;  %v10361_v34 = vld [vmem:[%s13523_s8 + $0x18] sm:$0xff]  }
  0xf2   :  { %v600_v39 = vadd.f32 %v9060_v36, %v560_v35  ;;  %9613 = vmatpush3.bf16.msra.mxu0 %v10354_v26  ;;  %v10357_v30 = vld [vmem:[%s13523_s8 + $0x28] sm:$0xff]   ;;  %v10362_v35 = vld [vmem:[%s13523_s8 + $0x118] sm:$0xff]   ;;  %v10363_v36 = vld [vmem:[%s13523_s8 + $0x10] sm:$0xff]  }
  0xf3   :  { %v9062_v32 = vpop.f32.mrf.mxu1  ;;  %9614 = vmatprep.subr.bf16.mxu0 %v10356_v28  ;;  %v10358_v31 = vld [vmem:[%s13523_s8 + $0x128] sm:$0xff]   ;;  %v10380_v26 = vld [vmem:[%s13523_s8 + $0x150] sm:$0xff]  }
  0xf4   :  { %v10359_v32 = vld [vmem:[%s13523_s8 + $0x20] sm:$0xff]  }
  0xf6   :  { %9615 = vmatpush3.bf16.msra.mxu0 %v10356_v28  ;;  %v10382_v28 = vld [vmem:[%s13523_s8 + $0x148] sm:$0xff]  }
  0xf7   :  { %9616 = vmatprep.subr.bf16.mxu0 %v10358_v31 }
  0xfa   :  { %9617 = vmatpush3.bf16.msra.mxu0 %v10358_v31  ;;  %v10384_v31 = vld [vmem:[%s13523_s8 + $0x140] sm:$0xff]  }
  0xfb   :  { %9618 = vmatprep.subr.bf16.mxu0 %v10360_v33 }
  0xfe   :  { %9619 = vmatpush3.bf16.msra.mxu0 %v10360_v33 }
  0xff   :  { %9620 = vmatprep.subr.bf16.mxu0 %v10362_v35 }
 0x102   :  { %9621 = vmatpush3.bf16.msra.mxu0 %v10362_v35 }
 0x10b   :  { %v9080_v37 = vpop.f32.mrf.mxu0 }
 0x10d   :  { %v9081_v38 = vpop.f32.mrf.mxu0 }
 0x10e   :  { %v9082_v40 = vadd.f32 %v9081_v38, %v9080_v37  ;;  %v10364_v37 = vld [vmem:[%s13523_s8 + $0x110] sm:$0xff]   ;;  %v10365_v38 = vld [vmem:[%s13523_s8 + $0x8] sm:$0xff]  }
 0x10f   :  { %v9083_v41 = vpop.f32.mrf.mxu0  ;;  %9622 = vmatprep.subr.bf16.mxu0 %v10364_v37 }
 0x110   :  { %v640_v42 = vadd.f32 %v9082_v40, %v600_v39  ;;  %9623 = vmatpush3.bf16.msra.mxu0 %v10364_v37  ;;  %v10366_v39 = vld [vmem:[%s13523_s8 + $0x108] sm:$0xff]   ;;  %v10367_v40 = vld [vmem:[%s13523_s8] sm:$0xff]  }
 0x111   :  { %v9084_v43 = vpop.f32.mrf.mxu0  ;;  %9624 = vmatprep.subr.bf16.mxu0 %v10366_v39  ;;  %v10368_v41 = vld [vmem:[%s13523_s8 + $0x100] sm:$0xff]  }
 0x112   :  { %v645_v44 = vpack.c.bf16 %v640_v42, %v640_v42  ;;  %v10369_v42 = vld [vmem:[%s13523_s8 + $0x238] sm:$0xff]  }
 0x113   :  { %v10370_v43 = vld [vmem:[%s13523_s8 + $0x178] sm:$0xff]  }
 0x114   :  { %9569 = vmatmul.mubr.bf16.vlgmr.msra.gmra.mxu1 %v645_v44  ;;  %9625 = vmatpush3.bf16.msra.mxu0 %v10366_v39  ;;  %v8091_v39 = vld [vmem:[%s13525_s9] ss:$0 sm:$0xff] }
 0x115   :  { %9593 = vmatpush3.bf16.msra.mxu1 %v10353_v25  ;;  %9626 = vmatprep.subr.bf16.mxu0 %v10368_v41  ;;  %v10379_v25 = vld [vmem:[%s13523_s8 + $0x210] sm:$0xff]  }
 0x116   :  { %9594 = vmatprep.subr.bf16.mxu1 %v10355_v27 }
 0x118   :  { %9627 = vmatpush3.bf16.msra.mxu0 %v10368_v41 }
 0x119   :  { %9595 = vmatpush3.bf16.msra.mxu1 %v10355_v27  ;;  %9688 = vmatprep.subr.bf16.mxu0 %v10370_v43  ;;  %v10381_v27 = vld [vmem:[%s13523_s8 + $0x208] sm:$0xff]  }
 0x11a   :  { %9596 = vmatprep.subr.bf16.mxu1 %v10357_v30 }
 0x11d   :  { %9597 = vmatpush3.bf16.msra.mxu1 %v10357_v30  ;;  %v10383_v30 = vld [vmem:[%s13523_s8 + $0x200] sm:$0xff]  }
 0x11e   :  { %9598 = vmatprep.subr.bf16.mxu1 %v10359_v32 }
 0x121   :  { %9599 = vmatpush3.bf16.msra.mxu1 %v10359_v32 }
 0x122   :  { %9600 = vmatprep.subr.bf16.mxu1 %v10361_v34 }
 0x125   :  { %9601 = vmatpush3.bf16.msra.mxu1 %v10361_v34  ;;  %v8116_v34 = vld [vmem:[%s13525_s9 + $0x4] ss:$0 sm:$0xff] }
 0x126   :  { %9602 = vmatprep.subr.bf16.mxu1 %v10363_v36 }
 0x129   :  { %9603 = vmatpush3.bf16.msra.mxu1 %v10363_v36 }
 0x12a   :  { %9604 = vmatprep.subr.bf16.mxu1 %v10365_v38 }
 0x12b   :  { %v826_v46 = vpop.f32.mrf.mxu0 }
 0x12c   :  { %v827_v47 = vadd.f32 %v8080_v45, %v826_v46 }
 0x12d   :  { %v9590_v48 = vpop.f32.mrf.mxu0  ;;  %9605 = vmatpush3.bf16.msra.mxu1 %v10365_v38 }
 0x12e   :  { %833 = vst [vmem:[#allocation2 + $0x2] sm:$0xff] %v827_v47  ;;  %9606 = vmatprep.subr.bf16.mxu1 %v10367_v40 }
 0x12f   :  { %v829_v49 = vpop.f32.mrf.mxu0 }
 0x131   :  { %v9591_v50 = vpop.f32.mrf.mxu0  ;;  %9607 = vmatpush3.bf16.msra.mxu1 %v10367_v40 }
 0x132   :  { %9632 = vmatprep.subr.bf16.mxu1 %v10369_v42 }
 0x135   :  { %v841_v5 = vld [vmem:[#allocation2 + $0x8] sm:$0xff] }
 0x136   :  { %v11356_v7 = vadd.f32 %v845_v6, %v841_v5 }
 0x1d4   :  { %v732_v61 = vpop.f32.mrf.mxu1 }
 0x1d5   :  { %v733_v62 = vadd.f32 %v8071_v60, %v732_v61  ;;  %v8089_v60 = vld [vmem:[%s13524_s14] ss:$0 sm:$0xff] }
 0x1d6   :  { %v9570_v63 = vpop.f32.mrf.mxu1 }
 0x1d7   :  { %832 = vst [vmem:[#allocation2] sm:$0x3] %v733_v62 }
 0x1d8   :  { %v735_v0 = vpop.f32.mrf.mxu1 }
 0x1da   :  { %v9571_v1 = vpop.f32.mrf.mxu1 }
 0x1db   :  { %v8090_v1 = vld [vmem:[%s13524_s14 + $0x1] ss:$0 sm:$0xff] }
 0x1de   :  { %v840_v3 = vld [vmem:[#allocation2] sm:$0xff] }
 0x1df   :  { %v11350_v4 = vadd.f32 %v844_v2, %v840_v3 }
 0x1e1   :  { %867 = vadd.xlane.f32.xlu0 %v11350_v4 }
 0x1e5   :  { %869 = vadd.xlane.f32.xlu0 %v11356_v7 }
 0x26a   :  { %v868_v10 = vpop.xlane.xlu0 %867 }
 0x26b   :  { %v876_v12 = vmul.f32 0.0078125, %v868_v10 }
 0x26d   :  { %v11360_v13 = vsub.f32 %v11350_v4, %v876_v12 }
 0x26e   :  { %v870_v16 = vpop.xlane.xlu0 %869 }
 0x26f   :  { %v877_v17 = vmul.f32 0.0078125, %v870_v16  ;;  %v884_v18 = vmul.f32 %v11360_v13, %v11360_v13 }
 0x271   :  { %888 = vadd.xlane.f32.xlu0 %v884_v18  ;;  %v11370_v20 = vsub.f32 %v11356_v7, %v877_v17  ;;  %v10372_v17 = vld [vmem:[%s13523_s8 + $0x170] sm:$0xff]   ;;  %v10373_v18 = vld [vmem:[%s13523_s8 + $0x228] sm:$0xff]  }
 0x273   :  { %v885_v22 = vmul.f32 %v11370_v20, %v11370_v20 }
 0x275   :  { %892 = vadd.xlane.f32.xlu0 %v886_v19  ;;  %890 = vadd.xlane.f32.xlu1 %v885_v22  ;;  %v10374_v19 = vld [vmem:[%s13523_s8 + $0x168] sm:$0xff]   ;;  %v10377_v22 = vld [vmem:[%s13523_s8 + $0x218] sm:$0xff]  }
 0x279   :  { %894 = vadd.xlane.f32.xlu1 %v887_v24  ;;  %v10378_v24 = vld [vmem:[%s13523_s8 + $0x158] sm:$0xff]  }
 0x2fa   :  { %v889_v44 = vpop.xlane.xlu0 %888 }
 0x2fb   :  { %v896_v45 = vmul.f32 0.0078125, %v889_v44 }
 0x2fd   :  { %v900_v46 = vadd.f32 1e-05, %v896_v45 }
 0x2fe   :  { %v891_v47 = vpop.xlane.xlu1 %890  ;;  %v893_v48 = vpop.xlane.xlu0 %892 }
 0x2ff   :  { %10745 = vrsqrt.f32 %v900_v46  ;;  %v897_v49 = vmul.f32 0.0078125, %v891_v47  ;;  %v898_v50 = vmul.f32 0.0078125, %v893_v48 }
 0x301   :  { %v901_v51 = vadd.f32 1e-05, %v897_v49  ;;  %v902_v52 = vadd.f32 1e-05, %v898_v50 }
 0x302   :  { %v895_v53 = vpop.xlane.xlu1 %894 }
 0x303   :  { %10747 = vrsqrt.f32 %v901_v51  ;;  %v899_v54 = vmul.f32 0.0078125, %v895_v53 }
 0x304   :  { %10749 = vrsqrt.f32 %v902_v52 }
 0x305   :  { %v903_v55 = vadd.f32 1e-05, %v899_v54 }
 0x307   :  { %10751 = vrsqrt.f32 %v903_v55 }
 0x30c   :  { %v10746_v57 = vpop.eup %10745 }
 0x30d   :  { %v908_v58 = vmul.f32 %v10746_v57, %v11360_v13 }
 0x30f   :  { %v916_v63 = vmul.f32 %v8089_v60, %v908_v58 }
 0x310   :  { %v10748_v61 = vpop.eup %10747 }
 0x311   :  { %v10750_v62 = vpop.eup %10749  ;;  %v909_v0 = vmul.f32 %v10748_v61, %v11370_v20  ;;  %v924_v6 = vadd.f32 %v8090_v1, %v916_v63  ;;  %v10375_v20 = vld [vmem:[%s13523_s8 + $0x220] sm:$0xff]  }
 0x312   :  { %v910_v2 = vmul.f32 %v10750_v62, %v11363_v15  ;;  %v10371_v15 = vld [vmem:[%s13523_s8 + $0x230] sm:$0xff]   ;;  %v8195_v61 = vld [vmem:[%s13525_s9 + $0x5] ss:$0 sm:$0xff] }
 0x313   :  { %v917_v3 = vmul.f32 %v8089_v60, %v909_v0 }
 0x314   :  { %v10752_v5 = vpop.eup %10751  ;;  %v918_v9 = vmul.f32 %v8089_v60, %v910_v2 }
 0x315   :  { %v925_v8 = vadd.f32 %v8090_v1, %v917_v3  ;;  %v911_v10 = vmul.f32 %v10752_v5, %v11373_v21  ;;  %v10376_v21 = vld [vmem:[%s13523_s8 + $0x160] sm:$0xff]  }
 0x316   :  { %v926_v13 = vadd.f32 %v8090_v1, %v918_v9 }
 0x317   :  { %v11443_v11 = vpack.c.bf16 %v925_v8, %v924_v6  ;;  %v919_v12 = vmul.f32 %v8089_v60, %v911_v10  ;;  %v8141_v60 = vld [vmem:[%s13525_s9 + $0x8] ss:$0 sm:$0xff] }
 0x319   :  { %v927_v14 = vadd.f32 %v8090_v1, %v919_v12  ;;  %9608 = vmatprep.mubr.bf16.mxu1 %v11443_v11  ;;  %9628 = vmatprep.mubr.bf16.mxu0 %v11443_v11 }
 0x31b   :  { %v11447_v16 = vpack.c.bf16 %v927_v14, %v926_v13 }
 0x31d   :  { %9609 = vmatmul.mubr.bf16.vlgmr.msra.gmra.mxu1 %v11447_v16  ;;  %9629 = vmatmul.mubr.bf16.vlgmr.msra.gmra.mxu0 %v11447_v16 }
 0x31e   :  { %9633 = vmatpush3.bf16.msra.mxu1 %v10369_v42  ;;  %9689 = vmatpush3.bf16.msra.mxu0 %v10370_v43 }
 0x31f   :  { %9648 = vmatprep.mubr.bf16.mxu1 %v11443_v11  ;;  %9704 = vmatprep.mubr.bf16.mxu0 %v11443_v11 }
 0x320   :  { %9634 = vmatprep.subr.bf16.mxu1 %v10371_v15  ;;  %9690 = vmatprep.subr.bf16.mxu0 %v10372_v17 }
 0x322   :  { %9635 = vmatpush3.bf16.msra.mxu1 %v10371_v15  ;;  %9691 = vmatpush3.bf16.msra.mxu0 %v10372_v17 }
 0x323   :  { %9636 = vmatprep.subr.bf16.mxu1 %v10373_v18  ;;  %9692 = vmatprep.subr.bf16.mxu0 %v10374_v19 }
 0x326   :  { %9637 = vmatpush3.bf16.msra.mxu1 %v10373_v18  ;;  %9693 = vmatpush3.bf16.msra.mxu0 %v10374_v19 }
 0x327   :  { %9638 = vmatprep.subr.bf16.mxu1 %v10375_v20  ;;  %9694 = vmatprep.subr.bf16.mxu0 %v10376_v21 }
 0x32a   :  { %9639 = vmatpush3.bf16.msra.mxu1 %v10375_v20  ;;  %9695 = vmatpush3.bf16.msra.mxu0 %v10376_v21 }
 0x32b   :  { %9640 = vmatprep.subr.bf16.mxu1 %v10377_v22  ;;  %9696 = vmatprep.subr.bf16.mxu0 %v10378_v24 }
 0x32e   :  { %9641 = vmatpush3.bf16.msra.mxu1 %v10377_v22  ;;  %9697 = vmatpush3.bf16.msra.mxu0 %v10378_v24  ;;  %v11522_v24 = vld [vmem:[%s13526_s5] sm:$0xff] }
 0x32f   :  { %9642 = vmatprep.subr.bf16.mxu1 %v10379_v25  ;;  %9698 = vmatprep.subr.bf16.mxu0 %v10380_v26 }
 0x332   :  { %9643 = vmatpush3.bf16.msra.mxu1 %v10379_v25  ;;  %9699 = vmatpush3.bf16.msra.mxu0 %v10380_v26  ;;  %v11527_v25 = vld [vmem:[%s13526_s5 + $0x10] sm:$0xff] }
 0x333   :  { %9644 = vmatprep.subr.bf16.mxu1 %v10381_v27  ;;  %9700 = vmatprep.subr.bf16.mxu0 %v10382_v28 }
 0x336   :  { %9645 = vmatpush3.bf16.msra.mxu1 %v10381_v27  ;;  %9701 = vmatpush3.bf16.msra.mxu0 %v10382_v28 }
 0x337   :  { %9646 = vmatprep.subr.bf16.mxu1 %v10383_v30  ;;  %9702 = vmatprep.subr.bf16.mxu0 %v10384_v31 }
 0x33a   :  { %9647 = vmatpush3.bf16.msra.mxu1 %v10383_v30  ;;  %9703 = vmatpush3.bf16.msra.mxu0 %v10384_v31  ;;  %v11533_v30 = vld [vmem:[%s13526_s5 + $0x8] sm:$0xff] }
 0x33d   :  { %9649 = vmatmul.mubr.bf16.vlgmr.msra.gmra.mxu1 %v11447_v16  ;;  %9705 = vmatmul.mubr.bf16.vlgmr.msra.gmra.mxu0 %v11447_v16 }
 0x3dd   :  { %v9610_v32 = vpop.f32.mrf.mxu1  ;;  %v9630_v33 = vpop.f32.mrf.mxu0 }
 0x3de   :  { %v1161_v40 = vadd.f32 %v9630_v33, %v8116_v34  ;;  %v1042_v54 = vadd.f32 %v9610_v32, %v8091_v39  ;;  %v11540_v33 = vld [vmem:[%s13526_s5 + $0x18] sm:$0xff] }
 0x3df   :  { %v1033_v35 = vpop.f32.mrf.mxu1  ;;  %v1152_v36 = vpop.f32.mrf.mxu0 }
 0x3e0   :  { %v1034_v42 = vadd.f32 %v8091_v39, %v1033_v35  ;;  %v1153_v45 = vadd.f32 %v8116_v34, %v1152_v36 }
 0x3e1   :  { %v9611_v37 = vpop.f32.mrf.mxu1  ;;  %v9631_v38 = vpop.f32.mrf.mxu0 }
 0x3e2   :  { %v1164_v41 = vadd.f32 %v9631_v38, %v8116_v34  ;;  %v1045_v53 = vadd.f32 %v9611_v37, %v8091_v39 }
 0x3e3   :  { %v1036_v43 = vpop.f32.mrf.mxu1  ;;  %v1155_v44 = vpop.f32.mrf.mxu0 }
 0x3e4   :  { %v1289_v46 = vpack.c.bf16 %v1164_v41, %v1161_v40  ;;  %v1037_v47 = vadd.f32 %v8091_v39, %v1036_v43  ;;  %v1156_v48 = vadd.f32 %v8116_v34, %v1155_v44  ;;  %v1287_v55 = vpack.c.bf16 %v1045_v53, %v1042_v54 }
 0x3e6   :  { %v1286_v49 = vpack.c.bf16 %v1037_v47, %v1034_v42  ;;  %v1288_v50 = vpack.c.bf16 %v1156_v48, %v1153_v45  ;;  %10264 = vmatprep.subr.msk.bf16.mxu1 %vm1290_vm1, %v1289_v46  ;;  %v1301_v51 = vsel %vm1290_vm1, %v1289_v46, 0 }
 0x3e7   :  { %9653 = vmatpush3.bf16.xpose.msra.mxu1 %v1301_v51 }
 0x3e8   :  { %10265 = vmatprep.subr.msk.bf16.mxu1 %vm1290_vm1, %v1288_v50  ;;  %9656 = vmatprep.mubr.msk.bf16.mxu1 %vm1290_vm1, %v1286_v49  ;;  %v1298_v52 = vsel %vm1290_vm1, %v1288_v50, 0 }
 0x3ef   :  { %9655 = vmatpush3.bf16.xpose.msra.mxu1 %v1298_v52 }
 0x3f6   :  { %9657 = vmatmul.mubr.msk.bf16.vlgmr.msra.gmra.mxu1 %vm1290_vm1, %v1287_v55 }
 0x3fd   :  { %v9650_v57 = vpop.f32.mrf.mxu1  ;;  %v9706_v58 = vpop.f32.mrf.mxu0 }
 0x3fe   :  { %v1280_v2 = vadd.f32 %v9650_v57, %v8141_v60  ;;  %v1693_v3 = vadd.f32 %v9706_v58, %v8195_v61 }
 0x3ff   :  { %v1271_v62 = vpop.f32.mrf.mxu1  ;;  %v1684_v63 = vpop.f32.mrf.mxu0 }
 0x400   :  { %v1272_v8 = vadd.f32 %v8141_v60, %v1271_v62  ;;  %v1685_v9 = vadd.f32 %v8195_v61, %v1684_v63  ;;  %v10385_v62 = vld [vmem:[%s13523_s8 + $0x78] sm:$0xff]  }
 0x401   :  { %v9651_v0 = vpop.f32.mrf.mxu1  ;;  %v9707_v1 = vpop.f32.mrf.mxu0 }
 0x402   :  { %v1283_v5 = vadd.f32 %v9651_v0, %v8141_v60  ;;  %v1696_v6 = vadd.f32 %v9707_v1, %v8195_v61 }
 0x403   :  { %v1274_v10 = vpop.f32.mrf.mxu1  ;;  %v1687_v12 = vpop.f32.mrf.mxu0 }
 0x404   :  { %v1399_v13 = vpack.c.bf16 %v1283_v5, %v1280_v2  ;;  %v1821_v14 = vpack.c.bf16 %v1696_v6, %v1693_v3  ;;  %v1275_v15 = vadd.f32 %v8141_v60, %v1274_v10  ;;  %v1688_v17 = vadd.f32 %v8195_v61, %v1687_v12 }
 0x406   :  { %v1398_v18 = vpack.c.bf16 %v1275_v15, %v1272_v8  ;;  %v1820_v19 = vpack.c.bf16 %v1688_v17, %v1685_v9  ;;  %9660 = vmatprep.subr.bf16.mxu1 %v1399_v13  ;;  %10266 = vmatprep.subr.msk.bf16.mxu0 %vm1290_vm1, %v1821_v14  ;;  %v1832_v20 = vsel %vm1290_vm1, %v1821_v14, 0  ;;  %v10386_v17 = vld [vmem:[%s13523_s8 + $0x70] sm:$0xff]  }
 0x407   :  { %9661 = vmatpush3.bf16.msra.mxu1 %v1399_v13  ;;  %9729 = vmatpush3.bf16.xpose.msra.mxu0 %v1832_v20  ;;  %v10389_v20 = vld [vmem:[%s13523_s8 + $0x58] sm:$0xff]  }
 0x408   :  { %9662 = vmatprep.subr.bf16.mxu1 %v1398_v18  ;;  %10267 = vmatprep.subr.msk.bf16.mxu0 %vm1290_vm1, %v1820_v19  ;;  %v1829_v21 = vsel %vm1290_vm1, %v1820_v19, 0  ;;  %v10388_v19 = vld [vmem:[%s13523_s8 + $0x60] sm:$0xff]  }
 0x40b   :  { %9663 = vmatpush3.bf16.msra.mxu1 %v1398_v18  ;;  %v10387_v18 = vld [vmem:[%s13523_s8 + $0x68] sm:$0xff]  }
 0x40c   :  { %9668 = vmatprep.subr.bf16.mxu1 %v10385_v62 }
 0x40f   :  { %9731 = vmatpush3.bf16.xpose.msra.mxu0 %v1829_v21  ;;  %v10390_v21 = vld [vmem:[%s13523_s8 + $0x50] sm:$0xff]  }
 0x4b6   :  { %v9658_v22 = vpop.f32.mrf.mxu1 }
 0x4b7   :  { %v1346_v31 = vadd.f32 %v9658_v22, %v11527_v25  ;;  %v10391_v22 = vld [vmem:[%s13523_s8 + $0x48] sm:$0xff]  }
 0x4b8   :  { %v1337_v26 = vpop.f32.mrf.mxu1 }
 0x4b9   :  { %v1338_v27 = vadd.f32 %v1337_v26, %v11522_v24  ;;  %v1358_v38 = vsel %vm1290_vm1, %v1346_v31, -inf  ;;  %v10392_v26 = vld [vmem:[%s13523_s8 + $0x40] sm:$0xff]  }
 0x4ba   :  { %v9659_v28 = vpop.f32.mrf.mxu1 }
 0x4bb   :  { %v1352_v32 = vsel %vm1290_vm1, %v1338_v27, -inf  ;;  %v1349_v36 = vadd.f32 %v9659_v28, %v11540_v33  ;;  %v10394_v28 = vld [vmem:[%s13523_s8 + $0x270] sm:$0xff]  }
 0x4bc   :  { %v1340_v34 = vpop.f32.mrf.mxu1  ;;  %1353 = vmax.xlane.f32.xlu0 %v1352_v32  ;;  %v10396_v32 = vld [vmem:[%s13523_s8 + $0x260] sm:$0xff]  }
 0x4bd   :  { %v1341_v35 = vadd.f32 %v1340_v34, %v11533_v30  ;;  %v1361_v39 = vsel %vm1290_vm1, %v1349_v36, -inf  ;;  %v10397_v34 = vld [vmem:[%s13523_s8 + $0x258] sm:$0xff]  }
 0x4bf   :  { %v1355_v37 = vsel %vm1290_vm1, %v1341_v35, -inf }
 0x4c0   :  { %1356 = vmax.xlane.f32.xlu1 %v1355_v37  ;;  %1359 = vmax.xlane.f32.xlu0 %v1358_v38  ;;  %v10400_v37 = vld [vmem:[%s13523_s8 + $0x240] sm:$0xff]   ;;  %v10401_v38 = vld [vmem:[%s13527_s10 + $0x8] sm:$0xff]  }
 0x4c4   :  { %1362 = vmax.xlane.f32.xlu1 %v1361_v39  ;;  %v10402_v39 = vld [vmem:[%s13527_s10] sm:$0xff]  }
 0x545   :  { %v1354_v40 = vpop.xlane.xlu0 %1353 }
 0x546   :  { %v1364_v41 = vsub.f32 %v1338_v27, %v1354_v40  ;;  %v10393_v27 = vld [vmem:[%s13523_s8 + $0x278] sm:$0xff]  }
 0x547   :  { %v10403_v40 = vld [vmem:[%s13523_s8 + $0x1b8] sm:$0xff]  }
 0x548   :  { %v1368_v42 = vmul.f32 1.442695, %v1364_v41 }
 0x549   :  { %v1357_v43 = vpop.xlane.xlu1 %1356  ;;  %v1360_v44 = vpop.xlane.xlu0 %1359 }
 0x54a   :  { %10753 = vpow2.f32 %v1368_v42  ;;  %v1365_v45 = vsub.f32 %v1341_v35, %v1357_v43  ;;  %v1366_v46 = vsub.f32 %v1346_v31, %v1360_v44  ;;  %v10395_v31 = vld [vmem:[%s13523_s8 + $0x268] sm:$0xff]   ;;  %v10398_v35 = vld [vmem:[%s13523_s8 + $0x250] sm:$0xff]  }
 0x54c   :  { %v1370_v47 = vmul.f32 1.442695, %v1365_v45  ;;  %v1372_v48 = vmul.f32 1.442695, %v1366_v46 }
 0x54d   :  { %v1363_v49 = vpop.xlane.xlu1 %1362 }
 0x54e   :  { %10755 = vpow2.f32 %v1370_v47  ;;  %v1367_v50 = vsub.f32 %v1349_v36, %v1363_v49  ;;  %v10399_v36 = vld [vmem:[%s13523_s8 + $0x248] sm:$0xff]   ;;  %v10404_v47 = vld [vmem:[%s13523_s8 + $0x1b0] sm:$0xff]   ;;  %v10406_v49 = vld [vmem:[%s13523_s8 + $0x1a0] sm:$0xff]  }
 0x54f   :  { %10757 = vpow2.f32 %v1372_v48  ;;  %v10405_v48 = vld [vmem:[%s13523_s8 + $0x1a8] sm:$0xff]  }
 0x550   :  { %v1374_v51 = vmul.f32 1.442695, %v1367_v50  ;;  %v10407_v50 = vld [vmem:[%s13523_s8 + $0x198] sm:$0xff]  }
 0x552   :  { %10759 = vpow2.f32 %v1374_v51  ;;  %v10408_v51 = vld [vmem:[%s13523_s8 + $0x190] sm:$0xff]  }
 0x557   :  { %v10754_v52 = vpop.eup %10753 }
 0x558   :  { %v1376_v53 = vsel %vm1290_vm1, %v10754_v52, 0.0 }
 0x559   :  { %1377 = vadd.xlane.f32.xlu0 %v1376_v53 }
 0x55b   :  { %v10756_v54 = vpop.eup %10755 }
 0x55c   :  { %v10758_v55 = vpop.eup %10757  ;;  %v1379_v57 = vsel %vm1290_vm1, %v10756_v54, 0.0 }
 0x55d   :  { %1380 = vadd.xlane.f32.xlu1 %v1379_v57  ;;  %v1382_v58 = vsel %vm1290_vm1, %v10758_v55, 0.0 }
 0x55e   :  { %1383 = vadd.xlane.f32.xlu0 %v1382_v58  ;;  %v8170_v58 = vld [vmem:[%s13525_s9 + $0x1] ss:$0 sm:$0xff] }
 0x55f   :  { %v10760_v60 = vpop.eup %10759 }
 0x560   :  { %v1385_v61 = vsel %vm1290_vm1, %v10760_v60, 0.0 }
 0x561   :  { %1386 = vadd.xlane.f32.xlu1 %v1385_v61 }
 0x5e2   :  { %v1378_v63 = vpop.xlane.xlu0 %1377 }
 0x5e3   :  { %10761 = vrcp.f32 %v1378_v63 }
 0x5e6   :  { %v1381_v0 = vpop.xlane.xlu1 %1380 }
 0x5e7   :  { %10763 = vrcp.f32 %v1381_v0  ;;  %v1384_v1 = vpop.xlane.xlu0 %1383 }
 0x5e8   :  { %10765 = vrcp.f32 %v1384_v1 }
 0x5ea   :  { %v1387_v2 = vpop.xlane.xlu1 %1386 }
 0x5eb   :  { %10767 = vrcp.f32 %v1387_v2 }
 0x5f0   :  { %v10762_v3 = vpop.eup %10761 }
 0x5f1   :  { %v1389_v6 = vmul.f32 %v10762_v3, %v10754_v52  ;;  %v10409_v52 = vld [vmem:[%s13523_s8 + $0x188] sm:$0xff]  }
 0x5f4   :  { %v10764_v5 = vpop.eup %10763 }
 0x5f5   :  { %v1391_v8 = vmul.f32 %v10764_v5, %v10756_v54  ;;  %v10766_v9 = vpop.eup %10765  ;;  %v10410_v54 = vld [vmem:[%s13523_s8 + $0x180] sm:$0xff]   ;;  %v8220_v5 = vld [vmem:[%s13525_s9 + $0x9] ss:$0 sm:$0xff] }
 0x5f6   :  { %v1393_v13 = vmul.f32 %v10766_v9, %v10758_v55 }
 0x5f7   :  { %v1396_v10 = vpack.c.bf16 %v1391_v8, %v1389_v6 }
 0x5f8   :  { %v10768_v12 = vpop.eup %10767 }
 0x5f9   :  { %9664 = vmatprep.mubr.msk.bf16.mxu1 %vm1290_vm1, %v1396_v10  ;;  %v1395_v14 = vmul.f32 %v10768_v12, %v10760_v60 }
 0x5fb   :  { %v1397_v15 = vpack.c.bf16 %v1395_v14, %v1393_v13 }
 0x5fd   :  { %9665 = vmatmul.mubr.msk.bf16.vlgmr.msra.gmra.mxu1 %vm1290_vm1, %v1397_v15 }
 0x5fe   :  { %9669 = vmatpush3.bf16.msra.mxu1 %v10385_v62  ;;  %9684 = vmatprep.mubr.bf16.mxu1 %v11443_v11 }
 0x5ff   :  { %9670 = vmatprep.subr.bf16.mxu1 %v10386_v17 }
 0x602   :  { %9671 = vmatpush3.bf16.msra.mxu1 %v10386_v17 }
 0x603   :  { %9672 = vmatprep.subr.bf16.mxu1 %v10387_v18 }
 0x606   :  { %9673 = vmatpush3.bf16.msra.mxu1 %v10387_v18 }
 0x607   :  { %9674 = vmatprep.subr.bf16.mxu1 %v10388_v19 }
 0x60a   :  { %9675 = vmatpush3.bf16.msra.mxu1 %v10388_v19 }
 0x60b   :  { %9676 = vmatprep.subr.bf16.mxu1 %v10389_v20 }
 0x60e   :  { %9677 = vmatpush3.bf16.msra.mxu1 %v10389_v20 }
 0x60f   :  { %9678 = vmatprep.subr.bf16.mxu1 %v10390_v21 }
 0x612   :  { %9679 = vmatpush3.bf16.msra.mxu1 %v10390_v21 }
 0x613   :  { %9680 = vmatprep.subr.bf16.mxu1 %v10391_v22 }
 0x616   :  { %9681 = vmatpush3.bf16.msra.mxu1 %v10391_v22 }
 0x617   :  { %9682 = vmatprep.subr.bf16.mxu1 %v10392_v26 }
 0x61a   :  { %9683 = vmatpush3.bf16.msra.mxu1 %v10392_v26  ;;  %v8286_v26 = vld [vmem:[%s13525_s9 + $0x6] ss:$0 sm:$0xff] }
 0x61b   :  { %9708 = vmatprep.subr.bf16.mxu1 %v10393_v27 }
 0x61d   :  { %9685 = vmatmul.mubr.bf16.vlgmr.msra.gmra.mxu1 %v11447_v16 }
 0x61e   :  { %9709 = vmatpush3.bf16.msra.mxu1 %v10393_v27  ;;  %9724 = vmatprep.mubr.bf16.mxu1 %v11443_v11 }
 0x61f   :  { %9710 = vmatprep.subr.bf16.mxu1 %v10394_v28 }
 0x622   :  { %9711 = vmatpush3.bf16.msra.mxu1 %v10394_v28 }
 0x623   :  { %9712 = vmatprep.subr.bf16.mxu1 %v10395_v31 }
 0x626   :  { %9713 = vmatpush3.bf16.msra.mxu1 %v10395_v31 }
 0x627   :  { %9714 = vmatprep.subr.bf16.mxu1 %v10396_v32 }
 0x62a   :  { %9715 = vmatpush3.bf16.msra.mxu1 %v10396_v32 }
 0x62b   :  { %9716 = vmatprep.subr.bf16.mxu1 %v10397_v34 }
 0x62e   :  { %9717 = vmatpush3.bf16.msra.mxu1 %v10397_v34 }
 0x62f   :  { %9718 = vmatprep.subr.bf16.mxu1 %v10398_v35 }
 0x632   :  { %9719 = vmatpush3.bf16.msra.mxu1 %v10398_v35 }
 0x633   :  { %9720 = vmatprep.subr.bf16.mxu1 %v10399_v36 }
 0x636   :  { %9721 = vmatpush3.bf16.msra.mxu1 %v10399_v36 }
 0x637   :  { %9722 = vmatprep.subr.bf16.mxu1 %v10400_v37 }
 0x63a   :  { %9723 = vmatpush3.bf16.msra.mxu1 %v10400_v37 }
 0x63b   :  { %9752 = vmatprep.subr.bf16.mxu1 %v10401_v38 }
 0x63d   :  { %9725 = vmatmul.mubr.bf16.vlgmr.msra.gmra.mxu1 %v11447_v16 }
 0x63e   :  { %9753 = vmatpush3.bf16.msra.mxu1 %v10401_v38 }
 0x63f   :  { %9754 = vmatprep.subr.bf16.mxu1 %v10402_v39 }
 0x642   :  { %9755 = vmatpush3.bf16.msra.mxu1 %v10402_v39 }
 0x643   :  { %9780 = vmatprep.subr.bf16.mxu1 %v10403_v40 }
 0x6bd   :  { %v9666_v41 = vpop.f32.mrf.mxu1 }
 0x6bf   :  { %v1440_v42 = vpop.f32.mrf.mxu1 }
 0x6c1   :  { %v9667_v43 = vpop.f32.mrf.mxu1 }
 0x6c2   :  { %v1460_v46 = vpack.c.bf16 %v9667_v43, %v9666_v41 }
 0x6c3   :  { %v1443_v44 = vpop.f32.mrf.mxu1 }
 0x6c4   :  { %v1459_v45 = vpack.c.bf16 %v1443_v44, %v1440_v42 }
 0x6c6   :  { %9756 = vmatprep.mubr.msk.bf16.mxu1 %vm1290_vm1, %v1459_v45 }
 0x6c7   :  { %9757 = vmatmul.mubr.msk.bf16.vlgmr.msra.gmra.mxu1 %vm1290_vm1, %v1460_v46 }
 0x6c8   :  { %9781 = vmatpush3.bf16.msra.mxu1 %v10403_v40  ;;  %9796 = vmatprep.mubr.bf16.mxu1 %v11443_v11 }
 0x6c9   :  { %9782 = vmatprep.subr.bf16.mxu1 %v10404_v47 }
 0x6cc   :  { %9783 = vmatpush3.bf16.msra.mxu1 %v10404_v47 }
 0x6cd   :  { %9784 = vmatprep.subr.bf16.mxu1 %v10405_v48 }
 0x6d0   :  { %9785 = vmatpush3.bf16.msra.mxu1 %v10405_v48 }
 0x6d1   :  { %9786 = vmatprep.subr.bf16.mxu1 %v10406_v49 }
 0x6d4   :  { %9787 = vmatpush3.bf16.msra.mxu1 %v10406_v49 }
 0x6d5   :  { %9788 = vmatprep.subr.bf16.mxu1 %v10407_v50 }
 0x6d8   :  { %9789 = vmatpush3.bf16.msra.mxu1 %v10407_v50 }
 0x6d9   :  { %9790 = vmatprep.subr.bf16.mxu1 %v10408_v51 }
 0x6dc   :  { %9791 = vmatpush3.bf16.msra.mxu1 %v10408_v51 }
 0x6dd   :  { %v9686_v53 = vpop.f32.mrf.mxu1  ;;  %9792 = vmatprep.subr.bf16.mxu1 %v10409_v52 }
 0x6de   :  { %v1574_v0 = vadd.f32 %v9686_v53, %v8170_v58 }
 0x6df   :  { %v1565_v55 = vpop.f32.mrf.mxu1 }
 0x6e0   :  { %9793 = vmatpush3.bf16.msra.mxu1 %v10409_v52  ;;  %v1566_v62 = vadd.f32 %v8170_v58, %v1565_v55 }
 0x6e1   :  { %v9687_v57 = vpop.f32.mrf.mxu1  ;;  %9794 = vmatprep.subr.bf16.mxu1 %v10410_v54 }
 0x6e2   :  { %v1577_v60 = vadd.f32 %v9687_v57, %v8170_v58 }
 0x6e3   :  { %v1568_v61 = vpop.f32.mrf.mxu1 }
 0x6e4   :  { %v1569_v63 = vadd.f32 %v8170_v58, %v1568_v61  ;;  %9795 = vmatpush3.bf16.msra.mxu1 %v10410_v54  ;;  %v1819_v2 = vpack.c.bf16 %v1577_v60, %v1574_v0 }
 0x6e6   :  { %v1818_v1 = vpack.c.bf16 %v1569_v63, %v1566_v62 }
 0x6e7   :  { %9797 = vmatmul.mubr.bf16.vlgmr.msra.gmra.mxu1 %v11447_v16 }
 0x6e8   :  { %9732 = vmatprep.mubr.msk.bf16.mxu0 %vm1290_vm1, %v1818_v1 }
 0x6e9   :  { %9733 = vmatmul.mubr.msk.bf16.vlgmr.msra.gmra.mxu0 %vm1290_vm1, %v1819_v2 }
 0x6fd   :  { %v9726_v3 = vpop.f32.mrf.mxu1 }
 0x6fe   :  { %v1812_v9 = vadd.f32 %v9726_v3, %v8220_v5 }
 0x6ff   :  { %v1803_v6 = vpop.f32.mrf.mxu1 }
 0x700   :  { %v1804_v13 = vadd.f32 %v8220_v5, %v1803_v6 }
 0x701   :  { %v9727_v8 = vpop.f32.mrf.mxu1 }
 0x702   :  { %v1815_v10 = vadd.f32 %v9727_v8, %v8220_v5 }
 0x703   :  { %v1806_v12 = vpop.f32.mrf.mxu1 }
 0x704   :  { %v1930_v14 = vpack.c.bf16 %v1815_v10, %v1812_v9  ;;  %v1807_v15 = vadd.f32 %v8220_v5, %v1806_v12 }
 0x706   :  { %v1929_v17 = vpack.c.bf16 %v1807_v15, %v1804_v13  ;;  %9736 = vmatprep.subr.bf16.mxu0 %v1930_v14 }
 0x707   :  { %9737 = vmatpush3.bf16.msra.mxu0 %v1930_v14 }
 0x708   :  { %9738 = vmatprep.subr.bf16.mxu0 %v1929_v17 }
 0x70b   :  { %9739 = vmatpush3.bf16.msra.mxu0 %v1929_v17 }
 0x787   :  { %v11647_v18 = vpop.f32.mrf.mxu1 }
 0x789   :  { %v11649_v19 = vpop.f32.mrf.mxu1 }
 0x78b   :  { %v11651_v20 = vpop.f32.mrf.mxu1 }
 0x78d   :  { %v11653_v21 = vpop.f32.mrf.mxu1 }
 0x7a7   :  { %v9798_v22 = vpop.f32.mrf.mxu1 }
 0x7a8   :  { %v2359_v34 = vadd.f32 %v9798_v22, %v8286_v26 }
 0x7a9   :  { %v9734_v27 = vpop.f32.mrf.mxu0  ;;  %v2350_v28 = vpop.f32.mrf.mxu1 }
 0x7aa   :  { %v1877_v37 = vadd.f32 %v9734_v27, %v11527_v25  ;;  %v2351_v40 = vadd.f32 %v8286_v26, %v2350_v28 }
 0x7ab   :  { %v1868_v31 = vpop.f32.mrf.mxu0  ;;  %v9799_v32 = vpop.f32.mrf.mxu1 }
 0x7ac   :  { %v1869_v35 = vadd.f32 %v1868_v31, %v11522_v24  ;;  %v2362_v36 = vadd.f32 %v9799_v32, %v8286_v26  ;;  %v1889_v50 = vsel %vm1290_vm1, %v1877_v37, -inf }
 0x7ad   :  { %v9735_v38 = vpop.f32.mrf.mxu0  ;;  %v2353_v39 = vpop.f32.mrf.mxu1 }
 0x7ae   :  { %v2487_v41 = vpack.c.bf16 %v2362_v36, %v2359_v34  ;;  %v2354_v42 = vadd.f32 %v8286_v26, %v2353_v39  ;;  %v1883_v43 = vsel %vm1290_vm1, %v1869_v35, -inf  ;;  %v1880_v48 = vadd.f32 %v9735_v38, %v11540_v33  ;;  %v10411_v39 = vld [vmem:[%s13527_s10 + $0x18] sm:$0xff]  }
 0x7af   :  { %v1871_v44 = vpop.f32.mrf.mxu0  ;;  %1884 = vmax.xlane.f32.xlu0 %v1883_v43  ;;  %9744 = vmatprep.subr.bf16.mxu0 %v10411_v39 }
 0x7b0   :  { %v2486_v45 = vpack.c.bf16 %v2354_v42, %v2351_v40  ;;  %v1872_v46 = vadd.f32 %v1871_v44, %v11533_v30  ;;  %10268 = vmatprep.subr.msk.bf16.mxu1 %vm1290_vm1, %v2487_v41  ;;  %v2498_v47 = vsel %vm1290_vm1, %v2487_v41, 0  ;;  %v1892_v51 = vsel %vm1290_vm1, %v1880_v48, -inf  ;;  %v10412_v40 = vld [vmem:[%s13527_s10 + $0x10] sm:$0xff]   ;;  %v10413_v41 = vld [vmem:[%s13523_s8 + $0xb8] sm:$0xff]  }
 0x7b1   :  { %9821 = vmatpush3.bf16.xpose.msra.mxu1 %v2498_v47 }
 0x7b2   :  { %10269 = vmatprep.subr.msk.bf16.mxu1 %vm1290_vm1, %v2486_v45  ;;  %v1886_v49 = vsel %vm1290_vm1, %v1872_v46, -inf  ;;  %v2495_v52 = vsel %vm1290_vm1, %v2486_v45, 0 }
 0x7b3   :  { %1887 = vmax.xlane.f32.xlu1 %v1886_v49  ;;  %1890 = vmax.xlane.f32.xlu0 %v1889_v50  ;;  %v10415_v49 = vld [vmem:[%s13523_s8 + $0xa8] sm:$0xff]   ;;  %v10416_v50 = vld [vmem:[%s13523_s8 + $0xa0] sm:$0xff]  }
 0x7b7   :  { %1893 = vmax.xlane.f32.xlu1 %v1892_v51  ;;  %v10417_v51 = vld [vmem:[%s13523_s8 + $0x98] sm:$0xff]  }
 0x7b9   :  { %9823 = vmatpush3.bf16.xpose.msra.mxu1 %v2495_v52  ;;  %v10418_v52 = vld [vmem:[%s13523_s8 + $0x90] sm:$0xff]  }
 0x838   :  { %v1885_v53 = vpop.xlane.xlu0 %1884 }
 0x839   :  { %v1895_v54 = vsub.f32 %v1869_v35, %v1885_v53  ;;  %v10419_v53 = vld [vmem:[%s13523_s8 + $0x88] sm:$0xff]  }
 0x83b   :  { %v1899_v55 = vmul.f32 1.442695, %v1895_v54  ;;  %v10420_v54 = vld [vmem:[%s13523_s8 + $0x80] sm:$0xff]  }
 0x83c   :  { %v1888_v57 = vpop.xlane.xlu1 %1887  ;;  %v1891_v58 = vpop.xlane.xlu0 %1890 }
 0x83d   :  { %10769 = vpow2.f32 %v1899_v55  ;;  %v1896_v60 = vsub.f32 %v1872_v46, %v1888_v57  ;;  %v1897_v61 = vsub.f32 %v1877_v37, %v1891_v58  ;;  %v10421_v55 = vld [vmem:[%s13523_s8 + $0x2b8] sm:$0xff]   ;;  %v10422_v57 = vld [vmem:[%s13523_s8 + $0x2b0] sm:$0xff]   ;;  %v10423_v58 = vld [vmem:[%s13523_s8 + $0x2a8] sm:$0xff]  }
 0x83f   :  { %v1901_v62 = vmul.f32 1.442695, %v1896_v60  ;;  %v1903_v63 = vmul.f32 1.442695, %v1897_v61  ;;  %v10424_v60 = vld [vmem:[%s13523_s8 + $0x2a0] sm:$0xff]   ;;  %v10425_v61 = vld [vmem:[%s13523_s8 + $0x298] sm:$0xff]  }
 0x840   :  { %v1894_v0 = vpop.xlane.xlu1 %1893 }
 0x841   :  { %10771 = vpow2.f32 %v1901_v62  ;;  %v1898_v1 = vsub.f32 %v1880_v48, %v1894_v0  ;;  %v10414_v48 = vld [vmem:[%s13523_s8 + $0xb0] sm:$0xff]   ;;  %v10428_v0 = vld [vmem:[%s13523_s8 + $0x280] sm:$0xff]  }
 0x842   :  { %10773 = vpow2.f32 %v1903_v63  ;;  %v10426_v62 = vld [vmem:[%s13523_s8 + $0x290] sm:$0xff]   ;;  %v10427_v63 = vld [vmem:[%s13523_s8 + $0x288] sm:$0xff]  }
 0x843   :  { %v1905_v2 = vmul.f32 1.442695, %v1898_v1  ;;  %v10429_v1 = vld [vmem:[%s13523_s8 + $0xf8] sm:$0xff]  }
 0x845   :  { %10775 = vpow2.f32 %v1905_v2  ;;  %v10430_v2 = vld [vmem:[%s13523_s8 + $0xf0] sm:$0xff]  }
 0x84a   :  { %v10770_v3 = vpop.eup %10769 }
 0x84b   :  { %v1907_v5 = vsel %vm1290_vm1, %v10770_v3, 0.0 }
 0x84c   :  { %1908 = vadd.xlane.f32.xlu0 %v1907_v5  ;;  %v10432_v5 = vld [vmem:[%s13523_s8 + $0xe0] sm:$0xff]  }
 0x84e   :  { %v10772_v6 = vpop.eup %10771 }
 0x84f   :  { %v10774_v8 = vpop.eup %10773  ;;  %v1910_v9 = vsel %vm1290_vm1, %v10772_v6, 0.0 }
 0x850   :  { %1911 = vadd.xlane.f32.xlu1 %v1910_v9  ;;  %v1913_v10 = vsel %vm1290_vm1, %v10774_v8, 0.0  ;;  %v10435_v9 = vld [vmem:[%s13523_s8 + $0xc8] sm:$0xff]  }
 0x851   :  { %1914 = vadd.xlane.f32.xlu0 %v1913_v10  ;;  %v10436_v10 = vld [vmem:[%s13523_s8 + $0xc0] sm:$0xff]  }
 0x852   :  { %v10776_v12 = vpop.eup %10775 }
 0x853   :  { %v1916_v13 = vsel %vm1290_vm1, %v10776_v12, 0.0 }
 0x854   :  { %1917 = vadd.xlane.f32.xlu1 %v1916_v13  ;;  %v10438_v13 = vld [vmem:[%s13523_s8 + $0x2f0] sm:$0xff]  }
 0x8d5   :  { %v1909_v14 = vpop.xlane.xlu0 %1908 }
 0x8d6   :  { %10777 = vrcp.f32 %v1909_v14  ;;  %v10439_v14 = vld [vmem:[%s13523_s8 + $0x2e8] sm:$0xff]  }
 0x8d9   :  { %v1912_v15 = vpop.xlane.xlu1 %1911 }
 0x8da   :  { %10779 = vrcp.f32 %v1912_v15  ;;  %v1915_v17 = vpop.xlane.xlu0 %1914  ;;  %v10440_v15 = vld [vmem:[%s13523_s8 + $0x2e0] sm:$0xff]  }
 0x8db   :  { %10781 = vrcp.f32 %v1915_v17  ;;  %v10441_v17 = vld [vmem:[%s13523_s8 + $0x2d8] sm:$0xff]  }
 0x8dd   :  { %v1918_v22 = vpop.xlane.xlu1 %1917 }
 0x8de   :  { %10783 = vrcp.f32 %v1918_v22  ;;  %v10442_v22 = vld [vmem:[%s13523_s8 + $0x2d0] sm:$0xff]  }
 0x8e3   :  { %v10778_v26 = vpop.eup %10777 }
 0x8e4   :  { %v1920_v28 = vmul.f32 %v10778_v26, %v10770_v3  ;;  %v10431_v3 = vld [vmem:[%s13523_s8 + $0xe8] sm:$0xff]  }
 0x8e5   :  { %v10443_v26 = vld [vmem:[%s13523_s8 + $0x2c8] sm:$0xff]  }
 0x8e7   :  { %v10780_v27 = vpop.eup %10779 }
 0x8e8   :  { %v1922_v31 = vmul.f32 %v10780_v27, %v10772_v6  ;;  %v10782_v32 = vpop.eup %10781  ;;  %v10433_v6 = vld [vmem:[%s13523_s8 + $0xd8] sm:$0xff]   ;;  %v10444_v27 = vld [vmem:[%s13523_s8 + $0x2c0] sm:$0xff]  }
 0x8e9   :  { %v1924_v36 = vmul.f32 %v10782_v32, %v10774_v8  ;;  %v10434_v8 = vld [vmem:[%s13523_s8 + $0xd0] sm:$0xff]  }
 0x8ea   :  { %v1927_v34 = vpack.c.bf16 %v1922_v31, %v1920_v28 }
 0x8eb   :  { %v10784_v35 = vpop.eup %10783 }
 0x8ec   :  { %9740 = vmatprep.mubr.msk.bf16.mxu0 %vm1290_vm1, %v1927_v34  ;;  %v1926_v37 = vmul.f32 %v10784_v35, %v10776_v12  ;;  %v10437_v12 = vld [vmem:[%s13523_s8 + $0x2f8] sm:$0xff]  }
 0x8ee   :  { %v1928_v38 = vpack.c.bf16 %v1926_v37, %v1924_v36 }
 0x8f0   :  { %9741 = vmatmul.mubr.msk.bf16.vlgmr.msra.gmra.mxu0 %vm1290_vm1, %v1928_v38  ;;  %v8261_v38 = vld [vmem:[%s13525_s9 + $0x2] ss:$0 sm:$0xff] }
 0x8f1   :  { %9745 = vmatpush3.bf16.msra.mxu0 %v10411_v39 }
 0x8f2   :  { %9746 = vmatprep.subr.bf16.mxu0 %v10412_v40 }
 0x8f5   :  { %9747 = vmatpush3.bf16.msra.mxu0 %v10412_v40 }
 0x8f6   :  { %9760 = vmatprep.subr.bf16.mxu0 %v10413_v41 }
 0x9b0   :  { %v9742_v42 = vpop.f32.mrf.mxu0 }
 0x9b2   :  { %v1971_v43 = vpop.f32.mrf.mxu0 }
 0x9b4   :  { %v9743_v44 = vpop.f32.mrf.mxu0 }
 0x9b5   :  { %v1992_v47 = vpack.c.bf16 %v9743_v44, %v9742_v42 }
 0x9b6   :  { %v1974_v45 = vpop.f32.mrf.mxu0 }
 0x9b7   :  { %v1991_v46 = vpack.c.bf16 %v1974_v45, %v1971_v43 }
 0x9b9   :  { %9748 = vmatprep.mubr.msk.bf16.mxu0 %vm1290_vm1, %v1991_v46 }
 0x9ba   :  { %9749 = vmatmul.mubr.msk.bf16.vlgmr.msra.gmra.mxu0 %vm1290_vm1, %v1992_v47  ;;  %v8311_v47 = vld [vmem:[%s13525_s9 + $0xa] ss:$0 sm:$0xff] }
 0x9bb   :  { %9761 = vmatpush3.bf16.msra.mxu0 %v10413_v41  ;;  %9776 = vmatprep.mubr.bf16.mxu0 %v11443_v11 }
 0x9bc   :  { %9762 = vmatprep.subr.bf16.mxu0 %v10414_v48 }
 0x9bf   :  { %9763 = vmatpush3.bf16.msra.mxu0 %v10414_v48 }
 0x9c0   :  { %9764 = vmatprep.subr.bf16.mxu0 %v10415_v49 }
 0x9c3   :  { %9765 = vmatpush3.bf16.msra.mxu0 %v10415_v49 }
 0x9c4   :  { %9766 = vmatprep.subr.bf16.mxu0 %v10416_v50 }
 0x9c7   :  { %9767 = vmatpush3.bf16.msra.mxu0 %v10416_v50 }
 0x9c8   :  { %9768 = vmatprep.subr.bf16.mxu0 %v10417_v51 }
 0x9cb   :  { %9769 = vmatpush3.bf16.msra.mxu0 %v10417_v51 }
 0x9cc   :  { %9770 = vmatprep.subr.bf16.mxu0 %v10418_v52 }
 0x9cf   :  { %9771 = vmatpush3.bf16.msra.mxu0 %v10418_v52 }
 0x9d0   :  { %9772 = vmatprep.subr.bf16.mxu0 %v10419_v53 }
 0x9d3   :  { %9773 = vmatpush3.bf16.msra.mxu0 %v10419_v53 }
 0x9d4   :  { %9774 = vmatprep.subr.bf16.mxu0 %v10420_v54 }
 0x9d7   :  { %9775 = vmatpush3.bf16.msra.mxu0 %v10420_v54 }
 0x9d8   :  { %9800 = vmatprep.subr.bf16.mxu0 %v10421_v55 }
 0x9da   :  { %9777 = vmatmul.mubr.bf16.vlgmr.msra.gmra.mxu0 %v11447_v16 }
 0x9db   :  { %9801 = vmatpush3.bf16.msra.mxu0 %v10421_v55  ;;  %9816 = vmatprep.mubr.bf16.mxu0 %v11443_v11 }
 0x9dc   :  { %9802 = vmatprep.subr.bf16.mxu0 %v10422_v57 }
 0x9df   :  { %9803 = vmatpush3.bf16.msra.mxu0 %v10422_v57 }
 0x9e0   :  { %9804 = vmatprep.subr.bf16.mxu0 %v10423_v58 }
 0x9e3   :  { %9805 = vmatpush3.bf16.msra.mxu0 %v10423_v58  ;;  %v11807_v58 = vld [vmem:[%s13525_s9 + $0x3] ss:$0 sm:$0xff] }
 0x9e4   :  { %9806 = vmatprep.subr.bf16.mxu0 %v10424_v60 }
 0x9e7   :  { %9807 = vmatpush3.bf16.msra.mxu0 %v10424_v60 }
 0x9e8   :  { %9808 = vmatprep.subr.bf16.mxu0 %v10425_v61 }
 0x9eb   :  { %9809 = vmatpush3.bf16.msra.mxu0 %v10425_v61 }
 0x9ec   :  { %9810 = vmatprep.subr.bf16.mxu0 %v10426_v62 }
 0x9ef   :  { %9811 = vmatpush3.bf16.msra.mxu0 %v10426_v62 }
 0x9f0   :  { %9812 = vmatprep.subr.bf16.mxu0 %v10427_v63 }
 0x9f3   :  { %9813 = vmatpush3.bf16.msra.mxu0 %v10427_v63 }
 0x9f4   :  { %9814 = vmatprep.subr.bf16.mxu0 %v10428_v0 }
 0x9f7   :  { %9815 = vmatpush3.bf16.msra.mxu0 %v10428_v0 }
 0x9f8   :  { %9844 = vmatprep.subr.bf16.mxu0 %v10429_v1 }
 0x9fa   :  { %9817 = vmatmul.mubr.bf16.vlgmr.msra.gmra.mxu0 %v11447_v16 }
 0x9fb   :  { %9845 = vmatpush3.bf16.msra.mxu0 %v10429_v1  ;;  %9860 = vmatprep.mubr.bf16.mxu0 %v11443_v11 }
 0x9fc   :  { %9846 = vmatprep.subr.bf16.mxu0 %v10430_v2 }
 0x9ff   :  { %9847 = vmatpush3.bf16.msra.mxu0 %v10430_v2 }
 0xa00   :  { %9848 = vmatprep.subr.bf16.mxu0 %v10431_v3 }
 0xa03   :  { %9849 = vmatpush3.bf16.msra.mxu0 %v10431_v3 }
 0xa04   :  { %9850 = vmatprep.subr.bf16.mxu0 %v10432_v5 }
 0xa07   :  { %9851 = vmatpush3.bf16.msra.mxu0 %v10432_v5 }
 0xa08   :  { %9852 = vmatprep.subr.bf16.mxu0 %v10433_v6 }
 0xa0b   :  { %9853 = vmatpush3.bf16.msra.mxu0 %v10433_v6 }
 0xa0c   :  { %9854 = vmatprep.subr.bf16.mxu0 %v10434_v8 }
 0xa0f   :  { %9855 = vmatpush3.bf16.msra.mxu0 %v10434_v8 }
 0xa10   :  { %9856 = vmatprep.subr.bf16.mxu0 %v10435_v9 }
 0xa13   :  { %9857 = vmatpush3.bf16.msra.mxu0 %v10435_v9 }
 0xa14   :  { %9858 = vmatprep.subr.bf16.mxu0 %v10436_v10 }
 0xa17   :  { %9859 = vmatpush3.bf16.msra.mxu0 %v10436_v10 }
 0xa18   :  { %9884 = vmatprep.subr.bf16.mxu0 %v10437_v12 }
 0xa1a   :  { %9861 = vmatmul.mubr.bf16.vlgmr.msra.gmra.mxu0 %v11447_v16 }
 0xa1b   :  { %9885 = vmatpush3.bf16.msra.mxu0 %v10437_v12  ;;  %9900 = vmatprep.mubr.bf16.mxu0 %v11443_v11 }
 0xa1c   :  { %9886 = vmatprep.subr.bf16.mxu0 %v10438_v13 }
 0xa1f   :  { %9887 = vmatpush3.bf16.msra.mxu0 %v10438_v13 }
 0xa20   :  { %9888 = vmatprep.subr.bf16.mxu0 %v10439_v14 }
 0xa23   :  { %9889 = vmatpush3.bf16.msra.mxu0 %v10439_v14 }
 0xa24   :  { %9890 = vmatprep.subr.bf16.mxu0 %v10440_v15 }
 0xa27   :  { %9891 = vmatpush3.bf16.msra.mxu0 %v10440_v15 }
 0xa28   :  { %9892 = vmatprep.subr.bf16.mxu0 %v10441_v17 }
 0xa2b   :  { %9893 = vmatpush3.bf16.msra.mxu0 %v10441_v17 }
 0xa2c   :  { %9894 = vmatprep.subr.bf16.mxu0 %v10442_v22 }
 0xa2f   :  { %9895 = vmatpush3.bf16.msra.mxu0 %v10442_v22 }
 0xa30   :  { %9896 = vmatprep.subr.bf16.mxu0 %v10443_v26 }
 0xa33   :  { %9897 = vmatpush3.bf16.msra.mxu0 %v10443_v26 }
 0xa34   :  { %9898 = vmatprep.subr.bf16.mxu0 %v10444_v27 }
 0xa37   :  { %9899 = vmatpush3.bf16.msra.mxu0 %v10444_v27 }
 0xa3a   :  { %9901 = vmatmul.mubr.bf16.vlgmr.msra.gmra.mxu0 %v11447_v16 }
 0xa7a   :  { %v11788_v28 = vpop.f32.mrf.mxu0 }
 0xa7c   :  { %v11790_v31 = vpop.f32.mrf.mxu0 }
 0xa7e   :  { %v11792_v32 = vpop.f32.mrf.mxu0 }
 0xa80   :  { %v11794_v34 = vpop.f32.mrf.mxu0 }
 0xa9a   :  { %v9778_v35 = vpop.f32.mrf.mxu0 }
 0xa9b   :  { %v2240_v43 = vadd.f32 %v9778_v35, %v8261_v38 }
 0xa9c   :  { %v2231_v36 = vpop.f32.mrf.mxu0 }
 0xa9d   :  { %v2232_v41 = vadd.f32 %v8261_v38, %v2231_v36 }
 0xa9e   :  { %v9779_v37 = vpop.f32.mrf.mxu0 }
 0xa9f   :  { %v2243_v39 = vadd.f32 %v9779_v37, %v8261_v38 }
 0xaa0   :  { %v2234_v40 = vpop.f32.mrf.mxu0 }
 0xaa1   :  { %v2235_v42 = vadd.f32 %v8261_v38, %v2234_v40  ;;  %v2485_v45 = vpack.c.bf16 %v2243_v39, %v2240_v43 }
 0xaa3   :  { %v2484_v44 = vpack.c.bf16 %v2235_v42, %v2232_v41 }
 0xaa5   :  { %9824 = vmatprep.mubr.msk.bf16.mxu1 %vm1290_vm1, %v2484_v44 }
 0xaa6   :  { %9825 = vmatmul.mubr.msk.bf16.vlgmr.msra.gmra.mxu1 %vm1290_vm1, %v2485_v45 }
 0xaba   :  { %v9818_v46 = vpop.f32.mrf.mxu0 }
 0xabb   :  { %v2478_v50 = vadd.f32 %v9818_v46, %v8311_v47 }
 0xabc   :  { %v2469_v48 = vpop.f32.mrf.mxu0 }
 0xabd   :  { %v2470_v53 = vadd.f32 %v8311_v47, %v2469_v48 }
 0xabe   :  { %v9819_v49 = vpop.f32.mrf.mxu0 }
 0xabf   :  { %v2481_v51 = vadd.f32 %v9819_v49, %v8311_v47 }
 0xac0   :  { %v2472_v52 = vpop.f32.mrf.mxu0 }
 0xac1   :  { %v2596_v54 = vpack.c.bf16 %v2481_v51, %v2478_v50  ;;  %v2473_v55 = vadd.f32 %v8311_v47, %v2472_v52 }
 0xac3   :  { %v2595_v57 = vpack.c.bf16 %v2473_v55, %v2470_v53  ;;  %9828 = vmatprep.subr.bf16.mxu1 %v2596_v54 }
 0xac4   :  { %9829 = vmatpush3.bf16.msra.mxu1 %v2596_v54 }
 0xac5   :  { %9830 = vmatprep.subr.bf16.mxu1 %v2595_v57 }
 0xac8   :  { %9831 = vmatpush3.bf16.msra.mxu1 %v2595_v57 }
 0xada   :  { %v9862_v60 = vpop.f32.mrf.mxu0 }
 0xadb   :  { %v11810_v61 = vadd.f32 %v9862_v60, %v11807_v58 }
 0xadc   :  { %v11812_v62 = vpop.f32.mrf.mxu0 }
 0xade   :  { %v9863_v63 = vpop.f32.mrf.mxu0 }
 0xadf   :  { %v11815_v0 = vadd.f32 %v9863_v63, %v11807_v58 }
 0xae1   :  { %v3088_v1 = vpack.c.bf16 %v11815_v0, %v11810_v61 }
 0xb66   :  { %v9826_v2 = vpop.f32.mrf.mxu1 }
 0xb67   :  { %v2543_v8 = vadd.f32 %v9826_v2, %v11527_v25 }
 0xb68   :  { %v2534_v3 = vpop.f32.mrf.mxu1 }
 0xb69   :  { %v2535_v5 = vadd.f32 %v2534_v3, %v11522_v24  ;;  %v2555_v15 = vsel %vm1290_vm1, %v2543_v8, -inf }
 0xb6a   :  { %v9827_v6 = vpop.f32.mrf.mxu1 }
 0xb6b   :  { %v2549_v9 = vsel %vm1290_vm1, %v2535_v5, -inf  ;;  %v2546_v13 = vadd.f32 %v9827_v6, %v11540_v33  ;;  %v10445_v6 = vld [vmem:[%s13527_s10 + $0x28] sm:$0xff]  }
 0xb6c   :  { %v2537_v10 = vpop.f32.mrf.mxu1  ;;  %2550 = vmax.xlane.f32.xlu0 %v2549_v9  ;;  %9836 = vmatprep.subr.bf16.mxu1 %v10445_v6  ;;  %v10447_v9 = vld [vmem:[%s13523_s8 + $0x1f8] sm:$0xff]  }
 0xb6d   :  { %v2538_v12 = vadd.f32 %v2537_v10, %v11533_v30  ;;  %v2558_v17 = vsel %vm1290_vm1, %v2546_v13, -inf }
 0xb6f   :  { %v2552_v14 = vsel %vm1290_vm1, %v2538_v12, -inf }
 0xb70   :  { %2553 = vmax.xlane.f32.xlu1 %v2552_v14  ;;  %2556 = vmax.xlane.f32.xlu0 %v2555_v15 }
 0xb74   :  { %2559 = vmax.xlane.f32.xlu1 %v2558_v17 }
 0xbf5   :  { %v2551_v24 = vpop.xlane.xlu0 %2550 }
 0xbf6   :  { %v2561_v22 = vsub.f32 %v2535_v5, %v2551_v24  ;;  %v10448_v24 = vld [vmem:[%s13523_s8 + $0x1f0] sm:$0xff]  }
 0xbf8   :  { %v2565_v25 = vmul.f32 1.442695, %v2561_v22  ;;  %v10449_v22 = vld [vmem:[%s13523_s8 + $0x1e8] sm:$0xff]  }
 0xbf9   :  { %v2554_v26 = vpop.xlane.xlu1 %2553  ;;  %v2557_v27 = vpop.xlane.xlu0 %2556 }
 0xbfa   :  { %10785 = vpow2.f32 %v2565_v25  ;;  %v2562_v35 = vsub.f32 %v2538_v12, %v2554_v26  ;;  %v2563_v36 = vsub.f32 %v2543_v8, %v2557_v27  ;;  %v10446_v8 = vld [vmem:[%s13527_s10 + $0x20] sm:$0xff]   ;;  %v10451_v26 = vld [vmem:[%s13523_s8 + $0x1d8] sm:$0xff]   ;;  %v10453_v27 = vld [vmem:[%s13523_s8 + $0x1c8] sm:$0xff]  }
 0xbfb   :  { %v10450_v25 = vld [vmem:[%s13523_s8 + $0x1e0] sm:$0xff]  }
 0xbfc   :  { %v2567_v30 = vmul.f32 1.442695, %v2562_v35  ;;  %v2569_v37 = vmul.f32 1.442695, %v2563_v36  ;;  %v10454_v35 = vld [vmem:[%s13523_s8 + $0x1c0] sm:$0xff]   ;;  %v2837_v36 = vpop.f32.mrf.mxu0 }
 0xbfd   :  { %v2560_v33 = vpop.xlane.xlu1 %2559 }
 0xbfe   :  { %10787 = vpow2.f32 %v2567_v30  ;;  %v2564_v38 = vsub.f32 %v2546_v13, %v2560_v33  ;;  %v2838_v30 = vadd.f32 %v11807_v58, %v2837_v36 }
 0xbff   :  { %10789 = vpow2.f32 %v2569_v37  ;;  %v2835_v37 = vadd.f32 %v11807_v58, %v11812_v62 }
 0xc00   :  { %v2571_v39 = vmul.f32 1.442695, %v2564_v38  ;;  %v2121_v38 = vadd.f32 %v11647_v18, %v11788_v28 }
 0xc01   :  { %v3087_v33 = vpack.c.bf16 %v2838_v30, %v2835_v37 }
 0xc02   :  { %10791 = vpow2.f32 %v2571_v39 }
 0xc07   :  { %v10786_v40 = vpop.eup %10785 }
 0xc08   :  { %v2573_v41 = vsel %vm1290_vm1, %v10786_v40, 0.0 }
 0xc09   :  { %2574 = vadd.xlane.f32.xlu0 %v2573_v41 }
 0xc0b   :  { %v10788_v42 = vpop.eup %10787 }
 0xc0c   :  { %v10790_v43 = vpop.eup %10789  ;;  %v2576_v44 = vsel %vm1290_vm1, %v10788_v42, 0.0 }
 0xc0d   :  { %2577 = vadd.xlane.f32.xlu1 %v2576_v44  ;;  %v2579_v45 = vsel %vm1290_vm1, %v10790_v43, 0.0 }
 0xc0e   :  { %2580 = vadd.xlane.f32.xlu0 %v2579_v45 }
 0xc0f   :  { %v10792_v46 = vpop.eup %10791 }
 0xc10   :  { %v2582_v47 = vsel %vm1290_vm1, %v10792_v46, 0.0 }
 0xc11   :  { %2583 = vadd.xlane.f32.xlu1 %v2582_v47 }
 0xc92   :  { %v2575_v48 = vpop.xlane.xlu0 %2574 }
 0xc93   :  { %10793 = vrcp.f32 %v2575_v48 }
 0xc96   :  { %v2578_v49 = vpop.xlane.xlu1 %2577 }
 0xc97   :  { %10795 = vrcp.f32 %v2578_v49  ;;  %v2581_v50 = vpop.xlane.xlu0 %2580 }
 0xc98   :  { %10797 = vrcp.f32 %v2581_v50 }
 0xc9a   :  { %v2584_v51 = vpop.xlane.xlu1 %2583 }
 0xc9b   :  { %10799 = vrcp.f32 %v2584_v51 }
 0xca0   :  { %v10794_v52 = vpop.eup %10793 }
 0xca1   :  { %v2586_v54 = vmul.f32 %v10794_v52, %v10786_v40  ;;  %v2113_v40 = vadd.f32 %v11649_v19, %v11790_v31  ;;  %v8373_v19 = vld [vmem:[%s13525_s9 + $0x7] ss:$0 sm:$0xff] }
 0xca4   :  { %v10796_v53 = vpop.eup %10795 }
 0xca5   :  { %v2588_v55 = vmul.f32 %v10796_v53, %v10788_v42  ;;  %v10798_v57 = vpop.eup %10797 }
 0xca6   :  { %v2590_v2 = vmul.f32 %v10798_v57, %v10790_v43  ;;  %v2124_v43 = vadd.f32 %v11651_v20, %v11792_v32 }
 0xca7   :  { %v2593_v60 = vpack.c.bf16 %v2588_v55, %v2586_v54  ;;  %v8398_v54 = vld [vmem:[%s13525_s9 + $0xb] ss:$0 sm:$0xff] }
 0xca8   :  { %v10800_v63 = vpop.eup %10799 }
 0xca9   :  { %9832 = vmatprep.mubr.msk.bf16.mxu1 %vm1290_vm1, %v2593_v60  ;;  %v2592_v3 = vmul.f32 %v10800_v63, %v10792_v46  ;;  %v9902_v46 = vpop.f32.mrf.mxu0 }
 0xcaa   :  { %v3081_v57 = vadd.f32 %v9902_v46, %v8398_v54 }
 0xcab   :  { %v2594_v5 = vpack.c.bf16 %v2592_v3, %v2590_v2  ;;  %v3072_v48 = vpop.f32.mrf.mxu0 }
 0xcad   :  { %9833 = vmatmul.mubr.msk.bf16.vlgmr.msra.gmra.mxu1 %vm1290_vm1, %v2594_v5  ;;  %v9903_v53 = vpop.f32.mrf.mxu0  ;;  %v3073_v5 = vadd.f32 %v8398_v54, %v3072_v48 }
 0xcae   :  { %9837 = vmatpush3.bf16.msra.mxu1 %v10445_v6  ;;  %v3084_v55 = vadd.f32 %v9903_v53, %v8398_v54 }
 0xcaf   :  { %9838 = vmatprep.subr.bf16.mxu1 %v10446_v8  ;;  %v3075_v2 = vpop.f32.mrf.mxu0 }
 0xcb0   :  { %v3199_v60 = vpack.c.bf16 %v3084_v55, %v3081_v57  ;;  %v3076_v3 = vadd.f32 %v8398_v54, %v3075_v2  ;;  %v10455_v2 = vld [vmem:[%s13527_s10 + $0x38] sm:$0xff]  }
 0xcb2   :  { %9839 = vmatpush3.bf16.msra.mxu1 %v10446_v8  ;;  %v3198_v6 = vpack.c.bf16 %v3076_v3, %v3073_v5  ;;  %v10456_v3 = vld [vmem:[%s13527_s10 + $0x30] sm:$0xff]  }
 0xcb3   :  { %9864 = vmatprep.subr.bf16.mxu1 %v10447_v9 }
 0xd6d   :  { %v9834_v10 = vpop.f32.mrf.mxu1 }
 0xd6f   :  { %v2637_v12 = vpop.f32.mrf.mxu1 }
 0xd71   :  { %v9835_v13 = vpop.f32.mrf.mxu1 }
 0xd72   :  { %v2658_v17 = vpack.c.bf16 %v9835_v13, %v9834_v10  ;;  %v11001_v10 = vld [vmem:[%s13526_s5] sm:$0xff] }
 0xd73   :  { %v2640_v14 = vpop.f32.mrf.mxu1 }
 0xd74   :  { %v2657_v15 = vpack.c.bf16 %v2640_v14, %v2637_v12  ;;  %v11002_v14 = vld [vmem:[%s13526_s5 + $0x10] sm:$0xff] }
 0xd76   :  { %9840 = vmatprep.mubr.msk.bf16.mxu1 %vm1290_vm1, %v2657_v15 }
 0xd77   :  { %9841 = vmatmul.mubr.msk.bf16.vlgmr.msra.gmra.mxu1 %vm1290_vm1, %v2658_v17 }
 0xd78   :  { %9865 = vmatpush3.bf16.msra.mxu1 %v10447_v9  ;;  %9880 = vmatprep.mubr.bf16.mxu1 %v11443_v11  ;;  %v10452_v11 = vld [vmem:[%s13523_s8 + $0x1d0] sm:$0xff]  }
 0xd79   :  { %9866 = vmatprep.subr.bf16.mxu1 %v10448_v24 }
 0xd7c   :  { %9867 = vmatpush3.bf16.msra.mxu1 %v10448_v24  ;;  %v11004_v24 = vld [vmem:[%s13526_s5 + $0x18] sm:$0xff] }
 0xd7d   :  { %9868 = vmatprep.subr.bf16.mxu1 %v10449_v22 }
 0xd80   :  { %9869 = vmatpush3.bf16.msra.mxu1 %v10449_v22 }
 0xd81   :  { %9870 = vmatprep.subr.bf16.mxu1 %v10450_v25 }
 0xd84   :  { %9871 = vmatpush3.bf16.msra.mxu1 %v10450_v25 }
 0xd85   :  { %9872 = vmatprep.subr.bf16.mxu1 %v10451_v26 }
 0xd88   :  { %9873 = vmatpush3.bf16.msra.mxu1 %v10451_v26 }
 0xd89   :  { %9874 = vmatprep.subr.bf16.mxu1 %v10452_v11 }
 0xd8c   :  { %9875 = vmatpush3.bf16.msra.mxu1 %v10452_v11 }
 0xd8d   :  { %9876 = vmatprep.subr.bf16.mxu1 %v10453_v27 }
 0xd90   :  { %9877 = vmatpush3.bf16.msra.mxu1 %v10453_v27 }
 0xd91   :  { %9878 = vmatprep.subr.bf16.mxu1 %v10454_v35 }
 0xd94   :  { %9879 = vmatpush3.bf16.msra.mxu1 %v10454_v35 }
 0xd97   :  { %9881 = vmatmul.mubr.bf16.vlgmr.msra.gmra.mxu1 %v11447_v16  ;;  %v2116_v16 = vadd.f32 %v11653_v21, %v11794_v34 }
 0xd98   :  { %9908 = vmatprep.mubr.msk.bf16.mxu1 %vm1290_vm1, %v3087_v33 }
 0xe37   :  { %v9842_v39 = vpop.f32.mrf.mxu1 }
 0xe38   :  { %v11875_v41 = vadd.f32 %v9842_v39, %v2121_v38 }
 0xe39   :  { %v2711_v42 = vpop.f32.mrf.mxu1 }
 0xe3a   :  { %v11879_v58 = vadd.f32 %v2711_v42, %v2113_v40 }
 0xe3b   :  { %v9843_v62 = vpop.f32.mrf.mxu1 }
 0xe3c   :  { %v11883_v44 = vadd.f32 %v9843_v62, %v2124_v43 }
 0xe3d   :  { %v2714_v45 = vpop.f32.mrf.mxu1 }
 0xe3e   :  { %v11885_v18 = vadd.f32 %v2714_v45, %v2116_v16 }
 0xe57   :  { %v9882_v28 = vpop.f32.mrf.mxu1 }
 0xe58   :  { %v2962_v20 = vadd.f32 %v9882_v28, %v8373_v19 }
 0xe59   :  { %v2953_v31 = vpop.f32.mrf.mxu1 }
 0xe5a   :  { %v2954_v50 = vadd.f32 %v8373_v19, %v2953_v31 }
 0xe5b   :  { %v9883_v47 = vpop.f32.mrf.mxu1 }
 0xe5c   :  { %v2965_v32 = vadd.f32 %v9883_v47, %v8373_v19 }
 0xe5d   :  { %v2956_v49 = vpop.f32.mrf.mxu1 }
 0xe5e   :  { %v3090_v51 = vpack.c.bf16 %v2965_v32, %v2962_v20  ;;  %v2957_v21 = vadd.f32 %v8373_v19, %v2956_v49 }
 0xe60   :  { %v3089_v34 = vpack.c.bf16 %v2957_v21, %v2954_v50  ;;  %10270 = vmatprep.subr.msk.bf16.mxu1 %vm1290_vm1, %v3090_v51  ;;  %v3101_v52 = vsel %vm1290_vm1, %v3090_v51, 0 }
 0xe61   :  { %9905 = vmatpush3.bf16.xpose.msra.mxu1 %v3101_v52 }
 0xe62   :  { %10271 = vmatprep.subr.msk.bf16.mxu1 %vm1290_vm1, %v3089_v34  ;;  %v3098_v63 = vsel %vm1290_vm1, %v3089_v34, 0 }
 0xe69   :  { %9907 = vmatpush3.bf16.xpose.msra.mxu1 %v3098_v63 }
 0xe6a   :  { %9912 = vmatprep.subr.bf16.mxu1 %v3199_v60 }
 0xe70   :  { %9909 = vmatmul.mubr.msk.bf16.vlgmr.msra.gmra.mxu1 %vm1290_vm1, %v3088_v1  ;;  %v11003_v1 = vld [vmem:[%s13526_s5 + $0x8] sm:$0xff] }
 0xe71   :  { %9913 = vmatpush3.bf16.msra.mxu1 %v3199_v60 }
 0xe72   :  { %9914 = vmatprep.subr.bf16.mxu1 %v3198_v6 }
 0xe75   :  { %9915 = vmatpush3.bf16.msra.mxu1 %v3198_v6 }
 0xe76   :  { %9920 = vmatprep.subr.bf16.mxu1 %v10455_v2 }
 0xf30   :  { %v9910_v8 = vpop.f32.mrf.mxu1 }
 0xf31   :  { %v3146_v15 = vadd.f32 %v11002_v14, %v9910_v8 }
 0xf32   :  { %v3137_v9 = vpop.f32.mrf.mxu1 }
 0xf33   :  { %v3138_v12 = vadd.f32 %v11001_v10, %v3137_v9  ;;  %v3158_v26 = vsel %vm1290_vm1, %v3146_v15, -inf }
 0xf34   :  { %v9911_v13 = vpop.f32.mrf.mxu1 }
 0xf35   :  { %v3152_v61 = vsel %vm1290_vm1, %v3138_v12, -inf  ;;  %v3149_v22 = vadd.f32 %v11004_v24, %v9911_v13  ;;  %v8419_v24 = vld [vmem:[%s13524_s14 + $0x4] ss:$0 sm:$0xff] }
 0xf36   :  { %v3140_v0 = vpop.f32.mrf.mxu1  ;;  %3153 = vmax.xlane.f32.xlu0 %v3152_v61 }
 0xf37   :  { %v3141_v17 = vadd.f32 %v11003_v1, %v3140_v0  ;;  %v3161_v11 = vsel %vm1290_vm1, %v3149_v22, -inf }
 0xf39   :  { %v3155_v25 = vsel %vm1290_vm1, %v3141_v17, -inf }
 0xf3a   :  { %3156 = vmax.xlane.f32.xlu1 %v3155_v25  ;;  %3159 = vmax.xlane.f32.xlu0 %v3158_v26 }
 0xf3e   :  { %3162 = vmax.xlane.f32.xlu1 %v3161_v11 }
 0xfbf   :  { %v3154_v27 = vpop.xlane.xlu0 %3153 }
 0xfc0   :  { %v3164_v35 = vsub.f32 %v3138_v12, %v3154_v27 }
 0xfc2   :  { %v3168_v36 = vmul.f32 1.442695, %v3164_v35 }
 0xfc3   :  { %v3157_v30 = vpop.xlane.xlu1 %3156  ;;  %v3160_v37 = vpop.xlane.xlu0 %3159 }
 0xfc4   :  { %10801 = vpow2.f32 %v3168_v36  ;;  %v3165_v33 = vsub.f32 %v3141_v17, %v3157_v30  ;;  %v3166_v38 = vsub.f32 %v3146_v15, %v3160_v37 }
 0xfc6   :  { %v3170_v39 = vmul.f32 1.442695, %v3165_v33  ;;  %v3172_v40 = vmul.f32 1.442695, %v3166_v38 }
 0xfc7   :  { %v3163_v42 = vpop.xlane.xlu1 %3162 }
 0xfc8   :  { %10803 = vpow2.f32 %v3170_v39  ;;  %v3167_v43 = vsub.f32 %v3149_v22, %v3163_v42 }
 0xfc9   :  { %10805 = vpow2.f32 %v3172_v40 }
 0xfca   :  { %v3174_v62 = vmul.f32 1.442695, %v3167_v43 }
 0xfcc   :  { %10807 = vpow2.f32 %v3174_v62 }
 0xfd1   :  { %v10802_v16 = vpop.eup %10801 }
 0xfd2   :  { %v3176_v45 = vsel %vm1290_vm1, %v10802_v16, 0.0 }
 0xfd3   :  { %3177 = vadd.xlane.f32.xlu0 %v3176_v45 }
 0xfd5   :  { %v10804_v28 = vpop.eup %10803 }
 0xfd6   :  { %v10806_v46 = vpop.eup %10805  ;;  %v3179_v19 = vsel %vm1290_vm1, %v10804_v28, 0.0 }
 0xfd7   :  { %3180 = vadd.xlane.f32.xlu1 %v3179_v19  ;;  %v3182_v31 = vsel %vm1290_vm1, %v10806_v46, 0.0 }
 0xfd8   :  { %3183 = vadd.xlane.f32.xlu0 %v3182_v31 }
 0xfd9   :  { %v10808_v47 = vpop.eup %10807 }
 0xfda   :  { %v3185_v20 = vsel %vm1290_vm1, %v10808_v47, 0.0 }
 0xfdb   :  { %3186 = vadd.xlane.f32.xlu1 %v3185_v20  ;;  %v10465_v20 = vld [vmem:[%s13528_s11 + $0xc4] ss:$16 sps:$4 sm:$0xff]  }
0x105c   :  { %v3178_v32 = vpop.xlane.xlu0 %3177 }
0x105d   :  { %10809 = vrcp.f32 %v3178_v32  ;;  %v10468_v32 = vld [vmem:[%s13528_s11 + $0xcc] ss:$16 sps:$4 sm:$0xff]  }
0x1060   :  { %v3181_v48 = vpop.xlane.xlu1 %3180 }
0x1061   :  { %10811 = vrcp.f32 %v3181_v48  ;;  %v3184_v49 = vpop.xlane.xlu0 %3183  ;;  %v10463_v48 = vld [vmem:[%s13528_s11 + $0xc0] ss:$16 sps:$4 sm:$0xff]  }
0x1062   :  { %10813 = vrcp.f32 %v3184_v49  ;;  %v10466_v49 = vld [vmem:[%s13528_s11 + $0xc8] ss:$16 sps:$4 sm:$0xff]  }
0x1064   :  { %v3187_v50 = vpop.xlane.xlu1 %3186 }
0x1065   :  { %10815 = vrcp.f32 %v3187_v50  ;;  %v10471_v50 = vld [vmem:[%s13528_s11 + $0xa4] ss:$16 sps:$4 sm:$0xff]  }
0x106a   :  { %v10810_v51 = vpop.eup %10809 }
0x106b   :  { %v3189_v34 = vmul.f32 %v10810_v51, %v10802_v16  ;;  %v10474_v51 = vld [vmem:[%s13528_s11 + $0xac] ss:$16 sps:$4 sm:$0xff]  }
0x106e   :  { %v10812_v21 = vpop.eup %10811 }
0x106f   :  { %v3191_v52 = vmul.f32 %v10812_v21, %v10804_v28  ;;  %v10814_v53 = vpop.eup %10813  ;;  %v10469_v21 = vld [vmem:[%s13528_s11 + $0xa0] ss:$16 sps:$4 sm:$0xff]  }
0x1070   :  { %v3193_v57 = vmul.f32 %v10814_v53, %v10806_v46  ;;  %v10480_v53 = vld [vmem:[%s13528_s11 + $0x8c] ss:$16 sps:$4 sm:$0xff]  }
0x1071   :  { %v3196_v54 = vpack.c.bf16 %v3191_v52, %v3189_v34  ;;  %v10472_v34 = vld [vmem:[%s13528_s11 + $0xa8] ss:$16 sps:$4 sm:$0xff]   ;;  %v10477_v52 = vld [vmem:[%s13528_s11 + $0x84] ss:$16 sps:$4 sm:$0xff]  }
0x1072   :  { %v10816_v55 = vpop.eup %10815 }
0x1073   :  { %9916 = vmatprep.mubr.msk.bf16.mxu1 %vm1290_vm1, %v3196_v54  ;;  %v3195_v60 = vmul.f32 %v10816_v55, %v10808_v47  ;;  %v10475_v54 = vld [vmem:[%s13528_s11 + $0x80] ss:$16 sps:$4 sm:$0xff]   ;;  %v10478_v55 = vld [vmem:[%s13528_s11 + $0x88] ss:$16 sps:$4 sm:$0xff]  }
0x1075   :  { %v3197_v63 = vpack.c.bf16 %v3195_v60, %v3193_v57  ;;  %v10481_v57 = vld [vmem:[%s13528_s11 + $0x60] ss:$16 sps:$4 sm:$0xff]   ;;  %v10483_v60 = vld [vmem:[%s13528_s11 + $0x64] ss:$16 sps:$4 sm:$0xff]  }
0x1077   :  { %9917 = vmatmul.mubr.msk.bf16.vlgmr.msra.gmra.mxu1 %vm1290_vm1, %v3197_v63  ;;  %v10484_v63 = vld [vmem:[%s13528_s11 + $0x68] ss:$16 sps:$4 sm:$0xff]  }
0x1078   :  { %9921 = vmatpush3.bf16.msra.mxu1 %v10455_v2  ;;  %v10486_v2 = vld [vmem:[%s13528_s11 + $0x6c] ss:$16 sps:$4 sm:$0xff]  }
0x1079   :  { %9922 = vmatprep.subr.bf16.mxu1 %v10456_v3 }
0x107c   :  { %9923 = vmatpush3.bf16.msra.mxu1 %v10456_v3  ;;  %v10489_v3 = vld [vmem:[%s13528_s11 + $0x44] ss:$16 sps:$4 sm:$0xff]  }
0x1137   :  { %v9918_v5 = vpop.f32.mrf.mxu1 }
0x1139   :  { %v3240_v6 = vpop.f32.mrf.mxu1 }
0x113b   :  { %v9919_v8 = vpop.f32.mrf.mxu1 }
0x113c   :  { %v3261_v12 = vpack.c.bf16 %v9919_v8, %v9918_v5  ;;  %v10492_v5 = vld [vmem:[%s13528_s11 + $0x4c] ss:$16 sps:$4 sm:$0xff]   ;;  %v10490_v8 = vld [vmem:[%s13528_s11 + $0x48] ss:$16 sps:$4 sm:$0xff]  }
0x113d   :  { %v3243_v9 = vpop.f32.mrf.mxu1 }
0x113e   :  { %v3260_v10 = vpack.c.bf16 %v3243_v9, %v3240_v6  ;;  %v10487_v6 = vld [vmem:[%s13528_s11 + $0x40] ss:$16 sps:$4 sm:$0xff]   ;;  %v10495_v9 = vld [vmem:[%s13528_s11 + $0x24] ss:$16 sps:$4 sm:$0xff]  }
0x1140   :  { %9924 = vmatprep.mubr.msk.bf16.mxu1 %vm1290_vm1, %v3260_v10  ;;  %v10498_v10 = vld [vmem:[%s13528_s11 + $0x2c] ss:$16 sps:$4 sm:$0xff]  }
0x1141   :  { %9925 = vmatmul.mubr.msk.bf16.vlgmr.msra.gmra.mxu1 %vm1290_vm1, %v3261_v12  ;;  %v11016_v12 = vmov 0  }
0x1142   :  { %3656 = vmatprep.mubr.bf16.mxu0 %v11016_v12  ;;  %3709 = vmatprep.mubr.bf16.mxu1 %v11016_v12 }
0x1143   :  { %10287 = vset.pattern.permute.xlu1 %v11016_v12  ;;  %10286 = vset.pattern.permute.xlu0 %v11016_v12 }
0x1201   :  { %v9926_v13 = vpop.f32.mrf.mxu1 }
0x1202   :  { %v3331_v15 = vadd.f32 %v9926_v13, %v11875_v41  ;;  %v10493_v13 = vld [vmem:[%s13528_s11 + $0x20] ss:$16 sps:$4 sm:$0xff]  }
0x1203   :  { %v3314_v14 = vpop.f32.mrf.mxu1 }
0x1204   :  { %v3329_v61 = vadd.f32 %v3314_v14, %v11879_v58  ;;  %v3335_v22 = vadd.f32 %v3331_v15, %v11335_v56  ;;  %v10457_v56 = vld [vmem:[%s13528_s11 + $0xe0] ss:$16 sps:$4 sm:$0xff]   ;;  %v10496_v14 = vld [vmem:[%s13528_s11 + $0x28] ss:$16 sps:$4 sm:$0xff]   ;;  %v10501_v15 = vld [vmem:[%s13528_s11 + $0x4] ss:$16 sps:$4 sm:$0xff]  }
0x1205   :  { %v9927_v0 = vpop.f32.mrf.mxu1 }
0x1206   :  { %v3333_v1 = vadd.f32 %v3329_v61, %v11350_v4  ;;  %v3332_v25 = vadd.f32 %v9927_v0, %v11883_v44  ;;  %v11944_v35 = vadd.f32 %v8419_v24, %v3335_v22  ;;  %v10460_v44 = vld [vmem:[%s13528_s11 + $0xe8] ss:$16 sps:$4 sm:$0xff]   ;;  %v10504_v61 = vld [vmem:[%s13528_s11 + $0xc] ss:$16 sps:$4 sm:$0xff]   ;;  %v10499_v0 = vld [vmem:[%s13528_s11] ss:$16 sps:$4 sm:$0xff]  }
0x1207   :  { %v3317_v17 = vpop.f32.mrf.mxu1 }
0x1208   :  { %v3330_v26 = vadd.f32 %v3317_v17, %v11885_v18  ;;  %v3342_v11 = vadd.f32 %v8419_v24, %v3333_v1  ;;  %v3336_v41 = vadd.f32 %v3332_v25, %v11341_v59  ;;  %v10459_v59 = vld [vmem:[%s13528_s11 + $0xe4] ss:$16 sps:$4 sm:$0xff]   ;;  %v10462_v18 = vld [vmem:[%s13528_s11 + $0xec] ss:$16 sps:$4 sm:$0xff]   ;;  %v10502_v1 = vld [vmem:[%s13528_s11 + $0x8] ss:$16 sps:$4 sm:$0xff]  }
0x1209   :  { %3624 = vmatprep.subr.bf16.mxu0 %v10459_v59  ;;  %3677 = vmatprep.subr.bf16.mxu1 %v10462_v18 }
0x120a   :  { %v3334_v27 = vadd.f32 %v3330_v26, %v11356_v7  ;;  %3348 = vadd.xlane.f32.xlu0 %v3342_v11  ;;  %v11948_v36 = vadd.f32 %v8419_v24, %v3336_v41  ;;  %3625 = vmatpush1.bf16.msra.mxu0 %v10457_v56 }
0x120b   :  { %3678 = vmatpush1.bf16.msra.mxu1 %v10460_v44  ;;  %3626 = vmatprep.subr.bf16.mxu0 %v10465_v20 }
0x120c   :  { %v11942_v58 = vadd.f32 %v8419_v24, %v3334_v27  ;;  %3679 = vmatprep.subr.bf16.mxu1 %v10468_v32 }
0x120e   :  { %3350 = vadd.xlane.f32.xlu1 %v11942_v58  ;;  %3352 = vadd.xlane.f32.xlu0 %v11944_v35 }
0x120f   :  { %3627 = vmatpush1.bf16.msra.mxu0 %v10463_v48  ;;  %3680 = vmatpush1.bf16.msra.mxu1 %v10466_v49 }
0x1210   :  { %3628 = vmatprep.subr.bf16.mxu0 %v10471_v50  ;;  %3681 = vmatprep.subr.bf16.mxu1 %v10474_v51 }
0x1212   :  { %3354 = vadd.xlane.f32.xlu1 %v11948_v36 }
0x1213   :  { %3629 = vmatpush1.bf16.msra.mxu0 %v10469_v21  ;;  %3682 = vmatpush1.bf16.msra.mxu1 %v10472_v34  ;;  %v10507_v21 = vld [vmem:[%s13529_s13 + $0x38] sm:$0xff]  }
0x1214   :  { %3630 = vmatprep.subr.bf16.mxu0 %v10477_v52  ;;  %3683 = vmatprep.subr.bf16.mxu1 %v10480_v53  ;;  %v10508_v34 = vld [vmem:[%s13529_s13 + $0xb8] sm:$0xff]   ;;  %v10509_v52 = vld [vmem:[%s13529_s13 + $0x70] sm:$0xff]  }
0x1215   :  { %v10510_v53 = vld [vmem:[%s13529_s13 + $0xf0] sm:$0xff]  }
0x1217   :  { %3631 = vmatpush1.bf16.msra.mxu0 %v10475_v54  ;;  %3684 = vmatpush1.bf16.msra.mxu1 %v10478_v55  ;;  %v10511_v54 = vld [vmem:[%s13529_s13 + $0x30] sm:$0xff]  }
0x1218   :  { %3632 = vmatprep.subr.bf16.mxu0 %v10483_v60  ;;  %3685 = vmatprep.subr.bf16.mxu1 %v10486_v2  ;;  %v10512_v55 = vld [vmem:[%s13529_s13 + $0xb0] sm:$0xff]   ;;  %v10514_v60 = vld [vmem:[%s13529_s13 + $0xe8] sm:$0xff]  }
0x1219   :  { %v10516_v2 = vld [vmem:[%s13529_s13 + $0xa8] sm:$0xff]  }
0x121b   :  { %3633 = vmatpush1.bf16.msra.mxu0 %v10481_v57  ;;  %3686 = vmatpush1.bf16.msra.mxu1 %v10484_v63  ;;  %v10513_v57 = vld [vmem:[%s13529_s13 + $0x68] sm:$0xff]  }
0x121c   :  { %3634 = vmatprep.subr.bf16.mxu0 %v10489_v3  ;;  %3687 = vmatprep.subr.bf16.mxu1 %v10492_v5  ;;  %v10515_v63 = vld [vmem:[%s13529_s13 + $0x28] sm:$0xff]   ;;  %v10517_v3 = vld [vmem:[%s13529_s13 + $0x60] sm:$0xff]  }
0x121d   :  { %v10518_v5 = vld [vmem:[%s13529_s13 + $0xe0] sm:$0xff]  }
0x121f   :  { %3635 = vmatpush1.bf16.msra.mxu0 %v10487_v6  ;;  %3688 = vmatpush1.bf16.msra.mxu1 %v10490_v8  ;;  %v10519_v6 = vld [vmem:[%s13529_s13 + $0x20] sm:$0xff]  }
0x1220   :  { %3636 = vmatprep.subr.bf16.mxu0 %v10495_v9  ;;  %3689 = vmatprep.subr.bf16.mxu1 %v10498_v10  ;;  %v10520_v8 = vld [vmem:[%s13529_s13 + $0xa0] sm:$0xff]   ;;  %v10521_v9 = vld [vmem:[%s13529_s13 + $0x58] sm:$0xff]  }
0x1221   :  { %v10522_v10 = vld [vmem:[%s13529_s13 + $0xd8] sm:$0xff]  }
0x1223   :  { %3637 = vmatpush1.bf16.msra.mxu0 %v10493_v13  ;;  %3690 = vmatpush1.bf16.msra.mxu1 %v10496_v14  ;;  %v10523_v13 = vld [vmem:[%s13529_s13 + $0x18] sm:$0xff]  }
0x1224   :  { %3638 = vmatprep.subr.bf16.mxu0 %v10501_v15  ;;  %3691 = vmatprep.subr.bf16.mxu1 %v10504_v61  ;;  %v10524_v14 = vld [vmem:[%s13529_s13 + $0x98] sm:$0xff]   ;;  %v10525_v15 = vld [vmem:[%s13529_s13 + $0x50] sm:$0xff]  }
0x1225   :  { %v10526_v61 = vld [vmem:[%s13529_s13 + $0xd0] sm:$0xff]  }
0x1227   :  { %3639 = vmatpush1.bf16.msra.mxu0 %v10499_v0  ;;  %3692 = vmatpush1.bf16.msra.mxu1 %v10502_v1  ;;  %v10527_v0 = vld [vmem:[%s13529_s13 + $0x10] sm:$0xff]  }
0x1228   :  { %v10528_v1 = vld [vmem:[%s13529_s13 + $0x90] sm:$0xff]  }
0x1293   :  { %v3349_v30 = vpop.xlane.xlu0 %3348 }
0x1294   :  { %v3356_v37 = vmul.f32 0.0078125, %v3349_v30 }
0x1296   :  { %v11963_v33 = vsub.f32 %v3342_v11, %v3356_v37 }
0x1297   :  { %v3351_v38 = vpop.xlane.xlu1 %3350  ;;  %v3353_v39 = vpop.xlane.xlu0 %3352 }
0x1298   :  { %v3357_v40 = vmul.f32 0.0078125, %v3351_v38  ;;  %v3358_v42 = vmul.f32 0.0078125, %v3353_v39  ;;  %v3364_v43 = vmul.f32 %v11963_v33, %v11963_v33  ;;  %v8420_v38 = vld [vmem:[%s13524_s14 + $0x2] ss:$0 sm:$0xff] }
0x129a   :  { %v11968_v62 = vsub.f32 %v11942_v58, %v3357_v40  ;;  %v11971_v16 = vsub.f32 %v11944_v35, %v3358_v42  ;;  %3368 = vadd.xlane.f32.xlu0 %v3364_v43 }
0x129b   :  { %v3355_v45 = vpop.xlane.xlu1 %3354 }
0x129c   :  { %v3359_v28 = vmul.f32 0.0078125, %v3355_v45  ;;  %v3365_v46 = vmul.f32 %v11968_v62, %v11968_v62  ;;  %v3366_v19 = vmul.f32 %v11971_v16, %v11971_v16  ;;  %v8421_v45 = vld [vmem:[%s13524_s14 + $0x3] ss:$0 sm:$0xff] }
0x129e   :  { %v11978_v31 = vsub.f32 %v11948_v36, %v3359_v28  ;;  %3370 = vadd.xlane.f32.xlu1 %v3365_v46  ;;  %3372 = vadd.xlane.f32.xlu0 %v3366_v19 }
0x12a0   :  { %v3367_v47 = vmul.f32 %v11978_v31, %v11978_v31 }
0x12a2   :  { %3374 = vadd.xlane.f32.xlu1 %v3367_v47  ;;  %4255 = vadd.xlane.f32.xlu0 %v11350_v4 }
0x1323   :  { %v3369_v17 = vpop.xlane.xlu0 %3368 }
0x1324   :  { %v3376_v24 = vmul.f32 0.0078125, %v3369_v17  ;;  %v10529_v17 = vld [vmem:[%s13529_s13 + $0x48] sm:$0xff]  }
0x1326   :  { %v3380_v22 = vadd.f32 1e-05, %v3376_v24  ;;  %v10530_v24 = vld [vmem:[%s13529_s13 + $0xc8] sm:$0xff]  }
0x1327   :  { %v3371_v25 = vpop.xlane.xlu1 %3370  ;;  %v3373_v26 = vpop.xlane.xlu0 %3372 }
0x1328   :  { %10817 = vrsqrt.f32 %v3380_v22  ;;  %v3377_v11 = vmul.f32 0.0078125, %v3371_v25  ;;  %v3378_v27 = vmul.f32 0.0078125, %v3373_v26  ;;  %v10531_v22 = vld [vmem:[%s13529_s13 + $0x8] sm:$0xff]   ;;  %v10533_v26 = vld [vmem:[%s13529_s13 + $0x40] sm:$0xff]  }
0x1329   :  { %v10532_v25 = vld [vmem:[%s13529_s13 + $0x88] sm:$0xff]  }
0x132a   :  { %v3381_v41 = vadd.f32 1e-05, %v3377_v11  ;;  %v3382_v56 = vadd.f32 1e-05, %v3378_v27  ;;  %v10534_v11 = vld [vmem:[%s13529_s13 + $0xc0] sm:$0xff]  }
0x132b   :  { %v3375_v59 = vpop.xlane.xlu1 %3374  ;;  %v10535_v27 = vld [vmem:[%s13529_s13] sm:$0xff]  }
0x132c   :  { %10819 = vrsqrt.f32 %v3381_v41  ;;  %v3379_v44 = vmul.f32 0.0078125, %v3375_v59  ;;  %v10536_v41 = vld [vmem:[%s13529_s13 + $0x80] sm:$0xff]   ;;  %v3454_v59 = vsub.s32 2, %v11188_v29 }
0x132d   :  { %10821 = vrsqrt.f32 %v3382_v56  ;;  %v12180_v56 = vsub.s32 0, %v11188_v29 }
0x132e   :  { %v3383_v18 = vadd.f32 1e-05, %v3379_v44  ;;  %v3442_v44 = vld [vmem:[%s13530_s12] sm:$0xf] }
0x1330   :  { %10823 = vrsqrt.f32 %v3383_v18  ;;  %v12187_v18 = vsub.s32 1, %v11188_v29 }
0x1335   :  { %v10818_v30 = vpop.eup %10817 }
0x1336   :  { %v3388_v37 = vmul.f32 %v10818_v30, %v11963_v33  ;;  %v3458_v30 = vsub.s32 3, %v11188_v29 }
0x1338   :  { %v3396_v42 = vmul.f32 %v8420_v38, %v3388_v37  ;;  %v12191_v37 = vrot.slane %v3442_v44, %v12180_v56 }
0x1339   :  { %v10820_v39 = vpop.eup %10819 }
0x133a   :  { %v3389_v40 = vmul.f32 %v10820_v39, %v11968_v62  ;;  %v10822_v43 = vpop.eup %10821  ;;  %v3404_v19 = vadd.f32 %v8421_v45, %v3396_v42  ;;  %v12198_v42 = vrot.slane %v3442_v44, %v12187_v18 }
0x133b   :  { %v3390_v20 = vmul.f32 %v10822_v43, %v11971_v16  ;;  %v10505_v16 = vld [vmem:[%s13529_s13 + $0x78] sm:$0xff]   ;;  %v12202_v43 = vrot.slane %v3442_v44, %v3458_v30 }
0x133c   :  { %v3397_v28 = vmul.f32 %v8420_v38, %v3389_v40  ;;  %9272 = vmatprep.subr.bf16.mxu0 %v10505_v16 }
0x133d   :  { %v10824_v46 = vpop.eup %10823  ;;  %v3398_v49 = vmul.f32 %v8420_v38, %v3390_v20 }
0x133e   :  { %v3405_v47 = vadd.f32 %v8421_v45, %v3397_v28  ;;  %v3391_v33 = vmul.f32 %v10824_v46, %v11978_v31  ;;  %v10506_v31 = vld [vmem:[%s13529_s13 + $0xf8] sm:$0xff]  }
0x133f   :  { %v3406_v50 = vadd.f32 %v8421_v45, %v3398_v49  ;;  %9300 = vmatprep.subr.bf16.mxu1 %v10506_v31 }
0x1340   :  { %v3440_v32 = vpack.c.bf16 %v3405_v47, %v3404_v19  ;;  %v3399_v48 = vmul.f32 %v8420_v38, %v3391_v33  ;;  %v12195_v38 = vrot.slane %v3442_v44, %v3454_v59 }
0x1342   :  { %3657 = vmatmul.mubr.bf16.vlgmr.msra.gmra.mxu0 %v3440_v32  ;;  %3710 = vmatmul.mubr.bf16.vlgmr.msra.gmra.mxu1 %v3440_v32  ;;  %v3407_v62 = vadd.f32 %v8421_v45, %v3399_v48 }
0x1343   :  { %3666 = vmatprep.mubr.bf16.mxu0 %v11016_v12  ;;  %3719 = vmatprep.mubr.bf16.mxu1 %v11016_v12 }
0x1344   :  { %v3441_v51 = vpack.c.bf16 %v3407_v62, %v3406_v50  ;;  %9273 = vmatpush3.bf16.msra.mxu0 %v10507_v21  ;;  %9301 = vmatpush3.bf16.msra.mxu1 %v10508_v34 }
0x1345   :  { %9274 = vmatprep.subr.bf16.mxu0 %v10509_v52  ;;  %9302 = vmatprep.subr.bf16.mxu1 %v10510_v53 }
0x1348   :  { %9275 = vmatpush3.bf16.msra.mxu0 %v10511_v54  ;;  %9303 = vmatpush3.bf16.msra.mxu1 %v10512_v55 }
0x1349   :  { %9276 = vmatprep.subr.bf16.mxu0 %v10513_v57  ;;  %9304 = vmatprep.subr.bf16.mxu1 %v10514_v60 }
0x134a   :  { %3667 = vmatmul.mubr.bf16.gmra.mxu0 %v3441_v51  ;;  %3720 = vmatmul.mubr.bf16.gmra.mxu1 %v3441_v51 }
0x134c   :  { %9277 = vmatpush3.bf16.msra.mxu0 %v10515_v63  ;;  %9305 = vmatpush3.bf16.msra.mxu1 %v10516_v2 }
0x134d   :  { %9278 = vmatprep.subr.bf16.mxu0 %v10517_v3  ;;  %9306 = vmatprep.subr.bf16.mxu1 %v10518_v5 }
0x1350   :  { %9279 = vmatpush3.bf16.msra.mxu0 %v10519_v6  ;;  %9307 = vmatpush3.bf16.msra.mxu1 %v10520_v8 }
0x1351   :  { %9280 = vmatprep.subr.bf16.mxu0 %v10521_v9  ;;  %9308 = vmatprep.subr.bf16.mxu1 %v10522_v10 }
0x1354   :  { %9281 = vmatpush3.bf16.msra.mxu0 %v10523_v13  ;;  %9309 = vmatpush3.bf16.msra.mxu1 %v10524_v14 }
0x1355   :  { %9282 = vmatprep.subr.bf16.mxu0 %v10525_v15  ;;  %9310 = vmatprep.subr.bf16.mxu1 %v10526_v61 }
0x1358   :  { %9283 = vmatpush3.bf16.msra.mxu0 %v10527_v0  ;;  %9311 = vmatpush3.bf16.msra.mxu1 %v10528_v1 }
0x1359   :  { %9284 = vmatprep.subr.bf16.mxu0 %v10529_v17  ;;  %9312 = vmatprep.subr.bf16.mxu1 %v10530_v24 }
0x135c   :  { %9285 = vmatpush3.bf16.msra.mxu0 %v10531_v22  ;;  %9313 = vmatpush3.bf16.msra.mxu1 %v10532_v25 }
0x135d   :  { %9286 = vmatprep.subr.bf16.mxu0 %v10533_v26  ;;  %9314 = vmatprep.subr.bf16.mxu1 %v10534_v11 }
0x1360   :  { %9287 = vmatpush3.bf16.msra.mxu0 %v10535_v27  ;;  %9315 = vmatpush3.bf16.msra.mxu1 %v10536_v41 }
0x1402   :  { %v3658_v39 = vpop.f32.mrf.mxu0  ;;  %v3711_v40 = vpop.f32.mrf.mxu1 }
0x1403   :  { %v12205_v45 = vadd.f32 %v3658_v39, %v12191_v37  ;;  %v12208_v28 = vadd.f32 %v3711_v40, %v12195_v38 }
0x1404   :  { %v3660_v46 = vpop.f32.mrf.mxu0  ;;  %v3713_v19 = vpop.f32.mrf.mxu1 }
0x1405   :  { %v3746_v47 = vmul.f32 0.044715, %v12205_v45  ;;  %v3748_v20 = vmul.f32 0.044715, %v12208_v28  ;;  %v12213_v33 = vadd.f32 %v3660_v46, %v12198_v42  ;;  %v12216_v32 = vadd.f32 %v3713_v19, %v12202_v43 }
0x1406   :  { %v3662_v48 = vpop.f32.mrf.mxu0  ;;  %v3715_v49 = vpop.f32.mrf.mxu1 }
0x1407   :  { %v3762_v62 = vmul.f32 %v3746_v47, %v12205_v45  ;;  %v3764_v50 = vmul.f32 %v3748_v20, %v12208_v28  ;;  %v12221_v51 = vadd.f32 %v3662_v48, %v12191_v37  ;;  %v12224_v16 = vadd.f32 %v3715_v49, %v12195_v38 }
0x1408   :  { %v3664_v31 = vpop.f32.mrf.mxu0  ;;  %v3717_v21 = vpop.f32.mrf.mxu1  ;;  %v3747_v53 = vmul.f32 0.044715, %v12213_v33  ;;  %v3749_v55 = vmul.f32 0.044715, %v12216_v32 }
0x1409   :  { %v3778_v34 = vmul.f32 %v3762_v62, %v12205_v45  ;;  %v3780_v52 = vmul.f32 %v3764_v50, %v12208_v28  ;;  %v3750_v54 = vmul.f32 0.044715, %v12221_v51  ;;  %v3752_v57 = vmul.f32 0.044715, %v12224_v16 }
0x140a   :  { %v3668_v60 = vpop.f32.mrf.mxu0  ;;  %v3721_v63 = vpop.f32.mrf.mxu1  ;;  %v12235_v5 = vadd.f32 %v3664_v31, %v12198_v42  ;;  %v12239_v8 = vadd.f32 %v3717_v21, %v12202_v43  ;;  %v3763_v14 = vmul.f32 %v3747_v53, %v12213_v33  ;;  %v3765_v0 = vmul.f32 %v3749_v55, %v12216_v32 }
0x140b   :  { %v3794_v2 = vadd.f32 %v3778_v34, %v12205_v45  ;;  %v3766_v3 = vmul.f32 %v3750_v54, %v12221_v51  ;;  %v3768_v6 = vmul.f32 %v3752_v57, %v12224_v16  ;;  %v3796_v13 = vadd.f32 %v3780_v52, %v12208_v28 }
0x140c   :  { %v3670_v9 = vpop.f32.mrf.mxu0  ;;  %v3723_v10 = vpop.f32.mrf.mxu1  ;;  %v3751_v61 = vmul.f32 0.044715, %v12235_v5  ;;  %v3753_v17 = vmul.f32 0.044715, %v12239_v8  ;;  %v12249_v24 = vadd.f32 %v3668_v60, %v12191_v37  ;;  %v3779_v40 = vmul.f32 %v3763_v14, %v12213_v33 }
0x140d   :  { %v3782_v15 = vmul.f32 %v3766_v3, %v12221_v51  ;;  %v3784_v1 = vmul.f32 %v3768_v6, %v12224_v16  ;;  %v3810_v25 = vmul.f32 0.7978846, %v3794_v2  ;;  %v12254_v27 = vadd.f32 %v3670_v9, %v12198_v42 }
0x140e   :  { %v3672_v22 = vpop.f32.mrf.mxu0  ;;  %v3767_v11 = vmul.f32 %v3751_v61, %v12235_v5  ;;  %v3725_v41 = vpop.f32.mrf.mxu1  ;;  %v3812_v39 = vmul.f32 0.7978846, %v3796_v13  ;;  %v12259_v46 = vadd.f32 %v3721_v63, %v12195_v38  ;;  %v3781_v47 = vmul.f32 %v3765_v0, %v12216_v32 }
0x140f   :  { %v3798_v26 = vadd.f32 %v3782_v15, %v12221_v51  ;;  %v3800_v44 = vadd.f32 %v3784_v1, %v12224_v16  ;;  %v3755_v19 = vmul.f32 0.044715, %v12254_v27  ;;  %v3769_v20 = vmul.f32 %v3753_v17, %v12239_v8 }
0x1410   :  { %v3754_v48 = vmul.f32 0.044715, %v12249_v24  ;;  %v12266_v49 = vadd.f32 %v3723_v10, %v12202_v43  ;;  %v3674_v62 = vpop.f32.mrf.mxu0  ;;  %10825 = vtanh.f32 %v3810_v25  ;;  %v3783_v31 = vmul.f32 %v3767_v11, %v12235_v5  ;;  %v3727_v34 = vpop.f32.mrf.mxu1 }
0x1411   :  { %v3814_v50 = vmul.f32 0.7978846, %v3798_v26  ;;  %v12270_v21 = vadd.f32 %v3672_v22, %v12191_v37  ;;  %v3816_v52 = vmul.f32 0.7978846, %v3800_v44  ;;  %v3771_v53 = vmul.f32 %v3755_v19, %v12254_v27 }
0x1412   :  { %v3757_v54 = vmul.f32 0.044715, %v12266_v49  ;;  %v12275_v55 = vadd.f32 %v3725_v41, %v12195_v38  ;;  %10827 = vtanh.f32 %v3812_v39  ;;  %v3756_v57 = vmul.f32 0.044715, %v12259_v46 }
0x1413   :  { %v3758_v60 = vmul.f32 0.044715, %v12270_v21  ;;  %v12280_v63 = vadd.f32 %v3674_v62, %v12198_v42  ;;  %v3785_v37 = vmul.f32 %v3769_v20, %v12239_v8  ;;  %v3770_v2 = vmul.f32 %v3754_v48, %v12249_v24 }
0x1414   :  { %v3773_v3 = vmul.f32 %v3757_v54, %v12266_v49  ;;  %v12286_v6 = vadd.f32 %v3727_v34, %v12202_v43  ;;  %10829 = vtanh.f32 %v3814_v50  ;;  %v3795_v9 = vadd.f32 %v3779_v40, %v12213_v33 }
0x1415   :  { %v3759_v38 = vmul.f32 0.044715, %v12280_v63  ;;  %v3799_v10 = vadd.f32 %v3783_v31, %v12235_v5  ;;  %10831 = vtanh.f32 %v3816_v52  ;;  %v3787_v42 = vmul.f32 %v3771_v53, %v12254_v27 }
0x1416   :  { %v3760_v13 = vmul.f32 0.044715, %v12275_v55  ;;  %v3761_v14 = vmul.f32 0.044715, %v12286_v6  ;;  %v3774_v15 = vmul.f32 %v3758_v60, %v12270_v21  ;;  %v3811_v43 = vmul.f32 0.7978846, %v3795_v9 }
0x1417   :  { %v3775_v61 = vmul.f32 %v3759_v38, %v12280_v63  ;;  %v3815_v0 = vmul.f32 0.7978846, %v3799_v10  ;;  %v3789_v1 = vmul.f32 %v3773_v3, %v12266_v49  ;;  %v3797_v22 = vadd.f32 %v3781_v47, %v12216_v32 }
0x1418   :  { %v3777_v17 = vmul.f32 %v3761_v14, %v12286_v6  ;;  %v3801_v25 = vadd.f32 %v3785_v37, %v12239_v8  ;;  %v3772_v26 = vmul.f32 %v3756_v57, %v12259_v46  ;;  %10833 = vtanh.f32 %v3811_v43 }
0x1419   :  { %v3791_v11 = vmul.f32 %v3775_v61, %v12280_v63  ;;  %10835 = vtanh.f32 %v3815_v0  ;;  %v3813_v44 = vmul.f32 0.7978846, %v3797_v22  ;;  %v3786_v40 = vmul.f32 %v3770_v2, %v12249_v24 }
0x141a   :  { %v3793_v41 = vmul.f32 %v3777_v17, %v12286_v6  ;;  %v3817_v39 = vmul.f32 0.7978846, %v3801_v25  ;;  %v3776_v19 = vmul.f32 %v3760_v13, %v12275_v55  ;;  %v3803_v20 = vadd.f32 %v3787_v42, %v12254_v27 }
0x141b   :  { %v3807_v47 = vadd.f32 %v3791_v11, %v12280_v63  ;;  %v3790_v48 = vmul.f32 %v3774_v15, %v12270_v21  ;;  %10837 = vtanh.f32 %v3813_v44  ;;  %v3805_v62 = vadd.f32 %v3789_v1, %v12266_v49 }
0x141c   :  { %10839 = vtanh.f32 %v3817_v39  ;;  %v3819_v50 = vmul.f32 0.7978846, %v3803_v20  ;;  %v3809_v52 = vadd.f32 %v3793_v41, %v12286_v6  ;;  %v3788_v54 = vmul.f32 %v3772_v26, %v12259_v46 }
0x141d   :  { %v3823_v31 = vmul.f32 0.7978846, %v3807_v47  ;;  %v10826_v34 = vpop.eup %10825  ;;  %v3821_v53 = vmul.f32 0.7978846, %v3805_v62  ;;  %v3792_v57 = vmul.f32 %v3776_v19, %v12275_v55  ;;  %v3802_v60 = vadd.f32 %v3786_v40, %v12249_v24 }
0x141e   :  { %10841 = vtanh.f32 %v3819_v50  ;;  %v3825_v2 = vmul.f32 0.7978846, %v3809_v52  ;;  %v3806_v3 = vadd.f32 %v3790_v48, %v12270_v21  ;;  %v3804_v13 = vadd.f32 %v3788_v54, %v12259_v46 }
0x141f   :  { %v10828_v37 = vpop.eup %10827  ;;  %10843 = vtanh.f32 %v3823_v31  ;;  %v3818_v38 = vmul.f32 0.7978846, %v3802_v60  ;;  %v3808_v14 = vadd.f32 %v3792_v57, %v12275_v55  ;;  %v3731_v1 = vmul.f32 0.5, %v12213_v33 }
0x1420   :  { %10845 = vtanh.f32 %v3821_v53  ;;  %v3822_v10 = vmul.f32 0.7978846, %v3806_v3  ;;  %v3820_v61 = vmul.f32 0.7978846, %v3804_v13  ;;  %v3734_v22 = vmul.f32 0.5, %v12221_v51 }
0x1421   :  { %v10830_v9 = vpop.eup %10829  ;;  %10847 = vtanh.f32 %v3825_v2  ;;  %v3824_v43 = vmul.f32 0.7978846, %v3808_v14  ;;  %v3842_v26 = vadd.f32 1.0, %v10826_v34  ;;  %v3735_v11 = vmul.f32 0.5, %v12235_v5 }
0x1422   :  { %v10832_v42 = vpop.eup %10831  ;;  %10849 = vtanh.f32 %v3818_v38  ;;  %v3846_v15 = vadd.f32 1.0, %v10830_v9  ;;  %v3730_v40 = vmul.f32 0.5, %v12205_v45  ;;  %v3736_v19 = vmul.f32 0.5, %v12224_v16 }
0x1423   :  { %10851 = vtanh.f32 %v3822_v10  ;;  %v3848_v44 = vadd.f32 1.0, %v10832_v42  ;;  %v3844_v50 = vadd.f32 1.0, %v10828_v37  ;;  %v3733_v51 = vmul.f32 0.5, %v12216_v32 }
0x1424   :  { %10853 = vtanh.f32 %v3820_v61  ;;  %v3862_v20 = vmul.f32 %v3846_v15, %v3734_v22  ;;  %v3737_v31 = vmul.f32 0.5, %v12239_v8  ;;  %v3858_v5 = vmul.f32 %v3842_v26, %v3730_v40 }
0x1425   :  { %v10834_v0 = vpop.eup %10833  ;;  %10855 = vtanh.f32 %v3824_v43  ;;  %v3732_v53 = vmul.f32 0.5, %v12208_v28  ;;  %v3864_v57 = vmul.f32 %v3848_v44, %v3736_v19  ;;  %v3739_v37 = vmul.f32 0.5, %v12254_v27 }
0x1426   :  { %v10836_v17 = vpop.eup %10835  ;;  %v3843_v25 = vadd.f32 1.0, %v10834_v0  ;;  %v3938_v2 = vpack.c.bf16 %v3862_v20, %v3858_v5  ;;  %v3743_v32 = vmul.f32 0.5, %v12280_v63  ;;  %v3741_v28 = vmul.f32 0.5, %v12266_v49 }
0x1427   :  { %v3847_v41 = vadd.f32 1.0, %v10836_v17  ;;  %v3860_v9 = vmul.f32 %v3844_v50, %v3732_v53  ;;  %v3745_v13 = vmul.f32 0.5, %v12286_v6  ;;  %v3738_v27 = vmul.f32 0.5, %v12249_v24 }
0x1428   :  { %v10838_v39 = vpop.eup %10837  ;;  %v3859_v48 = vmul.f32 %v3843_v25, %v3731_v1  ;;  %v3742_v63 = vmul.f32 0.5, %v12270_v21  ;;  %v3744_v24 = vmul.f32 0.5, %v12275_v55  ;;  %v12333_v55 = vadd.s32 8, %v11188_v29 }
0x1429   :  { %v10840_v47 = vpop.eup %10839  ;;  %v3863_v33 = vmul.f32 %v3847_v41, %v3735_v11  ;;  %v3845_v62 = vadd.f32 1.0, %v10838_v39  ;;  %v3940_v61 = vpack.c.bf16 %v3864_v57, %v3860_v9  ;;  %v4256_v9 = vpop.xlane.xlu0 %4255 }
0x142a   :  { %v3849_v34 = vadd.f32 1.0, %v10840_v47  ;;  %v3740_v47 = vmul.f32 0.5, %v12259_v46  ;;  %vm858_vm2 = vcmp.lt.s32.totalorder %v12333_v55, 10  ;;  %v10721_v55 = vld [vmem:[%s13531_s15 + $0x70] ss:$8 sps:$4 sm:$0xff]  }
0x142b   :  { %v10842_v52 = vpop.eup %10841  ;;  %v3939_v54 = vpack.c.bf16 %v3863_v33, %v3859_v48  ;;  %v3861_v60 = vmul.f32 %v3845_v62, %v3733_v51 }
0x142c   :  { %v10844_v45 = vpop.eup %10843  ;;  %v3865_v16 = vmul.f32 %v3849_v34, %v3737_v31  ;;  %v3851_v3 = vadd.f32 1.0, %v10842_v52 }
0x142d   :  { %v10846_v38 = vpop.eup %10845  ;;  %4170 = vmatprep.mubr.bf16.mxu0 %v3939_v54  ;;  %v3855_v8 = vadd.f32 1.0, %v10844_v45 }
0x142e   :  { %v10848_v10 = vpop.eup %10847  ;;  %v3941_v42 = vpack.c.bf16 %v3865_v16, %v3861_v60  ;;  %4171 = vmatmul.mubr.bf16.vlgmr.msra.gmra.mxu0 %v3938_v2  ;;  %v3853_v14 = vadd.f32 1.0, %v10846_v38  ;;  %v3867_v43 = vmul.f32 %v3851_v3, %v3739_v37  ;;  %v8486_v38 = vld [vmem:[%s13524_s14 + $0x5] ss:$0 sm:$0xff] }
0x142f   :  { %v10850_v15 = vpop.eup %10849  ;;  %v3871_v0 = vmul.f32 %v3855_v8, %v3743_v32  ;;  %v3857_v1 = vadd.f32 1.0, %v10848_v10 }
0x1430   :  { %v10852_v17 = vpop.eup %10851  ;;  %4219 = vmatprep.mubr.bf16.mxu1 %v3941_v42  ;;  %v3850_v22 = vadd.f32 1.0, %v10850_v15  ;;  %v3869_v26 = vmul.f32 %v3853_v14, %v3741_v28  ;;  %v4263_v14 = vmul.f32 0.0078125, %v4256_v9 }
0x1431   :  { %4220 = vmatmul.mubr.bf16.vlgmr.msra.gmra.mxu1 %v3940_v61  ;;  %v3943_v25 = vpack.c.bf16 %v3871_v0, %v3867_v43  ;;  %v3873_v11 = vmul.f32 %v3857_v1, %v3745_v13  ;;  %v3854_v49 = vadd.f32 1.0, %v10852_v17  ;;  %v10854_v41 = vpop.eup %10853 }
0x1432   :  { %v3866_v44 = vmul.f32 %v3850_v22, %v3738_v27  ;;  %v10856_v40 = vpop.eup %10855  ;;  %v3852_v19 = vadd.f32 1.0, %v10854_v41  ;;  %v12348_v17 = vsub.f32 %v11350_v4, %v4263_v14 }
0x1433   :  { %4178 = vmatprep.mubr.bf16.mxu0 %v3943_v25  ;;  %v3945_v6 = vpack.c.bf16 %v3873_v11, %v3869_v26  ;;  %v3870_v39 = vmul.f32 %v3854_v49, %v3742_v63  ;;  %v3856_v21 = vadd.f32 1.0, %v10856_v40 }
0x1434   :  { %v3868_v48 = vmul.f32 %v3852_v19, %v3740_v47  ;;  %v4271_v26 = vmul.f32 %v12348_v17, %v12348_v17 }
0x1435   :  { %4227 = vmatprep.mubr.bf16.mxu1 %v3945_v6  ;;  %v3942_v20 = vpack.c.bf16 %v3870_v39, %v3866_v44  ;;  %v3872_v33 = vmul.f32 %v3856_v21, %v3744_v24  ;;  %v10537_v24 = vld [vmem:[%s13523_s8 + $0x338] sm:$0xff]  }
0x1436   :  { %v10538_v21 = vld [vmem:[%s13523_s8 + $0x438] sm:$0xff]   ;;  %9928 = vmatprep.subr.bf16.mxu0 %v10537_v24 }
0x1437   :  { %4179 = vmatmul.mubr.bf16.gmra.mxu0 %v3942_v20  ;;  %v3944_v62 = vpack.c.bf16 %v3872_v33, %v3868_v48  ;;  %9948 = vmatprep.subr.bf16.mxu1 %v10538_v21  ;;  %v10539_v48 = vld [vmem:[%s13523_s8 + $0x330] sm:$0xff]  }
0x1438   :  { %9929 = vmatpush3.bf16.msra.mxu0 %v10537_v24  ;;  %9949 = vmatpush3.bf16.msra.mxu1 %v10538_v21  ;;  %v10540_v33 = vld [vmem:[%s13523_s8 + $0x430] sm:$0xff]   ;;  %v10557_v21 = vld [vmem:[%s13523_s8 + $0x518] sm:$0xff]  }
0x1439   :  { %4228 = vmatmul.mubr.bf16.gmra.mxu1 %v3944_v62  ;;  %9930 = vmatprep.subr.bf16.mxu0 %v10539_v48  ;;  %v10541_v62 = vld [vmem:[%s13523_s8 + $0x328] sm:$0xff]   ;;  %v10554_v24 = vld [vmem:[%s13523_s8 + $0x530] sm:$0xff]  }
0x143a   :  { %9950 = vmatprep.subr.bf16.mxu1 %v10540_v33 }
0x143c   :  { %9931 = vmatpush3.bf16.msra.mxu0 %v10539_v48  ;;  %9951 = vmatpush3.bf16.msra.mxu1 %v10540_v33  ;;  %v10558_v48 = vld [vmem:[%s13523_s8 + $0x510] sm:$0xff]   ;;  %v10559_v33 = vld [vmem:[%s13523_s8 + $0x508] sm:$0xff]  }
0x143d   :  { %9932 = vmatprep.subr.bf16.mxu0 %v10541_v62 }
0x1440   :  { %9933 = vmatpush3.bf16.msra.mxu0 %v10541_v62  ;;  %v10560_v62 = vld [vmem:[%s13523_s8 + $0x500] sm:$0xff]  }
0x14ee   :  { %v9288_v50 = vpop.f32.mrf.mxu0 }
0x14ef   :  { %v10542_v50 = vld [vmem:[%s13523_s8 + $0x428] sm:$0xff]  }
0x14f0   :  { %v9289_v51 = vpop.f32.mrf.mxu0  ;;  %9952 = vmatprep.subr.bf16.mxu1 %v10542_v50 }
0x14f1   :  { %v9316_v31 = vpop.f32.mrf.mxu1  ;;  %9953 = vmatpush3.bf16.msra.mxu1 %v10542_v50  ;;  %v10543_v51 = vld [vmem:[%s13523_s8 + $0x320] sm:$0xff]   ;;  %v10561_v50 = vld [vmem:[%s13523_s8 + $0x478] sm:$0xff]  }
0x14f2   :  { %v9291_v34 = vpop.f32.mrf.mxu0  ;;  %v10544_v31 = vld [vmem:[%s13523_s8 + $0x420] sm:$0xff]   ;;  %9934 = vmatprep.subr.bf16.mxu0 %v10543_v51 }
0x14f3   :  { %v9317_v5 = vpop.f32.mrf.mxu1  ;;  %9935 = vmatpush3.bf16.msra.mxu0 %v10543_v51  ;;  %9954 = vmatprep.subr.bf16.mxu1 %v10544_v31  ;;  %v10562_v51 = vld [vmem:[%s13523_s8 + $0x470] sm:$0xff]  }
0x14f4   :  { %v9292_v52 = vpop.f32.mrf.mxu0  ;;  %v10546_v5 = vld [vmem:[%s13523_s8 + $0x418] sm:$0xff]  }
0x14f5   :  { %v9319_v53 = vpop.f32.mrf.mxu1  ;;  %v9293_v54 = vadd.f32 %v9292_v52, %v9291_v34  ;;  %9955 = vmatpush3.bf16.msra.mxu1 %v10544_v31  ;;  %v10545_v34 = vld [vmem:[%s13523_s8 + $0x318] sm:$0xff]   ;;  %v10547_v52 = vld [vmem:[%s13523_s8 + $0x310] sm:$0xff]   ;;  %v10563_v31 = vld [vmem:[%s13523_s8 + $0x468] sm:$0xff]  }
0x14f6   :  { %9936 = vmatprep.subr.bf16.mxu0 %v10545_v34  ;;  %9956 = vmatprep.subr.bf16.mxu1 %v10546_v5 }
0x14f7   :  { %v9320_v57 = vpop.f32.mrf.mxu1  ;;  %v9294_v45 = vpop.f32.mrf.mxu0  ;;  %9937 = vmatpush3.bf16.msra.mxu0 %v10545_v34  ;;  %v10564_v34 = vld [vmem:[%s13523_s8 + $0x460] sm:$0xff]  }
0x14f8   :  { %v9321_v60 = vadd.f32 %v9320_v57, %v9319_v53  ;;  %v10548_v53 = vld [vmem:[%s13523_s8 + $0x410] sm:$0xff]   ;;  %9938 = vmatprep.subr.bf16.mxu0 %v10547_v52  ;;  %v10550_v57 = vld [vmem:[%s13523_s8 + $0x408] sm:$0xff]  }
0x14f9   :  { %v9295_v46 = vpop.f32.mrf.mxu0  ;;  %v9322_v2 = vpop.f32.mrf.mxu1  ;;  %9957 = vmatpush3.bf16.msra.mxu1 %v10546_v5  ;;  %v10565_v5 = vld [vmem:[%s13523_s8 + $0x458] sm:$0xff]  }
0x14fa   :  { %v4225_v16 = vadd.f32 %v9321_v60, %v9293_v54  ;;  %v9296_v32 = vadd.f32 %v9295_v46, %v9294_v45  ;;  %9958 = vmatprep.subr.bf16.mxu1 %v10548_v53  ;;  %v10549_v54 = vld [vmem:[%s13523_s8 + $0x308] sm:$0xff]   ;;  %v10551_v45 = vld [vmem:[%s13523_s8 + $0x300] sm:$0xff]   ;;  %v10553_v46 = vld [vmem:[%s13523_s8 + $0x538] sm:$0xff]  }
0x14fb   :  { %v9297_v3 = vpop.f32.mrf.mxu0  ;;  %v9323_v8 = vpop.f32.mrf.mxu1  ;;  %9939 = vmatpush3.bf16.msra.mxu0 %v10547_v52  ;;  %v10552_v60 = vld [vmem:[%s13523_s8 + $0x400] sm:$0xff]   ;;  %v10566_v52 = vld [vmem:[%s13523_s8 + $0x450] sm:$0xff]  }
0x14fc   :  { %v4237_v37 = vadd.f32 %v4225_v16, %v11942_v58  ;;  %v9324_v42 = vadd.f32 %v9323_v8, %v9322_v2  ;;  %9940 = vmatprep.subr.bf16.mxu0 %v10549_v54 }
0x14fd   :  { %v9298_v10 = vpop.f32.mrf.mxu0  ;;  %v9325_v13 = vpop.f32.mrf.mxu1  ;;  %9959 = vmatpush3.bf16.msra.mxu1 %v10548_v53  ;;  %v10567_v53 = vld [vmem:[%s13523_s8 + $0x448] sm:$0xff]  }
0x14fe   :  { %v4246_v28 = vadd.f32 %v8486_v38, %v4237_v37  ;;  %v4230_v15 = vadd.f32 %v9324_v42, %v9296_v32  ;;  %v9299_v61 = vadd.f32 %v9298_v10, %v9297_v3  ;;  %9960 = vmatprep.subr.bf16.mxu1 %v10550_v57 }
0x14ff   :  { %v9326_v0 = vpop.f32.mrf.mxu1  ;;  %9941 = vmatpush3.bf16.msra.mxu0 %v10549_v54  ;;  %v10568_v54 = vld [vmem:[%s13523_s8 + $0x440] sm:$0xff]  }
0x1500   :  { %v12343_v43 = vsel %vm858_vm2, %v11356_v7, %v4246_v28  ;;  %v4238_v58 = vadd.f32 %v4230_v15, %v11944_v35  ;;  %v9327_v1 = vadd.f32 %v9326_v0, %v9325_v13  ;;  %9942 = vmatprep.subr.bf16.mxu0 %v10551_v45 }
0x1501   :  { %4257 = vadd.xlane.f32.xlu1 %v12343_v43  ;;  %9961 = vmatpush3.bf16.msra.mxu1 %v10550_v57 }
0x1502   :  { %v4233_v27 = vadd.f32 %v9327_v1, %v9299_v61  ;;  %v12350_v63 = vadd.f32 %v8486_v38, %v4238_v58  ;;  %9962 = vmatprep.subr.bf16.mxu1 %v10552_v60  ;;  %v8487_v61 = vld [vmem:[%s13524_s14 + $0x6] ss:$0 sm:$0xff] }
0x1503   :  { %9943 = vmatpush3.bf16.msra.mxu0 %v10551_v45 }
0x1504   :  { %v4239_v22 = vadd.f32 %v4233_v27, %v11948_v36  ;;  %4259 = vadd.xlane.f32.xlu0 %v12350_v63  ;;  %9968 = vmatprep.subr.bf16.mxu0 %v10553_v46  ;;  %v8488_v27 = vld [vmem:[%s13524_s14 + $0x7] ss:$0 sm:$0xff] }
0x1505   :  { %9963 = vmatpush3.bf16.msra.mxu1 %v10552_v60  ;;  %v8530_v60 = vld [vmem:[%s13525_s9 + $0x10] ss:$0 sm:$0xff] }
0x1506   :  { %v12354_v25 = vadd.f32 %v8486_v38, %v4239_v22 }
0x1508   :  { %4261 = vadd.xlane.f32.xlu1 %v12354_v25  ;;  %4275 = vadd.xlane.f32.xlu0 %v4271_v26 }
0x158a   :  { %v4258_v35 = vpop.xlane.xlu1 %4257 }
0x158b   :  { %v4264_v11 = vmul.f32 0.0078125, %v4258_v35 }
0x158d   :  { %v12360_v49 = vsub.f32 %v12343_v43, %v4264_v11  ;;  %v4260_v41 = vpop.xlane.xlu0 %4259 }
0x158e   :  { %v4265_v36 = vmul.f32 0.0078125, %v4260_v41 }
0x158f   :  { %v4272_v6 = vmul.f32 %v12360_v49, %v12360_v49 }
0x1590   :  { %v12365_v44 = vsub.f32 %v12350_v63, %v4265_v36 }
0x1591   :  { %4277 = vadd.xlane.f32.xlu1 %v4272_v6  ;;  %v4262_v39 = vpop.xlane.xlu1 %4261  ;;  %v4276_v16 = vpop.xlane.xlu0 %4275 }
0x1592   :  { %v4266_v40 = vmul.f32 0.0078125, %v4262_v39  ;;  %v4273_v19 = vmul.f32 %v12365_v44, %v12365_v44  ;;  %v4283_v2 = vmul.f32 0.0078125, %v4276_v16 }
0x1594   :  { %v12370_v20 = vsub.f32 %v12354_v25, %v4266_v40  ;;  %4279 = vadd.xlane.f32.xlu0 %v4273_v19  ;;  %v4287_v3 = vadd.f32 1e-05, %v4283_v2 }
0x1596   :  { %v4274_v47 = vmul.f32 %v12370_v20, %v12370_v20  ;;  %10857 = vrsqrt.f32 %v4287_v3 }
0x1598   :  { %4281 = vadd.xlane.f32.xlu1 %v4274_v47 }
0x15a3   :  { %v10858_v13 = vpop.eup %10857 }
0x15a4   :  { %v4295_v15 = vmul.f32 %v10858_v13, %v12348_v17 }
0x15a6   :  { %v4303_v58 = vmul.f32 %v8487_v61, %v4295_v15 }
0x15a8   :  { %v4311_v35 = vadd.f32 %v8488_v27, %v4303_v58 }
0x161a   :  { %v4278_v38 = vpop.xlane.xlu1 %4277 }
0x161b   :  { %v4284_v9 = vmul.f32 0.0078125, %v4278_v38  ;;  %v8505_v38 = vld [vmem:[%s13525_s9 + $0xc] ss:$0 sm:$0xff] }
0x161d   :  { %v4288_v37 = vadd.f32 1e-05, %v4284_v9  ;;  %v4280_v32 = vpop.xlane.xlu0 %4279 }
0x161e   :  { %v4285_v8 = vmul.f32 0.0078125, %v4280_v32 }
0x161f   :  { %10859 = vrsqrt.f32 %v4288_v37 }
0x1620   :  { %v4289_v10 = vadd.f32 1e-05, %v4285_v8 }
0x1621   :  { %v4282_v42 = vpop.xlane.xlu1 %4281 }
0x1622   :  { %10861 = vrsqrt.f32 %v4289_v10  ;;  %v4286_v28 = vmul.f32 0.0078125, %v4282_v42 }
0x1624   :  { %v4290_v14 = vadd.f32 1e-05, %v4286_v28 }
0x1626   :  { %10863 = vrsqrt.f32 %v4290_v14 }
0x162c   :  { %v10860_v0 = vpop.eup %10859 }
0x162d   :  { %v4296_v1 = vmul.f32 %v10860_v0, %v12360_v49 }
0x162f   :  { %v4304_v22 = vmul.f32 %v8487_v61, %v4296_v1  ;;  %v10862_v26 = vpop.eup %10861 }
0x1630   :  { %v4297_v41 = vmul.f32 %v10862_v26, %v12365_v44  ;;  %v10555_v44 = vld [vmem:[%s13523_s8 + $0x528] sm:$0xff]  }
0x1631   :  { %v4312_v11 = vadd.f32 %v8488_v27, %v4304_v22 }
0x1632   :  { %v4305_v36 = vmul.f32 %v8487_v61, %v4297_v41 }
0x1633   :  { %v12434_v6 = vpack.c.bf16 %v4312_v11, %v4311_v35  ;;  %v10864_v17 = vpop.eup %10863  ;;  %v8555_v35 = vld [vmem:[%s13525_s9 + $0x14] ss:$0 sm:$0xff] }
0x1634   :  { %v4298_v49 = vmul.f32 %v10864_v17, %v12370_v20  ;;  %v4313_v40 = vadd.f32 %v8488_v27, %v4305_v36  ;;  %v10556_v20 = vld [vmem:[%s13523_s8 + $0x520] sm:$0xff]  }
0x1635   :  { %9944 = vmatprep.mubr.bf16.mxu0 %v12434_v6  ;;  %9964 = vmatprep.mubr.bf16.mxu1 %v12434_v6 }
0x1636   :  { %v4306_v39 = vmul.f32 %v8487_v61, %v4298_v49 }
0x1638   :  { %v4314_v19 = vadd.f32 %v8488_v27, %v4306_v39 }
0x163a   :  { %v12439_v47 = vpack.c.bf16 %v4314_v19, %v4313_v40 }
0x163c   :  { %9945 = vmatmul.mubr.bf16.vlgmr.msra.gmra.mxu0 %v12439_v47  ;;  %9965 = vmatmul.mubr.bf16.vlgmr.msra.gmra.mxu1 %v12439_v47 }
0x163d   :  { %9969 = vmatpush3.bf16.msra.mxu0 %v10553_v46  ;;  %9984 = vmatprep.mubr.bf16.mxu0 %v12434_v6 }
0x163e   :  { %9970 = vmatprep.subr.bf16.mxu0 %v10554_v24 }
0x1641   :  { %9971 = vmatpush3.bf16.msra.mxu0 %v10554_v24 }
0x1642   :  { %9972 = vmatprep.subr.bf16.mxu0 %v10555_v44 }
0x1645   :  { %9973 = vmatpush3.bf16.msra.mxu0 %v10555_v44 }
0x1646   :  { %9974 = vmatprep.subr.bf16.mxu0 %v10556_v20 }
0x1649   :  { %9975 = vmatpush3.bf16.msra.mxu0 %v10556_v20  ;;  %v8613_v20 = vld [vmem:[%s13525_s9 + $0x11] ss:$0 sm:$0xff] }
0x164a   :  { %9976 = vmatprep.subr.bf16.mxu0 %v10557_v21 }
0x164d   :  { %9977 = vmatpush3.bf16.msra.mxu0 %v10557_v21 }
0x164e   :  { %9978 = vmatprep.subr.bf16.mxu0 %v10558_v48 }
0x1651   :  { %9979 = vmatpush3.bf16.msra.mxu0 %v10558_v48 }
0x1652   :  { %9980 = vmatprep.subr.bf16.mxu0 %v10559_v33 }
0x1655   :  { %9981 = vmatpush3.bf16.msra.mxu0 %v10559_v33 }
0x1656   :  { %9982 = vmatprep.subr.bf16.mxu0 %v10560_v62 }
0x1659   :  { %9983 = vmatpush3.bf16.msra.mxu0 %v10560_v62 }
0x165a   :  { %10024 = vmatprep.subr.bf16.mxu0 %v10561_v50 }
0x165c   :  { %9985 = vmatmul.mubr.bf16.vlgmr.msra.gmra.mxu0 %v12439_v47 }
0x165d   :  { %10025 = vmatpush3.bf16.msra.mxu0 %v10561_v50  ;;  %10040 = vmatprep.mubr.bf16.mxu0 %v12434_v6 }
0x165e   :  { %10026 = vmatprep.subr.bf16.mxu0 %v10562_v51 }
0x1661   :  { %10027 = vmatpush3.bf16.msra.mxu0 %v10562_v51 }
0x1662   :  { %10028 = vmatprep.subr.bf16.mxu0 %v10563_v31 }
0x1665   :  { %10029 = vmatpush3.bf16.msra.mxu0 %v10563_v31 }
0x1666   :  { %10030 = vmatprep.subr.bf16.mxu0 %v10564_v34 }
0x1669   :  { %10031 = vmatpush3.bf16.msra.mxu0 %v10564_v34 }
0x166a   :  { %10032 = vmatprep.subr.bf16.mxu0 %v10565_v5 }
0x166d   :  { %10033 = vmatpush3.bf16.msra.mxu0 %v10565_v5 }
0x166e   :  { %10034 = vmatprep.subr.bf16.mxu0 %v10566_v52 }
0x1671   :  { %10035 = vmatpush3.bf16.msra.mxu0 %v10566_v52 }
0x1672   :  { %10036 = vmatprep.subr.bf16.mxu0 %v10567_v53 }
0x1675   :  { %10037 = vmatpush3.bf16.msra.mxu0 %v10567_v53 }
0x1676   :  { %10038 = vmatprep.subr.bf16.mxu0 %v10568_v54 }
0x1679   :  { %10039 = vmatpush3.bf16.msra.mxu0 %v10568_v54 }
0x167c   :  { %10041 = vmatmul.mubr.bf16.vlgmr.msra.gmra.mxu0 %v12439_v47 }
0x16fc   :  { %v9946_v57 = vpop.f32.mrf.mxu0  ;;  %v9966_v45 = vpop.f32.mrf.mxu1 }
0x16fd   :  { %v4549_v9 = vadd.f32 %v9966_v45, %v8530_v60  ;;  %v4430_v27 = vadd.f32 %v9946_v57, %v8505_v38  ;;  %v12517_v45 = vld [vmem:[%s13526_s5] sm:$0xff] }
0x16fe   :  { %v4421_v46 = vpop.f32.mrf.mxu0  ;;  %v4540_v16 = vpop.f32.mrf.mxu1 }
0x16ff   :  { %v4422_v32 = vadd.f32 %v8505_v38, %v4421_v46  ;;  %v4541_v42 = vadd.f32 %v8530_v60, %v4540_v16  ;;  %v12523_v16 = vld [vmem:[%s13526_s5 + $0x10] sm:$0xff] }
0x1700   :  { %v9947_v2 = vpop.f32.mrf.mxu0  ;;  %v9967_v3 = vpop.f32.mrf.mxu1 }
0x1701   :  { %v4552_v37 = vadd.f32 %v9967_v3, %v8530_v60  ;;  %v4433_v1 = vadd.f32 %v9947_v2, %v8505_v38 }
0x1702   :  { %v4424_v8 = vpop.f32.mrf.mxu0  ;;  %v4543_v10 = vpop.f32.mrf.mxu1 }
0x1703   :  { %v4677_v28 = vpack.c.bf16 %v4552_v37, %v4549_v9  ;;  %v4425_v13 = vadd.f32 %v8505_v38, %v4424_v8  ;;  %v4544_v14 = vadd.f32 %v8530_v60, %v4543_v10  ;;  %v4675_v22 = vpack.c.bf16 %v4433_v1, %v4430_v27  ;;  %v12530_v9 = vld [vmem:[%s13526_s5 + $0x8] sm:$0xff] }
0x1705   :  { %v4674_v15 = vpack.c.bf16 %v4425_v13, %v4422_v32  ;;  %v4676_v61 = vpack.c.bf16 %v4544_v14, %v4541_v42  ;;  %10272 = vmatprep.subr.msk.bf16.mxu1 %vm1290_vm1, %v4677_v28  ;;  %v4688_v0 = vsel %vm1290_vm1, %v4677_v28, 0  ;;  %v12536_v32 = vld [vmem:[%s13526_s5 + $0x18] sm:$0xff] }
0x1706   :  { %9989 = vmatpush3.bf16.xpose.msra.mxu1 %v4688_v0 }
0x1707   :  { %10273 = vmatprep.subr.msk.bf16.mxu1 %vm1290_vm1, %v4676_v61  ;;  %9992 = vmatprep.mubr.msk.bf16.mxu1 %vm1290_vm1, %v4674_v15  ;;  %v4685_v58 = vsel %vm1290_vm1, %v4676_v61, 0 }
0x170e   :  { %9991 = vmatpush3.bf16.xpose.msra.mxu1 %v4685_v58 }
0x1715   :  { %9993 = vmatmul.mubr.msk.bf16.vlgmr.msra.gmra.mxu1 %vm1290_vm1, %v4675_v22 }
0x171c   :  { %v9986_v26 = vpop.f32.mrf.mxu0 }
0x171d   :  { %v4668_v17 = vadd.f32 %v9986_v26, %v8555_v35 }
0x171e   :  { %v4659_v11 = vpop.f32.mrf.mxu0 }
0x171f   :  { %v4660_v39 = vadd.f32 %v8555_v35, %v4659_v11 }
0x1720   :  { %v9987_v41 = vpop.f32.mrf.mxu0 }
0x1721   :  { %v4671_v36 = vadd.f32 %v9987_v41, %v8555_v35 }
0x1722   :  { %v4662_v49 = vpop.f32.mrf.mxu0 }
0x1723   :  { %v4786_v40 = vpack.c.bf16 %v4671_v36, %v4668_v17  ;;  %v4663_v19 = vadd.f32 %v8555_v35, %v4662_v49 }
0x1725   :  { %v4785_v24 = vpack.c.bf16 %v4663_v19, %v4660_v39  ;;  %9996 = vmatprep.subr.bf16.mxu1 %v4786_v40 }
0x1726   :  { %9997 = vmatpush3.bf16.msra.mxu1 %v4786_v40 }
0x1727   :  { %9998 = vmatprep.subr.bf16.mxu1 %v4785_v24 }
0x172a   :  { %9999 = vmatpush3.bf16.msra.mxu1 %v4785_v24 }
0x173c   :  { %v10042_v44 = vpop.f32.mrf.mxu0 }
0x173d   :  { %v5081_v33 = vadd.f32 %v10042_v44, %v8613_v20  ;;  %v10569_v44 = vld [vmem:[%s13523_s8 + $0x378] sm:$0xff]  }
0x173e   :  { %v5072_v21 = vpop.f32.mrf.mxu0  ;;  %10004 = vmatprep.subr.bf16.mxu1 %v10569_v44 }
0x173f   :  { %v5073_v51 = vadd.f32 %v8613_v20, %v5072_v21 }
0x1740   :  { %v10043_v48 = vpop.f32.mrf.mxu0 }
0x1741   :  { %v5084_v62 = vadd.f32 %v10043_v48, %v8613_v20 }
0x1742   :  { %v5075_v50 = vpop.f32.mrf.mxu0 }
0x1743   :  { %v5209_v31 = vpack.c.bf16 %v5084_v62, %v5081_v33  ;;  %v5076_v34 = vadd.f32 %v8613_v20, %v5075_v50 }
0x1745   :  { %v5208_v5 = vpack.c.bf16 %v5076_v34, %v5073_v51  ;;  %10274 = vmatprep.subr.msk.bf16.mxu0 %vm1290_vm1, %v5209_v31  ;;  %v5220_v52 = vsel %vm1290_vm1, %v5209_v31, 0 }
0x1746   :  { %10065 = vmatpush3.bf16.xpose.msra.mxu0 %v5220_v52 }
0x1747   :  { %10275 = vmatprep.subr.msk.bf16.mxu0 %vm1290_vm1, %v5208_v5  ;;  %v5217_v53 = vsel %vm1290_vm1, %v5208_v5, 0 }
0x174e   :  { %10067 = vmatpush3.bf16.xpose.msra.mxu0 %v5217_v53 }
0x17d5   :  { %v9994_v54 = vpop.f32.mrf.mxu1 }
0x17d6   :  { %v4733_v2 = vadd.f32 %v12523_v16, %v9994_v54 }
0x17d7   :  { %v4724_v57 = vpop.f32.mrf.mxu1 }
0x17d8   :  { %v4725_v60 = vadd.f32 %v12517_v45, %v4724_v57  ;;  %v4745_v42 = vsel %vm1290_vm1, %v4733_v2, -inf }
0x17d9   :  { %v9995_v46 = vpop.f32.mrf.mxu1 }
0x17da   :  { %v4739_v3 = vsel %vm1290_vm1, %v4725_v60, -inf  ;;  %v4736_v8 = vadd.f32 %v12536_v32, %v9995_v46  ;;  %v10571_v46 = vld [vmem:[%s13523_s8 + $0x368] sm:$0xff]  }
0x17db   :  { %v4727_v38 = vpop.f32.mrf.mxu1  ;;  %4740 = vmax.xlane.f32.xlu0 %v4739_v3  ;;  %v10573_v3 = vld [vmem:[%s13523_s8 + $0x358] sm:$0xff]  }
0x17dc   :  { %v4728_v37 = vadd.f32 %v12530_v9, %v4727_v38  ;;  %v4748_v28 = vsel %vm1290_vm1, %v4736_v8, -inf  ;;  %v10574_v38 = vld [vmem:[%s13523_s8 + $0x350] sm:$0xff]  }
0x17de   :  { %v4742_v10 = vsel %vm1290_vm1, %v4728_v37, -inf }
0x17df   :  { %4743 = vmax.xlane.f32.xlu1 %v4742_v10  ;;  %4746 = vmax.xlane.f32.xlu0 %v4745_v42  ;;  %v10577_v10 = vld [vmem:[%s13523_s8 + $0x578] sm:$0xff]   ;;  %v10578_v42 = vld [vmem:[%s13523_s8 + $0x570] sm:$0xff]  }
0x17e3   :  { %4749 = vmax.xlane.f32.xlu1 %v4748_v28  ;;  %v10579_v28 = vld [vmem:[%s13523_s8 + $0x568] sm:$0xff]  }
0x1864   :  { %v4741_v13 = vpop.xlane.xlu0 %4740 }
0x1865   :  { %v4751_v14 = vsub.f32 %v4725_v60, %v4741_v13  ;;  %v10570_v60 = vld [vmem:[%s13523_s8 + $0x370] sm:$0xff]   ;;  %v10580_v13 = vld [vmem:[%s13523_s8 + $0x560] sm:$0xff]  }
0x1867   :  { %v4755_v15 = vmul.f32 1.442695, %v4751_v14  ;;  %v10581_v14 = vld [vmem:[%s13523_s8 + $0x558] sm:$0xff]  }
0x1868   :  { %v4744_v61 = vpop.xlane.xlu1 %4743  ;;  %v4747_v0 = vpop.xlane.xlu0 %4746 }
0x1869   :  { %10865 = vpow2.f32 %v4755_v15  ;;  %v4752_v58 = vsub.f32 %v4728_v37, %v4744_v61  ;;  %v4753_v1 = vsub.f32 %v4733_v2, %v4747_v0  ;;  %v10572_v2 = vld [vmem:[%s13523_s8 + $0x360] sm:$0xff]   ;;  %v10575_v37 = vld [vmem:[%s13523_s8 + $0x348] sm:$0xff]   ;;  %v10582_v15 = vld [vmem:[%s13523_s8 + $0x550] sm:$0xff]  }
0x186a   :  { %v10583_v61 = vld [vmem:[%s13523_s8 + $0x548] sm:$0xff]   ;;  %v10584_v0 = vld [vmem:[%s13523_s8 + $0x540] sm:$0xff]  }
0x186b   :  { %v4757_v27 = vmul.f32 1.442695, %v4752_v58  ;;  %v4759_v22 = vmul.f32 1.442695, %v4753_v1  ;;  %v10585_v58 = vld [vmem:[%s13527_s10 + $0x48] sm:$0xff]   ;;  %v10586_v1 = vld [vmem:[%s13527_s10 + $0x40] sm:$0xff]  }
0x186c   :  { %v4750_v26 = vpop.xlane.xlu1 %4749 }
0x186d   :  { %10867 = vpow2.f32 %v4757_v27  ;;  %v4754_v35 = vsub.f32 %v4736_v8, %v4750_v26  ;;  %v10576_v8 = vld [vmem:[%s13523_s8 + $0x340] sm:$0xff]   ;;  %v10587_v27 = vld [vmem:[%s13523_s8 + $0x4b8] sm:$0xff]  }
0x186e   :  { %10869 = vpow2.f32 %v4759_v22 }
0x186f   :  { %v4761_v11 = vmul.f32 1.442695, %v4754_v35 }
0x1871   :  { %10871 = vpow2.f32 %v4761_v11 }
0x1876   :  { %v10866_v41 = vpop.eup %10865 }
0x1877   :  { %v4763_v17 = vsel %vm1290_vm1, %v10866_v41, 0.0 }
0x1878   :  { %4764 = vadd.xlane.f32.xlu0 %v4763_v17 }
0x187a   :  { %v10868_v36 = vpop.eup %10867 }
0x187b   :  { %v10870_v49 = vpop.eup %10869  ;;  %v4766_v39 = vsel %vm1290_vm1, %v10868_v36, 0.0 }
0x187c   :  { %4767 = vadd.xlane.f32.xlu1 %v4766_v39  ;;  %v4769_v40 = vsel %vm1290_vm1, %v10870_v49, 0.0  ;;  %v10590_v39 = vld [vmem:[%s13523_s8 + $0x4a0] sm:$0xff]  }
0x187d   :  { %4770 = vadd.xlane.f32.xlu0 %v4769_v40  ;;  %v10591_v40 = vld [vmem:[%s13523_s8 + $0x498] sm:$0xff]  }
0x187e   :  { %v10872_v19 = vpop.eup %10871 }
0x187f   :  { %v4772_v24 = vsel %vm1290_vm1, %v10872_v19, 0.0 }
0x1880   :  { %4773 = vadd.xlane.f32.xlu1 %v4772_v24  ;;  %v10593_v24 = vld [vmem:[%s13523_s8 + $0x488] sm:$0xff]  }
0x1901   :  { %v4765_v20 = vpop.xlane.xlu0 %4764 }
0x1902   :  { %10873 = vrcp.f32 %v4765_v20  ;;  %v10594_v20 = vld [vmem:[%s13523_s8 + $0x480] sm:$0xff]  }
0x1905   :  { %v4768_v21 = vpop.xlane.xlu1 %4767 }
0x1906   :  { %10875 = vrcp.f32 %v4768_v21  ;;  %v4771_v48 = vpop.xlane.xlu0 %4770 }
0x1907   :  { %10877 = vrcp.f32 %v4771_v48 }
0x1909   :  { %v4774_v33 = vpop.xlane.xlu1 %4773 }
0x190a   :  { %10879 = vrcp.f32 %v4774_v33  ;;  %v8588_v33 = vld [vmem:[%s13525_s9 + $0xd] ss:$0 sm:$0xff] }
0x190f   :  { %v10874_v62 = vpop.eup %10873 }
0x1910   :  { %v4776_v51 = vmul.f32 %v10874_v62, %v10866_v41 }
0x1913   :  { %v10876_v50 = vpop.eup %10875 }
0x1914   :  { %v4778_v31 = vmul.f32 %v10876_v50, %v10868_v36  ;;  %v10878_v34 = vpop.eup %10877  ;;  %v10588_v36 = vld [vmem:[%s13523_s8 + $0x4b0] sm:$0xff]  }
0x1915   :  { %v4780_v53 = vmul.f32 %v10878_v34, %v10870_v49  ;;  %v10589_v49 = vld [vmem:[%s13523_s8 + $0x4a8] sm:$0xff]  }
0x1916   :  { %v4783_v5 = vpack.c.bf16 %v4778_v31, %v4776_v51 }
0x1917   :  { %v10880_v52 = vpop.eup %10879 }
0x1918   :  { %10000 = vmatprep.mubr.msk.bf16.mxu1 %vm1290_vm1, %v4783_v5  ;;  %v4782_v54 = vmul.f32 %v10880_v52, %v10872_v19  ;;  %v10592_v19 = vld [vmem:[%s13523_s8 + $0x490] sm:$0xff]  }
0x191a   :  { %v4784_v57 = vpack.c.bf16 %v4782_v54, %v4780_v53  ;;  %v8638_v54 = vld [vmem:[%s13525_s9 + $0x15] ss:$0 sm:$0xff] }
0x191c   :  { %10001 = vmatmul.mubr.msk.bf16.vlgmr.msra.gmra.mxu1 %vm1290_vm1, %v4784_v57 }
0x191d   :  { %10005 = vmatpush3.bf16.msra.mxu1 %v10569_v44  ;;  %10020 = vmatprep.mubr.bf16.mxu1 %v12434_v6 }
0x191e   :  { %10006 = vmatprep.subr.bf16.mxu1 %v10570_v60 }
0x1921   :  { %10007 = vmatpush3.bf16.msra.mxu1 %v10570_v60 }
0x1922   :  { %10008 = vmatprep.subr.bf16.mxu1 %v10571_v46 }
0x1925   :  { %10009 = vmatpush3.bf16.msra.mxu1 %v10571_v46 }
0x1926   :  { %10010 = vmatprep.subr.bf16.mxu1 %v10572_v2 }
0x1929   :  { %10011 = vmatpush3.bf16.msra.mxu1 %v10572_v2 }
0x192a   :  { %10012 = vmatprep.subr.bf16.mxu1 %v10573_v3 }
0x192d   :  { %10013 = vmatpush3.bf16.msra.mxu1 %v10573_v3 }
0x192e   :  { %10014 = vmatprep.subr.bf16.mxu1 %v10574_v38 }
0x1931   :  { %10015 = vmatpush3.bf16.msra.mxu1 %v10574_v38 }
0x1932   :  { %10016 = vmatprep.subr.bf16.mxu1 %v10575_v37 }
0x1935   :  { %10017 = vmatpush3.bf16.msra.mxu1 %v10575_v37 }
0x1936   :  { %10018 = vmatprep.subr.bf16.mxu1 %v10576_v8 }
0x1939   :  { %10019 = vmatpush3.bf16.msra.mxu1 %v10576_v8 }
0x193a   :  { %10044 = vmatprep.subr.bf16.mxu1 %v10577_v10 }
0x193c   :  { %10021 = vmatmul.mubr.bf16.vlgmr.msra.gmra.mxu1 %v12439_v47 }
0x193d   :  { %10045 = vmatpush3.bf16.msra.mxu1 %v10577_v10  ;;  %10060 = vmatprep.mubr.bf16.mxu1 %v12434_v6 }
0x193e   :  { %10046 = vmatprep.subr.bf16.mxu1 %v10578_v42 }
0x1941   :  { %10047 = vmatpush3.bf16.msra.mxu1 %v10578_v42 }
0x1942   :  { %10048 = vmatprep.subr.bf16.mxu1 %v10579_v28 }
0x1945   :  { %10049 = vmatpush3.bf16.msra.mxu1 %v10579_v28 }
0x1946   :  { %10050 = vmatprep.subr.bf16.mxu1 %v10580_v13 }
0x1949   :  { %10051 = vmatpush3.bf16.msra.mxu1 %v10580_v13 }
0x194a   :  { %10052 = vmatprep.subr.bf16.mxu1 %v10581_v14 }
0x194d   :  { %10053 = vmatpush3.bf16.msra.mxu1 %v10581_v14 }
0x194e   :  { %10054 = vmatprep.subr.bf16.mxu1 %v10582_v15 }
0x1951   :  { %10055 = vmatpush3.bf16.msra.mxu1 %v10582_v15 }
0x1952   :  { %10056 = vmatprep.subr.bf16.mxu1 %v10583_v61 }
0x1955   :  { %10057 = vmatpush3.bf16.msra.mxu1 %v10583_v61  ;;  %v8704_v61 = vld [vmem:[%s13525_s9 + $0x12] ss:$0 sm:$0xff] }
0x1956   :  { %10058 = vmatprep.subr.bf16.mxu1 %v10584_v0 }
0x1959   :  { %10059 = vmatpush3.bf16.msra.mxu1 %v10584_v0 }
0x195a   :  { %10088 = vmatprep.subr.bf16.mxu1 %v10585_v58 }
0x195c   :  { %10061 = vmatmul.mubr.bf16.vlgmr.msra.gmra.mxu1 %v12439_v47 }
0x195d   :  { %10089 = vmatpush3.bf16.msra.mxu1 %v10585_v58 }
0x195e   :  { %10090 = vmatprep.subr.bf16.mxu1 %v10586_v1 }
0x1961   :  { %10091 = vmatpush3.bf16.msra.mxu1 %v10586_v1 }
0x1962   :  { %10116 = vmatprep.subr.bf16.mxu1 %v10587_v27 }
0x19dc   :  { %v10002_v22 = vpop.f32.mrf.mxu1 }
0x19de   :  { %v4827_v26 = vpop.f32.mrf.mxu1 }
0x19e0   :  { %v10003_v35 = vpop.f32.mrf.mxu1 }
0x19e1   :  { %v4848_v17 = vpack.c.bf16 %v10003_v35, %v10002_v22 }
0x19e2   :  { %v4830_v11 = vpop.f32.mrf.mxu1 }
0x19e3   :  { %v4847_v41 = vpack.c.bf16 %v4830_v11, %v4827_v26 }
0x19e5   :  { %10092 = vmatprep.mubr.msk.bf16.mxu1 %vm1290_vm1, %v4847_v41 }
0x19e6   :  { %10093 = vmatmul.mubr.msk.bf16.vlgmr.msra.gmra.mxu1 %vm1290_vm1, %v4848_v17 }
0x19e7   :  { %10117 = vmatpush3.bf16.msra.mxu1 %v10587_v27  ;;  %10132 = vmatprep.mubr.bf16.mxu1 %v12434_v6 }
0x19e8   :  { %10118 = vmatprep.subr.bf16.mxu1 %v10588_v36 }
0x19eb   :  { %10119 = vmatpush3.bf16.msra.mxu1 %v10588_v36 }
0x19ec   :  { %10120 = vmatprep.subr.bf16.mxu1 %v10589_v49 }
0x19ef   :  { %10121 = vmatpush3.bf16.msra.mxu1 %v10589_v49 }
0x19f0   :  { %10122 = vmatprep.subr.bf16.mxu1 %v10590_v39 }
0x19f3   :  { %10123 = vmatpush3.bf16.msra.mxu1 %v10590_v39 }
0x19f4   :  { %10124 = vmatprep.subr.bf16.mxu1 %v10591_v40 }
0x19f7   :  { %10125 = vmatpush3.bf16.msra.mxu1 %v10591_v40 }
0x19f8   :  { %10126 = vmatprep.subr.bf16.mxu1 %v10592_v19 }
0x19fb   :  { %10127 = vmatpush3.bf16.msra.mxu1 %v10592_v19 }
0x19fc   :  { %v10022_v44 = vpop.f32.mrf.mxu1  ;;  %10128 = vmatprep.subr.bf16.mxu1 %v10593_v24 }
0x19fd   :  { %v4962_v34 = vadd.f32 %v10022_v44, %v8588_v33 }
0x19fe   :  { %v4953_v21 = vpop.f32.mrf.mxu1 }
0x19ff   :  { %10129 = vmatpush3.bf16.msra.mxu1 %v10593_v24  ;;  %v4954_v51 = vadd.f32 %v8588_v33, %v4953_v21 }
0x1a00   :  { %v10023_v48 = vpop.f32.mrf.mxu1  ;;  %10130 = vmatprep.subr.bf16.mxu1 %v10594_v20 }
0x1a01   :  { %v4965_v62 = vadd.f32 %v10023_v48, %v8588_v33 }
0x1a02   :  { %v4956_v50 = vpop.f32.mrf.mxu1 }
0x1a03   :  { %v4957_v31 = vadd.f32 %v8588_v33, %v4956_v50  ;;  %10131 = vmatpush3.bf16.msra.mxu1 %v10594_v20  ;;  %v5207_v52 = vpack.c.bf16 %v4965_v62, %v4962_v34 }
0x1a05   :  { %v5206_v5 = vpack.c.bf16 %v4957_v31, %v4954_v51 }
0x1a06   :  { %10133 = vmatmul.mubr.bf16.vlgmr.msra.gmra.mxu1 %v12439_v47 }
0x1a07   :  { %10068 = vmatprep.mubr.msk.bf16.mxu0 %vm1290_vm1, %v5206_v5 }
0x1a08   :  { %10069 = vmatmul.mubr.msk.bf16.vlgmr.msra.gmra.mxu0 %vm1290_vm1, %v5207_v52 }
0x1a1c   :  { %v10062_v53 = vpop.f32.mrf.mxu1 }
0x1a1d   :  { %v5200_v46 = vadd.f32 %v10062_v53, %v8638_v54 }
0x1a1e   :  { %v5191_v57 = vpop.f32.mrf.mxu1 }
0x1a1f   :  { %v5192_v38 = vadd.f32 %v8638_v54, %v5191_v57 }
0x1a20   :  { %v10063_v60 = vpop.f32.mrf.mxu1 }
0x1a21   :  { %v5203_v2 = vadd.f32 %v10063_v60, %v8638_v54 }
0x1a22   :  { %v5194_v3 = vpop.f32.mrf.mxu1 }
0x1a23   :  { %v5318_v37 = vpack.c.bf16 %v5203_v2, %v5200_v46  ;;  %v5195_v8 = vadd.f32 %v8638_v54, %v5194_v3 }
0x1a25   :  { %v5317_v10 = vpack.c.bf16 %v5195_v8, %v5192_v38  ;;  %10072 = vmatprep.subr.bf16.mxu0 %v5318_v37 }
0x1a26   :  { %10073 = vmatpush3.bf16.msra.mxu0 %v5318_v37 }
0x1a27   :  { %10074 = vmatprep.subr.bf16.mxu0 %v5317_v10 }
0x1a2a   :  { %10075 = vmatpush3.bf16.msra.mxu0 %v5317_v10 }
0x1aa6   :  { %v12642_v42 = vpop.f32.mrf.mxu1 }
0x1aa8   :  { %v12644_v28 = vpop.f32.mrf.mxu1 }
0x1aaa   :  { %v12646_v13 = vpop.f32.mrf.mxu1 }
0x1aac   :  { %v12648_v14 = vpop.f32.mrf.mxu1 }
0x1ac6   :  { %v10134_v15 = vpop.f32.mrf.mxu1 }
0x1ac7   :  { %v5747_v22 = vadd.f32 %v10134_v15, %v8704_v61 }
0x1ac8   :  { %v10070_v0 = vpop.f32.mrf.mxu0  ;;  %v5738_v58 = vpop.f32.mrf.mxu1 }
0x1ac9   :  { %v5265_v11 = vadd.f32 %v12523_v16, %v10070_v0  ;;  %v5739_v36 = vadd.f32 %v8704_v61, %v5738_v58 }
0x1aca   :  { %v5256_v1 = vpop.f32.mrf.mxu0  ;;  %v10135_v27 = vpop.f32.mrf.mxu1 }
0x1acb   :  { %v5257_v26 = vadd.f32 %v12517_v45, %v5256_v1  ;;  %v5750_v35 = vadd.f32 %v10135_v27, %v8704_v61  ;;  %v5277_v33 = vsel %vm1290_vm1, %v5265_v11, -inf }
0x1acc   :  { %v10071_v41 = vpop.f32.mrf.mxu0  ;;  %v5741_v17 = vpop.f32.mrf.mxu1 }
0x1acd   :  { %v5875_v49 = vpack.c.bf16 %v5750_v35, %v5747_v22  ;;  %v5742_v39 = vadd.f32 %v8704_v61, %v5741_v17  ;;  %v5271_v40 = vsel %vm1290_vm1, %v5257_v26, -inf  ;;  %v5268_v21 = vadd.f32 %v12536_v32, %v10071_v41 }
0x1ace   :  { %v5259_v19 = vpop.f32.mrf.mxu0  ;;  %5272 = vmax.xlane.f32.xlu0 %v5271_v40 }
0x1acf   :  { %v5874_v24 = vpack.c.bf16 %v5742_v39, %v5739_v36  ;;  %v5260_v44 = vadd.f32 %v12530_v9, %v5259_v19  ;;  %10276 = vmatprep.subr.msk.bf16.mxu1 %vm1290_vm1, %v5875_v49  ;;  %v5886_v20 = vsel %vm1290_vm1, %v5875_v49, 0  ;;  %v5280_v62 = vsel %vm1290_vm1, %v5268_v21, -inf }
0x1ad0   :  { %10157 = vmatpush3.bf16.xpose.msra.mxu1 %v5886_v20  ;;  %v10596_v20 = vld [vmem:[%s13527_s10 + $0x50] sm:$0xff]  }
0x1ad1   :  { %10277 = vmatprep.subr.msk.bf16.mxu1 %vm1290_vm1, %v5874_v24  ;;  %v5274_v48 = vsel %vm1290_vm1, %v5260_v44, -inf  ;;  %v5883_v50 = vsel %vm1290_vm1, %v5874_v24, 0 }
0x1ad2   :  { %5275 = vmax.xlane.f32.xlu1 %v5274_v48  ;;  %5278 = vmax.xlane.f32.xlu0 %v5277_v33 }
0x1ad6   :  { %5281 = vmax.xlane.f32.xlu1 %v5280_v62 }
0x1ad8   :  { %10159 = vmatpush3.bf16.xpose.msra.mxu1 %v5883_v50 }
0x1b57   :  { %v5273_v51 = vpop.xlane.xlu0 %5272 }
0x1b58   :  { %v5283_v31 = vsub.f32 %v5257_v26, %v5273_v51 }
0x1b5a   :  { %v5287_v34 = vmul.f32 1.442695, %v5283_v31 }
0x1b5b   :  { %v5276_v5 = vpop.xlane.xlu1 %5275  ;;  %v5279_v52 = vpop.xlane.xlu0 %5278 }
0x1b5c   :  { %10881 = vpow2.f32 %v5287_v34  ;;  %v5284_v53 = vsub.f32 %v5260_v44, %v5276_v5  ;;  %v5285_v54 = vsub.f32 %v5265_v11, %v5279_v52  ;;  %v10595_v44 = vld [vmem:[%s13527_s10 + $0x58] sm:$0xff]   ;;  %v10598_v34 = vld [vmem:[%s13523_s8 + $0x3b0] sm:$0xff]   ;;  %v10599_v5 = vld [vmem:[%s13523_s8 + $0x3a8] sm:$0xff]  }
0x1b5d   :  { %10080 = vmatprep.subr.bf16.mxu0 %v10595_v44  ;;  %v10600_v52 = vld [vmem:[%s13523_s8 + $0x3a0] sm:$0xff]  }
0x1b5e   :  { %v5289_v57 = vmul.f32 1.442695, %v5284_v53  ;;  %v5291_v60 = vmul.f32 1.442695, %v5285_v54  ;;  %v10601_v53 = vld [vmem:[%s13523_s8 + $0x398] sm:$0xff]   ;;  %v10602_v54 = vld [vmem:[%s13523_s8 + $0x390] sm:$0xff]  }
0x1b5f   :  { %v5282_v46 = vpop.xlane.xlu1 %5281 }
0x1b60   :  { %10883 = vpow2.f32 %v5289_v57  ;;  %v5286_v2 = vsub.f32 %v5268_v21, %v5282_v46  ;;  %v10597_v21 = vld [vmem:[%s13523_s8 + $0x3b8] sm:$0xff]   ;;  %v10603_v57 = vld [vmem:[%s13523_s8 + $0x388] sm:$0xff]  }
0x1b61   :  { %10885 = vpow2.f32 %v5291_v60  ;;  %v10604_v60 = vld [vmem:[%s13523_s8 + $0x380] sm:$0xff]   ;;  %v10605_v46 = vld [vmem:[%s13523_s8 + $0x5b8] sm:$0xff]  }
0x1b62   :  { %v5293_v3 = vmul.f32 1.442695, %v5286_v2  ;;  %v10606_v2 = vld [vmem:[%s13523_s8 + $0x5b0] sm:$0xff]  }
0x1b64   :  { %10887 = vpow2.f32 %v5293_v3  ;;  %v10607_v3 = vld [vmem:[%s13523_s8 + $0x5a8] sm:$0xff]  }
0x1b69   :  { %v10882_v38 = vpop.eup %10881 }
0x1b6a   :  { %v5295_v37 = vsel %vm1290_vm1, %v10882_v38, 0.0 }
0x1b6b   :  { %5296 = vadd.xlane.f32.xlu0 %v5295_v37  ;;  %v10609_v37 = vld [vmem:[%s13523_s8 + $0x598] sm:$0xff]  }
0x1b6d   :  { %v10884_v8 = vpop.eup %10883 }
0x1b6e   :  { %v10886_v10 = vpop.eup %10885  ;;  %v5298_v15 = vsel %vm1290_vm1, %v10884_v8, 0.0 }
0x1b6f   :  { %5299 = vadd.xlane.f32.xlu1 %v5298_v15  ;;  %v5301_v61 = vsel %vm1290_vm1, %v10886_v10, 0.0  ;;  %v10612_v15 = vld [vmem:[%s13523_s8 + $0x580] sm:$0xff]  }
0x1b70   :  { %5302 = vadd.xlane.f32.xlu0 %v5301_v61  ;;  %v10613_v61 = vld [vmem:[%s13523_s8 + $0x3f8] sm:$0xff]  }
0x1b71   :  { %v10888_v0 = vpop.eup %10887 }
0x1b72   :  { %v5304_v58 = vsel %vm1290_vm1, %v10888_v0, 0.0 }
0x1b73   :  { %5305 = vadd.xlane.f32.xlu1 %v5304_v58  ;;  %v10615_v58 = vld [vmem:[%s13523_s8 + $0x3e8] sm:$0xff]  }
0x1bf4   :  { %v5297_v1 = vpop.xlane.xlu0 %5296 }
0x1bf5   :  { %10889 = vrcp.f32 %v5297_v1  ;;  %v10616_v1 = vld [vmem:[%s13523_s8 + $0x3e0] sm:$0xff]  }
0x1bf8   :  { %v5300_v27 = vpop.xlane.xlu1 %5299 }
0x1bf9   :  { %10891 = vrcp.f32 %v5300_v27  ;;  %v5303_v22 = vpop.xlane.xlu0 %5302  ;;  %v10617_v27 = vld [vmem:[%s13523_s8 + $0x3d8] sm:$0xff]  }
0x1bfa   :  { %10893 = vrcp.f32 %v5303_v22  ;;  %v10618_v22 = vld [vmem:[%s13523_s8 + $0x3d0] sm:$0xff]  }
0x1bfc   :  { %v5306_v26 = vpop.xlane.xlu1 %5305 }
0x1bfd   :  { %10895 = vrcp.f32 %v5306_v26  ;;  %v10619_v26 = vld [vmem:[%s13523_s8 + $0x3c8] sm:$0xff]  }
0x1c02   :  { %v10890_v35 = vpop.eup %10889 }
0x1c03   :  { %v5308_v41 = vmul.f32 %v10890_v35, %v10882_v38  ;;  %v10608_v38 = vld [vmem:[%s13523_s8 + $0x5a0] sm:$0xff]  }
0x1c04   :  { %v10620_v35 = vld [vmem:[%s13523_s8 + $0x3c0] sm:$0xff]  }
0x1c06   :  { %v10892_v11 = vpop.eup %10891 }
0x1c07   :  { %v5310_v17 = vmul.f32 %v10892_v11, %v10884_v8  ;;  %v10894_v36 = vpop.eup %10893  ;;  %v10610_v8 = vld [vmem:[%s13523_s8 + $0x590] sm:$0xff]   ;;  %v10621_v11 = vld [vmem:[%s13523_s8 + $0x5f8] sm:$0xff]  }
0x1c08   :  { %v5312_v40 = vmul.f32 %v10894_v36, %v10886_v10  ;;  %v10611_v10 = vld [vmem:[%s13523_s8 + $0x588] sm:$0xff]   ;;  %v10624_v36 = vld [vmem:[%s13523_s8 + $0x5e0] sm:$0xff]  }
0x1c09   :  { %v5315_v49 = vpack.c.bf16 %v5310_v17, %v5308_v41  ;;  %v10622_v41 = vld [vmem:[%s13523_s8 + $0x5f0] sm:$0xff]   ;;  %v10623_v17 = vld [vmem:[%s13523_s8 + $0x5e8] sm:$0xff]  }
0x1c0a   :  { %v10896_v39 = vpop.eup %10895 }
0x1c0b   :  { %10076 = vmatprep.mubr.msk.bf16.mxu0 %vm1290_vm1, %v5315_v49  ;;  %v5314_v19 = vmul.f32 %v10896_v39, %v10888_v0  ;;  %v10614_v0 = vld [vmem:[%s13523_s8 + $0x3f0] sm:$0xff]   ;;  %v10625_v49 = vld [vmem:[%s13523_s8 + $0x5d8] sm:$0xff]  }
0x1c0c   :  { %v10626_v39 = vld [vmem:[%s13523_s8 + $0x5d0] sm:$0xff]  }
0x1c0d   :  { %v5316_v24 = vpack.c.bf16 %v5314_v19, %v5312_v40  ;;  %v10627_v40 = vld [vmem:[%s13523_s8 + $0x5c8] sm:$0xff]   ;;  %v10628_v19 = vld [vmem:[%s13523_s8 + $0x5c0] sm:$0xff]  }
0x1c0f   :  { %10077 = vmatmul.mubr.msk.bf16.vlgmr.msra.gmra.mxu0 %vm1290_vm1, %v5316_v24 }
0x1c10   :  { %10081 = vmatpush3.bf16.msra.mxu0 %v10595_v44 }
0x1c11   :  { %10082 = vmatprep.subr.bf16.mxu0 %v10596_v20 }
0x1c14   :  { %10083 = vmatpush3.bf16.msra.mxu0 %v10596_v20 }
0x1c15   :  { %10096 = vmatprep.subr.bf16.mxu0 %v10597_v21 }
0x1ccf   :  { %v10078_v48 = vpop.f32.mrf.mxu0 }
0x1cd1   :  { %v5359_v33 = vpop.f32.mrf.mxu0 }
0x1cd3   :  { %v10079_v62 = vpop.f32.mrf.mxu0 }
0x1cd4   :  { %v5380_v31 = vpack.c.bf16 %v10079_v62, %v10078_v48 }
0x1cd5   :  { %v5362_v50 = vpop.f32.mrf.mxu0 }
0x1cd6   :  { %v5379_v51 = vpack.c.bf16 %v5362_v50, %v5359_v33  ;;  %v8679_v50 = vld [vmem:[%s13525_s9 + $0xe] ss:$0 sm:$0xff] }
0x1cd8   :  { %10084 = vmatprep.mubr.msk.bf16.mxu0 %vm1290_vm1, %v5379_v51 }
0x1cd9   :  { %10085 = vmatmul.mubr.msk.bf16.vlgmr.msra.gmra.mxu0 %vm1290_vm1, %v5380_v31 }
0x1cda   :  { %10097 = vmatpush3.bf16.msra.mxu0 %v10597_v21  ;;  %10112 = vmatprep.mubr.bf16.mxu0 %v12434_v6 }
0x1cdb   :  { %10098 = vmatprep.subr.bf16.mxu0 %v10598_v34 }
0x1cde   :  { %10099 = vmatpush3.bf16.msra.mxu0 %v10598_v34 }
0x1cdf   :  { %10100 = vmatprep.subr.bf16.mxu0 %v10599_v5 }
0x1ce2   :  { %10101 = vmatpush3.bf16.msra.mxu0 %v10599_v5 }
0x1ce3   :  { %10102 = vmatprep.subr.bf16.mxu0 %v10600_v52 }
0x1ce6   :  { %10103 = vmatpush3.bf16.msra.mxu0 %v10600_v52 }
0x1ce7   :  { %10104 = vmatprep.subr.bf16.mxu0 %v10601_v53 }
0x1cea   :  { %10105 = vmatpush3.bf16.msra.mxu0 %v10601_v53 }
0x1ceb   :  { %10106 = vmatprep.subr.bf16.mxu0 %v10602_v54 }
0x1cee   :  { %10107 = vmatpush3.bf16.msra.mxu0 %v10602_v54 }
0x1cef   :  { %10108 = vmatprep.subr.bf16.mxu0 %v10603_v57 }
0x1cf2   :  { %10109 = vmatpush3.bf16.msra.mxu0 %v10603_v57 }
0x1cf3   :  { %10110 = vmatprep.subr.bf16.mxu0 %v10604_v60 }
0x1cf6   :  { %10111 = vmatpush3.bf16.msra.mxu0 %v10604_v60  ;;  %v8729_v60 = vld [vmem:[%s13525_s9 + $0x16] ss:$0 sm:$0xff] }
0x1cf7   :  { %10136 = vmatprep.subr.bf16.mxu0 %v10605_v46 }
0x1cf9   :  { %10113 = vmatmul.mubr.bf16.vlgmr.msra.gmra.mxu0 %v12439_v47 }
0x1cfa   :  { %10137 = vmatpush3.bf16.msra.mxu0 %v10605_v46  ;;  %10152 = vmatprep.mubr.bf16.mxu0 %v12434_v6 }
0x1cfb   :  { %10138 = vmatprep.subr.bf16.mxu0 %v10606_v2 }
0x1cfe   :  { %10139 = vmatpush3.bf16.msra.mxu0 %v10606_v2 }
0x1cff   :  { %10140 = vmatprep.subr.bf16.mxu0 %v10607_v3 }
0x1d02   :  { %10141 = vmatpush3.bf16.msra.mxu0 %v10607_v3 }
0x1d03   :  { %10142 = vmatprep.subr.bf16.mxu0 %v10608_v38 }
0x1d06   :  { %10143 = vmatpush3.bf16.msra.mxu0 %v10608_v38 }
0x1d07   :  { %10144 = vmatprep.subr.bf16.mxu0 %v10609_v37 }
0x1d0a   :  { %10145 = vmatpush3.bf16.msra.mxu0 %v10609_v37 }
0x1d0b   :  { %10146 = vmatprep.subr.bf16.mxu0 %v10610_v8 }
0x1d0e   :  { %10147 = vmatpush3.bf16.msra.mxu0 %v10610_v8 }
0x1d0f   :  { %10148 = vmatprep.subr.bf16.mxu0 %v10611_v10 }
0x1d12   :  { %10149 = vmatpush3.bf16.msra.mxu0 %v10611_v10 }
0x1d13   :  { %10150 = vmatprep.subr.bf16.mxu0 %v10612_v15 }
0x1d16   :  { %10151 = vmatpush3.bf16.msra.mxu0 %v10612_v15 }
0x1d17   :  { %10180 = vmatprep.subr.bf16.mxu0 %v10613_v61 }
0x1d19   :  { %10153 = vmatmul.mubr.bf16.vlgmr.msra.gmra.mxu0 %v12439_v47 }
0x1d1a   :  { %10181 = vmatpush3.bf16.msra.mxu0 %v10613_v61  ;;  %10196 = vmatprep.mubr.bf16.mxu0 %v12434_v6 }
0x1d1b   :  { %10182 = vmatprep.subr.bf16.mxu0 %v10614_v0 }
0x1d1e   :  { %10183 = vmatpush3.bf16.msra.mxu0 %v10614_v0  ;;  %v12803_v0 = vld [vmem:[%s13525_s9 + $0xf] ss:$0 sm:$0xff] }
0x1d1f   :  { %10184 = vmatprep.subr.bf16.mxu0 %v10615_v58 }
0x1d22   :  { %10185 = vmatpush3.bf16.msra.mxu0 %v10615_v58 }
0x1d23   :  { %10186 = vmatprep.subr.bf16.mxu0 %v10616_v1 }
0x1d26   :  { %10187 = vmatpush3.bf16.msra.mxu0 %v10616_v1 }
0x1d27   :  { %10188 = vmatprep.subr.bf16.mxu0 %v10617_v27 }
0x1d2a   :  { %10189 = vmatpush3.bf16.msra.mxu0 %v10617_v27 }
0x1d2b   :  { %10190 = vmatprep.subr.bf16.mxu0 %v10618_v22 }
0x1d2e   :  { %10191 = vmatpush3.bf16.msra.mxu0 %v10618_v22 }
0x1d2f   :  { %10192 = vmatprep.subr.bf16.mxu0 %v10619_v26 }
0x1d32   :  { %10193 = vmatpush3.bf16.msra.mxu0 %v10619_v26 }
0x1d33   :  { %10194 = vmatprep.subr.bf16.mxu0 %v10620_v35 }
0x1d36   :  { %10195 = vmatpush3.bf16.msra.mxu0 %v10620_v35 }
0x1d37   :  { %10220 = vmatprep.subr.bf16.mxu0 %v10621_v11 }
0x1d39   :  { %10197 = vmatmul.mubr.bf16.vlgmr.msra.gmra.mxu0 %v12439_v47 }
0x1d3a   :  { %10221 = vmatpush3.bf16.msra.mxu0 %v10621_v11  ;;  %10236 = vmatprep.mubr.bf16.mxu0 %v12434_v6 }
0x1d3b   :  { %10222 = vmatprep.subr.bf16.mxu0 %v10622_v41 }
0x1d3e   :  { %10223 = vmatpush3.bf16.msra.mxu0 %v10622_v41 }
0x1d3f   :  { %10224 = vmatprep.subr.bf16.mxu0 %v10623_v17 }
0x1d42   :  { %10225 = vmatpush3.bf16.msra.mxu0 %v10623_v17 }
0x1d43   :  { %10226 = vmatprep.subr.bf16.mxu0 %v10624_v36 }
0x1d46   :  { %10227 = vmatpush3.bf16.msra.mxu0 %v10624_v36 }
0x1d47   :  { %10228 = vmatprep.subr.bf16.mxu0 %v10625_v49 }
0x1d4a   :  { %10229 = vmatpush3.bf16.msra.mxu0 %v10625_v49 }
0x1d4b   :  { %10230 = vmatprep.subr.bf16.mxu0 %v10626_v39 }
0x1d4e   :  { %10231 = vmatpush3.bf16.msra.mxu0 %v10626_v39 }
0x1d4f   :  { %10232 = vmatprep.subr.bf16.mxu0 %v10627_v40 }
0x1d52   :  { %10233 = vmatpush3.bf16.msra.mxu0 %v10627_v40 }
0x1d53   :  { %10234 = vmatprep.subr.bf16.mxu0 %v10628_v19 }
0x1d56   :  { %10235 = vmatpush3.bf16.msra.mxu0 %v10628_v19 }
0x1d59   :  { %10237 = vmatmul.mubr.bf16.vlgmr.msra.gmra.mxu0 %v12439_v47 }
0x1d5a   :  { %7046 = vmatprep.mubr.bf16.mxu0 %v11016_v12 }
0x1d99   :  { %v12784_v24 = vpop.f32.mrf.mxu0 }
0x1d9b   :  { %v12786_v44 = vpop.f32.mrf.mxu0 }
0x1d9d   :  { %v12788_v20 = vpop.f32.mrf.mxu0 }
0x1d9f   :  { %v12790_v21 = vpop.f32.mrf.mxu0 }
0x1db9   :  { %v10114_v48 = vpop.f32.mrf.mxu0 }
0x1dba   :  { %v5628_v52 = vadd.f32 %v10114_v48, %v8679_v50 }
0x1dbb   :  { %v5619_v33 = vpop.f32.mrf.mxu0 }
0x1dbc   :  { %v5620_v34 = vadd.f32 %v8679_v50, %v5619_v33 }
0x1dbd   :  { %v10115_v62 = vpop.f32.mrf.mxu0 }
0x1dbe   :  { %v5631_v51 = vadd.f32 %v10115_v62, %v8679_v50 }
0x1dbf   :  { %v5622_v31 = vpop.f32.mrf.mxu0 }
0x1dc0   :  { %v5623_v5 = vadd.f32 %v8679_v50, %v5622_v31  ;;  %v5873_v54 = vpack.c.bf16 %v5631_v51, %v5628_v52 }
0x1dc2   :  { %v5872_v53 = vpack.c.bf16 %v5623_v5, %v5620_v34 }
0x1dc4   :  { %10160 = vmatprep.mubr.msk.bf16.mxu1 %vm1290_vm1, %v5872_v53 }
0x1dc5   :  { %10161 = vmatmul.mubr.msk.bf16.vlgmr.msra.gmra.mxu1 %vm1290_vm1, %v5873_v54 }
0x1dd9   :  { %v10154_v57 = vpop.f32.mrf.mxu0 }
0x1dda   :  { %v5866_v3 = vadd.f32 %v10154_v57, %v8729_v60 }
0x1ddb   :  { %v5857_v46 = vpop.f32.mrf.mxu0 }
0x1ddc   :  { %v5858_v8 = vadd.f32 %v8729_v60, %v5857_v46 }
0x1ddd   :  { %v10155_v2 = vpop.f32.mrf.mxu0 }
0x1dde   :  { %v5869_v38 = vadd.f32 %v10155_v2, %v8729_v60 }
0x1ddf   :  { %v5860_v37 = vpop.f32.mrf.mxu0 }
0x1de0   :  { %v5984_v10 = vpack.c.bf16 %v5869_v38, %v5866_v3  ;;  %v5861_v15 = vadd.f32 %v8729_v60, %v5860_v37 }
0x1de2   :  { %v5983_v61 = vpack.c.bf16 %v5861_v15, %v5858_v8  ;;  %10164 = vmatprep.subr.bf16.mxu1 %v5984_v10 }
0x1de3   :  { %10165 = vmatpush3.bf16.msra.mxu1 %v5984_v10 }
0x1de4   :  { %10166 = vmatprep.subr.bf16.mxu1 %v5983_v61 }
0x1de7   :  { %10167 = vmatpush3.bf16.msra.mxu1 %v5983_v61 }
0x1df9   :  { %v10198_v58 = vpop.f32.mrf.mxu0 }
0x1dfa   :  { %v12806_v1 = vadd.f32 %v10198_v58, %v12803_v0 }
0x1dfb   :  { %v12808_v27 = vpop.f32.mrf.mxu0 }
0x1dfd   :  { %v10199_v22 = vpop.f32.mrf.mxu0 }
0x1dfe   :  { %v12811_v26 = vadd.f32 %v10199_v22, %v12803_v0 }
0x1e00   :  { %v6476_v35 = vpack.c.bf16 %v12811_v26, %v12806_v1 }
0x1e85   :  { %v10162_v11 = vpop.f32.mrf.mxu1 }
0x1e86   :  { %v5931_v49 = vadd.f32 %v12523_v16, %v10162_v11 }
0x1e87   :  { %v5922_v41 = vpop.f32.mrf.mxu1 }
0x1e88   :  { %v5923_v17 = vadd.f32 %v12517_v45, %v5922_v41  ;;  %v5943_v62 = vsel %vm1290_vm1, %v5931_v49, -inf }
0x1e89   :  { %v10163_v36 = vpop.f32.mrf.mxu1 }
0x1e8a   :  { %v5937_v39 = vsel %vm1290_vm1, %v5923_v17, -inf  ;;  %v5934_v48 = vadd.f32 %v12536_v32, %v10163_v36 }
0x1e8b   :  { %v5925_v40 = vpop.f32.mrf.mxu1  ;;  %5938 = vmax.xlane.f32.xlu0 %v5937_v39 }
0x1e8c   :  { %v5926_v19 = vadd.f32 %v12530_v9, %v5925_v40  ;;  %v5946_v50 = vsel %vm1290_vm1, %v5934_v48, -inf }
0x1e8e   :  { %v5940_v33 = vsel %vm1290_vm1, %v5926_v19, -inf }
0x1e8f   :  { %5941 = vmax.xlane.f32.xlu1 %v5940_v33  ;;  %5944 = vmax.xlane.f32.xlu0 %v5943_v62  ;;  %v10629_v62 = vld [vmem:[%s13527_s10 + $0x68] sm:$0xff]  }
0x1e90   :  { %10172 = vmatprep.subr.bf16.mxu1 %v10629_v62 }
0x1e93   :  { %5947 = vmax.xlane.f32.xlu1 %v5946_v50  ;;  %v10630_v50 = vld [vmem:[%s13527_s10 + $0x60] sm:$0xff]  }
0x1f14   :  { %v5939_v45 = vpop.xlane.xlu0 %5938 }
0x1f15   :  { %v5949_v51 = vsub.f32 %v5923_v17, %v5939_v45  ;;  %v10631_v45 = vld [vmem:[%s13523_s8 + $0x4f8] sm:$0xff]  }
0x1f17   :  { %v5953_v16 = vmul.f32 1.442695, %v5949_v51 }
0x1f18   :  { %v5942_v31 = vpop.xlane.xlu1 %5941  ;;  %v5945_v34 = vpop.xlane.xlu0 %5944 }
0x1f19   :  { %10897 = vpow2.f32 %v5953_v16  ;;  %v5950_v5 = vsub.f32 %v5926_v19, %v5942_v31  ;;  %v5951_v52 = vsub.f32 %v5931_v49, %v5945_v34 }
0x1f1b   :  { %v5955_v9 = vmul.f32 1.442695, %v5950_v5  ;;  %v5957_v53 = vmul.f32 1.442695, %v5951_v52 }
0x1f1c   :  { %v5948_v32 = vpop.xlane.xlu1 %5947 }
0x1f1d   :  { %10899 = vpow2.f32 %v5955_v9  ;;  %v5952_v54 = vsub.f32 %v5934_v48, %v5948_v32  ;;  %v10632_v9 = vld [vmem:[%s13523_s8 + $0x4f0] sm:$0xff]   ;;  %v10634_v32 = vld [vmem:[%s13523_s8 + $0x4e0] sm:$0xff]  }
0x1f1e   :  { %10901 = vpow2.f32 %v5957_v53  ;;  %v10633_v53 = vld [vmem:[%s13523_s8 + $0x4e8] sm:$0xff]  }
0x1f1f   :  { %v5959_v57 = vmul.f32 1.442695, %v5952_v54  ;;  %v10635_v54 = vld [vmem:[%s13523_s8 + $0x4d8] sm:$0xff]  }
0x1f21   :  { %10903 = vpow2.f32 %v5959_v57  ;;  %v10637_v57 = vld [vmem:[%s13523_s8 + $0x4c8] sm:$0xff]  }
0x1f26   :  { %v10898_v60 = vpop.eup %10897 }
0x1f27   :  { %v5961_v46 = vsel %vm1290_vm1, %v10898_v60, 0.0 }
0x1f28   :  { %5962 = vadd.xlane.f32.xlu0 %v5961_v46  ;;  %v6225_v46 = vpop.f32.mrf.mxu0 }
0x1f2a   :  { %v10900_v2 = vpop.eup %10899 }
0x1f2b   :  { %v10902_v3 = vpop.eup %10901  ;;  %v5964_v38 = vsel %vm1290_vm1, %v10900_v2, 0.0 }
0x1f2c   :  { %5965 = vadd.xlane.f32.xlu1 %v5964_v38  ;;  %v5967_v37 = vsel %vm1290_vm1, %v10902_v3, 0.0 }
0x1f2d   :  { %5968 = vadd.xlane.f32.xlu0 %v5967_v37  ;;  %v5509_v37 = vadd.f32 %v12642_v42, %v12784_v24 }
0x1f2e   :  { %v10904_v8 = vpop.eup %10903 }
0x1f2f   :  { %v5970_v10 = vsel %vm1290_vm1, %v10904_v8, 0.0 }
0x1f30   :  { %5971 = vadd.xlane.f32.xlu1 %v5970_v10  ;;  %v5501_v10 = vadd.f32 %v12644_v28, %v12786_v44  ;;  %v8791_v28 = vld [vmem:[%s13525_s9 + $0x13] ss:$0 sm:$0xff] }
0x1fb1   :  { %v5963_v15 = vpop.xlane.xlu0 %5962 }
0x1fb2   :  { %10905 = vrcp.f32 %v5963_v15 }
0x1fb5   :  { %v5966_v61 = vpop.xlane.xlu1 %5965 }
0x1fb6   :  { %10907 = vrcp.f32 %v5966_v61  ;;  %v5969_v58 = vpop.xlane.xlu0 %5968 }
0x1fb7   :  { %10909 = vrcp.f32 %v5969_v58  ;;  %v5512_v58 = vadd.f32 %v12646_v13, %v12788_v20 }
0x1fb9   :  { %v5972_v22 = vpop.xlane.xlu1 %5971 }
0x1fba   :  { %10911 = vrcp.f32 %v5972_v22 }
0x1fbf   :  { %v10906_v11 = vpop.eup %10905 }
0x1fc0   :  { %v5974_v17 = vmul.f32 %v10906_v11, %v10898_v60  ;;  %v10638_v60 = vld [vmem:[%s13523_s8 + $0x4c0] sm:$0xff]  }
0x1fc3   :  { %v10908_v41 = vpop.eup %10907 }
0x1fc4   :  { %v5976_v36 = vmul.f32 %v10908_v41, %v10900_v2  ;;  %v10910_v49 = vpop.eup %10909  ;;  %v6226_v2 = vadd.f32 %v12803_v0, %v6225_v46  ;;  %v10238_v41 = vpop.f32.mrf.mxu0  ;;  %v11012_v46 = vld [vmem:[%s13526_s5 + $0x18] sm:$0xff] }
0x1fc5   :  { %v5978_v19 = vmul.f32 %v10910_v49, %v10902_v3  ;;  %v6223_v3 = vadd.f32 %v12803_v0, %v12808_v27 }
0x1fc6   :  { %v5981_v39 = vpack.c.bf16 %v5976_v36, %v5974_v17  ;;  %v6460_v36 = vpop.f32.mrf.mxu0 }
0x1fc7   :  { %v10912_v40 = vpop.eup %10911  ;;  %v6475_v38 = vpack.c.bf16 %v6226_v2, %v6223_v3 }
0x1fc8   :  { %v5980_v48 = vmul.f32 %v10912_v40, %v10904_v8  ;;  %10168 = vmatprep.mubr.msk.bf16.mxu1 %vm1290_vm1, %v5981_v39 }
0x1fca   :  { %v5982_v33 = vpack.c.bf16 %v5980_v48, %v5978_v19  ;;  %v10239_v48 = vpop.f32.mrf.mxu0 }
0x1fcc   :  { %10169 = vmatmul.mubr.msk.bf16.vlgmr.msra.gmra.mxu1 %vm1290_vm1, %v5982_v33  ;;  %v8816_v33 = vld [vmem:[%s13525_s9 + $0x17] ss:$0 sm:$0xff] }
0x1fcd   :  { %10173 = vmatpush3.bf16.msra.mxu1 %v10629_v62  ;;  %v6472_v62 = vadd.f32 %v10239_v48, %v8816_v33 }
0x1fce   :  { %10174 = vmatprep.subr.bf16.mxu1 %v10630_v50 }
0x1fd1   :  { %10175 = vmatpush3.bf16.msra.mxu1 %v10630_v50  ;;  %v6469_v50 = vadd.f32 %v10238_v41, %v8816_v33 }
0x1fd2   :  { %10200 = vmatprep.subr.bf16.mxu1 %v10631_v45 }
0x208c   :  { %v10170_v51 = vpop.f32.mrf.mxu1 }
0x208e   :  { %v6025_v16 = vpop.f32.mrf.mxu1 }
0x2090   :  { %v10171_v31 = vpop.f32.mrf.mxu1 }
0x2091   :  { %v6046_v52 = vpack.c.bf16 %v10171_v31, %v10170_v51 }
0x2092   :  { %v6028_v34 = vpop.f32.mrf.mxu1 }
0x2093   :  { %v6045_v5 = vpack.c.bf16 %v6028_v34, %v6025_v16  ;;  %v6463_v16 = vpop.f32.mrf.mxu0  ;;  %v6461_v34 = vadd.f32 %v8816_v33, %v6460_v36 }
0x2094   :  { %v6464_v31 = vadd.f32 %v8816_v33, %v6463_v16 }
0x2095   :  { %10176 = vmatprep.mubr.msk.bf16.mxu1 %vm1290_vm1, %v6045_v5 }
0x2096   :  { %10177 = vmatmul.mubr.msk.bf16.vlgmr.msra.gmra.mxu1 %vm1290_vm1, %v6046_v52  ;;  %v6586_v5 = vpack.c.bf16 %v6464_v31, %v6461_v34 }
0x2097   :  { %10201 = vmatpush3.bf16.msra.mxu1 %v10631_v45  ;;  %10216 = vmatprep.mubr.bf16.mxu1 %v12434_v6  ;;  %v10636_v6 = vld [vmem:[%s13523_s8 + $0x4d0] sm:$0xff]   ;;  %v6587_v45 = vpack.c.bf16 %v6472_v62, %v6469_v50 }
0x2098   :  { %10202 = vmatprep.subr.bf16.mxu1 %v10632_v9 }
0x209b   :  { %10203 = vmatpush3.bf16.msra.mxu1 %v10632_v9 }
0x209c   :  { %10204 = vmatprep.subr.bf16.mxu1 %v10633_v53 }
0x209f   :  { %10205 = vmatpush3.bf16.msra.mxu1 %v10633_v53  ;;  %v11009_v53 = vld [vmem:[%s13526_s5] sm:$0xff] }
0x20a0   :  { %10206 = vmatprep.subr.bf16.mxu1 %v10634_v32 }
0x20a3   :  { %10207 = vmatpush3.bf16.msra.mxu1 %v10634_v32 }
0x20a4   :  { %10208 = vmatprep.subr.bf16.mxu1 %v10635_v54 }
0x20a7   :  { %10209 = vmatpush3.bf16.msra.mxu1 %v10635_v54 }
0x20a8   :  { %10210 = vmatprep.subr.bf16.mxu1 %v10636_v6 }
0x20ab   :  { %10211 = vmatpush3.bf16.msra.mxu1 %v10636_v6  ;;  %v11010_v6 = vld [vmem:[%s13526_s5 + $0x10] sm:$0xff] }
0x20ac   :  { %10212 = vmatprep.subr.bf16.mxu1 %v10637_v57 }
0x20af   :  { %10213 = vmatpush3.bf16.msra.mxu1 %v10637_v57 }
0x20b0   :  { %10214 = vmatprep.subr.bf16.mxu1 %v10638_v60 }
0x20b3   :  { %10215 = vmatpush3.bf16.msra.mxu1 %v10638_v60 }
0x20b6   :  { %10217 = vmatmul.mubr.bf16.vlgmr.msra.gmra.mxu1 %v12439_v47  ;;  %v5504_v47 = vadd.f32 %v12648_v14, %v12790_v21 }
0x20b7   :  { %10244 = vmatprep.mubr.msk.bf16.mxu1 %vm1290_vm1, %v6475_v38 }
0x2156   :  { %v10178_v8 = vpop.f32.mrf.mxu1 }
0x2157   :  { %v12871_v15 = vadd.f32 %v10178_v8, %v5509_v37 }
0x2158   :  { %v6099_v61 = vpop.f32.mrf.mxu1 }
0x2159   :  { %v12875_v0 = vadd.f32 %v6099_v61, %v5501_v10 }
0x215a   :  { %v10179_v27 = vpop.f32.mrf.mxu1 }
0x215b   :  { %v12879_v22 = vadd.f32 %v10179_v27, %v5512_v58 }
0x215c   :  { %v6102_v11 = vpop.f32.mrf.mxu1 }
0x215d   :  { %v12881_v42 = vadd.f32 %v6102_v11, %v5504_v47 }
0x2176   :  { %v10218_v24 = vpop.f32.mrf.mxu1 }
0x2177   :  { %v6350_v13 = vadd.f32 %v10218_v24, %v8791_v28 }
0x2178   :  { %v6341_v44 = vpop.f32.mrf.mxu1 }
0x2179   :  { %v6342_v39 = vadd.f32 %v8791_v28, %v6341_v44 }
0x217a   :  { %v10219_v17 = vpop.f32.mrf.mxu1 }
0x217b   :  { %v6353_v20 = vadd.f32 %v10219_v17, %v8791_v28 }
0x217c   :  { %v6344_v49 = vpop.f32.mrf.mxu1 }
0x217d   :  { %v6478_v40 = vpack.c.bf16 %v6353_v20, %v6350_v13  ;;  %v6345_v14 = vadd.f32 %v8791_v28, %v6344_v49 }
0x217f   :  { %v6477_v21 = vpack.c.bf16 %v6345_v14, %v6342_v39  ;;  %10278 = vmatprep.subr.msk.bf16.mxu1 %vm1290_vm1, %v6478_v40  ;;  %v6489_v19 = vsel %vm1290_vm1, %v6478_v40, 0 }
0x2180   :  { %10241 = vmatpush3.bf16.xpose.msra.mxu1 %v6489_v19 }
0x2181   :  { %10279 = vmatprep.subr.msk.bf16.mxu1 %vm1290_vm1, %v6477_v21  ;;  %v6486_v51 = vsel %vm1290_vm1, %v6477_v21, 0 }
0x2188   :  { %10243 = vmatpush3.bf16.xpose.msra.mxu1 %v6486_v51 }
0x2189   :  { %10248 = vmatprep.subr.bf16.mxu1 %v6587_v45 }
0x218f   :  { %10245 = vmatmul.mubr.msk.bf16.vlgmr.msra.gmra.mxu1 %vm1290_vm1, %v6476_v35  ;;  %v11011_v35 = vld [vmem:[%s13526_s5 + $0x8] sm:$0xff] }
0x2190   :  { %10249 = vmatpush3.bf16.msra.mxu1 %v6587_v45 }
0x2191   :  { %10250 = vmatprep.subr.bf16.mxu1 %v6586_v5 }
0x2194   :  { %10251 = vmatpush3.bf16.msra.mxu1 %v6586_v5 }
0x224f   :  { %v10246_v52 = vpop.f32.mrf.mxu1 }
0x2250   :  { %v6534_v57 = vadd.f32 %v11010_v6, %v10246_v52 }
0x2251   :  { %v6525_v9 = vpop.f32.mrf.mxu1 }
0x2252   :  { %v6526_v32 = vadd.f32 %v11009_v53, %v6525_v9  ;;  %v6546_v38 = vsel %vm1290_vm1, %v6534_v57, -inf }
0x2253   :  { %v10247_v54 = vpop.f32.mrf.mxu1 }
0x2254   :  { %v6540_v1 = vsel %vm1290_vm1, %v6526_v32, -inf  ;;  %v6537_v2 = vadd.f32 %v11012_v46, %v10247_v54  ;;  %v10640_v54 = vld [vmem:[%s13527_s10 + $0x70] sm:$0xff]  }
0x2255   :  { %v6528_v26 = vpop.f32.mrf.mxu1  ;;  %6541 = vmax.xlane.f32.xlu0 %v6540_v1 }
0x2256   :  { %v6529_v60 = vadd.f32 %v11011_v35, %v6528_v26  ;;  %v6549_v37 = vsel %vm1290_vm1, %v6537_v2, -inf }
0x2258   :  { %v6543_v3 = vsel %vm1290_vm1, %v6529_v60, -inf }
0x2259   :  { %6544 = vmax.xlane.f32.xlu1 %v6543_v3  ;;  %6547 = vmax.xlane.f32.xlu0 %v6546_v38 }
0x225d   :  { %6550 = vmax.xlane.f32.xlu1 %v6549_v37 }
0x22de   :  { %v6542_v8 = vpop.xlane.xlu0 %6541 }
0x22df   :  { %v6552_v10 = vsub.f32 %v6526_v32, %v6542_v8  ;;  %v10639_v32 = vld [vmem:[%s13527_s10 + $0x78] sm:$0xff]  }
0x22e0   :  { %10256 = vmatprep.subr.bf16.mxu1 %v10639_v32 }
0x22e1   :  { %v6556_v61 = vmul.f32 1.442695, %v6552_v10 }
0x22e2   :  { %v6545_v58 = vpop.xlane.xlu1 %6544  ;;  %v6548_v27 = vpop.xlane.xlu0 %6547 }
0x22e3   :  { %10913 = vpow2.f32 %v6556_v61  ;;  %v6553_v47 = vsub.f32 %v6529_v60, %v6545_v58  ;;  %v6554_v11 = vsub.f32 %v6534_v57, %v6548_v27  ;;  %v8837_v61 = vld [vmem:[%s13524_s14 + $0xa] ss:$0 sm:$0xff] }
0x22e5   :  { %v6558_v24 = vmul.f32 1.442695, %v6553_v47  ;;  %v6560_v41 = vmul.f32 1.442695, %v6554_v11 }
0x22e6   :  { %v6551_v28 = vpop.xlane.xlu1 %6550 }
0x22e7   :  { %10915 = vpow2.f32 %v6558_v24  ;;  %v6555_v44 = vsub.f32 %v6537_v2, %v6551_v28 }
0x22e8   :  { %10917 = vpow2.f32 %v6560_v41 }
0x22e9   :  { %v6562_v17 = vmul.f32 1.442695, %v6555_v44 }
0x22eb   :  { %10919 = vpow2.f32 %v6562_v17 }
0x22f0   :  { %v10914_v13 = vpop.eup %10913 }
0x22f1   :  { %v6564_v20 = vsel %vm1290_vm1, %v10914_v13, 0.0 }
0x22f2   :  { %6565 = vadd.xlane.f32.xlu0 %v6564_v20 }
0x22f4   :  { %v10916_v36 = vpop.eup %10915 }
0x22f5   :  { %v10918_v49 = vpop.eup %10917  ;;  %v6567_v39 = vsel %vm1290_vm1, %v10916_v36, 0.0 }
0x22f6   :  { %6568 = vadd.xlane.f32.xlu1 %v6567_v39  ;;  %v6570_v40 = vsel %vm1290_vm1, %v10918_v49, 0.0 }
0x22f7   :  { %6571 = vadd.xlane.f32.xlu0 %v6570_v40 }
0x22f8   :  { %v10920_v14 = vpop.eup %10919 }
0x22f9   :  { %v6573_v21 = vsel %vm1290_vm1, %v10920_v14, 0.0 }
0x22fa   :  { %6574 = vadd.xlane.f32.xlu1 %v6573_v21 }
0x237b   :  { %v6566_v19 = vpop.xlane.xlu0 %6565 }
0x237c   :  { %10921 = vrcp.f32 %v6566_v19 }
0x237f   :  { %v6569_v48 = vpop.xlane.xlu1 %6568 }
0x2380   :  { %10923 = vrcp.f32 %v6569_v48  ;;  %v6572_v33 = vpop.xlane.xlu0 %6571 }
0x2381   :  { %10925 = vrcp.f32 %v6572_v33 }
0x2383   :  { %v6575_v62 = vpop.xlane.xlu1 %6574 }
0x2384   :  { %10927 = vrcp.f32 %v6575_v62 }
0x2389   :  { %v10922_v50 = vpop.eup %10921 }
0x238a   :  { %v6577_v51 = vmul.f32 %v10922_v50, %v10914_v13 }
0x238d   :  { %v10924_v45 = vpop.eup %10923 }
0x238e   :  { %v6579_v16 = vmul.f32 %v10924_v45, %v10916_v36  ;;  %v10926_v31 = vpop.eup %10925  ;;  %v10647_v45 = vld [vmem:[%s13528_s11 + $0x1c0] ss:$16 sps:$4 sm:$0xff]  }
0x238f   :  { %v6581_v52 = vmul.f32 %v10926_v31, %v10918_v49  ;;  %v10652_v31 = vld [vmem:[%s13528_s11 + $0x1cc] ss:$16 sps:$4 sm:$0xff]  }
0x2390   :  { %v6584_v34 = vpack.c.bf16 %v6579_v16, %v6577_v51  ;;  %v10649_v51 = vld [vmem:[%s13528_s11 + $0x1c4] ss:$16 sps:$4 sm:$0xff]   ;;  %v10650_v16 = vld [vmem:[%s13528_s11 + $0x1c8] ss:$16 sps:$4 sm:$0xff]  }
0x2391   :  { %v10928_v5 = vpop.eup %10927 }
0x2392   :  { %v6583_v9 = vmul.f32 %v10928_v5, %v10920_v14  ;;  %10252 = vmatprep.mubr.msk.bf16.mxu1 %vm1290_vm1, %v6584_v34  ;;  %v10653_v34 = vld [vmem:[%s13528_s11 + $0x1a0] ss:$16 sps:$4 sm:$0xff]   ;;  %v10655_v5 = vld [vmem:[%s13528_s11 + $0x1a4] ss:$16 sps:$4 sm:$0xff]  }
0x2394   :  { %v6585_v53 = vpack.c.bf16 %v6583_v9, %v6581_v52  ;;  %v10656_v52 = vld [vmem:[%s13528_s11 + $0x1a8] ss:$16 sps:$4 sm:$0xff]   ;;  %v10658_v9 = vld [vmem:[%s13528_s11 + $0x1ac] ss:$16 sps:$4 sm:$0xff]  }
0x2396   :  { %10253 = vmatmul.mubr.msk.bf16.vlgmr.msra.gmra.mxu1 %vm1290_vm1, %v6585_v53  ;;  %v10659_v53 = vld [vmem:[%s13528_s11 + $0x180] ss:$16 sps:$4 sm:$0xff]  }
0x2397   :  { %10257 = vmatpush3.bf16.msra.mxu1 %v10639_v32  ;;  %v10661_v32 = vld [vmem:[%s13528_s11 + $0x184] ss:$16 sps:$4 sm:$0xff]  }
0x2398   :  { %10258 = vmatprep.subr.bf16.mxu1 %v10640_v54 }
0x239b   :  { %10259 = vmatpush3.bf16.msra.mxu1 %v10640_v54  ;;  %v10662_v54 = vld [vmem:[%s13528_s11 + $0x188] ss:$16 sps:$4 sm:$0xff]  }
0x2456   :  { %v10254_v6 = vpop.f32.mrf.mxu1 }
0x2458   :  { %v6628_v57 = vpop.f32.mrf.mxu1 }
0x245a   :  { %v10255_v1 = vpop.f32.mrf.mxu1 }
0x245b   :  { %v6649_v60 = vpack.c.bf16 %v10255_v1, %v10254_v6  ;;  %v10664_v6 = vld [vmem:[%s13528_s11 + $0x18c] ss:$16 sps:$4 sm:$0xff]  }
0x245c   :  { %v6631_v26 = vpop.f32.mrf.mxu1  ;;  %v10670_v1 = vld [vmem:[%s13528_s11 + $0x16c] ss:$16 sps:$4 sm:$0xff]  }
0x245d   :  { %v6648_v35 = vpack.c.bf16 %v6631_v26, %v6628_v57  ;;  %v10667_v57 = vld [vmem:[%s13528_s11 + $0x164] ss:$16 sps:$4 sm:$0xff]   ;;  %v10665_v26 = vld [vmem:[%s13528_s11 + $0x160] ss:$16 sps:$4 sm:$0xff]  }
0x245f   :  { %10260 = vmatprep.mubr.msk.bf16.mxu1 %vm1290_vm1, %v6648_v35  ;;  %v10668_v35 = vld [vmem:[%s13528_s11 + $0x168] ss:$16 sps:$4 sm:$0xff]  }
0x2460   :  { %10261 = vmatmul.mubr.msk.bf16.vlgmr.msra.gmra.mxu1 %vm1290_vm1, %v6649_v60  ;;  %v10673_v60 = vld [vmem:[%s13528_s11 + $0x144] ss:$16 sps:$4 sm:$0xff]  }
0x2461   :  { %7099 = vmatprep.mubr.bf16.mxu1 %v11016_v12 }
0x2520   :  { %v10262_v46 = vpop.f32.mrf.mxu1 }
0x2521   :  { %v6719_v3 = vadd.f32 %v10262_v46, %v12871_v15  ;;  %v10676_v46 = vld [vmem:[%s13528_s11 + $0x14c] ss:$16 sps:$4 sm:$0xff]  }
0x2522   :  { %v6702_v2 = vpop.f32.mrf.mxu1 }
0x2523   :  { %v6717_v38 = vadd.f32 %v6702_v2, %v12875_v0  ;;  %v6723_v58 = vadd.f32 %v6719_v3, %v12350_v63  ;;  %v10641_v63 = vld [vmem:[%s13528_s11 + $0x1e0] ss:$16 sps:$4 sm:$0xff]   ;;  %v10674_v3 = vld [vmem:[%s13528_s11 + $0x148] ss:$16 sps:$4 sm:$0xff]  }
0x2524   :  { %v10263_v37 = vpop.f32.mrf.mxu1  ;;  %v10671_v2 = vld [vmem:[%s13528_s11 + $0x140] ss:$16 sps:$4 sm:$0xff]  }
0x2525   :  { %v6721_v8 = vadd.f32 %v6717_v38, %v11350_v4  ;;  %v6720_v27 = vadd.f32 %v10263_v37, %v12879_v22  ;;  %v12941_v41 = vadd.f32 %v8837_v61, %v6723_v58  ;;  %v10646_v22 = vld [vmem:[%s13528_s11 + $0x1ec] ss:$16 sps:$4 sm:$0xff]   ;;  %v10679_v38 = vld [vmem:[%s13528_s11 + $0x124] ss:$16 sps:$4 sm:$0xff]  }
0x2526   :  { %v6705_v10 = vpop.f32.mrf.mxu1  ;;  %7067 = vmatprep.subr.bf16.mxu1 %v10646_v22  ;;  %v10682_v37 = vld [vmem:[%s13528_s11 + $0x12c] ss:$16 sps:$4 sm:$0xff]  }
0x2527   :  { %v6718_v47 = vadd.f32 %v6705_v10, %v12881_v42  ;;  %v6730_v11 = vadd.f32 %v8837_v61, %v6721_v8  ;;  %v6724_v15 = vadd.f32 %v6720_v27, %v12354_v25  ;;  %v10644_v25 = vld [vmem:[%s13528_s11 + $0x1e8] ss:$16 sps:$4 sm:$0xff]   ;;  %v10677_v8 = vld [vmem:[%s13528_s11 + $0x120] ss:$16 sps:$4 sm:$0xff]   ;;  %v10688_v58 = vld [vmem:[%s13528_s11 + $0x10c] ss:$16 sps:$4 sm:$0xff]  }
0x2528   :  { %7068 = vmatpush1.bf16.msra.mxu1 %v10644_v25  ;;  %v10680_v10 = vld [vmem:[%s13528_s11 + $0x128] ss:$16 sps:$4 sm:$0xff]   ;;  %v10683_v27 = vld [vmem:[%s13528_s11 + $0x100] ss:$16 sps:$4 sm:$0xff]  }
0x2529   :  { %v6722_v24 = vadd.f32 %v6718_v47, %v12343_v43  ;;  %6736 = vadd.xlane.f32.xlu0 %v6730_v11  ;;  %v12945_v28 = vadd.f32 %v8837_v61, %v6724_v15  ;;  %v10643_v43 = vld [vmem:[%s13528_s11 + $0x1e4] ss:$16 sps:$4 sm:$0xff]   ;;  %7069 = vmatprep.subr.bf16.mxu1 %v10652_v31  ;;  %v10686_v47 = vld [vmem:[%s13528_s11 + $0x108] ss:$16 sps:$4 sm:$0xff]  }
0x252a   :  { %7014 = vmatprep.subr.bf16.mxu0 %v10643_v43 }
0x252b   :  { %v12939_v0 = vadd.f32 %v8837_v61, %v6722_v24  ;;  %7015 = vmatpush1.bf16.msra.mxu0 %v10641_v63  ;;  %v10685_v61 = vld [vmem:[%s13528_s11 + $0x104] ss:$16 sps:$4 sm:$0xff]  }
0x252c   :  { %7016 = vmatprep.subr.bf16.mxu0 %v10649_v51  ;;  %7070 = vmatpush1.bf16.msra.mxu1 %v10650_v16 }
0x252d   :  { %6738 = vadd.xlane.f32.xlu1 %v12939_v0  ;;  %6740 = vadd.xlane.f32.xlu0 %v12941_v41 }
0x252e   :  { %7071 = vmatprep.subr.bf16.mxu1 %v10658_v9 }
0x252f   :  { %7017 = vmatpush1.bf16.msra.mxu0 %v10647_v45  ;;  %v8839_v45 = vld [vmem:[%s13524_s14 + $0x9] ss:$0 sm:$0xff] }
0x2530   :  { %7018 = vmatprep.subr.bf16.mxu0 %v10655_v5  ;;  %7072 = vmatpush1.bf16.msra.mxu1 %v10656_v52 }
0x2531   :  { %6742 = vadd.xlane.f32.xlu1 %v12945_v28  ;;  %7073 = vmatprep.subr.bf16.mxu1 %v10664_v6  ;;  %v10691_v6 = vld [vmem:[%s13529_s13 + $0x138] sm:$0xff]  }
0x2533   :  { %7019 = vmatpush1.bf16.msra.mxu0 %v10653_v34 }
0x2534   :  { %7020 = vmatprep.subr.bf16.mxu0 %v10661_v32  ;;  %7074 = vmatpush1.bf16.msra.mxu1 %v10662_v54 }
0x2535   :  { %7075 = vmatprep.subr.bf16.mxu1 %v10670_v1  ;;  %v10693_v1 = vld [vmem:[%s13529_s13 + $0x170] sm:$0xff]  }
0x2537   :  { %7021 = vmatpush1.bf16.msra.mxu0 %v10659_v53 }
0x2538   :  { %7022 = vmatprep.subr.bf16.mxu0 %v10667_v57  ;;  %7076 = vmatpush1.bf16.msra.mxu1 %v10668_v35  ;;  %v10692_v57 = vld [vmem:[%s13529_s13 + $0x1b8] sm:$0xff]   ;;  %v10695_v35 = vld [vmem:[%s13529_s13 + $0x130] sm:$0xff]  }
0x2539   :  { %7077 = vmatprep.subr.bf16.mxu1 %v10676_v46  ;;  %v10697_v46 = vld [vmem:[%s13529_s13 + $0x168] sm:$0xff]  }
0x253b   :  { %7023 = vmatpush1.bf16.msra.mxu0 %v10665_v26  ;;  %v10694_v26 = vld [vmem:[%s13529_s13 + $0x1f0] sm:$0xff]  }
0x253c   :  { %7024 = vmatprep.subr.bf16.mxu0 %v10673_v60  ;;  %7078 = vmatpush1.bf16.msra.mxu1 %v10674_v3  ;;  %v10696_v60 = vld [vmem:[%s13529_s13 + $0x1b0] sm:$0xff]   ;;  %v10699_v3 = vld [vmem:[%s13529_s13 + $0x128] sm:$0xff]  }
0x253d   :  { %7079 = vmatprep.subr.bf16.mxu1 %v10682_v37  ;;  %v10701_v37 = vld [vmem:[%s13529_s13 + $0x160] sm:$0xff]  }
0x253f   :  { %7025 = vmatpush1.bf16.msra.mxu0 %v10671_v2  ;;  %v10698_v2 = vld [vmem:[%s13529_s13 + $0x1e8] sm:$0xff]  }
0x2540   :  { %7026 = vmatprep.subr.bf16.mxu0 %v10679_v38  ;;  %7080 = vmatpush1.bf16.msra.mxu1 %v10680_v10  ;;  %v10700_v38 = vld [vmem:[%s13529_s13 + $0x1a8] sm:$0xff]   ;;  %v10703_v10 = vld [vmem:[%s13529_s13 + $0x120] sm:$0xff]  }
0x2541   :  { %7081 = vmatprep.subr.bf16.mxu1 %v10688_v58  ;;  %v10705_v58 = vld [vmem:[%s13529_s13 + $0x158] sm:$0xff]  }
0x2543   :  { %7027 = vmatpush1.bf16.msra.mxu0 %v10677_v8  ;;  %v10702_v8 = vld [vmem:[%s13529_s13 + $0x1e0] sm:$0xff]  }
0x2544   :  { %7028 = vmatprep.subr.bf16.mxu0 %v10685_v61  ;;  %7082 = vmatpush1.bf16.msra.mxu1 %v10686_v47  ;;  %v10704_v61 = vld [vmem:[%s13529_s13 + $0x1a0] sm:$0xff]   ;;  %v10707_v47 = vld [vmem:[%s13529_s13 + $0x118] sm:$0xff]  }
0x2547   :  { %7029 = vmatpush1.bf16.msra.mxu0 %v10683_v27  ;;  %v10706_v27 = vld [vmem:[%s13529_s13 + $0x1d8] sm:$0xff]  }
0x25b2   :  { %v6737_v42 = vpop.xlane.xlu0 %6736 }
0x25b3   :  { %v6744_v44 = vmul.f32 0.0078125, %v6737_v42 }
0x25b5   :  { %v12960_v17 = vsub.f32 %v6730_v11, %v6744_v44 }
0x25b6   :  { %v6739_v13 = vpop.xlane.xlu1 %6738  ;;  %v6741_v20 = vpop.xlane.xlu0 %6740 }
0x25b7   :  { %v6745_v36 = vmul.f32 0.0078125, %v6739_v13  ;;  %v6746_v49 = vmul.f32 0.0078125, %v6741_v20  ;;  %v6752_v39 = vmul.f32 %v12960_v17, %v12960_v17 }
0x25b9   :  { %v12965_v40 = vsub.f32 %v12939_v0, %v6745_v36  ;;  %v12968_v14 = vsub.f32 %v12941_v41, %v6746_v49  ;;  %6756 = vadd.xlane.f32.xlu0 %v6752_v39 }
0x25ba   :  { %v6743_v21 = vpop.xlane.xlu1 %6742 }
0x25bb   :  { %v6747_v19 = vmul.f32 0.0078125, %v6743_v21  ;;  %v6753_v48 = vmul.f32 %v12965_v40, %v12965_v40  ;;  %v6754_v33 = vmul.f32 %v12968_v14, %v12968_v14  ;;  %v8838_v21 = vld [vmem:[%s13524_s14 + $0x8] ss:$0 sm:$0xff] }
0x25bd   :  { %v12975_v62 = vsub.f32 %v12945_v28, %v6747_v19  ;;  %6758 = vadd.xlane.f32.xlu1 %v6753_v48  ;;  %6760 = vadd.xlane.f32.xlu0 %v6754_v33 }
0x25bf   :  { %v6755_v50 = vmul.f32 %v12975_v62, %v12975_v62 }
0x25c1   :  { %6762 = vadd.xlane.f32.xlu1 %v6755_v50  ;;  %7644 = vadd.xlane.f32.xlu0 %v11350_v4 }
0x2642   :  { %v6757_v11 = vpop.xlane.xlu0 %6756 }
0x2643   :  { %v6764_v24 = vmul.f32 0.0078125, %v6757_v11  ;;  %v10708_v11 = vld [vmem:[%s13529_s13 + $0x198] sm:$0xff]  }
0x2645   :  { %v6768_v15 = vadd.f32 1e-05, %v6764_v24  ;;  %v10709_v24 = vld [vmem:[%s13529_s13 + $0x150] sm:$0xff]  }
0x2646   :  { %v6759_v63 = vpop.xlane.xlu1 %6758  ;;  %v6761_v43 = vpop.xlane.xlu0 %6760 }
0x2647   :  { %10929 = vrsqrt.f32 %v6768_v15  ;;  %v6765_v25 = vmul.f32 0.0078125, %v6759_v63  ;;  %v6766_v22 = vmul.f32 0.0078125, %v6761_v43  ;;  %v10710_v15 = vld [vmem:[%s13529_s13 + $0x1d0] sm:$0xff]  }
0x2648   :  { %v10711_v63 = vld [vmem:[%s13529_s13 + $0x110] sm:$0xff]  }
0x2649   :  { %v6769_v42 = vadd.f32 1e-05, %v6765_v25  ;;  %v6770_v44 = vadd.f32 1e-05, %v6766_v22  ;;  %v10712_v43 = vld [vmem:[%s13529_s13 + $0x190] sm:$0xff]   ;;  %v10713_v25 = vld [vmem:[%s13529_s13 + $0x148] sm:$0xff]  }
0x264a   :  { %v6763_v13 = vpop.xlane.xlu1 %6762  ;;  %v10714_v22 = vld [vmem:[%s13529_s13 + $0x1c8] sm:$0xff]  }
0x264b   :  { %10931 = vrsqrt.f32 %v6769_v42  ;;  %v6767_v20 = vmul.f32 0.0078125, %v6763_v13  ;;  %v10715_v42 = vld [vmem:[%s13529_s13 + $0x108] sm:$0xff]   ;;  %v10717_v13 = vld [vmem:[%s13529_s13 + $0x140] sm:$0xff]  }
0x264c   :  { %10933 = vrsqrt.f32 %v6770_v44  ;;  %v10716_v44 = vld [vmem:[%s13529_s13 + $0x188] sm:$0xff]  }
0x264d   :  { %v6771_v36 = vadd.f32 1e-05, %v6767_v20  ;;  %v10718_v20 = vld [vmem:[%s13529_s13 + $0x1c0] sm:$0xff]  }
0x264f   :  { %10935 = vrsqrt.f32 %v6771_v36  ;;  %v10719_v36 = vld [vmem:[%s13529_s13 + $0x100] sm:$0xff]  }
0x2654   :  { %v10930_v49 = vpop.eup %10929 }
0x2655   :  { %v6776_v39 = vmul.f32 %v10930_v49, %v12960_v17  ;;  %v10720_v49 = vld [vmem:[%s13529_s13 + $0x180] sm:$0xff]  }
0x2657   :  { %v6784_v33 = vmul.f32 %v8838_v21, %v6776_v39  ;;  %v8872_v39 = vld [vmem:[%s13530_s12 + $0x4] sm:$0xf] }
0x2658   :  { %v10932_v19 = vpop.eup %10931 }
0x2659   :  { %v6777_v48 = vmul.f32 %v10932_v19, %v12965_v40  ;;  %v10934_v50 = vpop.eup %10933  ;;  %v6792_v31 = vadd.f32 %v8839_v45, %v6784_v33  ;;  %v13180_v19 = vrot.slane %v8872_v39, %v3454_v59 }
0x265a   :  { %v6778_v5 = vmul.f32 %v10934_v50, %v12968_v14  ;;  %v10689_v14 = vld [vmem:[%s13529_s13 + $0x178] sm:$0xff]   ;;  %v13183_v50 = vrot.slane %v8872_v39, %v12187_v18 }
0x265b   :  { %v6785_v51 = vmul.f32 %v8838_v21, %v6777_v48  ;;  %9496 = vmatprep.subr.bf16.mxu0 %v10689_v14 }
0x265c   :  { %v10936_v16 = vpop.eup %10935  ;;  %v6786_v53 = vmul.f32 %v8838_v21, %v6778_v5 }
0x265d   :  { %v6793_v34 = vadd.f32 %v8839_v45, %v6785_v51  ;;  %v6779_v17 = vmul.f32 %v10936_v16, %v12975_v62  ;;  %v10690_v62 = vld [vmem:[%s13529_s13 + $0x1f8] sm:$0xff]  }
0x265e   :  { %v6794_v32 = vadd.f32 %v8839_v45, %v6786_v53  ;;  %9524 = vmatprep.subr.bf16.mxu1 %v10690_v62 }
0x265f   :  { %v6829_v52 = vpack.c.bf16 %v6793_v34, %v6792_v31  ;;  %v6787_v9 = vmul.f32 %v8838_v21, %v6779_v17  ;;  %v13176_v21 = vrot.slane %v8872_v39, %v12180_v56 }
0x2661   :  { %7047 = vmatmul.mubr.bf16.vlgmr.msra.gmra.mxu0 %v6829_v52  ;;  %7100 = vmatmul.mubr.bf16.vlgmr.msra.gmra.mxu1 %v6829_v52  ;;  %v6795_v40 = vadd.f32 %v8839_v45, %v6787_v9  ;;  %v13187_v45 = vrot.slane %v8872_v39, %v3458_v30 }
0x2662   :  { %7056 = vmatprep.mubr.bf16.mxu0 %v11016_v12  ;;  %7109 = vmatprep.mubr.bf16.mxu1 %v11016_v12 }
0x2663   :  { %v6830_v54 = vpack.c.bf16 %v6795_v40, %v6794_v32  ;;  %9497 = vmatpush3.bf16.msra.mxu0 %v10691_v6  ;;  %9525 = vmatpush3.bf16.msra.mxu1 %v10692_v57 }
0x2664   :  { %9498 = vmatprep.subr.bf16.mxu0 %v10693_v1  ;;  %9526 = vmatprep.subr.bf16.mxu1 %v10694_v26 }
0x2667   :  { %9499 = vmatpush3.bf16.msra.mxu0 %v10695_v35  ;;  %9527 = vmatpush3.bf16.msra.mxu1 %v10696_v60 }
0x2668   :  { %9500 = vmatprep.subr.bf16.mxu0 %v10697_v46  ;;  %9528 = vmatprep.subr.bf16.mxu1 %v10698_v2 }
0x2669   :  { %7057 = vmatmul.mubr.bf16.gmra.mxu0 %v6830_v54  ;;  %7110 = vmatmul.mubr.bf16.gmra.mxu1 %v6830_v54 }
0x266b   :  { %9501 = vmatpush3.bf16.msra.mxu0 %v10699_v3  ;;  %9529 = vmatpush3.bf16.msra.mxu1 %v10700_v38 }
0x266c   :  { %9502 = vmatprep.subr.bf16.mxu0 %v10701_v37  ;;  %9530 = vmatprep.subr.bf16.mxu1 %v10702_v8 }
0x266f   :  { %9503 = vmatpush3.bf16.msra.mxu0 %v10703_v10  ;;  %9531 = vmatpush3.bf16.msra.mxu1 %v10704_v61 }
0x2670   :  { %9504 = vmatprep.subr.bf16.mxu0 %v10705_v58  ;;  %9532 = vmatprep.subr.bf16.mxu1 %v10706_v27 }
0x2673   :  { %9505 = vmatpush3.bf16.msra.mxu0 %v10707_v47  ;;  %9533 = vmatpush3.bf16.msra.mxu1 %v10708_v11 }
0x2674   :  { %9506 = vmatprep.subr.bf16.mxu0 %v10709_v24  ;;  %9534 = vmatprep.subr.bf16.mxu1 %v10710_v15 }
0x2677   :  { %9507 = vmatpush3.bf16.msra.mxu0 %v10711_v63  ;;  %9535 = vmatpush3.bf16.msra.mxu1 %v10712_v43 }
0x2678   :  { %9508 = vmatprep.subr.bf16.mxu0 %v10713_v25  ;;  %9536 = vmatprep.subr.bf16.mxu1 %v10714_v22 }
0x267b   :  { %9509 = vmatpush3.bf16.msra.mxu0 %v10715_v42  ;;  %9537 = vmatpush3.bf16.msra.mxu1 %v10716_v44 }
0x267c   :  { %9510 = vmatprep.subr.bf16.mxu0 %v10717_v13  ;;  %9538 = vmatprep.subr.bf16.mxu1 %v10718_v20 }
0x267f   :  { %9511 = vmatpush3.bf16.msra.mxu0 %v10719_v36  ;;  %9539 = vmatpush3.bf16.msra.mxu1 %v10720_v49 }
0x2721   :  { %v7048_v48 = vpop.f32.mrf.mxu0  ;;  %v7101_v33 = vpop.f32.mrf.mxu1 }
0x2722   :  { %v13190_v51 = vadd.f32 %v7048_v48, %v13176_v21  ;;  %v13193_v16 = vadd.f32 %v7101_v33, %v13180_v19 }
0x2723   :  { %v7050_v31 = vpop.f32.mrf.mxu0  ;;  %v7103_v34 = vpop.f32.mrf.mxu1 }
0x2724   :  { %v7136_v59 = vmul.f32 0.044715, %v13190_v51  ;;  %v7138_v5 = vmul.f32 0.044715, %v13193_v16  ;;  %v13198_v17 = vadd.f32 %v7050_v31, %v13183_v50  ;;  %v13201_v52 = vadd.f32 %v7103_v34, %v13187_v45 }
0x2725   :  { %v7052_v29 = vpop.f32.mrf.mxu0  ;;  %v7105_v30 = vpop.f32.mrf.mxu1 }
0x2726   :  { %v7152_v9 = vmul.f32 %v7136_v59, %v13190_v51  ;;  %v7154_v53 = vmul.f32 %v7138_v5, %v13193_v16  ;;  %v13206_v40 = vadd.f32 %v7052_v29, %v13176_v21  ;;  %v13209_v32 = vadd.f32 %v7105_v30, %v13180_v19 }
0x2727   :  { %v7054_v54 = vpop.f32.mrf.mxu0  ;;  %v7107_v14 = vpop.f32.mrf.mxu1  ;;  %v7137_v57 = vmul.f32 0.044715, %v13198_v17  ;;  %v7139_v26 = vmul.f32 0.044715, %v13201_v52 }
0x2728   :  { %v7168_v62 = vmul.f32 %v7152_v9, %v13190_v51  ;;  %v7170_v6 = vmul.f32 %v7154_v53, %v13193_v16  ;;  %v7140_v1 = vmul.f32 0.044715, %v13206_v40  ;;  %v7142_v35 = vmul.f32 0.044715, %v13209_v32 }
0x2729   :  { %v7058_v60 = vpop.f32.mrf.mxu0  ;;  %v7111_v46 = vpop.f32.mrf.mxu1  ;;  %v13221_v37 = vadd.f32 %v7054_v54, %v13183_v50  ;;  %v13225_v10 = vadd.f32 %v7107_v14, %v13187_v45  ;;  %v7153_v27 = vmul.f32 %v7137_v57, %v13198_v17  ;;  %v7155_v42 = vmul.f32 %v7139_v26, %v13201_v52 }
0x272a   :  { %v7184_v2 = vadd.f32 %v7168_v62, %v13190_v51  ;;  %v7186_v3 = vadd.f32 %v7170_v6, %v13193_v16  ;;  %v7156_v38 = vmul.f32 %v7140_v1, %v13206_v40  ;;  %v7158_v8 = vmul.f32 %v7142_v35, %v13209_v32 }
0x272b   :  { %v7060_v61 = vpop.f32.mrf.mxu0  ;;  %v7113_v58 = vpop.f32.mrf.mxu1  ;;  %v7141_v11 = vmul.f32 0.044715, %v13221_v37  ;;  %v13232_v63 = vadd.f32 %v7058_v60, %v13176_v21  ;;  %v13235_v43 = vadd.f32 %v7111_v46, %v13180_v19  ;;  %v7143_v13 = vmul.f32 0.044715, %v13225_v10 }
0x272c   :  { %v7172_v47 = vmul.f32 %v7156_v38, %v13206_v40  ;;  %v7200_v24 = vmul.f32 0.7978846, %v7184_v2  ;;  %v7174_v15 = vmul.f32 %v7158_v8, %v13209_v32  ;;  %v7202_v22 = vmul.f32 0.7978846, %v7186_v3 }
0x272d   :  { %v7062_v25 = vpop.f32.mrf.mxu0  ;;  %v7115_v44 = vpop.f32.mrf.mxu1  ;;  %v7144_v20 = vmul.f32 0.044715, %v13232_v63  ;;  %v13241_v36 = vadd.f32 %v7060_v61, %v13183_v50  ;;  %v7169_v49 = vmul.f32 %v7153_v27, %v13198_v17  ;;  %v7157_v48 = vmul.f32 %v7141_v11, %v13221_v37 }
0x272e   :  { %v7188_v39 = vadd.f32 %v7172_v47, %v13206_v40  ;;  %v7146_v33 = vmul.f32 0.044715, %v13235_v43  ;;  %10937 = vtanh.f32 %v7200_v24  ;;  %v7190_v31 = vadd.f32 %v7174_v15, %v13209_v32 }
0x272f   :  { %v7160_v34 = vmul.f32 %v7144_v20, %v13232_v63  ;;  %v13250_v59 = vadd.f32 %v7113_v58, %v13187_v45  ;;  %v7064_v5 = vpop.f32.mrf.mxu0  ;;  %10939 = vtanh.f32 %v7202_v22  ;;  %v7171_v29 = vmul.f32 %v7155_v42, %v13201_v52  ;;  %v7117_v53 = vpop.f32.mrf.mxu1 }
0x2730   :  { %v7162_v30 = vmul.f32 %v7146_v33, %v13235_v43  ;;  %v13255_v9 = vadd.f32 %v7062_v25, %v13176_v21  ;;  %v7159_v54 = vmul.f32 %v7143_v13, %v13225_v10  ;;  %v7145_v62 = vmul.f32 0.044715, %v13241_v36 }
0x2731   :  { %v7176_v14 = vmul.f32 %v7160_v34, %v13232_v63  ;;  %v13261_v6 = vadd.f32 %v7115_v44, %v13180_v19  ;;  %v7204_v57 = vmul.f32 0.7978846, %v7188_v39  ;;  %v7173_v1 = vmul.f32 %v7157_v48, %v13221_v37 }
0x2732   :  { %v7148_v26 = vmul.f32 0.044715, %v13255_v9  ;;  %v13266_v35 = vadd.f32 %v7064_v5, %v13183_v50  ;;  %v7206_v21 = vmul.f32 0.7978846, %v7190_v31  ;;  %v7147_v60 = vmul.f32 0.044715, %v13250_v59 }
0x2733   :  { %v7150_v46 = vmul.f32 0.044715, %v13261_v6  ;;  %v13271_v2 = vadd.f32 %v7117_v53, %v13187_v45  ;;  %v7192_v3 = vadd.f32 %v7176_v14, %v13232_v63  ;;  %v7178_v19 = vmul.f32 %v7162_v30, %v13235_v43 }
0x2734   :  { %v7164_v38 = vmul.f32 %v7148_v26, %v13255_v9  ;;  %v7149_v8 = vmul.f32 0.044715, %v13266_v35  ;;  %v7175_v61 = vmul.f32 %v7159_v54, %v13225_v10  ;;  %v7161_v50 = vmul.f32 %v7145_v62, %v13241_v36 }
0x2735   :  { %v7166_v58 = vmul.f32 %v7150_v46, %v13261_v6  ;;  %v7151_v27 = vmul.f32 0.044715, %v13271_v2  ;;  %10941 = vtanh.f32 %v7204_v57  ;;  %v7185_v11 = vadd.f32 %v7169_v49, %v13198_v17 }
0x2736   :  { %v7180_v45 = vmul.f32 %v7164_v38, %v13255_v9  ;;  %v7165_v47 = vmul.f32 %v7149_v8, %v13266_v35  ;;  %10943 = vtanh.f32 %v7206_v21  ;;  %v7163_v24 = vmul.f32 %v7147_v60, %v13250_v59 }
0x2737   :  { %v7182_v15 = vmul.f32 %v7166_v58, %v13261_v6  ;;  %v7189_v25 = vadd.f32 %v7173_v1, %v13221_v37  ;;  %v7208_v22 = vmul.f32 0.7978846, %v7192_v3  ;;  %v7194_v42 = vadd.f32 %v7178_v19, %v13235_v43 }
0x2738   :  { %v7196_v44 = vadd.f32 %v7180_v45, %v13255_v9  ;;  %v7201_v13 = vmul.f32 0.7978846, %v7185_v11  ;;  %v7177_v20 = vmul.f32 %v7161_v50, %v13241_v36  ;;  %v7167_v48 = vmul.f32 %v7151_v27, %v13271_v2 }
0x2739   :  { %v7198_v39 = vadd.f32 %v7182_v15, %v13261_v6  ;;  %v7205_v49 = vmul.f32 0.7978846, %v7189_v25  ;;  %v7181_v31 = vmul.f32 %v7165_v47, %v13266_v35  ;;  %v7187_v34 = vadd.f32 %v7171_v29, %v13201_v52 }
0x273a   :  { %v7212_v33 = vmul.f32 0.7978846, %v7196_v44  ;;  %10945 = vtanh.f32 %v7201_v13  ;;  %v7191_v5 = vadd.f32 %v7175_v61, %v13225_v10  ;;  %v7210_v53 = vmul.f32 0.7978846, %v7194_v42 }
0x273b   :  { %10947 = vtanh.f32 %v7205_v49  ;;  %v10938_v30 = vpop.eup %10937  ;;  %v7179_v54 = vmul.f32 %v7163_v24, %v13250_v59  ;;  %v7203_v14 = vmul.f32 0.7978846, %v7187_v34  ;;  %v7214_v57 = vmul.f32 0.7978846, %v7198_v39 }
0x273c   :  { %10949 = vtanh.f32 %v7208_v22  ;;  %v10940_v62 = vpop.eup %10939  ;;  %v7183_v1 = vmul.f32 %v7167_v48, %v13271_v2  ;;  %v7207_v26 = vmul.f32 0.7978846, %v7191_v5  ;;  %v7193_v21 = vadd.f32 %v7177_v20, %v13241_v36 }
0x273d   :  { %10951 = vtanh.f32 %v7212_v33  ;;  %v7197_v29 = vadd.f32 %v7181_v31, %v13266_v35  ;;  %v7195_v3 = vadd.f32 %v7179_v54, %v13250_v59  ;;  %v7232_v47 = vadd.f32 1.0, %v10938_v30 }
0x273e   :  { %10953 = vtanh.f32 %v7203_v14  ;;  %v7209_v60 = vmul.f32 0.7978846, %v7193_v21  ;;  %v7199_v19 = vadd.f32 %v7183_v1, %v13271_v2  ;;  %v7124_v11 = vmul.f32 0.5, %v13206_v40 }
0x273f   :  { %10955 = vtanh.f32 %v7207_v26  ;;  %v7213_v46 = vmul.f32 0.7978846, %v7197_v29  ;;  %v7211_v38 = vmul.f32 0.7978846, %v7195_v3  ;;  %v7121_v25 = vmul.f32 0.5, %v13198_v17 }
0x2740   :  { %10957 = vtanh.f32 %v7210_v53  ;;  %v7215_v61 = vmul.f32 0.7978846, %v7199_v19  ;;  %v7125_v22 = vmul.f32 0.5, %v13221_v37  ;;  %v7120_v13 = vmul.f32 0.5, %v13190_v51 }
0x2741   :  { %10959 = vtanh.f32 %v7214_v57  ;;  %v7234_v49 = vadd.f32 1.0, %v10940_v62  ;;  %v7122_v40 = vmul.f32 0.5, %v13193_v16  ;;  %v7126_v30 = vmul.f32 0.5, %v13209_v32 }
0x2742   :  { %10961 = vtanh.f32 %v7209_v60  ;;  %v10942_v8 = vpop.eup %10941  ;;  %v7248_v5 = vmul.f32 %v7232_v47, %v7120_v13  ;;  %v7123_v37 = vmul.f32 0.5, %v13201_v52  ;;  %v7127_v14 = vmul.f32 0.5, %v13225_v10 }
0x2743   :  { %10963 = vtanh.f32 %v7213_v46  ;;  %v10944_v50 = vpop.eup %10943  ;;  %v7236_v58 = vadd.f32 1.0, %v10942_v8  ;;  %v7250_v29 = vmul.f32 %v7234_v49, %v7122_v40  ;;  %v7129_v16 = vmul.f32 0.5, %v13241_v36 }
0x2744   :  { %10965 = vtanh.f32 %v7211_v38  ;;  %v7238_v39 = vadd.f32 1.0, %v10944_v50  ;;  %v7133_v3 = vmul.f32 0.5, %v13266_v35  ;;  %v7132_v52 = vmul.f32 0.5, %v13255_v9 }
0x2745   :  { %10967 = vtanh.f32 %v7215_v61  ;;  %v7252_v20 = vmul.f32 %v7236_v58, %v7124_v11  ;;  %v7131_v50 = vmul.f32 0.5, %v13250_v59  ;;  %v7128_v58 = vmul.f32 0.5, %v13232_v63 }
0x2746   :  { %v7254_v26 = vmul.f32 %v7238_v39, %v7126_v30  ;;  %v7135_v35 = vmul.f32 0.5, %v13271_v2 }
0x2747   :  { %v10946_v27 = vpop.eup %10945  ;;  %v7329_v1 = vpack.c.bf16 %v7252_v20, %v7248_v5  ;;  %v7130_v20 = vmul.f32 0.5, %v13235_v43 }
0x2748   :  { %v10948_v45 = vpop.eup %10947  ;;  %v7233_v24 = vadd.f32 1.0, %v10946_v27 }
0x2749   :  { %v10950_v15 = vpop.eup %10949  ;;  %v7237_v42 = vadd.f32 1.0, %v10948_v45  ;;  %v7331_v45 = vpack.c.bf16 %v7254_v26, %v7250_v29  ;;  %v9001_v29 = vld [vmem:[%s13524_s14 + $0xb] ss:$0 sm:$0xff] }
0x274a   :  { %v10952_v44 = vpop.eup %10951  ;;  %v7249_v33 = vmul.f32 %v7233_v24, %v7121_v25  ;;  %v7240_v10 = vadd.f32 1.0, %v10950_v15  ;;  %v7134_v15 = vmul.f32 0.5, %v13261_v6 }
0x274b   :  { %v10954_v48 = vpop.eup %10953  ;;  %v7253_v31 = vmul.f32 %v7237_v42, %v7125_v22  ;;  %v7244_v62 = vadd.f32 1.0, %v10952_v44 }
0x274c   :  { %v10956_v34 = vpop.eup %10955  ;;  %v7235_v53 = vadd.f32 1.0, %v10954_v48  ;;  %v7256_v9 = vmul.f32 %v7240_v10, %v7128_v58 }
0x274d   :  { %v10958_v17 = vpop.eup %10957  ;;  %v7330_v54 = vpack.c.bf16 %v7253_v31, %v7249_v33  ;;  %v7239_v51 = vadd.f32 1.0, %v10956_v34  ;;  %v7260_v11 = vmul.f32 %v7244_v62, %v7132_v52 }
0x274e   :  { %v10960_v57 = vpop.eup %10959  ;;  %v7251_v60 = vmul.f32 %v7235_v53, %v7123_v37  ;;  %v7242_v42 = vadd.f32 1.0, %v10958_v17 }
0x274f   :  { %v10962_v21 = vpop.eup %10961  ;;  %7561 = vmatprep.mubr.bf16.mxu0 %v7330_v54  ;;  %v7255_v46 = vmul.f32 %v7239_v51, %v7127_v14  ;;  %v7246_v36 = vadd.f32 1.0, %v10960_v57  ;;  %v7333_v63 = vpack.c.bf16 %v7260_v11, %v7256_v9  ;;  %v7645_v57 = vpop.xlane.xlu0 %7644 }
0x2750   :  { %v10964_v32 = vpop.eup %10963  ;;  %7562 = vmatmul.mubr.bf16.vlgmr.msra.gmra.mxu0 %v7329_v1  ;;  %v7241_v19 = vadd.f32 1.0, %v10962_v21  ;;  %v7258_v49 = vmul.f32 %v7242_v42, %v7130_v20  ;;  %v10732_v20 = vld [vmem:[%s13531_s15 + $0x44] ss:$8 sps:$4 sm:$0xff]  }
0x2751   :  { %v10966_v38 = vpop.eup %10965  ;;  %v7332_v8 = vpack.c.bf16 %v7255_v46, %v7251_v60  ;;  %v7245_v61 = vadd.f32 1.0, %v10964_v32  ;;  %v7262_v39 = vmul.f32 %v7246_v36, %v7134_v15  ;;  %v7652_v32 = vmul.f32 0.0078125, %v7645_v57 }
0x2752   :  { %v10968_v27 = vpop.eup %10967  ;;  %v7243_v47 = vadd.f32 1.0, %v10966_v38  ;;  %v7257_v24 = vmul.f32 %v7241_v19, %v7129_v16 }
0x2753   :  { %7610 = vmatprep.mubr.bf16.mxu1 %v7332_v8  ;;  %v7261_v25 = vmul.f32 %v7245_v61, %v7133_v3  ;;  %v7247_v22 = vadd.f32 1.0, %v10968_v27  ;;  %v7335_v2 = vpack.c.bf16 %v7262_v39, %v7258_v49  ;;  %v10730_v39 = vld [vmem:[%s13531_s15 + $0x40] ss:$8 sps:$4 sm:$0xff]   ;;  %v10733_v49 = vld [vmem:[%s13531_s15 + $0x30] ss:$8 sps:$4 sm:$0xff]  }
0x2754   :  { %7611 = vmatmul.mubr.bf16.vlgmr.msra.gmra.mxu1 %v7331_v45  ;;  %v7259_v59 = vmul.f32 %v7243_v47, %v7131_v50  ;;  %v13327_v50 = vsub.f32 %v11350_v4, %v7652_v32  ;;  %v10723_v4 = vld [vmem:[%s13531_s15 + $0x74] ss:$8 sps:$4 sm:$0xff]   ;;  %v9003_v32 = vld [vmem:[%s13520_s7 + $0x4] ss:$0 sm:$0xff] }
0x2755   :  { %v7334_v44 = vpack.c.bf16 %v7261_v25, %v7257_v24  ;;  %v7263_v13 = vmul.f32 %v7247_v22, %v7135_v35  ;;  %7814 = vmatprep.subr.bf16.mxu0 %v10723_v4 }
0x2756   :  { %v7660_v47 = vmul.f32 %v13327_v50, %v13327_v50  ;;  %7815 = vmatpush1.bf16.msra.mxu0 %v10721_v55  ;;  %v7722_v55 = vld [vmem:[%s13532_s16] sm:$0x3] }
0x2757   :  { %7569 = vmatprep.mubr.bf16.mxu0 %v7334_v44  ;;  %v7336_v48 = vpack.c.bf16 %v7263_v13, %v7259_v59  ;;  %v10729_v13 = vld [vmem:[%s13531_s15 + $0x54] ss:$8 sps:$4 sm:$0xff]   ;;  %v7727_v4 = vrot.slane %v7722_v55, %v12180_v56 }
0x2758   :  { %7570 = vmatmul.mubr.bf16.gmra.mxu0 %v7333_v63  ;;  %v10727_v63 = vld [vmem:[%s13531_s15 + $0x50] ss:$8 sps:$4 sm:$0xff]  }
0x2759   :  { %7618 = vmatprep.mubr.bf16.mxu1 %v7336_v48  ;;  %7846 = vmatprep.mubr.bf16.mxu0 %v11016_v12  ;;  %v10735_v48 = vld [vmem:[%s13531_s15 + $0x34] ss:$8 sps:$4 sm:$0xff]  }
0x275c   :  { %7619 = vmatmul.mubr.bf16.gmra.mxu1 %v7335_v2  ;;  %v10738_v2 = vld [vmem:[%s13531_s15 + $0x24] ss:$8 sps:$4 sm:$0xff]  }
0x2810   :  { %v9512_v33 = vpop.f32.mrf.mxu0 }
0x2811   :  { %v10736_v33 = vld [vmem:[%s13531_s15 + $0x20] ss:$8 sps:$4 sm:$0xff]  }
0x2812   :  { %v9513_v31 = vpop.f32.mrf.mxu0 }
0x2813   :  { %v10741_v31 = vld [vmem:[%s13531_s15 + $0x14] ss:$8 sps:$4 sm:$0xff]  }
0x2814   :  { %v9540_v6 = vpop.f32.mrf.mxu1  ;;  %v9515_v34 = vpop.f32.mrf.mxu0 }
0x2815   :  { %v10739_v6 = vld [vmem:[%s13531_s15 + $0x10] ss:$8 sps:$4 sm:$0xff]  }
0x2816   :  { %v9541_v5 = vpop.f32.mrf.mxu1  ;;  %v9516_v40 = vpop.f32.mrf.mxu0 }
0x2817   :  { %v9517_v17 = vadd.f32 %v9516_v40, %v9515_v34  ;;  %v10744_v34 = vld [vmem:[%s13531_s15 + $0x4] ss:$8 sps:$4 sm:$0xff]   ;;  %v10742_v5 = vld [vmem:[%s13531_s15] ss:$8 sps:$4 sm:$0xff]  }
0x2818   :  { %v9543_v30 = vpop.f32.mrf.mxu1  ;;  %v9518_v53 = vpop.f32.mrf.mxu0 }
0x281a   :  { %v9544_v43 = vpop.f32.mrf.mxu1  ;;  %v9519_v54 = vpop.f32.mrf.mxu0 }
0x281b   :  { %v9545_v37 = vadd.f32 %v9544_v43, %v9543_v30  ;;  %v9520_v26 = vadd.f32 %v9519_v54, %v9518_v53 }
0x281c   :  { %v9546_v14 = vpop.f32.mrf.mxu1  ;;  %v9521_v51 = vpop.f32.mrf.mxu0 }
0x281d   :  { %v7616_v1 = vadd.f32 %v9545_v37, %v9517_v17 }
0x281e   :  { %v9547_v62 = vpop.f32.mrf.mxu1  ;;  %v9522_v21 = vpop.f32.mrf.mxu0 }
0x281f   :  { %v7628_v60 = vadd.f32 %v7616_v1, %v12939_v0  ;;  %v9548_v46 = vadd.f32 %v9547_v62, %v9546_v14  ;;  %v9523_v19 = vadd.f32 %v9522_v21, %v9521_v51 }
0x2820   :  { %v9549_v16 = vpop.f32.mrf.mxu1 }
0x2821   :  { %v7621_v3 = vadd.f32 %v9548_v46, %v9520_v26  ;;  %v7637_v52 = vadd.f32 %v9001_v29, %v7628_v60 }
0x2822   :  { %v9550_v10 = vpop.f32.mrf.mxu1 }
0x2823   :  { %v7629_v38 = vadd.f32 %v7621_v3, %v12941_v41  ;;  %v9551_v8 = vadd.f32 %v9550_v10, %v9549_v16  ;;  %v7641_v61 = vsel %vm858_vm2, %v11356_v7, %v7637_v52  ;;  %v10724_v7 = vld [vmem:[%s13531_s15 + $0x60] ss:$8 sps:$4 sm:$0xff]   ;;  %v10726_v41 = vld [vmem:[%s13531_s15 + $0x64] ss:$8 sps:$4 sm:$0xff]  }
0x2824   :  { %7646 = vadd.xlane.f32.xlu1 %v7641_v61  ;;  %7816 = vmatprep.subr.bf16.mxu0 %v10726_v41 }
0x2825   :  { %v7624_v58 = vadd.f32 %v9551_v8, %v9523_v19  ;;  %v7638_v0 = vadd.f32 %v9001_v29, %v7629_v38  ;;  %7817 = vmatpush1.bf16.msra.mxu0 %v10724_v7  ;;  %v7731_v7 = vrot.slane %v7722_v55, %v12187_v18 }
0x2826   :  { %7818 = vmatprep.subr.bf16.mxu0 %v10729_v13 }
0x2827   :  { %v7630_v27 = vadd.f32 %v7624_v58, %v12945_v28  ;;  %7648 = vadd.xlane.f32.xlu0 %v7638_v0 }
0x2829   :  { %v7639_v45 = vadd.f32 %v9001_v29, %v7630_v27  ;;  %7819 = vmatpush1.bf16.msra.mxu0 %v10727_v63  ;;  %v9002_v29 = vld [vmem:[%s13520_s7 + $0x3] ss:$0 sm:$0xff] }
0x282a   :  { %7820 = vmatprep.subr.bf16.mxu0 %v10732_v20 }
0x282b   :  { %7650 = vadd.xlane.f32.xlu1 %v7639_v45  ;;  %7664 = vadd.xlane.f32.xlu0 %v7660_v47 }
0x282d   :  { %7821 = vmatpush1.bf16.msra.mxu0 %v10730_v39 }
0x282e   :  { %7822 = vmatprep.subr.bf16.mxu0 %v10735_v48  ;;  %v13452_v48 = vld [vmem:[%s13534_s0 + $0x8] sm:$0xff] }
0x282f   :  { %vm7983_vm11 = vcmp.ge.s32.totalorder %v13452_v48, 0 }
0x2831   :  { %7823 = vmatpush1.bf16.msra.mxu0 %v10733_v49  ;;  %v13457_v49 = vld [vmem:[%s13534_s0] sm:$0xff] }
0x2832   :  { %7824 = vmatprep.subr.bf16.mxu0 %v10738_v2  ;;  %v13464_v2 = vld [vmem:[%s13534_s0 + $0x10] sm:$0xff]  ;;  %vm7982_vm12 = vcmp.ge.s32.totalorder %v13457_v49, 0 }
0x2833   :  { %vm7984_vm13 = vcmp.ge.s32.totalorder %v13464_v2, 0 }
0x2835   :  { %7825 = vmatpush1.bf16.msra.mxu0 %v10736_v33  ;;  %v13470_v33 = vld [vmem:[%s13534_s0 + $0x18] sm:$0xff] }
0x2836   :  { %7826 = vmatprep.subr.bf16.mxu0 %v10741_v31  ;;  %vm7985_vm15 = vcmp.ge.s32.totalorder %v13470_v33, 0 }
0x2839   :  { %7827 = vmatpush1.bf16.msra.mxu0 %v10739_v6 }
0x283a   :  { %7828 = vmatprep.subr.bf16.mxu0 %v10744_v34 }
0x283d   :  { %7829 = vmatpush1.bf16.msra.mxu0 %v10742_v5 }
0x28ad   :  { %v7647_v28 = vpop.xlane.xlu1 %7646 }
0x28ae   :  { %v7653_v11 = vmul.f32 0.0078125, %v7647_v28 }
0x28b0   :  { %v7657_v36 = vsub.f32 %v7641_v61, %v7653_v11  ;;  %v7649_v24 = vpop.xlane.xlu0 %7648 }
0x28b1   :  { %v7654_v25 = vmul.f32 0.0078125, %v7649_v24 }
0x28b2   :  { %v7661_v35 = vmul.f32 %v7657_v36, %v7657_v36 }
0x28b3   :  { %v7658_v22 = vsub.f32 %v7638_v0, %v7654_v25 }
0x28b4   :  { %7666 = vadd.xlane.f32.xlu1 %v7661_v35  ;;  %v7651_v9 = vpop.xlane.xlu1 %7650  ;;  %v7665_v40 = vpop.xlane.xlu0 %7664 }
0x28b5   :  { %v7655_v15 = vmul.f32 0.0078125, %v7651_v9  ;;  %v7662_v42 = vmul.f32 %v7658_v22, %v7658_v22  ;;  %v7672_v30 = vmul.f32 0.0078125, %v7665_v40 }
0x28b7   :  { %v7659_v44 = vsub.f32 %v7639_v45, %v7655_v15  ;;  %7668 = vadd.xlane.f32.xlu0 %v7662_v42  ;;  %v7676_v53 = vadd.f32 1e-05, %v7672_v30 }
0x28b9   :  { %v7663_v59 = vmul.f32 %v7659_v44, %v7659_v44  ;;  %10969 = vrsqrt.f32 %v7676_v53 }
0x28bb   :  { %7670 = vadd.xlane.f32.xlu1 %v7663_v59 }
0x28c6   :  { %v10970_v62 = vpop.eup %10969 }
0x28c7   :  { %v7684_v21 = vmul.f32 %v10970_v62, %v13327_v50 }
0x28c9   :  { %v7692_v46 = vmul.f32 %v9002_v29, %v7684_v21 }
0x28cb   :  { %v7700_v10 = vadd.f32 %v9003_v32, %v7692_v46  ;;  %v7880_v46 = vand.u32 127, %v200_v23 }
0x293d   :  { %v7667_v17 = vpop.xlane.xlu1 %7666 }
0x293e   :  { %v7673_v43 = vmul.f32 0.0078125, %v7667_v17 }
0x2940   :  { %v7677_v54 = vadd.f32 1e-05, %v7673_v43  ;;  %v7669_v37 = vpop.xlane.xlu0 %7668 }
0x2941   :  { %v7674_v14 = vmul.f32 0.0078125, %v7669_v37 }
0x2942   :  { %10971 = vrsqrt.f32 %v7677_v54 }
0x2943   :  { %v7678_v51 = vadd.f32 1e-05, %v7674_v14 }
0x2944   :  { %v7671_v57 = vpop.xlane.xlu1 %7670 }
0x2945   :  { %10973 = vrsqrt.f32 %v7678_v51  ;;  %v7675_v1 = vmul.f32 0.0078125, %v7671_v57 }
0x2947   :  { %v7679_v26 = vadd.f32 1e-05, %v7675_v1 }
0x2949   :  { %10975 = vrsqrt.f32 %v7679_v26 }
0x294f   :  { %v10972_v60 = vpop.eup %10971 }
0x2950   :  { %v7685_v16 = vmul.f32 %v10972_v60, %v7657_v36 }
0x2952   :  { %v10974_v3 = vpop.eup %10973  ;;  %v7693_v19 = vmul.f32 %v9002_v29, %v7685_v16 }
0x2953   :  { %v7686_v52 = vmul.f32 %v10974_v3, %v7658_v22 }
0x2954   :  { %v7701_v38 = vadd.f32 %v9003_v32, %v7693_v19  ;;  %v7881_v19 = vadd.s32 128, %v7880_v46 }
0x2955   :  { %v7694_v50 = vmul.f32 %v9002_v29, %v7686_v52 }
0x2956   :  { %v10976_v8 = vpop.eup %10975  ;;  %v7720_v61 = vpack.c.bf16 %v7701_v38, %v7700_v10 }
0x2957   :  { %v7687_v58 = vmul.f32 %v10976_v8, %v7659_v44  ;;  %v7702_v27 = vadd.f32 %v9003_v32, %v7694_v50 }
0x2958   :  { %7847 = vmatmul.mubr.bf16.vlgmr.msra.gmra.mxu0 %v7720_v61 }
0x2959   :  { %7856 = vmatprep.mubr.bf16.mxu0 %v11016_v12  ;;  %v7695_v0 = vmul.f32 %v9002_v29, %v7687_v58 }
0x295b   :  { %v7703_v45 = vadd.f32 %v9003_v32, %v7695_v0 }
0x295d   :  { %v7721_v47 = vpack.c.bf16 %v7703_v45, %v7702_v27 }
0x2960   :  { %7857 = vmatmul.mubr.bf16.gmra.mxu0 %v7721_v47 }
0x2a18   :  { %v7848_v41 = vpop.f32.mrf.mxu0 }
0x2a19   :  { %v13393_v28 = vadd.f32 %v7848_v41, %v7727_v4 }
0x2a1a   :  { %v7850_v11 = vpop.f32.mrf.mxu0 }
0x2a1b   :  { %7867 = vst [vmem:[%s13533_s17] sm:$0xff] %v13393_v28  ;;  %v13399_v12 = vadd.f32 %v7850_v11, %v7731_v7 }
0x2a1c   :  { %v7852_v36 = vpop.f32.mrf.mxu0 }
0x2a1d   :  { %7868 = vst [vmem:[%s13533_s17 + $0x8] sm:$0xff] %v13399_v12  ;;  %v13405_v56 = vadd.f32 %v7852_v36, %v7727_v4  ;;  %v7922_v18 = vmax.f32 %v13393_v28, %v13399_v12 }
0x2a1e   :  { %v7854_v24 = vpop.f32.mrf.mxu0 }
0x2a1f   :  { %7869 = vst [vmem:[%s13533_s17 + $0x10] sm:$0xff] %v13405_v56  ;;  %v13413_v25 = vadd.f32 %v7854_v24, %v7731_v7  ;;  %7923 = vmax.xlane.f32.xlu0 %v7922_v18 }
0x2a20   :  { %v7858_v35 = vpop.f32.mrf.mxu0 }
0x2a21   :  { %7870 = vst [vmem:[%s13533_s17 + $0x18] sm:$0xff] %v13413_v25  ;;  %v13419_v22 = vadd.f32 %v7858_v35, %v7727_v4  ;;  %v7925_v9 = vmax.f32 %v13405_v56, %v13413_v25 }
0x2a22   :  { %v7860_v15 = vpop.f32.mrf.mxu0 }
0x2a23   :  { %7871 = vst [vmem:[%s13533_s17 + $0x20] sm:$0xff] %v13419_v22  ;;  %v13427_v42 = vadd.f32 %v7860_v15, %v7731_v7  ;;  %7926 = vmax.xlane.f32.xlu1 %v7925_v9 }
0x2a24   :  { %v7862_v44 = vpop.f32.mrf.mxu0 }
0x2a25   :  { %7872 = vst [vmem:[%s13533_s17 + $0x28] sm:$0xff] %v13427_v42  ;;  %v13433_v59 = vadd.f32 %v7862_v44, %v7727_v4  ;;  %v7928_v13 = vmax.f32 %v13419_v22, %v13427_v42 }
0x2a26   :  { %v7864_v63 = vpop.f32.mrf.mxu0 }
0x2a27   :  { %7873 = vst [vmem:[%s13533_s17 + $0x30] sm:$0xff] %v13433_v59  ;;  %v13441_v20 = vadd.f32 %v7864_v63, %v7731_v7  ;;  %7929 = vmax.xlane.f32.xlu0 %v7928_v13 }
0x2a29   :  { %7874 = vst [vmem:[%s13533_s17 + $0x38] sm:$0xff] %v13441_v20  ;;  %v7931_v39 = vmax.f32 %v13433_v59, %v13441_v20 }
0x2a2b   :  { %7932 = vmax.xlane.f32.xlu1 %v7931_v39 }
0x2a3c   :  { %7886 = vperm.xlu1 %10287, %v13452_v48  }
0x2a3d   :  { %7883 = vperm.xlu0 %10286, %v13457_v49  }
0x2a40   :  { %7889 = vperm.xlu1 %10287, %v13464_v2  }
0x2a44   :  { %7892 = vperm.xlu1 %10287, %v13470_v33  }
0x2aa8   :  { %v13473_v31 = vpop.xlane.xlu0 %7923 }
0x2aa9   :  { %v7934_v6 = vsub.f32 %v13393_v28, %v13473_v31  ;;  %v7935_v34 = vsub.f32 %v13399_v12, %v13473_v31 }
0x2aab   :  { %v7942_v5 = vmul.f32 1.442695, %v7934_v6  ;;  %v7944_v40 = vmul.f32 1.442695, %v7935_v34 }
0x2aac   :  { %v13479_v30 = vpop.xlane.xlu1 %7926 }
0x2aad   :  { %10977 = vpow2.f32 %v7942_v5  ;;  %v7936_v53 = vsub.f32 %v13405_v56, %v13479_v30  ;;  %v7937_v17 = vsub.f32 %v13413_v25, %v13479_v30 }
0x2aae   :  { %10979 = vpow2.f32 %v7944_v40 }
0x2aaf   :  { %v7946_v43 = vmul.f32 1.442695, %v7936_v53  ;;  %v7948_v54 = vmul.f32 1.442695, %v7937_v17 }
0x2ab0   :  { %v13485_v37 = vpop.xlane.xlu0 %7929 }
0x2ab1   :  { %10981 = vpow2.f32 %v7946_v43  ;;  %v7938_v14 = vsub.f32 %v13419_v22, %v13485_v37  ;;  %v7939_v51 = vsub.f32 %v13427_v42, %v13485_v37 }
0x2ab2   :  { %10983 = vpow2.f32 %v7948_v54 }
0x2ab3   :  { %v7950_v57 = vmul.f32 1.442695, %v7938_v14  ;;  %v7952_v1 = vmul.f32 1.442695, %v7939_v51 }
0x2ab4   :  { %v13491_v26 = vpop.xlane.xlu1 %7932 }
0x2ab5   :  { %10985 = vpow2.f32 %v7950_v57  ;;  %v7940_v62 = vsub.f32 %v13433_v59, %v13491_v26  ;;  %v7941_v21 = vsub.f32 %v13441_v20, %v13491_v26 }
0x2ab6   :  { %10987 = vpow2.f32 %v7952_v1 }
0x2ab7   :  { %v7954_v29 = vmul.f32 1.442695, %v7940_v62  ;;  %v7956_v60 = vmul.f32 1.442695, %v7941_v21 }
0x2ab8   :  { %v7887_v16 = vpop.permute.xlu1 %7886  ;;  %v7884_v27 = vpop.permute.xlu0 %7883 }
0x2ab9   :  { %10989 = vpow2.f32 %v7954_v29  ;;  %vm7894_vm5 = vcmp.eq.s32.totalorder %v7880_v46, %v7884_v27  ;;  %vm7895_vm6 = vcmp.eq.s32.totalorder %v7881_v19, %v7884_v27  ;;  %vm7896_vm7 = vcmp.eq.s32.totalorder %v7880_v46, %v7887_v16 }
0x2aba   :  { %v10978_v32 = vpop.eup %10977  ;;  %10991 = vpow2.f32 %v7956_v60  ;;  %v7902_v41 = vsel %vm7894_vm5, %v13393_v28, 0.0  ;;  %v7903_v11 = vsel %vm7895_vm6, %v13399_v12, 0.0  ;;  %vm7897_vm8 = vcmp.eq.s32.totalorder %v7881_v19, %v7887_v16 }
0x2abb   :  { %v10980_v3 = vpop.eup %10979  ;;  %v7910_v18 = vadd.f32 %v7903_v11, %v7902_v41  ;;  %v7904_v24 = vsel %vm7896_vm7, %v13405_v56, 0.0  ;;  %v7905_v35 = vsel %vm7897_vm8, %v13413_v25, 0.0 }
0x2abc   :  { %v7890_v52 = vpop.permute.xlu1 %7889  ;;  %v7958_v10 = vadd.f32 %v10980_v3, %v10978_v32 }
0x2abd   :  { %vm7898_vm3 = vcmp.eq.s32.totalorder %v7880_v46, %v7890_v52  ;;  %vm7899_vm4 = vcmp.eq.s32.totalorder %v7881_v19, %v7890_v52 }
0x2abe   :  { %v10982_v38 = vpop.eup %10981  ;;  %7959 = vadd.xlane.f32.xlu1 %v7958_v10  ;;  %v7906_v58 = vsel %vm7898_vm3, %v13419_v22, 0.0  ;;  %v7907_v50 = vsel %vm7899_vm4, %v13427_v42, 0.0  ;;  %v7913_v22 = vadd.f32 %v7905_v35, %v7904_v24 }
0x2abf   :  { %v10984_v8 = vpop.eup %10983  ;;  %v7916_v45 = vadd.f32 %v7907_v50, %v7906_v58 }
0x2ac0   :  { %v7961_v61 = vadd.f32 %v10984_v8, %v10982_v38  ;;  %v7893_v36 = vpop.permute.xlu1 %7892 }
0x2ac1   :  { %vm7900_vm9 = vcmp.eq.s32.totalorder %v7880_v46, %v7893_v36  ;;  %vm7901_vm10 = vcmp.eq.s32.totalorder %v7881_v19, %v7893_v36 }
0x2ac2   :  { %v10986_v0 = vpop.eup %10985  ;;  %7962 = vadd.xlane.f32.xlu0 %v7961_v61  ;;  %v7908_v9 = vsel %vm7900_vm9, %v13433_v59, 0.0  ;;  %v7909_v15 = vsel %vm7901_vm10, %v13441_v20, 0.0 }
0x2ac3   :  { %v10988_v23 = vpop.eup %10987  ;;  %v7919_v28 = vadd.f32 %v7909_v15, %v7908_v9 }
0x2ac4   :  { %v7964_v47 = vadd.f32 %v10988_v23, %v10986_v0 }
0x2ac6   :  { %v10990_v55 = vpop.eup %10989  ;;  %7965 = vadd.xlane.f32.xlu1 %v7964_v47  ;;  %7917 = vadd.xlane.f32.xlu0 %v7916_v45 }
0x2ac7   :  { %v10992_v4 = vpop.eup %10991 }
0x2ac8   :  { %v7967_v7 = vadd.f32 %v10992_v4, %v10990_v55 }
0x2aca   :  { %7968 = vadd.xlane.f32.xlu1 %v7967_v7 }
0x2ace   :  { %7911 = vadd.xlane.f32.xlu1 %v7910_v18 }
0x2ad2   :  { %7914 = vadd.xlane.f32.xlu1 %v7913_v22 }
0x2ad6   :  { %7920 = vadd.xlane.f32.xlu1 %v7919_v28 }
0x2b47   :  { %v7960_v12 = vpop.xlane.xlu1 %7959 }
0x2b48   :  { %10993 = vlog2.f32 %v7960_v12 }
0x2b4b   :  { %v7963_v42 = vpop.xlane.xlu0 %7962 }
0x2b4c   :  { %10995 = vlog2.f32 %v7963_v42 }
0x2b4f   :  { %v7966_v44 = vpop.xlane.xlu1 %7965  ;;  %v7918_v51 = vpop.xlane.xlu0 %7917 }
0x2b50   :  { %10997 = vlog2.f32 %v7966_v44 }
0x2b53   :  { %v7969_v56 = vpop.xlane.xlu1 %7968 }
0x2b54   :  { %10999 = vlog2.f32 %v7969_v56 }
0x2b55   :  { %v10994_v25 = vpop.eup %10993 }
0x2b56   :  { %v7971_v13 = vmul.f32 0.6931472, %v10994_v25 }
0x2b57   :  { %v7912_v63 = vpop.xlane.xlu1 %7911 }
0x2b58   :  { %v7978_v59 = vadd.f32 %v7971_v13, %v13473_v31 }
0x2b59   :  { %v10996_v39 = vpop.eup %10995 }
0x2b5a   :  { %v7973_v6 = vmul.f32 0.6931472, %v10996_v39  ;;  %v7986_v53 = vsub.f32 %v7978_v59, %v7912_v63 }
0x2b5b   :  { %v7915_v5 = vpop.xlane.xlu1 %7914 }
0x2b5c   :  { %v7979_v20 = vadd.f32 %v7973_v6, %v13479_v30  ;;  %v7990_v30 = vsel %vm7982_vm12, %v7986_v53, 0.0 }
0x2b5d   :  { %v10998_v34 = vpop.eup %10997  ;;  %v7995_v29 = vsel %vm7994_vm14, %v7990_v30, 0.0 }
0x2b5e   :  { %v7975_v40 = vmul.f32 0.6931472, %v10998_v34  ;;  %v7987_v17 = vsub.f32 %v7979_v20, %v7915_v5 }
0x2b5f   :  { %v7921_v49 = vpop.xlane.xlu1 %7920 }
0x2b60   :  { %v7980_v43 = vadd.f32 %v7975_v40, %v13485_v37  ;;  %v7991_v54 = vsel %vm7983_vm11, %v7987_v17, 0.0 }
0x2b61   :  { %v11000_v14 = vpop.eup %10999  ;;  %v7996_v1 = vsel %vm7994_vm14, %v7991_v54, 0.0 }
0x2b62   :  { %v7988_v31 = vsub.f32 %v7980_v43, %v7918_v51  ;;  %v7977_v57 = vmul.f32 0.6931472, %v11000_v14  ;;  %v7997_v60 = vadd.f32 %v7996_v1, %v7995_v29 }
0x2b64   :  { %v7992_v62 = vsel %vm7984_vm13, %v7988_v31, 0.0  ;;  %v7981_v48 = vadd.f32 %v7977_v57, %v13491_v26 }
0x2b65   :  { %v7998_v21 = vsel %vm7994_vm14, %v7992_v62, 0.0 }
0x2b66   :  { %v7989_v37 = vsub.f32 %v7981_v48, %v7921_v49  ;;  %v7999_v16 = vadd.f32 %v7998_v21, %v7997_v60 }
0x2b68   :  { %v7993_v46 = vsel %vm7985_vm15, %v7989_v37, 0.0 }
0x2b69   :  { %v8000_v32 = vsel %vm7994_vm14, %v7993_v46, 0.0 }
0x2b6a   :  { %v8001_v2 = vadd.f32 %v8000_v32, %v7999_v16 }
0x2b6c   :  { %8002 = vadd.xlane.f32.xlu0 %v8001_v2 }
0x2bf5   :  { %v8003_v3 = vpop.xlane.xlu0 %8002 }
0x2bf6   :  { %v8004_v19 = vrot.slane %v8003_v3, 4 }
0x2bf8   :  { %v8005_v52 = vadd.f32 %v8004_v19, %v8003_v3 }
0x2bfa   :  { %v8006_v10 = vrot.slane %v8005_v52, 2 }
0x2bfc   :  { %v8007_v38 = vadd.f32 %v8006_v10, %v8005_v52 }
0x2bfe   :  { %v8008_v8 = vrot.slane %v8007_v38, 1 }
0x2c00   :  { %v8009_v61 = vadd.f32 %v8008_v8, %v8007_v38 }
0x2c02   :  { %10280 = vpush %v8009_v61 }
0x2c33   :  { %s10281_s0 = spop %10280 }
0x2c34   :  { %v8011_v26 = vstv %s10281_s0 }
0x2c35   :  { %8012 = vst [vmem:[%s13535_s18] sm:$0x1] %v8011_v26 }

</bundles_post_ra>
